<compile_context>
chip_gen: v7x
topology: tpu7x:2x2x1
jax: 0.10.0
libtpu: 0.0.40
codegen_flags: <defaults>
</compile_context>

<pallas_src>
import math

import jax
import jax.numpy as jnp
from jax import lax
from jax.experimental import pallas as pl
from jax.experimental.pallas import tpu as pltpu


def _round_up(x, m):
    return (x + m - 1) // m * m


def basic_block_kernel(x_ref, w1_ref, b1_ref, w2_ref, b2_ref, out_ref,
                       pad_s, slab_s):
    """One batch image per grid step.

    x_ref  : (1, H, W, Cp)   f32   input block (also the residual)
    w1_ref : (9*Cp, Cp)      bf16  conv1 weight * bn1 scale, K index = tap*Cp+ci
    b1_ref : (1, Cp)         f32   folded bn1 bias
    w2_ref : (9*Cp, Cp)      bf16  conv2 weight * bn2 scale
    b2_ref : (1, Cp)         f32   folded bn2 bias
    out_ref: (1, H, W, Cp)   f32
    pad_s  : (H+2, WP, Cp)   bf16  zero-framed staging buffer; interior at
                                   column offset 8 (sublane-aligned store);
                                   reused by both convs.
    slab_s : (H*Wt, 9*Cp)    bf16  im2col slab; reused by both convs.
    """
    _, H, W, Cp = x_ref.shape
    HWt = slab_s.shape[0]
    Wt = HWt // H                       # compute width, multiple of 8
    WP = pad_s.shape[1]
    LEFT = 8                            # aligned left halo: xpad col b -> LEFT-1+b

    x = x_ref[0]                        # (H, W, Cp) f32 (residual + conv1 input)

    # ---- zero frame (per grid step; regions the tap reads touch outside the
    #      interior).  All stores are sublane-aligned (offsets 0 / LEFT+W with
    #      W a multiple of 8 in standard stages).
    zrow = jnp.zeros((1, WP, Cp), pad_s.dtype)
    pad_s[0:1, :, :] = zrow
    pad_s[H + 1:H + 2, :, :] = zrow
    pad_s[1:H + 1, 0:LEFT, :] = jnp.zeros((H, LEFT, Cp), pad_s.dtype)
    pad_s[1:H + 1, LEFT + W:WP, :] = jnp.zeros((H, WP - LEFT - W, Cp),
                                               pad_s.dtype)

    def build_slab():
        # im2col: slab[h*Wt + w, (ky*3+kx)*Cp + ci] = xpad[h+ky, w+kx, ci]
        # Destination lane offset t*Cp is a multiple of 128 -> lane-dense store.
        for ky in range(3):
            for kx in range(3):
                t = ky * 3 + kx
                patch = pad_s[ky:ky + H, LEFT - 1 + kx:LEFT - 1 + kx + Wt, :]
                slab_s[:, t * Cp:(t + 1) * Cp] = patch.reshape(HWt, Cp)

    # ---- conv1 (bn1 scale pre-folded into w1) + bn1 bias + relu -------------
    pad_s[1:H + 1, LEFT:LEFT + W, :] = x.astype(pad_s.dtype)   # one f32->bf16 cast
    build_slab()
    mm1 = jnp.dot(slab_s[...], w1_ref[...],                    # K = 9*Cp, one matmul
                  preferred_element_type=jnp.float32)
    mid = jnp.maximum(mm1 + b1_ref[...], 0.0)                  # (H*Wt, Cp) f32
    mid = mid.reshape(H, Wt, Cp)

    # ---- conv2 (bn2 scale pre-folded into w2) -------------------------------
    # Only the W real columns are restaged; halo/extra columns keep their zeros.
    pad_s[1:H + 1, LEFT:LEFT + W, :] = mid[:, :W, :].astype(pad_s.dtype)
    build_slab()
    mm2 = jnp.dot(slab_s[...], w2_ref[...],
                  preferred_element_type=jnp.float32)
    y = mm2.reshape(H, Wt, Cp)[:, :W, :]                       # drop compute-pad cols

    # ---- bn2 bias + residual + relu, single fused lane-dense store ----------
    out_ref[0] = jnp.maximum(y + b2_ref[...] + x, 0.0).astype(out_ref.dtype)


def basic_block_pallas(x_nchw, w1_hwio, bn1, w2_hwio, bn2, eps=1e-5,
                       compute_dtype=jnp.bfloat16):
    """Fused BasicBlock forward.  x_nchw: (N, C, H, W).  Returns NCHW."""
    N, C, H, W = x_nchw.shape
    assert w1_hwio.shape == (3, 3, C, C) and w2_hwio.shape == (3, 3, C, C), (
        "BasicBlock without downsample requires inplanes == planes (stride=1)")

    LANE = 128
    Cp = _round_up(C, LANE)       # lane-dense channel width
    Wt = _round_up(W, 8)          # sublane-dense compute width
    WP = Wt + 16                  # 8-col aligned left halo + >=8-col right region

    # NCHW -> NHWC + zero channel pad (layout plumbing, fused by XLA).
    x_nhwc = jnp.transpose(x_nchw, (0, 2, 3, 1)).astype(jnp.float32)
    if Cp != C:
        x_nhwc = jnp.pad(x_nhwc, ((0, 0), (0, 0), (0, 0), (0, Cp - C)))

    # Fold eval-mode BatchNorm: the scale goes into the conv weights (once, in
    # the wrapper); only the per-channel bias stays in-kernel.  Weight laid out
    # as a single (9*Cp, Cp) bf16 matrix with K index = (ky*3+kx)*Cp + cin.
    def fold(w_hwio, bn):
        gamma, beta, mean, var = bn
        s = gamma / jnp.sqrt(var + eps)
        bias = jnp.pad((beta - mean * s).astype(jnp.float32),
                       (0, Cp - C)).reshape(1, Cp)
        w = w_hwio * s[None, None, None, :]
        w = jnp.pad(w, ((0, 0), (0, 0), (0, Cp - C), (0, Cp - C)))
        return w.reshape(9 * Cp, Cp).astype(compute_dtype), bias

    w1k, b1 = fold(w1_hwio, bn1)          # (9*Cp, Cp) bf16, (1, Cp) f32
    w2k, b2 = fold(w2_hwio, bn2)

    # VMEM budget from the actual footprint (no flat 48 MiB; v7x has 64 MiB).
    def nbytes(shape, dtype):
        return math.prod(shape) * jnp.dtype(dtype).itemsize

    footprint = (
        2 * nbytes((1, H, W, Cp), jnp.float32)          # input block (dbl-buf)
        + 2 * nbytes((1, H, W, Cp), jnp.float32)        # output block (dbl-buf)
        + 2 * 2 * nbytes((9 * Cp, Cp), compute_dtype)   # both weights
        + 2 * 2 * nbytes((1, Cp), jnp.float32)          # both biases
        + nbytes((H + 2, WP, Cp), compute_dtype)        # padded frame scratch
        + nbytes((H * Wt, 9 * Cp), compute_dtype)       # im2col slab scratch
    )
    vmem_limit = min(max(int(footprint * 1.5) + (4 << 20), 16 << 20), 64 << 20)

    compiler_params = pltpu.CompilerParams(
        dimension_semantics=("parallel",),   # megacore: images split across TCs
        vmem_limit_bytes=vmem_limit,
    )

    out_nhwc = pl.pallas_call(
        basic_block_kernel,
        out_shape=jax.ShapeDtypeStruct((N, H, W, Cp), jnp.float32),
        grid=(N,),                           # one image per grid step, pipelined
        in_specs=[
            pl.BlockSpec((1, H, W, Cp), lambda n: (n, 0, 0, 0)),
            pl.BlockSpec((9 * Cp, Cp), lambda n: (0, 0)),   # VMEM-resident
            pl.BlockSpec((1, Cp), lambda n: (0, 0)),
            pl.BlockSpec((9 * Cp, Cp), lambda n: (0, 0)),
            pl.BlockSpec((1, Cp), lambda n: (0, 0)),
        ],
        out_specs=pl.BlockSpec((1, H, W, Cp), lambda n: (n, 0, 0, 0)),
        scratch_shapes=[
            pltpu.VMEM((H + 2, WP, Cp), compute_dtype),     # padded frame (reused)
            pltpu.VMEM((H * Wt, 9 * Cp), compute_dtype),    # im2col slab (reused)
        ],
        compiler_params=compiler_params,
    )(x_nhwc, w1k, b1, w2k, b2)

    out = out_nhwc[..., :C]                 # drop channel padding
    return jnp.transpose(out, (0, 3, 1, 2)).astype(x_nchw.dtype)


def basic_block_reference(x_nchw, w1_hwio, bn1, w2_hwio, bn2, eps=1e-5,
                          conv_dtype=jnp.float32):
    """Plain-JAX reference.  With conv_dtype=bf16 it applies the same rounding
    to conv inputs / folded weights as the kernel (bf16 x bf16 products are
    exact in f32), so it matches the kernel up to accumulation order."""
    x = jnp.transpose(x_nchw, (0, 2, 3, 1)).astype(jnp.float32)

    def fold(w_hwio, bn):
        gamma, beta, mean, var = bn
        s = gamma / jnp.sqrt(var + eps)
        w = (w_hwio * s[None, None, None, :]).astype(conv_dtype).astype(jnp.float32)
        return w, (beta - mean * s).astype(jnp.float32)

    def conv(v, w):
        return lax.conv_general_dilated(
            v.astype(conv_dtype).astype(jnp.float32), w,
            window_strides=(1, 1), padding=((1, 1), (1, 1)),
            dimension_numbers=("NHWC", "HWIO", "NHWC"),
            precision=lax.Precision.HIGHEST)

    w1f, b1 = fold(w1_hwio, bn1)
    w2f, b2 = fold(w2_hwio, bn2)
    out = jax.nn.relu(conv(x, w1f) + b1)
    out = conv(out, w2f) + b2
    out = jax.nn.relu(out + x)
    return jnp.transpose(out, (0, 3, 1, 2))


if __name__ == "__main__":
    key = jax.random.PRNGKey(0)
    N, C, H, W = 2, 4, 16, 16          # inplanes == planes == 4, stride = 1
    ks = jax.random.split(key, 8)

    x = jax.random.normal(ks[0], (N, C, H, W), jnp.float32)
    w1 = jax.random.normal(ks[1], (3, 3, C, C), jnp.float32) * 0.2   # HWIO
    w2 = jax.random.normal(ks[2], (3, 3, C, C), jnp.float32) * 0.2   # HWIO
    # BatchNorm params (gamma, beta, running_mean, running_var) — eval mode
    bn1 = (jax.random.uniform(ks[3], (C,), minval=0.5, maxval=1.5),
           jax.random.normal(ks[4], (C,)) * 0.1,
           jax.random.normal(ks[5], (C,)) * 0.1,
           jax.random.uniform(ks[6], (C,), minval=0.5, maxval=1.5))
    bn2 = (jnp.ones((C,)), jnp.zeros((C,)),
           jax.random.normal(ks[7], (C,)) * 0.1,
           jnp.ones((C,)) * 0.9)

    out = jax.block_until_ready(basic_block_pallas(x, w1, bn1, w2, bn2))
    assert out.shape == (N, C, H, W)

    # Tight check against a reference that mirrors the kernel's bf16 rounding
    # of conv inputs / folded weights (products exact in f32; only accumulation
    # order differs).
    ref_bf16 = basic_block_reference(x, w1, bn1, w2, bn2,
                                     conv_dtype=jnp.bfloat16)
    assert jnp.allclose(out, ref_bf16, atol=1e-2, rtol=1e-2), \
        "mismatch vs bf16-consistent reference"

    # Loose sanity check against full-f32 module semantics (difference is the
    # standard bf16 conv-input rounding of mixed-precision MXU execution).
    ref_f32 = basic_block_reference(x, w1, bn1, w2, bn2,
                                    conv_dtype=jnp.float32)
    assert jnp.allclose(out, ref_f32, atol=0.2, rtol=0.1), \
        "mismatch vs f32 reference"

    print("KERNEL_OK")
</pallas_src>

<mosaic_0001>
module attributes {stable_mosaic.version = 11 : i64} {
  func.func @basic_block_kernel(%arg0: i32, %arg1: memref<1x16x16x128xf32, #tpu.memory_space<vmem>>, %arg2: memref<1152x128xbf16, #tpu.memory_space<vmem>>, %arg3: memref<1x128xf32, #tpu.memory_space<vmem>>, %arg4: memref<1152x128xbf16, #tpu.memory_space<vmem>>, %arg5: memref<1x128xf32, #tpu.memory_space<vmem>>, %arg6: memref<1x16x16x128xf32, #tpu.memory_space<vmem>>, %arg7: memref<18x32x128xbf16, #tpu.memory_space<vmem>>, %arg8: memref<256x1152xbf16, #tpu.memory_space<vmem>>) attributes {dimension_semantics = [#tpu.dimension_semantics<parallel>], iteration_bounds = array<i64: 2>, scalar_prefetch = 0 : i64, scratch_operands = 2 : i64, tpu.core_type = #tpu.core_type<tc>, window_params = [{transform_indices = @transform_0, window_bounds = array<i64: 1, 16, 16, 128>}, {pipeline_mode = #tpu.pipeline_mode<synchronous>, transform_indices = @transform_1, window_bounds = array<i64: 1152, 128>}, {pipeline_mode = #tpu.pipeline_mode<synchronous>, transform_indices = @transform_2, window_bounds = array<i64: 1, 128>}, {pipeline_mode = #tpu.pipeline_mode<synchronous>, transform_indices = @transform_3, window_bounds = array<i64: 1152, 128>}, {pipeline_mode = #tpu.pipeline_mode<synchronous>, transform_indices = @transform_4, window_bounds = array<i64: 1, 128>}, {transform_indices = @transform_5, window_bounds = array<i64: 1, 16, 16, 128>}]} {
    %c0 = arith.constant 0 : index
    %c0_0 = arith.constant 0 : index
    %c0_1 = arith.constant 0 : index
    %c0_2 = arith.constant 0 : index
    %0 = vector.load %arg1[%c0, %c0_0, %c0_1, %c0_2] : memref<1x16x16x128xf32, #tpu.memory_space<vmem>>, vector<1x16x16x128xf32>
    %1 = vector.shape_cast %0 : vector<1x16x16x128xf32> to vector<16x16x128xf32>
    %cst = arith.constant 0.000000e+00 : bf16
    %2 = vector.broadcast %cst : bf16 to vector<1x32x128xbf16>
    %c0_3 = arith.constant 0 : index
    %c0_4 = arith.constant 0 : index
    %c0_5 = arith.constant 0 : index
    %3 = vector.load %arg7[%c0_3, %c0_4, %c0_5] : memref<18x32x128xbf16, #tpu.memory_space<vmem>>, vector<1x32x128xbf16>
    tpu.vector_store %arg7[%c0_3, %c0_4, %c0_5], %2 {strides = array<i32>} : memref<18x32x128xbf16, #tpu.memory_space<vmem>>, vector<1x32x128xbf16>,
    %c17 = arith.constant 17 : index
    %c0_6 = arith.constant 0 : index
    %c0_7 = arith.constant 0 : index
    %4 = vector.load %arg7[%c17, %c0_6, %c0_7] : memref<18x32x128xbf16, #tpu.memory_space<vmem>>, vector<1x32x128xbf16>
    tpu.vector_store %arg7[%c17, %c0_6, %c0_7], %2 {strides = array<i32>} : memref<18x32x128xbf16, #tpu.memory_space<vmem>>, vector<1x32x128xbf16>,
    %cst_8 = arith.constant 0.000000e+00 : bf16
    %5 = vector.broadcast %cst_8 : bf16 to vector<16x8x128xbf16>
    %c1 = arith.constant 1 : index
    %c0_9 = arith.constant 0 : index
    %c0_10 = arith.constant 0 : index
    %6 = vector.load %arg7[%c1, %c0_9, %c0_10] : memref<18x32x128xbf16, #tpu.memory_space<vmem>>, vector<16x8x128xbf16>
    tpu.vector_store %arg7[%c1, %c0_9, %c0_10], %5 {strides = array<i32>} : memref<18x32x128xbf16, #tpu.memory_space<vmem>>, vector<16x8x128xbf16>,
    %cst_11 = arith.constant 0.000000e+00 : bf16
    %7 = vector.broadcast %cst_11 : bf16 to vector<16x8x128xbf16>
    %c1_12 = arith.constant 1 : index
    %c24 = arith.constant 24 : index
    %c0_13 = arith.constant 0 : index
    %8 = vector.load %arg7[%c1_12, %c24, %c0_13] : memref<18x32x128xbf16, #tpu.memory_space<vmem>>, vector<16x8x128xbf16>
    tpu.vector_store %arg7[%c1_12, %c24, %c0_13], %7 {strides = array<i32>} : memref<18x32x128xbf16, #tpu.memory_space<vmem>>, vector<16x8x128xbf16>,
    %9 = arith.truncf %1 : vector<16x16x128xf32> to vector<16x16x128xbf16>
    %c1_14 = arith.constant 1 : index
    %c8 = arith.constant 8 : index
    %c0_15 = arith.constant 0 : index
    %10 = vector.load %arg7[%c1_14, %c8, %c0_15] : memref<18x32x128xbf16, #tpu.memory_space<vmem>>, vector<16x16x128xbf16>
    tpu.vector_store %arg7[%c1_14, %c8, %c0_15], %9 {strides = array<i32>} : memref<18x32x128xbf16, #tpu.memory_space<vmem>>, vector<16x16x128xbf16>,
    %c0_16 = arith.constant 0 : index
    %c7 = arith.constant 7 : index
    %c0_17 = arith.constant 0 : index
    %11 = vector.load %arg7[%c0_16, %c7, %c0_17] : memref<18x32x128xbf16, #tpu.memory_space<vmem>>, vector<16x16x128xbf16>
    %12 = vector.shape_cast %11 : vector<16x16x128xbf16> to vector<256x128xbf16>
    %c0_18 = arith.constant 0 : index
    %c0_19 = arith.constant 0 : index
    %13 = vector.load %arg8[%c0_18, %c0_19] : memref<256x1152xbf16, #tpu.memory_space<vmem>>, vector<256x128xbf16>
    tpu.vector_store %arg8[%c0_18, %c0_19], %12 {strides = array<i32>} : memref<256x1152xbf16, #tpu.memory_space<vmem>>, vector<256x128xbf16>,
    %c0_20 = arith.constant 0 : index
    %c8_21 = arith.constant 8 : index
    %c0_22 = arith.constant 0 : index
    %14 = vector.load %arg7[%c0_20, %c8_21, %c0_22] : memref<18x32x128xbf16, #tpu.memory_space<vmem>>, vector<16x16x128xbf16>
    %15 = vector.shape_cast %14 : vector<16x16x128xbf16> to vector<256x128xbf16>
    %c0_23 = arith.constant 0 : index
    %c128 = arith.constant 128 : index
    %16 = vector.load %arg8[%c0_23, %c128] : memref<256x1152xbf16, #tpu.memory_space<vmem>>, vector<256x128xbf16>
    tpu.vector_store %arg8[%c0_23, %c128], %15 {strides = array<i32>} : memref<256x1152xbf16, #tpu.memory_space<vmem>>, vector<256x128xbf16>,
    %c0_24 = arith.constant 0 : index
    %c9 = arith.constant 9 : index
    %c0_25 = arith.constant 0 : index
    %17 = vector.load %arg7[%c0_24, %c9, %c0_25] : memref<18x32x128xbf16, #tpu.memory_space<vmem>>, vector<16x16x128xbf16>
    %18 = vector.shape_cast %17 : vector<16x16x128xbf16> to vector<256x128xbf16>
    %c0_26 = arith.constant 0 : index
    %c256 = arith.constant 256 : index
    %19 = vector.load %arg8[%c0_26, %c256] : memref<256x1152xbf16, #tpu.memory_space<vmem>>, vector<256x128xbf16>
    tpu.vector_store %arg8[%c0_26, %c256], %18 {strides = array<i32>} : memref<256x1152xbf16, #tpu.memory_space<vmem>>, vector<256x128xbf16>,
    %c1_27 = arith.constant 1 : index
    %c7_28 = arith.constant 7 : index
    %c0_29 = arith.constant 0 : index
    %20 = vector.load %arg7[%c1_27, %c7_28, %c0_29] : memref<18x32x128xbf16, #tpu.memory_space<vmem>>, vector<16x16x128xbf16>
    %21 = vector.shape_cast %20 : vector<16x16x128xbf16> to vector<256x128xbf16>
    %c0_30 = arith.constant 0 : index
    %c384 = arith.constant 384 : index
    %22 = vector.load %arg8[%c0_30, %c384] : memref<256x1152xbf16, #tpu.memory_space<vmem>>, vector<256x128xbf16>
    tpu.vector_store %arg8[%c0_30, %c384], %21 {strides = array<i32>} : memref<256x1152xbf16, #tpu.memory_space<vmem>>, vector<256x128xbf16>,
    %c1_31 = arith.constant 1 : index
    %c8_32 = arith.constant 8 : index
    %c0_33 = arith.constant 0 : index
    %23 = vector.load %arg7[%c1_31, %c8_32, %c0_33] : memref<18x32x128xbf16, #tpu.memory_space<vmem>>, vector<16x16x128xbf16>
    %24 = vector.shape_cast %23 : vector<16x16x128xbf16> to vector<256x128xbf16>
    %c0_34 = arith.constant 0 : index
    %c512 = arith.constant 512 : index
    %25 = vector.load %arg8[%c0_34, %c512] : memref<256x1152xbf16, #tpu.memory_space<vmem>>, vector<256x128xbf16>
    tpu.vector_store %arg8[%c0_34, %c512], %24 {strides = array<i32>} : memref<256x1152xbf16, #tpu.memory_space<vmem>>, vector<256x128xbf16>,
    %c1_35 = arith.constant 1 : index
    %c9_36 = arith.constant 9 : index
    %c0_37 = arith.constant 0 : index
    %26 = vector.load %arg7[%c1_35, %c9_36, %c0_37] : memref<18x32x128xbf16, #tpu.memory_space<vmem>>, vector<16x16x128xbf16>
    %27 = vector.shape_cast %26 : vector<16x16x128xbf16> to vector<256x128xbf16>
    %c0_38 = arith.constant 0 : index
    %c640 = arith.constant 640 : index
    %28 = vector.load %arg8[%c0_38, %c640] : memref<256x1152xbf16, #tpu.memory_space<vmem>>, vector<256x128xbf16>
    tpu.vector_store %arg8[%c0_38, %c640], %27 {strides = array<i32>} : memref<256x1152xbf16, #tpu.memory_space<vmem>>, vector<256x128xbf16>,
    %c2 = arith.constant 2 : index
    %c7_39 = arith.constant 7 : index
    %c0_40 = arith.constant 0 : index
    %29 = vector.load %arg7[%c2, %c7_39, %c0_40] : memref<18x32x128xbf16, #tpu.memory_space<vmem>>, vector<16x16x128xbf16>
    %30 = vector.shape_cast %29 : vector<16x16x128xbf16> to vector<256x128xbf16>
    %c0_41 = arith.constant 0 : index
    %c768 = arith.constant 768 : index
    %31 = vector.load %arg8[%c0_41, %c768] : memref<256x1152xbf16, #tpu.memory_space<vmem>>, vector<256x128xbf16>
    tpu.vector_store %arg8[%c0_41, %c768], %30 {strides = array<i32>} : memref<256x1152xbf16, #tpu.memory_space<vmem>>, vector<256x128xbf16>,
    %c2_42 = arith.constant 2 : index
    %c8_43 = arith.constant 8 : index
    %c0_44 = arith.constant 0 : index
    %32 = vector.load %arg7[%c2_42, %c8_43, %c0_44] : memref<18x32x128xbf16, #tpu.memory_space<vmem>>, vector<16x16x128xbf16>
    %33 = vector.shape_cast %32 : vector<16x16x128xbf16> to vector<256x128xbf16>
    %c0_45 = arith.constant 0 : index
    %c896 = arith.constant 896 : index
    %34 = vector.load %arg8[%c0_45, %c896] : memref<256x1152xbf16, #tpu.memory_space<vmem>>, vector<256x128xbf16>
    tpu.vector_store %arg8[%c0_45, %c896], %33 {strides = array<i32>} : memref<256x1152xbf16, #tpu.memory_space<vmem>>, vector<256x128xbf16>,
    %c2_46 = arith.constant 2 : index
    %c9_47 = arith.constant 9 : index
    %c0_48 = arith.constant 0 : index
    %35 = vector.load %arg7[%c2_46, %c9_47, %c0_48] : memref<18x32x128xbf16, #tpu.memory_space<vmem>>, vector<16x16x128xbf16>
    %36 = vector.shape_cast %35 : vector<16x16x128xbf16> to vector<256x128xbf16>
    %c0_49 = arith.constant 0 : index
    %c1024 = arith.constant 1024 : index
    %37 = vector.load %arg8[%c0_49, %c1024] : memref<256x1152xbf16, #tpu.memory_space<vmem>>, vector<256x128xbf16>
    tpu.vector_store %arg8[%c0_49, %c1024], %36 {strides = array<i32>} : memref<256x1152xbf16, #tpu.memory_space<vmem>>, vector<256x128xbf16>,
    %c0_50 = arith.constant 0 : index
    %c0_51 = arith.constant 0 : index
    %38 = vector.load %arg8[%c0_50, %c0_51] : memref<256x1152xbf16, #tpu.memory_space<vmem>>, vector<256x1152xbf16>
    %c0_52 = arith.constant 0 : index
    %c0_53 = arith.constant 0 : index
    %39 = vector.load %arg2[%c0_52, %c0_53] : memref<1152x128xbf16, #tpu.memory_space<vmem>>, vector<1152x128xbf16>
    %cst_54 = arith.constant dense<0.000000e+00> : vector<256x128xf32>
    %40 = tpu.matmul %38, %39, %cst_54 {dimension_numbers = #tpu.dot_dimension_numbers<[1], [0], [0], [1], [0, 0, 1, 1], [], []>} : vector<256x1152xbf16>, vector<1152x128xbf16>, vector<256x128xf32> -> vector<256x128xf32>
    %c0_55 = arith.constant 0 : index
    %c0_56 = arith.constant 0 : index
    %41 = vector.load %arg3[%c0_55, %c0_56] : memref<1x128xf32, #tpu.memory_space<vmem>>, vector<1x128xf32>
    %42 = vector.broadcast %41 : vector<1x128xf32> to vector<256x128xf32>
    %43 = arith.addf %40, %42 : vector<256x128xf32>
    %cst_57 = arith.constant 0.000000e+00 : f32
    %44 = vector.broadcast %cst_57 : f32 to vector<256x128xf32>
    %45 = arith.maximumf %43, %44 : vector<256x128xf32>
    %46 = vector.shape_cast %45 : vector<256x128xf32> to vector<16x16x128xf32>
    %47 = arith.truncf %46 : vector<16x16x128xf32> to vector<16x16x128xbf16>
    %c1_58 = arith.constant 1 : index
    %c8_59 = arith.constant 8 : index
    %c0_60 = arith.constant 0 : index
    %48 = vector.load %arg7[%c1_58, %c8_59, %c0_60] : memref<18x32x128xbf16, #tpu.memory_space<vmem>>, vector<16x16x128xbf16>
    tpu.vector_store %arg7[%c1_58, %c8_59, %c0_60], %47 {strides = array<i32>} : memref<18x32x128xbf16, #tpu.memory_space<vmem>>, vector<16x16x128xbf16>,
    %c0_61 = arith.constant 0 : index
    %c7_62 = arith.constant 7 : index
    %c0_63 = arith.constant 0 : index
    %49 = vector.load %arg7[%c0_61, %c7_62, %c0_63] : memref<18x32x128xbf16, #tpu.memory_space<vmem>>, vector<16x16x128xbf16>
    %50 = vector.shape_cast %49 : vector<16x16x128xbf16> to vector<256x128xbf16>
    %c0_64 = arith.constant 0 : index
    %c0_65 = arith.constant 0 : index
    %51 = vector.load %arg8[%c0_64, %c0_65] : memref<256x1152xbf16, #tpu.memory_space<vmem>>, vector<256x128xbf16>
    tpu.vector_store %arg8[%c0_64, %c0_65], %50 {strides = array<i32>} : memref<256x1152xbf16, #tpu.memory_space<vmem>>, vector<256x128xbf16>,
    %c0_66 = arith.constant 0 : index
    %c8_67 = arith.constant 8 : index
    %c0_68 = arith.constant 0 : index
    %52 = vector.load %arg7[%c0_66, %c8_67, %c0_68] : memref<18x32x128xbf16, #tpu.memory_space<vmem>>, vector<16x16x128xbf16>
    %53 = vector.shape_cast %52 : vector<16x16x128xbf16> to vector<256x128xbf16>
    %c0_69 = arith.constant 0 : index
    %c128_70 = arith.constant 128 : index
    %54 = vector.load %arg8[%c0_69, %c128_70] : memref<256x1152xbf16, #tpu.memory_space<vmem>>, vector<256x128xbf16>
    tpu.vector_store %arg8[%c0_69, %c128_70], %53 {strides = array<i32>} : memref<256x1152xbf16, #tpu.memory_space<vmem>>, vector<256x128xbf16>,
    %c0_71 = arith.constant 0 : index
    %c9_72 = arith.constant 9 : index
    %c0_73 = arith.constant 0 : index
    %55 = vector.load %arg7[%c0_71, %c9_72, %c0_73] : memref<18x32x128xbf16, #tpu.memory_space<vmem>>, vector<16x16x128xbf16>
    %56 = vector.shape_cast %55 : vector<16x16x128xbf16> to vector<256x128xbf16>
    %c0_74 = arith.constant 0 : index
    %c256_75 = arith.constant 256 : index
    %57 = vector.load %arg8[%c0_74, %c256_75] : memref<256x1152xbf16, #tpu.memory_space<vmem>>, vector<256x128xbf16>
    tpu.vector_store %arg8[%c0_74, %c256_75], %56 {strides = array<i32>} : memref<256x1152xbf16, #tpu.memory_space<vmem>>, vector<256x128xbf16>,
    %c1_76 = arith.constant 1 : index
    %c7_77 = arith.constant 7 : index
    %c0_78 = arith.constant 0 : index
    %58 = vector.load %arg7[%c1_76, %c7_77, %c0_78] : memref<18x32x128xbf16, #tpu.memory_space<vmem>>, vector<16x16x128xbf16>
    %59 = vector.shape_cast %58 : vector<16x16x128xbf16> to vector<256x128xbf16>
    %c0_79 = arith.constant 0 : index
    %c384_80 = arith.constant 384 : index
    %60 = vector.load %arg8[%c0_79, %c384_80] : memref<256x1152xbf16, #tpu.memory_space<vmem>>, vector<256x128xbf16>
    tpu.vector_store %arg8[%c0_79, %c384_80], %59 {strides = array<i32>} : memref<256x1152xbf16, #tpu.memory_space<vmem>>, vector<256x128xbf16>,
    %c1_81 = arith.constant 1 : index
    %c8_82 = arith.constant 8 : index
    %c0_83 = arith.constant 0 : index
    %61 = vector.load %arg7[%c1_81, %c8_82, %c0_83] : memref<18x32x128xbf16, #tpu.memory_space<vmem>>, vector<16x16x128xbf16>
    %62 = vector.shape_cast %61 : vector<16x16x128xbf16> to vector<256x128xbf16>
    %c0_84 = arith.constant 0 : index
    %c512_85 = arith.constant 512 : index
    %63 = vector.load %arg8[%c0_84, %c512_85] : memref<256x1152xbf16, #tpu.memory_space<vmem>>, vector<256x128xbf16>
    tpu.vector_store %arg8[%c0_84, %c512_85], %62 {strides = array<i32>} : memref<256x1152xbf16, #tpu.memory_space<vmem>>, vector<256x128xbf16>,
    %c1_86 = arith.constant 1 : index
    %c9_87 = arith.constant 9 : index
    %c0_88 = arith.constant 0 : index
    %64 = vector.load %arg7[%c1_86, %c9_87, %c0_88] : memref<18x32x128xbf16, #tpu.memory_space<vmem>>, vector<16x16x128xbf16>
    %65 = vector.shape_cast %64 : vector<16x16x128xbf16> to vector<256x128xbf16>
    %c0_89 = arith.constant 0 : index
    %c640_90 = arith.constant 640 : index
    %66 = vector.load %arg8[%c0_89, %c640_90] : memref<256x1152xbf16, #tpu.memory_space<vmem>>, vector<256x128xbf16>
    tpu.vector_store %arg8[%c0_89, %c640_90], %65 {strides = array<i32>} : memref<256x1152xbf16, #tpu.memory_space<vmem>>, vector<256x128xbf16>,
    %c2_91 = arith.constant 2 : index
    %c7_92 = arith.constant 7 : index
    %c0_93 = arith.constant 0 : index
    %67 = vector.load %arg7[%c2_91, %c7_92, %c0_93] : memref<18x32x128xbf16, #tpu.memory_space<vmem>>, vector<16x16x128xbf16>
    %68 = vector.shape_cast %67 : vector<16x16x128xbf16> to vector<256x128xbf16>
    %c0_94 = arith.constant 0 : index
    %c768_95 = arith.constant 768 : index
    %69 = vector.load %arg8[%c0_94, %c768_95] : memref<256x1152xbf16, #tpu.memory_space<vmem>>, vector<256x128xbf16>
    tpu.vector_store %arg8[%c0_94, %c768_95], %68 {strides = array<i32>} : memref<256x1152xbf16, #tpu.memory_space<vmem>>, vector<256x128xbf16>,
    %c2_96 = arith.constant 2 : index
    %c8_97 = arith.constant 8 : index
    %c0_98 = arith.constant 0 : index
    %70 = vector.load %arg7[%c2_96, %c8_97, %c0_98] : memref<18x32x128xbf16, #tpu.memory_space<vmem>>, vector<16x16x128xbf16>
    %71 = vector.shape_cast %70 : vector<16x16x128xbf16> to vector<256x128xbf16>
    %c0_99 = arith.constant 0 : index
    %c896_100 = arith.constant 896 : index
    %72 = vector.load %arg8[%c0_99, %c896_100] : memref<256x1152xbf16, #tpu.memory_space<vmem>>, vector<256x128xbf16>
    tpu.vector_store %arg8[%c0_99, %c896_100], %71 {strides = array<i32>} : memref<256x1152xbf16, #tpu.memory_space<vmem>>, vector<256x128xbf16>,
    %c2_101 = arith.constant 2 : index
    %c9_102 = arith.constant 9 : index
    %c0_103 = arith.constant 0 : index
    %73 = vector.load %arg7[%c2_101, %c9_102, %c0_103] : memref<18x32x128xbf16, #tpu.memory_space<vmem>>, vector<16x16x128xbf16>
    %74 = vector.shape_cast %73 : vector<16x16x128xbf16> to vector<256x128xbf16>
    %c0_104 = arith.constant 0 : index
    %c1024_105 = arith.constant 1024 : index
    %75 = vector.load %arg8[%c0_104, %c1024_105] : memref<256x1152xbf16, #tpu.memory_space<vmem>>, vector<256x128xbf16>
    tpu.vector_store %arg8[%c0_104, %c1024_105], %74 {strides = array<i32>} : memref<256x1152xbf16, #tpu.memory_space<vmem>>, vector<256x128xbf16>,
    %c0_106 = arith.constant 0 : index
    %c0_107 = arith.constant 0 : index
    %76 = vector.load %arg8[%c0_106, %c0_107] : memref<256x1152xbf16, #tpu.memory_space<vmem>>, vector<256x1152xbf16>
    %c0_108 = arith.constant 0 : index
    %c0_109 = arith.constant 0 : index
    %77 = vector.load %arg4[%c0_108, %c0_109] : memref<1152x128xbf16, #tpu.memory_space<vmem>>, vector<1152x128xbf16>
    %cst_110 = arith.constant dense<0.000000e+00> : vector<256x128xf32>
    %78 = tpu.matmul %76, %77, %cst_110 {dimension_numbers = #tpu.dot_dimension_numbers<[1], [0], [0], [1], [0, 0, 1, 1], [], []>} : vector<256x1152xbf16>, vector<1152x128xbf16>, vector<256x128xf32> -> vector<256x128xf32>
    %79 = vector.shape_cast %78 : vector<256x128xf32> to vector<16x16x128xf32>
    %c0_111 = arith.constant 0 : index
    %c0_112 = arith.constant 0 : index
    %80 = vector.load %arg5[%c0_111, %c0_112] : memref<1x128xf32, #tpu.memory_space<vmem>>, vector<1x128xf32>
    %81 = vector.shape_cast %80 : vector<1x128xf32> to vector<1x1x128xf32>
    %82 = vector.broadcast %81 : vector<1x1x128xf32> to vector<16x16x128xf32>
    %83 = arith.addf %79, %82 : vector<16x16x128xf32>
    %84 = arith.addf %83, %1 : vector<16x16x128xf32>
    %cst_113 = arith.constant 0.000000e+00 : f32
    %85 = vector.broadcast %cst_113 : f32 to vector<16x16x128xf32>
    %86 = arith.maximumf %84, %85 : vector<16x16x128xf32>
    %c0_114 = arith.constant 0 : index
    %c0_115 = arith.constant 0 : index
    %c0_116 = arith.constant 0 : index
    %c0_117 = arith.constant 0 : index
    %87 = vector.load %arg6[%c0_114, %c0_115, %c0_116, %c0_117] : memref<1x16x16x128xf32, #tpu.memory_space<vmem>>, vector<1x16x16x128xf32>
    %88 = vector.shape_cast %87 : vector<1x16x16x128xf32> to vector<16x16x128xf32>
    %89 = vector.shape_cast %86 : vector<16x16x128xf32> to vector<1x16x16x128xf32>
    tpu.vector_store %arg6[%c0_114, %c0_115, %c0_116, %c0_117], %89 {strides = array<i32>} : memref<1x16x16x128xf32, #tpu.memory_space<vmem>>, vector<1x16x16x128xf32>,
    return
  }
  func.func @transform_0(%arg0: i32) -> (i32, i32, i32, i32) {
    %c0_i32 = arith.constant 0 : i32
    %c0_i32_0 = arith.constant 0 : i32
    %c0_i32_1 = arith.constant 0 : i32
    %c0_i32_2 = arith.constant 0 : i32
    return %arg0, %c0_i32, %c0_i32_0, %c0_i32_1 : i32, i32, i32, i32
  }
  func.func @transform_1(%arg0: i32) -> (i32, i32) {
    %c0_i32 = arith.constant 0 : i32
    %c0_i32_0 = arith.constant 0 : i32
    %c0_i32_1 = arith.constant 0 : i32
    return %c0_i32, %c0_i32_0 : i32, i32
  }
  func.func @transform_2(%arg0: i32) -> (i32, i32) {
    %c0_i32 = arith.constant 0 : i32
    %c0_i32_0 = arith.constant 0 : i32
    %c0_i32_1 = arith.constant 0 : i32
    return %c0_i32, %c0_i32_0 : i32, i32
  }
  func.func @transform_3(%arg0: i32) -> (i32, i32) {
    %c0_i32 = arith.constant 0 : i32
    %c0_i32_0 = arith.constant 0 : i32
    %c0_i32_1 = arith.constant 0 : i32
    return %c0_i32, %c0_i32_0 : i32, i32
  }
  func.func @transform_4(%arg0: i32) -> (i32, i32) {
    %c0_i32 = arith.constant 0 : i32
    %c0_i32_0 = arith.constant 0 : i32
    %c0_i32_1 = arith.constant 0 : i32
    return %c0_i32, %c0_i32_0 : i32, i32
  }
  func.func @transform_5(%arg0: i32) -> (i32, i32, i32, i32) {
    %c0_i32 = arith.constant 0 : i32
    %c0_i32_0 = arith.constant 0 : i32
    %c0_i32_1 = arith.constant 0 : i32
    %c0_i32_2 = arith.constant 0 : i32
    return %arg0, %c0_i32, %c0_i32_0, %c0_i32_1 : i32, i32, i32, i32
  }
}

</mosaic_0001>

<bundles_post_ra>
// kernel: tpu_custom_call.1
= control target key start
LH: loop header
LB: loop body
LE: loop exit
PB: predicated region body
PF: predicated region fallthrough
CT: control target
= control target key end

     0   :  { %10 = vsyncpa [#allocation5], 0  ;;  %s12088_s0 = inlined_call_operand.hbm [shape: f32[2,16,16,128], index: 0, kind: input, shape index: {}]   ;;  %s12089_s1 = inlined_call_operand.hbm [shape: bf16[1152,128], index: 1, kind: input, shape index: {}]   ;;  %s12090_s2 = inlined_call_operand.vmem [shape: f32[1,128], index: 2, kind: input, shape index: {}]   ;;  %s12091_s3 = inlined_call_operand.hbm [shape: bf16[1152,128], index: 3, kind: input, shape index: {}]   ;;  %s12092_s4 = inlined_call_operand.vmem [shape: f32[1,128], index: 4, kind: input, shape index: {}]   ;;  %s12093_s5 = inlined_call_operand.hbm [shape: f32[2,16,16,128], index: 5, kind: output, shape index: {}]  }
   0x1   :  { %12 = vsyncpa [#allocation5 + $0x1], 0 }
   0x2   :  { %13 = vsyncpa [#allocation8], 0 }
   0x3   :  { %14 = vsyncpa [#allocation6], 0 }
   0x4   :  { %16 = vsyncpa [#allocation6 + $0x1], 0  ;;  %s10422_s18 = smov 0   ;;  %s10424_s19 = smov 0  }
   0x5   :  { %s10426_s20 = smov 0   ;;  %s10428_s21 = smov 0  }
   0x6 LB: > { %s10443_s22 = sadd.s32 4294967295, %s10379_s21   ;;  %s8765_s23 = sadd.s32 4294967294, %s10379_s21   ;;  %s10379_s21 = sphi %s10428_s21, %s12131_s21   ;;  %s10375_s20 = sphi %s10426_s20, %s12130_s20   ;;  %s10371_s19 = sphi %s10424_s19, %s12129_s19   ;;  %s10367_s18 = sphi %s10422_s18, %s12128_s18  }
   0x7   : > { %p42_p0 = scmp.ne.s32.totalorder %s10371_s19, %s10367_s18  ;;  %p12094_p1 = scmp.eq.s32.totalorder %s10443_s22, 0 }
   0x8   : > { %p156_p3 = scmp.eq.s32.totalorder %s8765_s23, 1  ;;  %p8766_p5 = scmp.ge.s32.totalorder %s10379_s21, 1 }
   0x9   : > { %p10452_p4 = por %p12094_p1, %p42_p0  ;;  %p163_p7 = scmp.lt.s32.totalorder %s10379_s21, 3 }
   0xa   : > { %p10457_p6 = por %p156_p3, %p42_p0  ;;  %s10381_s27 = smov [#allocation7]  }
   0xb   : > { %s12097_s24 = scalar_select %p10452_p4, 1, 0 }
   0xc   : > { %s12098_s25 = scalar_select %p10457_p6, 1, 0 }
   0xd   : > { %p10462_p8 = pnand %p8766_p5, %p163_p7  ;;  %s175_s28 = sshll.u32 %s10381_s27, 4  ;;  %s10466_s28 = int_to_ptr.vmem [resolvable:$true] %s175_s28 }
   0xe   : > { %s10382_s30 = smov [#allocation9]   ;;  %s10223_s9 = scalar_lea.hbm %s12089_s1, 9216 }
   0xf   : > { %p9983_p9 = pneg %p10462_p8  ;;  %s191_s6 = sshll.u32 %s10382_s30, 4  ;;  %s10477_s6 = int_to_ptr.vmem [resolvable:$true] %s191_s6 }
  0x10   : > { %p10224_p12 = scmp.ne.s32.totalorder %s12089_s1, %s10223_s9  ;;  %p10230_p5 = scmp.lt.u32.totalorder %s10223_s9, %s12089_s1 }
  0x11   : > { %p10473_p11 = pnand %p9983_p9, %p12094_p1 }
  0x13   : > { %p10225_p13 = pneg %p10473_p11 }
  0x15   : > { %p10226_p0 = pnand %p10225_p13, %p10224_p12 }
  0x17   : > { %p10227_p3 = pneg %p10226_p0 }
  0x19   : > { %p10232_p7 = pnand %p10230_p5, %p10227_p3 }
  0x1b   : > { %10235 = shalt.err (!%p10232_p7)
}
  0x1c   : > { %s10236_s14 = scalar_lea.vmem %s10466_s28, 9216  ;;  %p10244_p2 = scmp.lt.s32.totalorder %s10466_s28, %s10466_s28 }
  0x1d   : > { %p10237_p9 = scmp.ne.s32.totalorder %s10466_s28, %s10236_s14  ;;  %p10245_p12 = scmp.lt.s32.totalorder %s10236_s14, %s10236_s14 }
  0x1f   : > { %p10239_p10 = pnand %p10237_p9, %p10225_p13  ;;  %p10246_p0 = por %p10245_p12, %p10244_p2 }
  0x21   : > { %p10240_p1 = pneg %p10239_p10 }
  0x23   : > { %p10247_p6 = pnand %p10246_p0, %p10240_p1 }
  0x25   : > { %10250 = shalt.err (!%p10247_p6)
}
  0x26   : > { %s10383_s15 = smov 64   ;;  %s10384_s16 = smov 4  }
  0x27   : > { %9986 = dma.hbm_to_vmem [thread:$0]  (!%p10473_p11), %s12089_s1, 9216, %s10466_s28, [#allocation8], %s10383_s15, %s10383_s15, %s10384_s16  }
  0x28   : > { %s10251_s7 = scalar_lea.hbm %s12091_s3, 9216 }
  0x29   : > { %p10252_p2 = scmp.ne.s32.totalorder %s12091_s3, %s10251_s7  ;;  %p10258_p10 = scmp.lt.u32.totalorder %s10251_s7, %s12091_s3 }
  0x2b   : > { %p10254_p1 = pnand %p10252_p2, %p10225_p13 }
  0x2d   : > { %p10255_p6 = pneg %p10254_p1 }
  0x2f   : > { %p10260_p3 = pnand %p10258_p10, %p10255_p6 }
  0x31   : > { %10263 = shalt.err (!%p10260_p3)
}
  0x32   : > { %s10264_s28 = scalar_lea.vmem %s10477_s6, 9216  ;;  %p10272_p12 = scmp.lt.s32.totalorder %s10477_s6, %s10477_s6 }
  0x33   : > { %p10265_p5 = scmp.ne.s32.totalorder %s10477_s6, %s10264_s28  ;;  %p10273_p0 = scmp.lt.s32.totalorder %s10264_s28, %s10264_s28 }
  0x35   : > { %p10267_p7 = pnand %p10265_p5, %p10225_p13  ;;  %p10274_p2 = por %p10273_p0, %p10272_p12 }
  0x37   : > { %p10268_p9 = pneg %p10267_p7 }
  0x39   : > { %p10275_p1 = pnand %p10274_p2, %p10268_p9 }
  0x3b   : > { %10278 = shalt.err (!%p10275_p1)
}
  0x3c   : > { %9989 = dma.hbm_to_vmem [thread:$0]  (!%p10473_p11), %s12091_s3, 9216, %s10477_s6, [#allocation8], %s10383_s15, %s10383_s15, %s10384_s16  }
  0x3d   : > { %s10532_s14 = sadd.s32 1, %s10379_s21   ;;  %s29_s29 = sadd.s32 1, %s10375_s20 }
  0x3e   : > { %s26_s17 = ssub.s32 %s10379_s21, %s10532_s14  ;;  %p36_p13 = scmp.ne.s32.totalorder %s10375_s20, %s10371_s19 }
  0x3f   : > { %p27_p6 = scmp.eq.s32.totalorder %s26_s17, 0  ;;  %p37_p10 = scmp.eq.s32.totalorder %s10379_s21, 0 }
  0x40   : > { %p12101_p3 = scmp.eq.s32.totalorder %s10443_s22, 1  ;;  %p10000_p7 = scmp.lt.s32.totalorder %s10379_s21, 2 }
  0x41   : > { %s10548_s27 = scalar_select %p27_p6, %s10375_s20, %s29_s29  }
  0x42   : > { %p10542_p5 = por %p12101_p3, %p36_p13  ;;  %p38_p9 = por %p37_p10, %p36_p13 }
  0x43   : > { %s208_s30 = sand.u32 1, %s10375_s20   ;;  %s8929_s6 = sshll.u32 %s10379_s21, 12 }
  0x44   : > { %s12102_s23 = scalar_select %p10542_p5, 1, 0 }
  0x45   : > { %s8770_s7 = sshll.u32 %s208_s30, 8  ;;  %s10555_s8 = scalar_lea.hbm %s12088_s0, %s8929_s6 }
  0x46   : > { %s212_s9 = scalar_lea.vmem [#allocation4], %s8770_s7  ;;  %p10559_p11 = pnand %p10000_p7, %p38_p9 }
  0x47   : > { %s219_s10 = sshll.u32 %s212_s9, 4  ;;  %s10563_s28 = scalar_lea.sflag [#allocation5], %s208_s30  ;;  %s10557_s10 = int_to_ptr.vmem [resolvable:$true] %s219_s10 }
  0x48   : > { %s10279_s12 = scalar_lea.hbm %s10555_s8, 4096  ;;  %p10281_p0 = pneg %p10559_p11 }
  0x49   : > { %p10280_p12 = scmp.ne.s32.totalorder %s10555_s8, %s10279_s12  ;;  %s10284_s17 = scalar_lea.hbm %s12088_s0, 8192 }
  0x4a   : > { %p10285_p13 = scmp.lt.u32.totalorder %s10555_s8, %s12088_s0  ;;  %p10286_p6 = scmp.lt.u32.totalorder %s10284_s17, %s10279_s12 }
  0x4b   : > { %p10282_p2 = pnand %p10281_p0, %p10280_p12  ;;  %p10288_p3 = scmp.lt.u32.totalorder %s10279_s12, %s10555_s8 }
  0x4c   : > { %p10287_p10 = por %p10286_p6, %p10285_p13 }
  0x4d   : > { %p10283_p1 = pneg %p10282_p2 }
  0x4e   : > { %p10289_p7 = por %p10288_p3, %p10287_p10 }
  0x50   : > { %p10290_p9 = pnand %p10289_p7, %p10283_p1 }
  0x52   : > { %10293 = shalt.err (!%p10290_p9)
}
  0x53   : > { %s10294_s30 = scalar_lea.vmem %s10557_s10, 4096  ;;  %s10385_s15 = smov [#allocation4]  }
  0x54   : > { %p10295_p12 = scmp.ne.s32.totalorder %s10557_s10, %s10294_s30  ;;  %s10299_s16 = sshll.u32 %s10385_s15, 4  ;;  %s10300_s16 = int_to_ptr.vmem [resolvable:$false] %s10299_s16 }
  0x55   : > { %s10301_s9 = scalar_lea.vmem %s10300_s16, 8192  ;;  %p10302_p4 = scmp.lt.s32.totalorder %s10557_s10, %s10300_s16 }
  0x56   : > { %p10297_p2 = pnand %p10295_p12, %p10281_p0  ;;  %p10303_p13 = scmp.lt.s32.totalorder %s10301_s9, %s10294_s30 }
  0x58   : > { %p10298_p5 = pneg %p10297_p2  ;;  %p10304_p6 = por %p10303_p13, %p10302_p4 }
  0x5a   : > { %p10305_p10 = pnand %p10304_p6, %p10298_p5 }
  0x5c   : > { %10308 = shalt.err (!%p10305_p10)
}
  0x5d   : > { %s10386_s12 = smov 128   ;;  %s10387_s13 = smov 8  }
  0x5e   : > { %9993 = dma.hbm_to_vmem [thread:$0]  (!%p10559_p11), %s10555_s8, 4096, %s10557_s10, %s10563_s28, %s10386_s12, %s10386_s12, %s10387_s13  }
  0x5f   : > { %231 = sbr.rel (%p10462_p8) target bundleno = 1238 (0x4d6), region = 40 }
  0x66   : > { %s10594_s29 = sand.u32 1, %s10371_s19   ;;  %p12104_p4 = scmp.ne.s32.totalorder %s12097_s24, 0 }
  0x67   : > { %s8774_s17 = sshll.u32 %s10594_s29, 8  ;;  %s234_s7 = scalar_lea.sflag [#allocation5], %s10594_s29 }
  0x68   : > { %s10600_s6 = scalar_lea.vmem [#allocation4], %s8774_s17 }
  0x69   : > { %10354 = dma.done.wait (%p12104_p4), %s234_s7, 4096  }
  0x6a   : > { %10356 = vsyncadd (%p12104_p4), %s234_s7, 4294963200  ;;  %p12105_p5 = scmp.eq.s32.totalorder %s10443_s22, 0 }
  0x6c   : > { %10358 = dma.done.wait (%p12105_p5), [#allocation8], 18432   ;;  %p12106_p8 = pmov %p12105_p5 }
  0x6d   : > { %v10388_v0 = vmov 0   ;;  %v10045_v1 = vld [vmem:[#allocation7 + $0x40] sm:$0xff]   ;;  %v10049_v5 = vld [vmem:[#allocation7 + $0x48] sm:$0xff]   ;;  %v10053_v9 = vld [vmem:[#allocation7 + $0x50] sm:$0xff]   ;;  %vm840_vm0 = vcmask 1043456   ;;  %s11915_s30 = scalar_lea.vmem [#allocation10], %s8774_s17 }
  0x6e   : > { %10360 = vsyncadd (%p12106_p8), [#allocation8], 4294948864  ;;  %305 = vst [vmem:[#allocation2] sm:$0xff] %v10388_v0  ;;  %v10046_v2 = vld [vmem:[#allocation7] sm:$0xff]   ;;  %8931 = vmatprep.subr.bf16.mxu0 %v10045_v1  ;;  %v10050_v6 = vld [vmem:[#allocation7 + $0x8] sm:$0xff]   ;;  %s8930_s15 = sshll.u32 %s10443_s22, 12 }
  0x6f   : > { %306 = vst [vmem:[#allocation2 + $0x8] sm:$0xff] %v10388_v0  ;;  %308 = vst [vmem:[#allocation2 + $0x110] sm:$0xff] %v10388_v0  ;;  %v10047_v3 = vld [vmem:[#allocation7 + $0xc0] sm:$0xff]   ;;  %8932 = vmatpush3.bf16.msra.mxu0 %v10046_v2  ;;  %v10051_v7 = vld [vmem:[#allocation7 + $0xc8] sm:$0xff]   ;;  %vm471_vm1 = vsmask.f32 4352  ;;  %s12039_s13 = scalar_lea.hbm %s12093_s5, %s8930_s15 }
  0x70   : > { %309 = vst [vmem:[#allocation2 + $0x118] sm:$0xff] %v10388_v0  ;;  %311 = vst [vmem:[#allocation2 + $0x10] sm:$0xf] %v10388_v0  ;;  %v10048_v4 = vld [vmem:[#allocation7 + $0x80] sm:$0xff]   ;;  %9043 = vmatprep.subr.bf16.mxu1 %v10047_v3  ;;  %8933 = vmatprep.subr.bf16.mxu0 %v10049_v5  ;;  %v10052_v8 = vld [vmem:[#allocation7 + $0x88] sm:$0xff]   ;;  %s8673_s16 = sshll.u32 %s11915_s30, 4  ;;  %s12041_s16 = int_to_ptr.vmem [resolvable:$true] %s8673_s16 }
  0x71   : > { %312 = vst [vmem:[#allocation2 + $0x20] sm:$0xf] %v10388_v0  ;;  %313 = vst [vmem:[#allocation2 + $0x30] sm:$0xf] %v10388_v0  ;;  %9044 = vmatpush3.bf16.msra.mxu1 %v10048_v4  ;;  %v10054_v10 = vld [vmem:[#allocation7 + $0x10] sm:$0xff]   ;;  %v10057_v13 = vld [vmem:[#allocation7 + $0x58] sm:$0xff]  }
  0x72   : > { %314 = vst [vmem:[#allocation2 + $0x40] sm:$0xf] %v10388_v0  ;;  %315 = vst [vmem:[#allocation2 + $0x50] sm:$0xf] %v10388_v0  ;;  %9045 = vmatprep.subr.bf16.mxu1 %v10051_v7  ;;  %v10055_v11 = vld [vmem:[#allocation7 + $0xd0] sm:$0xff]   ;;  %v10058_v14 = vld [vmem:[#allocation7 + $0x18] sm:$0xff]  }
  0x73   : > { %316 = vst [vmem:[#allocation2 + $0x60] sm:$0xf] %v10388_v0  ;;  %317 = vst [vmem:[#allocation2 + $0x70] sm:$0xf] %v10388_v0  ;;  %8934 = vmatpush3.bf16.msra.mxu0 %v10050_v6  ;;  %v10056_v12 = vld [vmem:[#allocation7 + $0x90] sm:$0xff]   ;;  %v10059_v15 = vld [vmem:[#allocation7 + $0xd8] sm:$0xff]  }
  0x74   : > { %318 = vst [vmem:[#allocation2 + $0x80] sm:$0xf] %v10388_v0  ;;  %319 = vst [vmem:[#allocation2 + $0x90] sm:$0xf] %v10388_v0  ;;  %8935 = vmatprep.subr.bf16.mxu0 %v10053_v9  ;;  %v10060_v16 = vld [vmem:[#allocation7 + $0x98] sm:$0xff]   ;;  %v10061_v17 = vld [vmem:[#allocation7 + $0x60] sm:$0xff]  }
  0x75   : > { %320 = vst [vmem:[#allocation2 + $0xa0] sm:$0xf] %v10388_v0  ;;  %321 = vst [vmem:[#allocation2 + $0xb0] sm:$0xf] %v10388_v0  ;;  %9046 = vmatpush3.bf16.msra.mxu1 %v10052_v8  ;;  %v10062_v18 = vld [vmem:[#allocation7 + $0x20] sm:$0xff]   ;;  %v10065_v21 = vld [vmem:[#allocation7 + $0x68] sm:$0xff]  }
  0x76   : > { %322 = vst [vmem:[#allocation2 + $0xc0] sm:$0xf] %v10388_v0  ;;  %323 = vst [vmem:[#allocation2 + $0xd0] sm:$0xf] %v10388_v0  ;;  %9047 = vmatprep.subr.bf16.mxu1 %v10055_v11  ;;  %v10063_v19 = vld [vmem:[#allocation7 + $0xe0] sm:$0xff]   ;;  %v10066_v22 = vld [vmem:[#allocation7 + $0x28] sm:$0xff]  }
  0x77   : > { %324 = vst [vmem:[#allocation2 + $0xe0] sm:$0xf] %v10388_v0  ;;  %325 = vst [vmem:[#allocation2 + $0xf0] sm:$0xf] %v10388_v0  ;;  %8936 = vmatpush3.bf16.msra.mxu0 %v10054_v10  ;;  %v10064_v20 = vld [vmem:[#allocation7 + $0xa0] sm:$0xff]   ;;  %v10067_v23 = vld [vmem:[#allocation7 + $0xe8] sm:$0xff]  }
  0x78   : > { %326 = vst [vmem:[#allocation2 + $0x100] sm:$0xf] %v10388_v0  ;;  %327 = vst [vmem:[#allocation2 + $0x18] sm:$0xf0] %v10388_v0  ;;  %8937 = vmatprep.subr.bf16.mxu0 %v10057_v13  ;;  %v10068_v24 = vld [vmem:[#allocation7 + $0xa8] sm:$0xff]   ;;  %v10069_v25 = vld [vmem:[#allocation7 + $0x70] sm:$0xff]  }
  0x79   : > { %328 = vst [vmem:[#allocation2 + $0x28] sm:$0xf0] %v10388_v0  ;;  %329 = vst [vmem:[#allocation2 + $0x38] sm:$0xf0] %v10388_v0  ;;  %9048 = vmatpush3.bf16.msra.mxu1 %v10056_v12  ;;  %v10070_v26 = vld [vmem:[#allocation7 + $0x30] sm:$0xff]   ;;  %v10073_v29 = vld [vmem:[#allocation7 + $0x78] sm:$0xff]  }
  0x7a   : > { %330 = vst [vmem:[#allocation2 + $0x48] sm:$0xf0] %v10388_v0  ;;  %331 = vst [vmem:[#allocation2 + $0x58] sm:$0xf0] %v10388_v0  ;;  %9049 = vmatprep.subr.bf16.mxu1 %v10059_v15  ;;  %v10071_v27 = vld [vmem:[#allocation7 + $0xf0] sm:$0xff]   ;;  %v10074_v30 = vld [vmem:[#allocation7 + $0x38] sm:$0xff]  }
  0x7b   : > { %332 = vst [vmem:[#allocation2 + $0x68] sm:$0xf0] %v10388_v0  ;;  %333 = vst [vmem:[#allocation2 + $0x78] sm:$0xf0] %v10388_v0  ;;  %8938 = vmatpush3.bf16.msra.mxu0 %v10058_v14  ;;  %v10072_v28 = vld [vmem:[#allocation7 + $0xb0] sm:$0xff]   ;;  %v10075_v31 = vld [vmem:[#allocation7 + $0xf8] sm:$0xff]  }
  0x7c   : > { %334 = vst [vmem:[#allocation2 + $0x88] sm:$0xf0] %v10388_v0  ;;  %335 = vst [vmem:[#allocation2 + $0x98] sm:$0xf0] %v10388_v0  ;;  %8939 = vmatprep.subr.bf16.mxu0 %v10061_v17  ;;  %v776_v32 = vld [vmem:[#allocation2] sm:$0xf0] }
  0x7d   : > { %336 = vst [vmem:[#allocation2 + $0xa8] sm:$0xf0] %v10388_v0  ;;  %337 = vst [vmem:[#allocation2 + $0xb8] sm:$0xf0] %v10388_v0  ;;  %9050 = vmatpush3.bf16.msra.mxu1 %v10060_v16  ;;  %v777_v33 = vld [vmem:[#allocation2 + $0x8] sm:$0xf] }
  0x7e   : > { %338 = vst [vmem:[#allocation2 + $0xc8] sm:$0xf0] %v10388_v0  ;;  %339 = vst [vmem:[#allocation2 + $0xd8] sm:$0xf0] %v10388_v0  ;;  %9051 = vmatprep.subr.bf16.mxu1 %v10063_v19  ;;  %v841_v34 = vrot.slane %v776_v32, 4  ;;  %v842_v35 = vrot.slane %v777_v33, 4 }
  0x7f   : > { %340 = vst [vmem:[#allocation2 + $0xe8] sm:$0xf0] %v10388_v0  ;;  %341 = vst [vmem:[#allocation2 + $0xf8] sm:$0xf0] %v10388_v0  ;;  %8940 = vmatpush3.bf16.msra.mxu0 %v10062_v18  ;;  %v10076_v36 = vld [vmem:[#allocation7 + $0xb8] sm:$0xff]   ;;  %v10077_v37 = vld [vmem:[#allocation7 + $0x140] sm:$0xff]  }
  0x80   : > { %342 = vst [vmem:[#allocation2 + $0x108] sm:$0xf0] %v10388_v0  ;;  %8941 = vmatprep.subr.bf16.mxu0 %v10065_v21  ;;  %v439_v38 = vld [vmem:[#allocation2] sm:$0xf8]  ;;  %v440_v39 = vld [vmem:[#allocation2 + $0x8] sm:$0xf]  ;;  %v843_v40 = vsel %vm840_vm0, %v841_v34, %v842_v35 }
  0x81   : > { %9052 = vmatpush3.bf16.msra.mxu1 %v10064_v20  ;;  %v473_v41 = vshrl.u32 %v439_v38, 16  ;;  %v476_v42 = vshll.u32 %v439_v38, 16  ;;  %v481_v43 = vshrl.u32 %v440_v39, 16  ;;  %v273_v44 = vld [vmem:[%s10600_s6] sm:$0xff]  ;;  %3650 = vmatprep.mubr.bf16.mxu0 %v843_v40  ;;  %v484_v45 = vshll.u32 %v440_v39, 16  ;;  %v274_v46 = vld [vmem:[%s10600_s6 + $0x8] sm:$0xff] }
  0x82   : > { %9053 = vmatprep.subr.bf16.mxu1 %v10067_v23  ;;  %v343_v50 = vpack.c.bf16 %v274_v46, %v273_v44  ;;  %v921_v51 = vld [vmem:[#allocation2] sm:$0xf0]  ;;  %vm953_vm2 = vsmask.f32 3328  ;;  %v922_v53 = vld [vmem:[#allocation2 + $0x8] sm:$0x1f] }
  0x83   : > { %8942 = vmatpush3.bf16.msra.mxu0 %v10066_v22  ;;  %v475_v47 = vrot.slane %v473_v41, 3  ;;  %v478_v48 = vrot.slane %v476_v42, 4  ;;  %v483_v49 = vrot.slane %v481_v43, 3  ;;  %v486_v52 = vrot.slane %v484_v45, 4  ;;  %v275_v56 = vld [vmem:[%s10600_s6 + $0x10] sm:$0xff]  ;;  %v276_v61 = vld [vmem:[%s10600_s6 + $0x18] sm:$0xff] }
  0x84   : > { %8943 = vmatprep.subr.bf16.mxu0 %v10069_v25  ;;  %v955_v54 = vshrl.u32 %v921_v51, 16  ;;  %v958_v55 = vshll.u32 %v921_v51, 16  ;;  %v375_v58 = vrot.slane %v343_v50, 4  ;;  %v963_v59 = vshrl.u32 %v922_v53, 16  ;;  %v10078_v63 = vld [vmem:[#allocation7 + $0x100] sm:$0xff]   ;;  %v10079_v6 = vld [vmem:[#allocation7 + $0x148] sm:$0xff]  }
  0x85   : > { %9054 = vmatpush3.bf16.msra.mxu1 %v10068_v24  ;;  %v479_v57 = vor.u32 %v478_v48, %v475_v47  ;;  %v966_v60 = vshll.u32 %v922_v53, 16  ;;  %v487_v62 = vor.u32 %v486_v52, %v483_v49  ;;  %v344_v2 = vpack.c.bf16 %v276_v61, %v275_v56  ;;  %v277_v3 = vld [vmem:[%s10600_s6 + $0x20] sm:$0xff]  ;;  %v278_v7 = vld [vmem:[%s10600_s6 + $0x28] sm:$0xff]  ;;  %v279_v11 = vld [vmem:[%s10600_s6 + $0x30] sm:$0xff]  ;;  %s8660_s22 = scalar_lea.sflag [#allocation6], %s10594_s29  ;;  %s10309_s17 = scalar_lea.vmem %s12041_s16, 4096 }
  0x86   : > { %9055 = vmatprep.subr.bf16.mxu1 %v10071_v27  ;;  %v957_v0 = vrot.slane %v955_v54, 4  ;;  %v960_v1 = vrot.slane %v958_v55, 5  ;;  %407 = vst [vmem:[#allocation2 + $0x18] ss:$-4 sps:$4 sm:$0xff] %v375_v58   ;;  %v965_v4 = vrot.slane %v963_v59, 4  ;;  %v345_v10 = vpack.c.bf16 %v278_v7, %v277_v3  ;;  %v280_v12 = vld [vmem:[%s10600_s6 + $0x38] sm:$0xff]  ;;  %p10310_p11 = scmp.ne.s32.totalorder %s12041_s16, %s10309_s17 }
  0x87   : > { %8944 = vmatpush3.bf16.msra.mxu0 %v10070_v26  ;;  %v968_v5 = vrot.slane %v966_v60, 5  ;;  %v488_v8 = vsel %vm471_vm1, %v479_v57, %v487_v62  ;;  %v376_v9 = vrot.slane %v344_v2, 4  ;;  %v10080_v13 = vld [vmem:[#allocation7 + $0x108] sm:$0xff]   ;;  %v346_v14 = vpack.c.bf16 %v280_v12, %v279_v11  ;;  %v281_v18 = vld [vmem:[%s10600_s6 + $0x40] sm:$0xff]  ;;  %v10081_v21 = vld [vmem:[#allocation7 + $0x150] sm:$0xff]   ;;  %p12125_p0 = scmp.ne.s32.totalorder %s12102_s23, 0 }
  0x88   : > { %8945 = vmatprep.subr.bf16.mxu0 %v10073_v29  ;;  %v961_v15 = vor.u32 %v960_v1, %v957_v0  ;;  %v377_v17 = vrot.slane %v345_v10, 4  ;;  %v282_v19 = vld [vmem:[%s10600_s6 + $0x48] sm:$0xff]  ;;  %v10623_v23 = vld [vmem:[%s10600_s6 + $0x50] sm:$0xff]  ;;  %v10626_v25 = vld [vmem:[%s10600_s6 + $0x58] sm:$0xff]  ;;  %s10389_s7 = smov [#allocation10]  }
  0x89   : > { %9056 = vmatpush3.bf16.msra.mxu1 %v10072_v28  ;;  %v969_v16 = vor.u32 %v968_v5, %v965_v4  ;;  %409 = vst [vmem:[#allocation2 + $0x28] ss:$-4 sps:$4 sm:$0xff] %v376_v9   ;;  %v378_v20 = vrot.slane %v346_v14, 4  ;;  %v347_v22 = vpack.c.bf16 %v282_v19, %v281_v18  ;;  %v10082_v24 = vld [vmem:[#allocation7 + $0x110] sm:$0xff]   ;;  %v10083_v27 = vld [vmem:[#allocation7 + $0x158] sm:$0xff]   ;;  %v10629_v28 = vld [vmem:[%s10600_s6 + $0x60] sm:$0xff]  ;;  %v348_v43 = vpack.c.bf16 %v10626_v25, %v10623_v23  ;;  %p10311_p1 = pnand %p10310_p11, %p12125_p0 }
  0x8a   : > { %9057 = vmatprep.subr.bf16.mxu1 %v10075_v31  ;;  %411 = vst [vmem:[#allocation2 + $0x38] ss:$-4 sps:$4 sm:$0xff] %v377_v17   ;;  %v10632_v29 = vld [vmem:[%s10600_s6 + $0x68] sm:$0xff]  ;;  %v10084_v55 = vld [vmem:[#allocation7 + $0x118] sm:$0xff]   ;;  %v10085_v17 = vld [vmem:[#allocation7 + $0x160] sm:$0xff]  }
  0x8b   : > { %8946 = vmatpush3.bf16.msra.mxu0 %v10074_v30  ;;  %413 = vst [vmem:[#allocation2 + $0x48] ss:$-4 sps:$4 sm:$0xff] %v378_v20   ;;  %v379_v26 = vrot.slane %v347_v22, 4  ;;  %v970_v32 = vsel %vm953_vm2, %v961_v15, %v969_v16  ;;  %v349_v44 = vpack.c.bf16 %v10632_v29, %v10629_v28  ;;  %v10094_v25 = vld [vmem:[#allocation7 + $0x188] sm:$0xff]   ;;  %p10312_p3 = pneg %p10311_p1 }
  0x8c   : > { %9155 = vmatprep.subr.bf16.mxu0 %v10077_v37 }
  0x8d   : > { %9058 = vmatpush3.bf16.msra.mxu1 %v10076_v36  ;;  %v1258_v30 = vld [vmem:[#allocation2 + $0x10] sm:$0xf8]  ;;  %v1259_v31 = vld [vmem:[#allocation2 + $0x18] sm:$0xf]  ;;  %415 = vst [vmem:[#allocation2 + $0x58] ss:$-4 sps:$4 sm:$0xff] %v379_v26  }
  0x8e   : > { %3651 = vmatmul.mubr.bf16.vlgmr.msra.gmra.mrb[0].mxu0 %v488_v8  ;;  %v778_v33 = vld [vmem:[#allocation2 + $0x10] sm:$0xf0]  ;;  %v1291_v34 = vshrl.u32 %v1258_v30, 16  ;;  %v1294_v35 = vshll.u32 %v1258_v30, 16  ;;  %v1299_v36 = vshrl.u32 %v1259_v31, 16  ;;  %v1302_v37 = vshll.u32 %v1259_v31, 16 }
  0x8f   : > { %9156 = vmatpush3.bf16.msra.mxu0 %v10078_v63  ;;  %v779_v38 = vld [vmem:[#allocation2 + $0x18] sm:$0xf]  ;;  %v844_v39 = vrot.slane %v778_v33, 4  ;;  %v441_v41 = vld [vmem:[#allocation2 + $0x10] sm:$0xf8]  ;;  %v381_v23 = vrot.slane %v349_v44, 4 }
  0x90   : > { %9157 = vmatprep.subr.bf16.mxu0 %v10079_v6  ;;  %v845_v40 = vrot.slane %v779_v38, 4  ;;  %v442_v42 = vld [vmem:[#allocation2 + $0x18] sm:$0xf]  ;;  %v1293_v45 = vrot.slane %v1291_v34, 3  ;;  %v1296_v46 = vrot.slane %v1294_v35, 4  ;;  %v1301_v47 = vrot.slane %v1299_v36, 3 }
  0x91   : > { %v1304_v48 = vrot.slane %v1302_v37, 4  ;;  %v1260_v49 = vld [vmem:[#allocation2 + $0x20] sm:$0xf8]  ;;  %v490_v51 = vshrl.u32 %v441_v41, 16  ;;  %v493_v52 = vshll.u32 %v441_v41, 16  ;;  %v498_v53 = vshrl.u32 %v442_v42, 16 }
  0x92   : > { %v846_v50 = vsel %vm840_vm0, %v844_v39, %v845_v40  ;;  %v1261_v54 = vld [vmem:[#allocation2 + $0x28] sm:$0xf]  ;;  %v1297_v56 = vor.u32 %v1296_v46, %v1293_v45  ;;  %v501_v58 = vshll.u32 %v442_v42, 16  ;;  %v1308_v59 = vshrl.u32 %v1260_v49, 16  ;;  %v923_v60 = vld [vmem:[#allocation2 + $0x10] sm:$0xf0] }
  0x93   : > { %9158 = vmatpush3.bf16.msra.mxu0 %v10080_v13  ;;  %v1305_v57 = vor.u32 %v1304_v48, %v1301_v47  ;;  %3658 = vmatprep.mubr.bf16.mxu0 %v846_v50  ;;  %v492_v61 = vrot.slane %v490_v51, 3  ;;  %v495_v62 = vrot.slane %v493_v52, 4  ;;  %v500_v63 = vrot.slane %v498_v53, 3  ;;  %v924_v1 = vld [vmem:[#allocation2 + $0x18] sm:$0x1f]  ;;  %v10086_v36 = vld [vmem:[#allocation7 + $0x120] sm:$0xff]  }
  0x94   : > { %9159 = vmatprep.subr.bf16.mxu0 %v10081_v21  ;;  %v1311_v0 = vshll.u32 %v1260_v49, 16  ;;  %v503_v3 = vrot.slane %v501_v58, 4  ;;  %v1310_v4 = vrot.slane %v1308_v59, 3  ;;  %v1316_v5 = vshrl.u32 %v1261_v54, 16  ;;  %v780_v6 = vld [vmem:[#allocation2 + $0x20] sm:$0xf0] }
  0x95   : > { %v1306_v2 = vsel %vm471_vm1, %v1297_v56, %v1305_v57  ;;  %v496_v7 = vor.u32 %v495_v62, %v492_v61  ;;  %v1319_v9 = vshll.u32 %v1261_v54, 16  ;;  %v972_v10 = vshrl.u32 %v923_v60, 16  ;;  %v781_v11 = vld [vmem:[#allocation2 + $0x28] sm:$0xf]  ;;  %v443_v16 = vld [vmem:[#allocation2 + $0x20] sm:$0xf8] }
  0x96   : > { %3811 = vmatprep.mubr.bf16.mxu1 %v1306_v2  ;;  %v1313_v8 = vrot.slane %v1311_v0, 4  ;;  %v504_v12 = vor.u32 %v503_v3, %v500_v63  ;;  %v1318_v13 = vrot.slane %v1316_v5, 3  ;;  %v975_v14 = vshll.u32 %v923_v60, 16  ;;  %v444_v22 = vld [vmem:[#allocation2 + $0x28] sm:$0xf] }
  0x97   : > { %9160 = vmatpush3.bf16.msra.mxu0 %v10082_v24  ;;  %3812 = vmatmul.mubr.bf16.vlgmr.msra.gmra.mrb[0].mxu1 %v970_v32  ;;  %v980_v15 = vshrl.u32 %v924_v1, 16  ;;  %v1321_v19 = vrot.slane %v1319_v9, 4  ;;  %v974_v20 = vrot.slane %v972_v10, 4  ;;  %v983_v21 = vshll.u32 %v924_v1, 16  ;;  %v1262_v35 = vld [vmem:[#allocation2 + $0x30] sm:$0xf8] }
  0x98   : > { %9161 = vmatprep.subr.bf16.mxu0 %v10083_v27  ;;  %v1314_v18 = vor.u32 %v1313_v8, %v1310_v4  ;;  %v505_v24 = vsel %vm471_vm1, %v496_v7, %v504_v12  ;;  %v977_v26 = vrot.slane %v975_v14, 5  ;;  %v847_v30 = vrot.slane %v780_v6, 4  ;;  %v1263_v41 = vld [vmem:[#allocation2 + $0x38] sm:$0xf]  ;;  %v925_v48 = vld [vmem:[#allocation2 + $0x20] sm:$0xf0] }
  0x99   : > { %v982_v27 = vrot.slane %v980_v15, 4  ;;  %3659 = vmatmul.mubr.bf16.gmra.mrb[4].mxu0 %v505_v24  ;;  %v1322_v31 = vor.u32 %v1321_v19, %v1318_v13  ;;  %v985_v32 = vrot.slane %v983_v21, 5  ;;  %v848_v33 = vrot.slane %v781_v11, 4  ;;  %v926_v57 = vld [vmem:[#allocation2 + $0x28] sm:$0x1f] }
  0x9a   : > { %v507_v34 = vshrl.u32 %v443_v16, 16  ;;  %v978_v37 = vor.u32 %v977_v26, %v974_v20  ;;  %v510_v38 = vshll.u32 %v443_v16, 16  ;;  %v515_v39 = vshrl.u32 %v444_v22, 16  ;;  %v10087_v58 = vld [vmem:[#allocation7 + $0x168] sm:$0xff]   ;;  %v782_v63 = vld [vmem:[#allocation2 + $0x30] sm:$0xf0] }
  0x9b   : > { %9162 = vmatpush3.bf16.msra.mxu0 %v10084_v55  ;;  %v518_v40 = vshll.u32 %v444_v22, 16  ;;  %v1323_v42 = vsel %vm471_vm1, %v1314_v18, %v1322_v31  ;;  %v986_v45 = vor.u32 %v985_v32, %v982_v27  ;;  %v849_v46 = vsel %vm840_vm0, %v847_v30, %v848_v33  ;;  %v783_v0 = vld [vmem:[#allocation2 + $0x38] sm:$0xf]  ;;  %v445_v5 = vld [vmem:[#allocation2 + $0x30] sm:$0xf8] }
  0x9c   : > { %9163 = vmatprep.subr.bf16.mxu0 %v10085_v17  ;;  %v509_v47 = vrot.slane %v507_v34, 3  ;;  %3819 = vmatprep.mubr.bf16.mxu1 %v1323_v42  ;;  %v512_v49 = vrot.slane %v510_v38, 4  ;;  %v517_v50 = vrot.slane %v515_v39, 3  ;;  %v1325_v52 = vshrl.u32 %v1262_v35, 16  ;;  %v446_v10 = vld [vmem:[#allocation2 + $0x38] sm:$0xf] }
  0x9d   : > { %3666 = vmatprep.mubr.bf16.mxu0 %v849_v46  ;;  %v520_v51 = vrot.slane %v518_v40, 4  ;;  %v987_v53 = vsel %vm953_vm2, %v978_v37, %v986_v45  ;;  %v1328_v54 = vshll.u32 %v1262_v35, 16  ;;  %v1333_v55 = vshrl.u32 %v1263_v41, 16  ;;  %v1264_v19 = vld [vmem:[#allocation2 + $0x40] sm:$0xf8] }
  0x9e   : > { %v1336_v56 = vshll.u32 %v1263_v41, 16  ;;  %v513_v59 = vor.u32 %v512_v49, %v509_v47  ;;  %v1327_v61 = vrot.slane %v1325_v52, 3  ;;  %v989_v62 = vshrl.u32 %v925_v48, 16  ;;  %v1265_v26 = vld [vmem:[#allocation2 + $0x48] sm:$0xf] }
  0x9f   : > { %9164 = vmatpush3.bf16.msra.mxu0 %v10086_v36  ;;  %3820 = vmatmul.mubr.bf16.gmra.mrb[4].mxu1 %v987_v53  ;;  %v521_v60 = vor.u32 %v520_v51, %v517_v50  ;;  %v1330_v1 = vrot.slane %v1328_v54, 4  ;;  %v1335_v2 = vrot.slane %v1333_v55, 3  ;;  %v992_v4 = vshll.u32 %v925_v48, 16  ;;  %v927_v33 = vld [vmem:[#allocation2 + $0x30] sm:$0xf0]  ;;  %v10088_v51 = vld [vmem:[#allocation7 + $0x128] sm:$0xff]  }
  0xa0   : > { %v1338_v3 = vrot.slane %v1336_v56, 4  ;;  %9165 = vmatprep.subr.bf16.mxu0 %v10087_v58  ;;  %v991_v7 = vrot.slane %v989_v62, 4  ;;  %v997_v8 = vshrl.u32 %v926_v57, 16  ;;  %v1000_v9 = vshll.u32 %v926_v57, 16  ;;  %v928_v38 = vld [vmem:[#allocation2 + $0x38] sm:$0x1f] }
  0xa1   : > { %v522_v6 = vsel %vm471_vm1, %v513_v59, %v521_v60  ;;  %v1331_v11 = vor.u32 %v1330_v1, %v1327_v61  ;;  %v994_v13 = vrot.slane %v992_v4, 5  ;;  %v850_v14 = vrot.slane %v782_v63, 4  ;;  %v784_v45 = vld [vmem:[#allocation2 + $0x40] sm:$0xf0]  ;;  %v785_v50 = vld [vmem:[#allocation2 + $0x48] sm:$0xf] }
  0xa2   : > { %3667 = vmatmul.mubr.bf16.gmra.mrb[8].mxu0 %v522_v6  ;;  %v1339_v12 = vor.u32 %v1338_v3, %v1335_v2  ;;  %v999_v15 = vrot.slane %v997_v8, 4  ;;  %v1002_v16 = vrot.slane %v1000_v9, 5  ;;  %v851_v17 = vrot.slane %v783_v0, 4  ;;  %v447_v56 = vld [vmem:[#allocation2 + $0x40] sm:$0xf8] }
  0xa3   : > { %v524_v18 = vshrl.u32 %v445_v5, 16  ;;  %v995_v21 = vor.u32 %v994_v13, %v991_v7  ;;  %v527_v22 = vshll.u32 %v445_v5, 16  ;;  %v532_v24 = vshrl.u32 %v446_v10, 16  ;;  %v448_v61 = vld [vmem:[#allocation2 + $0x48] sm:$0xf]  ;;  %9166 = vmatpush3.bf16.msra.mxu0 %v10088_v51 }
  0xa4   : > { %v1340_v20 = vsel %vm471_vm1, %v1331_v11, %v1339_v12  ;;  %v1003_v27 = vor.u32 %v1002_v16, %v999_v15  ;;  %v852_v30 = vsel %vm840_vm0, %v850_v14, %v851_v17  ;;  %v535_v32 = vshll.u32 %v446_v10, 16  ;;  %v1266_v2 = vld [vmem:[#allocation2 + $0x50] sm:$0xf8]  ;;  %v1267_v3 = vld [vmem:[#allocation2 + $0x58] sm:$0xf] }
  0xa5   : > { %3827 = vmatprep.mubr.bf16.mxu1 %v1340_v20  ;;  %v526_v31 = vrot.slane %v524_v18, 3  ;;  %3674 = vmatprep.mubr.bf16.mxu0 %v852_v30  ;;  %v529_v34 = vrot.slane %v527_v22, 4  ;;  %v534_v35 = vrot.slane %v532_v24, 3  ;;  %v1342_v36 = vshrl.u32 %v1264_v19, 16  ;;  %v929_v8 = vld [vmem:[#allocation2 + $0x40] sm:$0xf0] }
  0xa6   : > { %v1345_v37 = vshll.u32 %v1264_v19, 16  ;;  %v1004_v39 = vsel %vm953_vm2, %v995_v21, %v1003_v27  ;;  %v537_v40 = vrot.slane %v535_v32, 4  ;;  %v1350_v41 = vshrl.u32 %v1265_v26, 16  ;;  %v930_v17 = vld [vmem:[#allocation2 + $0x48] sm:$0x1f] }
  0xa7   : > { %v1353_v42 = vshll.u32 %v1265_v26, 16  ;;  %3828 = vmatmul.mubr.bf16.gmra.mrb[8].mxu1 %v1004_v39  ;;  %v530_v46 = vor.u32 %v529_v34, %v526_v31  ;;  %v1344_v47 = vrot.slane %v1342_v36, 3  ;;  %v1006_v49 = vshrl.u32 %v927_v33, 16  ;;  %v786_v22 = vld [vmem:[#allocation2 + $0x50] sm:$0xf0] }
  0xa8   : > { %v1347_v48 = vrot.slane %v1345_v37, 4  ;;  %v538_v52 = vor.u32 %v537_v40, %v534_v35  ;;  %v1352_v53 = vrot.slane %v1350_v41, 3  ;;  %v1009_v55 = vshll.u32 %v927_v33, 16  ;;  %v787_v31 = vld [vmem:[#allocation2 + $0x58] sm:$0xf]  ;;  %v10089_v33 = vld [vmem:[#allocation7 + $0x170] sm:$0xff]  }
  0xa9   : > { %v1355_v54 = vrot.slane %v1353_v42, 4  ;;  %v1008_v58 = vrot.slane %v1006_v49, 4  ;;  %v1014_v59 = vshrl.u32 %v928_v38, 16  ;;  %v1017_v60 = vshll.u32 %v928_v38, 16  ;;  %v449_v32 = vld [vmem:[#allocation2 + $0x50] sm:$0xf8]  ;;  %9167 = vmatprep.subr.bf16.mxu0 %v10089_v33 }
  0xaa   : > { %v1348_v57 = vor.u32 %v1347_v48, %v1344_v47  ;;  %v539_v62 = vsel %vm471_vm1, %v530_v46, %v538_v52  ;;  %v1011_v0 = vrot.slane %v1009_v55, 5  ;;  %v853_v1 = vrot.slane %v784_v45, 4  ;;  %v450_v38 = vld [vmem:[#allocation2 + $0x58] sm:$0xf]  ;;  %v931_v49 = vld [vmem:[#allocation2 + $0x50] sm:$0xf0] }
  0xab   : > { %v1356_v63 = vor.u32 %v1355_v54, %v1352_v53  ;;  %3675 = vmatmul.mubr.bf16.gmra.mrb[12].mxu0 %v539_v62  ;;  %v1016_v4 = vrot.slane %v1014_v59, 4  ;;  %v1019_v5 = vrot.slane %v1017_v60, 5  ;;  %v854_v6 = vrot.slane %v785_v50, 4  ;;  %v10090_v50 = vld [vmem:[#allocation7 + $0x130] sm:$0xff]   ;;  %v932_v55 = vld [vmem:[#allocation2 + $0x58] sm:$0x1f] }
  0xac   : > { %v541_v7 = vshrl.u32 %v447_v56, 16  ;;  %v1012_v10 = vor.u32 %v1011_v0, %v1008_v58  ;;  %v544_v11 = vshll.u32 %v447_v56, 16  ;;  %v549_v12 = vshrl.u32 %v448_v61, 16  ;;  %v287_v0 = vld [vmem:[%s10600_s6 + $0x70] sm:$0xff]  ;;  %9168 = vmatpush3.bf16.msra.mxu0 %v10090_v50  ;;  %419 = vst [vmem:[#allocation2 + $0x78] ss:$-4 sps:$4 sm:$0xff] %v381_v23  }
  0xad   : > { %v1357_v9 = vsel %vm471_vm1, %v1348_v57, %v1356_v63  ;;  %v1020_v13 = vor.u32 %v1019_v5, %v1016_v4  ;;  %v855_v14 = vsel %vm840_vm0, %v853_v1, %v854_v6  ;;  %v552_v16 = vshll.u32 %v448_v61, 16  ;;  %v288_v1 = vld [vmem:[%s10600_s6 + $0x78] sm:$0xff]  ;;  %v289_v6 = vld [vmem:[%s10600_s6 + $0x80] sm:$0xff] }
  0xae   : > { %3835 = vmatprep.mubr.bf16.mxu1 %v1357_v9  ;;  %v543_v15 = vrot.slane %v541_v7, 3  ;;  %3682 = vmatprep.mubr.bf16.mxu0 %v855_v14  ;;  %v546_v18 = vrot.slane %v544_v11, 4  ;;  %v551_v19 = vrot.slane %v549_v12, 3  ;;  %v1359_v20 = vshrl.u32 %v1266_v2, 16  ;;  %v290_v7 = vld [vmem:[%s10600_s6 + $0x88] sm:$0xff]  ;;  %v292_v9 = vld [vmem:[%s10600_s6 + $0x98] sm:$0xff] }
  0xaf   : > { %v1362_v21 = vshll.u32 %v1266_v2, 16  ;;  %v1021_v24 = vsel %vm953_vm2, %v1012_v10, %v1020_v13  ;;  %v554_v26 = vrot.slane %v552_v16, 4  ;;  %v1367_v27 = vshrl.u32 %v1267_v3, 16  ;;  %v293_v10 = vld [vmem:[%s10600_s6 + $0xa0] sm:$0xff]  ;;  %v294_v11 = vld [vmem:[%s10600_s6 + $0xa8] sm:$0xff] }
  0xb0   : > { %v1370_v30 = vshll.u32 %v1267_v3, 16  ;;  %3836 = vmatmul.mubr.bf16.gmra.mrb[12].mxu1 %v1021_v24  ;;  %v547_v34 = vor.u32 %v546_v18, %v543_v15  ;;  %v1361_v35 = vrot.slane %v1359_v20, 3  ;;  %v1023_v37 = vshrl.u32 %v929_v8, 16  ;;  %v10091_v12 = vld [vmem:[#allocation7 + $0x1c0] sm:$0xff]   ;;  %v295_v18 = vld [vmem:[%s10600_s6 + $0xb0] sm:$0xff] }
  0xb1   : > { %v1364_v36 = vrot.slane %v1362_v21, 4  ;;  %v555_v39 = vor.u32 %v554_v26, %v551_v19  ;;  %v1369_v40 = vrot.slane %v1367_v27, 3  ;;  %v1026_v42 = vshll.u32 %v929_v8, 16  ;;  %v291_v8 = vld [vmem:[%s10600_s6 + $0x90] sm:$0xff]  ;;  %v10092_v13 = vld [vmem:[#allocation7 + $0x180] sm:$0xff]   ;;  %v296_v19 = vld [vmem:[%s10600_s6 + $0xb8] sm:$0xff]  ;;  %9267 = vmatprep.subr.bf16.mxu1 %v10091_v12 }
  0xb2   : > { %v1372_v41 = vrot.slane %v1370_v30, 4  ;;  %v1025_v46 = vrot.slane %v1023_v37, 4  ;;  %v1031_v47 = vshrl.u32 %v930_v17, 16  ;;  %v1034_v48 = vshll.u32 %v930_v17, 16  ;;  %v10093_v26 = vld [vmem:[#allocation7 + $0x1c8] sm:$0xff]   ;;  %9268 = vmatpush3.bf16.msra.mxu1 %v10092_v13 }
  0xb3   : > { %v1365_v45 = vor.u32 %v1364_v36, %v1361_v35  ;;  %v556_v51 = vsel %vm471_vm1, %v547_v34, %v555_v39  ;;  %v1028_v53 = vrot.slane %v1026_v42, 5  ;;  %v856_v54 = vrot.slane %v786_v22, 4  ;;  %v10674_v39 = vld [vmem:[%s10600_s6 + $0xc0] sm:$0xff]  ;;  %9269 = vmatprep.subr.bf16.mxu1 %v10093_v26 }
  0xb4   : > { %v1373_v52 = vor.u32 %v1372_v41, %v1369_v40  ;;  %3683 = vmatmul.mubr.bf16.gmra.mrb[16].mxu0 %v556_v51  ;;  %v1033_v56 = vrot.slane %v1031_v47, 4  ;;  %v1036_v57 = vrot.slane %v1034_v48, 5  ;;  %v857_v58 = vrot.slane %v787_v31, 4  ;;  %v10677_v40 = vld [vmem:[%s10600_s6 + $0xc8] sm:$0xff]  ;;  %v10095_v41 = vld [vmem:[#allocation7 + $0x1d0] sm:$0xff]   ;;  %v10684_v48 = vld [vmem:[%s10600_s6 + $0xd8] sm:$0xff] }
  0xb5   : > { %v558_v59 = vshrl.u32 %v449_v32, 16  ;;  %v1029_v61 = vor.u32 %v1028_v53, %v1025_v46  ;;  %v561_v62 = vshll.u32 %v449_v32, 16  ;;  %v566_v63 = vshrl.u32 %v450_v38, 16  ;;  %v10681_v47 = vld [vmem:[%s10600_s6 + $0xd0] sm:$0xff]  ;;  %v10097_v53 = vld [vmem:[#allocation7 + $0x1d8] sm:$0xff]  }
  0xb6   : > { %v1374_v60 = vsel %vm471_vm1, %v1365_v45, %v1373_v52  ;;  %v1037_v2 = vor.u32 %v1036_v57, %v1033_v56  ;;  %v858_v3 = vsel %vm840_vm0, %v856_v54, %v857_v58  ;;  %v569_v5 = vshll.u32 %v450_v38, 16  ;;  %9270 = vmatpush3.bf16.msra.mxu1 %v10094_v25 }
  0xb7   : > { %3843 = vmatprep.mubr.bf16.mxu1 %v1374_v60  ;;  %v560_v4 = vrot.slane %v558_v59, 3  ;;  %3690 = vmatprep.mubr.bf16.mxu0 %v858_v3  ;;  %v563_v14 = vrot.slane %v561_v62, 4  ;;  %v568_v15 = vrot.slane %v566_v63, 3  ;;  %v380_v16 = vrot.slane %v348_v43, 4 }
  0xb8   : > { %v1040_v17 = vshrl.u32 %v931_v49, 16  ;;  %v1038_v20 = vsel %vm953_vm2, %v1029_v61, %v1037_v2  ;;  %v571_v21 = vrot.slane %v569_v5, 4  ;;  %v1043_v22 = vshll.u32 %v931_v49, 16  ;;  %v10096_v49 = vld [vmem:[#allocation7 + $0x190] sm:$0xff]   ;;  %9271 = vmatprep.subr.bf16.mxu1 %v10095_v41 }
  0xb9   : > { %v1048_v24 = vshrl.u32 %v932_v55, 16  ;;  %3844 = vmatmul.mubr.bf16.gmra.mrb[16].mxu1 %v1038_v20  ;;  %v564_v27 = vor.u32 %v563_v14, %v560_v4  ;;  %417 = vst [vmem:[#allocation2 + $0x68] ss:$-4 sps:$4 sm:$0xff] %v380_v16   ;;  %v1051_v31 = vshll.u32 %v932_v55, 16  ;;  %v350_v34 = vpack.c.bf16 %v288_v1, %v287_v0  ;;  %v1271_v14 = vld [vmem:[#allocation2 + $0x78] sm:$0xf] }
  0xba   : > { %v1042_v30 = vrot.slane %v1040_v17, 4  ;;  %v572_v43 = vor.u32 %v571_v21, %v568_v15  ;;  %v1045_v32 = vrot.slane %v1043_v22, 5  ;;  %v351_v36 = vpack.c.bf16 %v290_v7, %v289_v6  ;;  %9272 = vmatpush3.bf16.msra.mxu1 %v10096_v49  ;;  %v10098_v15 = vld [vmem:[#allocation7 + $0x198] sm:$0xff]   ;;  %v453_v41 = vld [vmem:[#allocation2 + $0x70] sm:$0xf8] }
  0xbb   : > { %v1050_v33 = vrot.slane %v1048_v24, 4  ;;  %v1053_v35 = vrot.slane %v1051_v31, 5  ;;  %v352_v37 = vpack.c.bf16 %v292_v9, %v291_v8  ;;  %v353_v38 = vpack.c.bf16 %v294_v11, %v293_v10  ;;  %v1270_v9 = vld [vmem:[#allocation2 + $0x70] sm:$0xf8]  ;;  %9273 = vmatprep.subr.bf16.mxu1 %v10097_v53 }
  0xbc   : > { %v573_v28 = vsel %vm471_vm1, %v564_v27, %v572_v43  ;;  %v382_v29 = vrot.slane %v350_v34, 4  ;;  %v354_v44 = vpack.c.bf16 %v296_v19, %v295_v18  ;;  %v383_v42 = vrot.slane %v351_v36, 4  ;;  %v790_v43 = vld [vmem:[#allocation2 + $0x70] sm:$0xf0] }
  0xbd   : > { %3691 = vmatmul.mubr.bf16.gmra.mrb[20].mxu0 %v573_v28  ;;  %v384_v45 = vrot.slane %v352_v37, 4  ;;  %v385_v46 = vrot.slane %v353_v38, 4  ;;  %v1046_v50 = vor.u32 %v1045_v32, %v1042_v30  ;;  %v1054_v51 = vor.u32 %v1053_v35, %v1050_v33  ;;  %v10099_v32 = vld [vmem:[#allocation7 + $0x178] sm:$0xff]  }
  0xbe   : > { %421 = vst [vmem:[#allocation2 + $0x88] ss:$-4 sps:$4 sm:$0xff] %v382_v29   ;;  %v386_v52 = vrot.slane %v354_v44, 4  ;;  %423 = vst [vmem:[#allocation2 + $0x98] ss:$-4 sps:$4 sm:$0xff] %v383_v42   ;;  %v355_v57 = vpack.c.bf16 %v10677_v40, %v10674_v39  ;;  %v356_v4 = vpack.c.bf16 %v10684_v48, %v10681_v47  ;;  %v1393_v19 = vshrl.u32 %v1270_v9, 16  ;;  %9274 = vmatpush3.bf16.msra.mxu1 %v10098_v15 }
  0xbf   : > { %425 = vst [vmem:[#allocation2 + $0xa8] ss:$-4 sps:$4 sm:$0xff] %v384_v45   ;;  %427 = vst [vmem:[#allocation2 + $0xb8] ss:$-4 sps:$4 sm:$0xff] %v385_v46   ;;  %v1055_v63 = vsel %vm953_vm2, %v1046_v50, %v1054_v51  ;;  %v1396_v26 = vshll.u32 %v1270_v9, 16  ;;  %v1401_v25 = vshrl.u32 %v1271_v14, 16  ;;  %9169 = vmatprep.subr.bf16.mxu0 %v10099_v32 }
  0xc0   : > { %v1268_v54 = vld [vmem:[#allocation2 + $0x60] sm:$0xf8]  ;;  %v1269_v55 = vld [vmem:[#allocation2 + $0x68] sm:$0xf]  ;;  %429 = vst [vmem:[#allocation2 + $0xc8] ss:$-4 sps:$4 sm:$0xff] %v386_v52  }
  0xc1   : > { %v788_v56 = vld [vmem:[#allocation2 + $0x60] sm:$0xf0]  ;;  %v1376_v58 = vshrl.u32 %v1268_v54, 16  ;;  %v1379_v59 = vshll.u32 %v1268_v54, 16  ;;  %v1384_v60 = vshrl.u32 %v1269_v55, 16  ;;  %v1387_v61 = vshll.u32 %v1269_v55, 16 }
  0xc2   : > { %v789_v62 = vld [vmem:[#allocation2 + $0x68] sm:$0xf]  ;;  %v859_v0 = vrot.slane %v788_v56, 4  ;;  %v451_v2 = vld [vmem:[#allocation2 + $0x60] sm:$0xf8]  ;;  %v1395_v23 = vrot.slane %v1393_v19, 3 }
  0xc3   : > { %v860_v1 = vrot.slane %v789_v62, 4  ;;  %v452_v3 = vld [vmem:[#allocation2 + $0x68] sm:$0xf]  ;;  %v1378_v5 = vrot.slane %v1376_v58, 3  ;;  %v1381_v6 = vrot.slane %v1379_v59, 4  ;;  %v1386_v7 = vrot.slane %v1384_v60, 3 }
  0xc4   : > { %v1389_v8 = vrot.slane %v1387_v61, 4  ;;  %v575_v11 = vshrl.u32 %v451_v2, 16  ;;  %v578_v12 = vshll.u32 %v451_v2, 16  ;;  %v583_v13 = vshrl.u32 %v452_v3, 16  ;;  %v933_v20 = vld [vmem:[#allocation2 + $0x60] sm:$0xf0] }
  0xc5   : > { %v861_v10 = vsel %vm840_vm0, %v859_v0, %v860_v1  ;;  %v1382_v16 = vor.u32 %v1381_v6, %v1378_v5  ;;  %v586_v18 = vshll.u32 %v452_v3, 16  ;;  %v934_v27 = vld [vmem:[#allocation2 + $0x68] sm:$0x1f]  ;;  %v1398_v34 = vrot.slane %v1396_v26, 4  ;;  %v791_v37 = vld [vmem:[#allocation2 + $0x78] sm:$0xf] }
  0xc6   : > { %v1390_v17 = vor.u32 %v1389_v8, %v1386_v7  ;;  %3698 = vmatprep.mubr.bf16.mxu0 %v861_v10  ;;  %v577_v21 = vrot.slane %v575_v11, 3  ;;  %v580_v22 = vrot.slane %v578_v12, 4  ;;  %v585_v24 = vrot.slane %v583_v13, 3  ;;  %v454_v50 = vld [vmem:[#allocation2 + $0x78] sm:$0xf]  ;;  %v10101_v56 = vld [vmem:[#allocation7 + $0x1e0] sm:$0xff]  }
  0xc7   : > { %v588_v31 = vrot.slane %v586_v18, 4  ;;  %v1404_v35 = vshll.u32 %v1271_v14, 16  ;;  %v1057_v36 = vshrl.u32 %v933_v20, 16  ;;  %v1403_v28 = vrot.slane %v1401_v25, 3  ;;  %v10100_v51 = vld [vmem:[#allocation7 + $0x138] sm:$0xff]   ;;  %9275 = vmatprep.subr.bf16.mxu1 %v10101_v56  ;;  %v10103_v6 = vld [vmem:[#allocation7 + $0x1e8] sm:$0xff]  }
  0xc8   : > { %v1391_v30 = vsel %vm471_vm1, %v1382_v16, %v1390_v17  ;;  %v581_v33 = vor.u32 %v580_v22, %v577_v21  ;;  %v1060_v29 = vshll.u32 %v933_v20, 16  ;;  %v1065_v44 = vshrl.u32 %v934_v27, 16  ;;  %v1272_v62 = vld [vmem:[#allocation2 + $0x80] sm:$0xf8]  ;;  %v1273_v5 = vld [vmem:[#allocation2 + $0x88] sm:$0xf]  ;;  %9170 = vmatpush3.bf16.msra.mxu0 %v10100_v51 }
  0xc9   : > { %3851 = vmatprep.mubr.bf16.mxu1 %v1391_v30  ;;  %v589_v38 = vor.u32 %v588_v31, %v585_v24  ;;  %v1399_v42 = vor.u32 %v1398_v34, %v1395_v23  ;;  %v1406_v45 = vrot.slane %v1404_v35, 4  ;;  %v1059_v46 = vrot.slane %v1057_v36, 4  ;;  %v935_v11 = vld [vmem:[#allocation2 + $0x70] sm:$0xf0]  ;;  %v10104_v12 = vld [vmem:[#allocation7 + $0x1a8] sm:$0xff]  }
  0xca   : > { %3852 = vmatmul.mubr.bf16.gmra.mrb[20].mxu1 %v1055_v63  ;;  %v1068_v49 = vshll.u32 %v934_v27, 16  ;;  %v1062_v53 = vrot.slane %v1060_v29, 5  ;;  %v1067_v54 = vrot.slane %v1065_v44, 4  ;;  %v862_v55 = vrot.slane %v790_v43, 4  ;;  %v10102_v63 = vld [vmem:[#allocation7 + $0x1a0] sm:$0xff]  }
  0xcb   : > { %v590_v52 = vsel %vm471_vm1, %v581_v33, %v589_v38  ;;  %v1407_v58 = vor.u32 %v1406_v45, %v1403_v28  ;;  %v863_v60 = vrot.slane %v791_v37, 4  ;;  %v592_v61 = vshrl.u32 %v453_v41, 16  ;;  %9276 = vmatpush3.bf16.msra.mxu1 %v10102_v63  ;;  %v936_v21 = vld [vmem:[#allocation2 + $0x78] sm:$0x1f]  ;;  %v792_v30 = vld [vmem:[#allocation2 + $0x80] sm:$0xf0] }
  0xcc   : > { %3699 = vmatmul.mubr.bf16.gmra.mrb[24].mxu0 %v590_v52  ;;  %v1070_v59 = vrot.slane %v1068_v49, 5  ;;  %v1063_v0 = vor.u32 %v1062_v53, %v1059_v46  ;;  %v595_v1 = vshll.u32 %v453_v41, 16  ;;  %v600_v2 = vshrl.u32 %v454_v50, 16  ;;  %9277 = vmatprep.subr.bf16.mxu1 %v10103_v6  ;;  %v793_v31 = vld [vmem:[#allocation2 + $0x88] sm:$0xf] }
  0xcd   : > { %v603_v3 = vshll.u32 %v454_v50, 16  ;;  %v1408_v7 = vsel %vm471_vm1, %v1399_v42, %v1407_v58  ;;  %v864_v9 = vsel %vm840_vm0, %v862_v55, %v863_v60  ;;  %v594_v10 = vrot.slane %v592_v61, 3  ;;  %v455_v33 = vld [vmem:[#allocation2 + $0x80] sm:$0xf8]  ;;  %v456_v38 = vld [vmem:[#allocation2 + $0x88] sm:$0xf] }
  0xce   : > { %v1071_v8 = vor.u32 %v1070_v59, %v1067_v54  ;;  %3859 = vmatprep.mubr.bf16.mxu1 %v1408_v7  ;;  %3706 = vmatprep.mubr.bf16.mxu0 %v864_v9  ;;  %v597_v13 = vrot.slane %v595_v1, 4  ;;  %v602_v14 = vrot.slane %v600_v2, 3  ;;  %v1410_v16 = vshrl.u32 %v1272_v62, 16  ;;  %v1274_v50 = vld [vmem:[#allocation2 + $0x90] sm:$0xf8] }
  0xcf   : > { %v605_v15 = vrot.slane %v603_v3, 4  ;;  %v1413_v18 = vshll.u32 %v1272_v62, 16  ;;  %v1418_v19 = vshrl.u32 %v1273_v5, 16  ;;  %v1421_v20 = vshll.u32 %v1273_v5, 16  ;;  %9278 = vmatpush3.bf16.msra.mxu1 %v10104_v12  ;;  %v1275_v55 = vld [vmem:[#allocation2 + $0x98] sm:$0xf] }
  0xd0   : > { %v1072_v17 = vsel %vm953_vm2, %v1063_v0, %v1071_v8  ;;  %v598_v22 = vor.u32 %v597_v13, %v594_v10  ;;  %v1412_v26 = vrot.slane %v1410_v16, 3  ;;  %v1074_v27 = vshrl.u32 %v935_v11, 16  ;;  %v937_v61 = vld [vmem:[#allocation2 + $0x80] sm:$0xf0]  ;;  %v938_v2 = vld [vmem:[#allocation2 + $0x88] sm:$0x1f] }
  0xd1   : > { %v606_v24 = vor.u32 %v605_v15, %v602_v14  ;;  %v1415_v23 = vrot.slane %v1413_v18, 4  ;;  %v1420_v25 = vrot.slane %v1418_v19, 3  ;;  %v1423_v43 = vrot.slane %v1421_v20, 4  ;;  %v794_v8 = vld [vmem:[#allocation2 + $0x90] sm:$0xf0] }
  0xd2   : > { %3860 = vmatmul.mubr.bf16.gmra.mrb[24].mxu1 %v1072_v17  ;;  %v1077_v32 = vshll.u32 %v935_v11, 16  ;;  %v1076_v35 = vrot.slane %v1074_v27, 4  ;;  %v1082_v36 = vshrl.u32 %v936_v21, 16  ;;  %v1085_v37 = vshll.u32 %v936_v21, 16  ;;  %v10105_v9 = vld [vmem:[#allocation7 + $0x1f0] sm:$0xff]   ;;  %v10107_v21 = vld [vmem:[#allocation7 + $0x1f8] sm:$0xff]  }
  0xd3   : > { %v607_v34 = vsel %vm471_vm1, %v598_v22, %v606_v24  ;;  %v1416_v28 = vor.u32 %v1415_v23, %v1412_v26  ;;  %v1424_v29 = vor.u32 %v1423_v43, %v1420_v25  ;;  %v865_v41 = vrot.slane %v792_v30, 4  ;;  %v795_v14 = vld [vmem:[#allocation2 + $0x98] sm:$0xf]  ;;  %v10106_v15 = vld [vmem:[#allocation7 + $0x1b0] sm:$0xff]   ;;  %9279 = vmatprep.subr.bf16.mxu1 %v10105_v9  ;;  %v459_v9 = vld [vmem:[#allocation2 + $0xa0] sm:$0xf8] }
  0xd4   : > { %3707 = vmatmul.mubr.bf16.gmra.mrb[28].mxu0 %v607_v34  ;;  %v1079_v44 = vrot.slane %v1077_v32, 5  ;;  %v1084_v42 = vrot.slane %v1082_v36, 4  ;;  %v1087_v45 = vrot.slane %v1085_v37, 5  ;;  %v866_v46 = vrot.slane %v793_v31, 4  ;;  %v457_v20 = vld [vmem:[#allocation2 + $0x90] sm:$0xf8]  ;;  %9280 = vmatpush3.bf16.msra.mxu1 %v10106_v15 }
  0xd5   : > { %v609_v49 = vshrl.u32 %v455_v33, 16  ;;  %v1425_v51 = vsel %vm471_vm1, %v1416_v28, %v1424_v29  ;;  %v612_v53 = vshll.u32 %v455_v33, 16  ;;  %v617_v54 = vshrl.u32 %v456_v38, 16  ;;  %v458_v30 = vld [vmem:[#allocation2 + $0x98] sm:$0xf]  ;;  %9281 = vmatprep.subr.bf16.mxu1 %v10107_v21 }
  0xd6   : > { %v1080_v52 = vor.u32 %v1079_v44, %v1076_v35  ;;  %3867 = vmatprep.mubr.bf16.mxu1 %v1425_v51  ;;  %v1088_v56 = vor.u32 %v1087_v45, %v1084_v42  ;;  %v867_v58 = vsel %vm840_vm0, %v865_v41, %v866_v46  ;;  %v620_v60 = vshll.u32 %v456_v38, 16  ;;  %v10108_v31 = vld [vmem:[#allocation7 + $0x1b8] sm:$0xff]   ;;  %v1276_v37 = vld [vmem:[#allocation2 + $0xa0] sm:$0xf8]  ;;  %v1277_v41 = vld [vmem:[#allocation2 + $0xa8] sm:$0xf] }
  0xd7   : > { %v611_v59 = vrot.slane %v609_v49, 3  ;;  %3714 = vmatprep.mubr.bf16.mxu0 %v867_v58  ;;  %v614_v62 = vrot.slane %v612_v53, 4  ;;  %v619_v63 = vrot.slane %v617_v54, 3  ;;  %v1427_v0 = vshrl.u32 %v1274_v50, 16 }
  0xd8   : > { %v1430_v1 = vshll.u32 %v1274_v50, 16  ;;  %v1089_v3 = vsel %vm953_vm2, %v1080_v52, %v1088_v56  ;;  %v622_v5 = vrot.slane %v620_v60, 4  ;;  %v1435_v6 = vshrl.u32 %v1275_v55, 16  ;;  %v939_v50 = vld [vmem:[#allocation2 + $0x90] sm:$0xf0]  ;;  %9282 = vmatpush3.bf16.msra.mxu1 %v10108_v31 }
  0xd9   : > { %v1438_v7 = vshll.u32 %v1275_v55, 16  ;;  %v615_v10 = vor.u32 %v614_v62, %v611_v59  ;;  %v1429_v11 = vrot.slane %v1427_v0, 3  ;;  %v1091_v13 = vshrl.u32 %v937_v61, 16  ;;  %v940_v55 = vld [vmem:[#allocation2 + $0x98] sm:$0x1f]  ;;  %v10705_v62 = vld [vmem:[#allocation7 + $0x200] sm:$0xff]  }
  0xda   : > { %3868 = vmatmul.mubr.bf16.gmra.mrb[28].mxu1 %v1089_v3  ;;  %v1432_v12 = vrot.slane %v1430_v1, 4  ;;  %v623_v16 = vor.u32 %v622_v5, %v619_v63  ;;  %v1437_v17 = vrot.slane %v1435_v6, 3  ;;  %v1094_v19 = vshll.u32 %v937_v61, 16  ;;  %v796_v61 = vld [vmem:[#allocation2 + $0xa0] sm:$0xf0]  ;;  %9875 = vmatprep.subr.bf16.mxu0 %v10705_v62 }
  0xdb   : > { %v1440_v18 = vrot.slane %v1438_v7, 4  ;;  %v1093_v24 = vrot.slane %v1091_v13, 4  ;;  %v1099_v26 = vshrl.u32 %v938_v2, 16  ;;  %v1102_v27 = vshll.u32 %v938_v2, 16  ;;  %v797_v3 = vld [vmem:[#allocation2 + $0xa8] sm:$0xf] }
  0xdc   : > { %v1433_v22 = vor.u32 %v1432_v12, %v1429_v11  ;;  %v624_v23 = vsel %vm471_vm1, %v615_v10, %v623_v16  ;;  %v1096_v43 = vrot.slane %v1094_v19, 5  ;;  %v868_v32 = vrot.slane %v794_v8, 4 }
  0xdd   : > { %v1441_v25 = vor.u32 %v1440_v18, %v1437_v17  ;;  %3715 = vmatmul.mubr.bf16.gmra.mrb[32].mxu0 %v624_v23  ;;  %v1101_v33 = vrot.slane %v1099_v26, 4  ;;  %v1104_v34 = vrot.slane %v1102_v27, 5  ;;  %v869_v35 = vrot.slane %v795_v14, 4  ;;  %v460_v14 = vld [vmem:[#allocation2 + $0xa8] sm:$0xf] }
  0xde   : > { %v626_v36 = vshrl.u32 %v457_v20, 16  ;;  %v1097_v28 = vor.u32 %v1096_v43, %v1093_v24  ;;  %v629_v29 = vshll.u32 %v457_v20, 16  ;;  %v634_v44 = vshrl.u32 %v458_v30, 16  ;;  %v1278_v24 = vld [vmem:[#allocation2 + $0xb0] sm:$0xf8] }
  0xdf   : > { %v1442_v38 = vsel %vm471_vm1, %v1433_v22, %v1441_v25  ;;  %v1105_v42 = vor.u32 %v1104_v34, %v1101_v33  ;;  %v870_v45 = vsel %vm840_vm0, %v868_v32, %v869_v35  ;;  %v637_v49 = vshll.u32 %v458_v30, 16  ;;  %v1279_v23 = vld [vmem:[#allocation2 + $0xb8] sm:$0xf]  ;;  %v941_v25 = vld [vmem:[#allocation2 + $0xa0] sm:$0xf0] }
  0xe0   : > { %3875 = vmatprep.mubr.bf16.mxu1 %v1442_v38  ;;  %v628_v46 = vrot.slane %v626_v36, 3  ;;  %3722 = vmatprep.mubr.bf16.mxu0 %v870_v45  ;;  %v631_v51 = vrot.slane %v629_v29, 4  ;;  %v636_v52 = vrot.slane %v634_v44, 3  ;;  %v1444_v53 = vshrl.u32 %v1276_v37, 16  ;;  %v942_v35 = vld [vmem:[#allocation2 + $0xa8] sm:$0x1f] }
  0xe1   : > { %v1447_v54 = vshll.u32 %v1276_v37, 16  ;;  %v1106_v56 = vsel %vm953_vm2, %v1097_v28, %v1105_v42  ;;  %v639_v58 = vrot.slane %v637_v49, 4  ;;  %v1452_v59 = vshrl.u32 %v1277_v41, 16  ;;  %v798_v29 = vld [vmem:[#allocation2 + $0xb0] sm:$0xf0] }
  0xe2   : > { %v1455_v60 = vshll.u32 %v1277_v41, 16  ;;  %3876 = vmatmul.mubr.bf16.gmra.mrb[32].mxu1 %v1106_v56  ;;  %v632_v63 = vor.u32 %v631_v51, %v628_v46  ;;  %v1446_v0 = vrot.slane %v1444_v53, 3  ;;  %v1108_v2 = vshrl.u32 %v939_v50, 16  ;;  %v799_v46 = vld [vmem:[#allocation2 + $0xb8] sm:$0xf] }
  0xe3   : > { %v1449_v1 = vrot.slane %v1447_v54, 4  ;;  %v640_v5 = vor.u32 %v639_v58, %v636_v52  ;;  %v1454_v6 = vrot.slane %v1452_v59, 3  ;;  %v1111_v8 = vshll.u32 %v939_v50, 16  ;;  %v461_v49 = vld [vmem:[#allocation2 + $0xb0] sm:$0xf8] }
  0xe4   : > { %v1457_v7 = vrot.slane %v1455_v60, 4  ;;  %v1110_v11 = vrot.slane %v1108_v2, 4  ;;  %v1116_v12 = vshrl.u32 %v940_v55, 16  ;;  %v1119_v13 = vshll.u32 %v940_v55, 16  ;;  %v462_v54 = vld [vmem:[#allocation2 + $0xb8] sm:$0xf] }
  0xe5   : > { %v1450_v10 = vor.u32 %v1449_v1, %v1446_v0  ;;  %v641_v15 = vsel %vm471_vm1, %v632_v63, %v640_v5  ;;  %v1113_v17 = vrot.slane %v1111_v8, 5  ;;  %v871_v18 = vrot.slane %v796_v61, 4  ;;  %v1280_v1 = vld [vmem:[#allocation2 + $0xc0] sm:$0xf8] }
  0xe6   : > { %v1458_v16 = vor.u32 %v1457_v7, %v1454_v6  ;;  %3723 = vmatmul.mubr.bf16.gmra.mrb[36].mxu0 %v641_v15  ;;  %v1118_v19 = vrot.slane %v1116_v12, 4  ;;  %v1121_v20 = vrot.slane %v1119_v13, 5  ;;  %v872_v21 = vrot.slane %v797_v3, 4  ;;  %v1281_v7 = vld [vmem:[#allocation2 + $0xc8] sm:$0xf] }
  0xe7   : > { %v643_v22 = vshrl.u32 %v459_v9, 16  ;;  %v1114_v27 = vor.u32 %v1113_v17, %v1110_v11  ;;  %v646_v30 = vshll.u32 %v459_v9, 16  ;;  %v651_v31 = vshrl.u32 %v460_v14, 16  ;;  %v943_v12 = vld [vmem:[#allocation2 + $0xb0] sm:$0xf0] }
  0xe8   : > { %v1459_v26 = vsel %vm471_vm1, %v1450_v10, %v1458_v16  ;;  %v1122_v43 = vor.u32 %v1121_v20, %v1118_v19  ;;  %v873_v32 = vsel %vm840_vm0, %v871_v18, %v872_v21  ;;  %v654_v34 = vshll.u32 %v460_v14, 16  ;;  %v944_v21 = vld [vmem:[#allocation2 + $0xb8] sm:$0x1f] }
  0xe9   : > { %3883 = vmatprep.mubr.bf16.mxu1 %v1459_v26  ;;  %v645_v33 = vrot.slane %v643_v22, 3  ;;  %3730 = vmatprep.mubr.bf16.mxu0 %v873_v32  ;;  %v648_v36 = vrot.slane %v646_v30, 4  ;;  %v653_v37 = vrot.slane %v651_v31, 3  ;;  %v1461_v38 = vshrl.u32 %v1278_v24, 16  ;;  %v800_v30 = vld [vmem:[#allocation2 + $0xc0] sm:$0xf0] }
  0xea   : > { %v1464_v28 = vshll.u32 %v1278_v24, 16  ;;  %v1123_v44 = vsel %vm953_vm2, %v1114_v27, %v1122_v43  ;;  %v656_v41 = vrot.slane %v654_v34, 4  ;;  %v1469_v42 = vshrl.u32 %v1279_v23, 16  ;;  %v801_v32 = vld [vmem:[#allocation2 + $0xc8] sm:$0xf] }
  0xeb   : > { %v1472_v45 = vshll.u32 %v1279_v23, 16  ;;  %3884 = vmatmul.mubr.bf16.gmra.mrb[36].mxu1 %v1123_v44  ;;  %v649_v50 = vor.u32 %v648_v36, %v645_v33  ;;  %v1463_v51 = vrot.slane %v1461_v38, 3  ;;  %v1125_v53 = vshrl.u32 %v941_v25, 16  ;;  %v463_v33 = vld [vmem:[#allocation2 + $0xc0] sm:$0xf8] }
  0xec   : > { %v1466_v52 = vrot.slane %v1464_v28, 4  ;;  %v657_v55 = vor.u32 %v656_v41, %v653_v37  ;;  %v1471_v56 = vrot.slane %v1469_v42, 3  ;;  %v1128_v59 = vshll.u32 %v941_v25, 16  ;;  %v464_v38 = vld [vmem:[#allocation2 + $0xc8] sm:$0xf] }
  0xed   : > { %v1474_v58 = vrot.slane %v1472_v45, 4  ;;  %v1127_v61 = vrot.slane %v1125_v53, 4  ;;  %v1133_v63 = vshrl.u32 %v942_v35, 16  ;;  %v1136_v0 = vshll.u32 %v942_v35, 16 }
  0xee   : > { %v1467_v60 = vor.u32 %v1466_v52, %v1463_v51  ;;  %v658_v2 = vsel %vm471_vm1, %v649_v50, %v657_v55  ;;  %v1130_v5 = vrot.slane %v1128_v59, 5  ;;  %v874_v6 = vrot.slane %v798_v29, 4 }
  0xef   : > { %v1475_v3 = vor.u32 %v1474_v58, %v1471_v56  ;;  %3731 = vmatmul.mubr.bf16.gmra.mrb[40].mxu0 %v658_v2  ;;  %v1135_v8 = vrot.slane %v1133_v63, 4  ;;  %v1138_v9 = vrot.slane %v1136_v0, 5  ;;  %v875_v10 = vrot.slane %v799_v46, 4  ;;  %v301_v2 = vld [vmem:[%s10600_s6 + $0xe0] sm:$0xff] }
  0xf0   : > { %v660_v11 = vshrl.u32 %v461_v49, 16  ;;  %v1131_v14 = vor.u32 %v1130_v5, %v1127_v61  ;;  %v663_v15 = vshll.u32 %v461_v49, 16  ;;  %v668_v16 = vshrl.u32 %v462_v54, 16 }
  0xf1   : > { %v1476_v13 = vsel %vm471_vm1, %v1467_v60, %v1475_v3  ;;  %v1139_v17 = vor.u32 %v1138_v9, %v1135_v8  ;;  %v876_v18 = vsel %vm840_vm0, %v874_v6, %v875_v10  ;;  %v671_v20 = vshll.u32 %v462_v54, 16  ;;  %v945_v54 = vld [vmem:[#allocation2 + $0xc0] sm:$0xf0]  ;;  %v302_v8 = vld [vmem:[%s10600_s6 + $0xe8] sm:$0xff]  ;;  %v303_v9 = vld [vmem:[%s10600_s6 + $0xf0] sm:$0xff] }
  0xf2   : > { %3891 = vmatprep.mubr.bf16.mxu1 %v1476_v13  ;;  %v662_v19 = vrot.slane %v660_v11, 3  ;;  %3738 = vmatprep.mubr.bf16.mxu0 %v876_v18  ;;  %v665_v22 = vrot.slane %v663_v15, 4  ;;  %v670_v24 = vrot.slane %v668_v16, 3  ;;  %v1478_v26 = vshrl.u32 %v1280_v1, 16  ;;  %v304_v18 = vld [vmem:[%s10600_s6 + $0xf8] sm:$0xff] }
  0xf3   : > { %v1481_v27 = vshll.u32 %v1280_v1, 16  ;;  %v1140_v31 = vsel %vm953_vm2, %v1131_v14, %v1139_v17  ;;  %v673_v23 = vrot.slane %v671_v20, 4  ;;  %v1486_v25 = vshrl.u32 %v1281_v7, 16  ;;  %v946_v1 = vld [vmem:[#allocation2 + $0xc8] sm:$0x1f] }
  0xf4   : > { %v1489_v43 = vshll.u32 %v1281_v7, 16  ;;  %3892 = vmatmul.mubr.bf16.gmra.mrb[40].mxu1 %v1140_v31  ;;  %v666_v34 = vor.u32 %v665_v22, %v662_v19  ;;  %v1480_v35 = vrot.slane %v1478_v26, 3  ;;  %v1142_v37 = vshrl.u32 %v943_v12, 16  ;;  %v1738_v19 = vld [vmem:[#allocation2 + $0x10] sm:$0xf0] }
  0xf5   : > { %v1483_v36 = vrot.slane %v1481_v27, 4  ;;  %v674_v28 = vor.u32 %v673_v23, %v670_v24  ;;  %v1488_v29 = vrot.slane %v1486_v25, 3  ;;  %v1145_v41 = vshll.u32 %v943_v12, 16  ;;  %v10730_v26 = vld [vmem:[#allocation2 + $0x18] sm:$0x1f] }
  0xf6   : > { %v1491_v44 = vrot.slane %v1489_v43, 4  ;;  %v1144_v45 = vrot.slane %v1142_v37, 4  ;;  %v1150_v46 = vshrl.u32 %v944_v21, 16  ;;  %v1153_v49 = vshll.u32 %v944_v21, 16 }
  0xf7   : > { %v1484_v42 = vor.u32 %v1483_v36, %v1480_v35  ;;  %v675_v50 = vsel %vm471_vm1, %v666_v34, %v674_v28  ;;  %v1147_v52 = vrot.slane %v1145_v41, 5  ;;  %v877_v53 = vrot.slane %v800_v30, 4  ;;  %v10732_v30 = vld [vmem:[#allocation2 + $0x10] sm:$0xf0]  ;;  %v2412_v35 = vld [vmem:[#allocation2 + $0x28] sm:$0xf] }
  0xf8   : > { %v1492_v51 = vor.u32 %v1491_v44, %v1488_v29  ;;  %3739 = vmatmul.mubr.bf16.gmra.mrb[44].mxu0 %v675_v50  ;;  %v1152_v55 = vrot.slane %v1150_v46, 4  ;;  %v1155_v56 = vrot.slane %v1153_v49, 5  ;;  %v878_v58 = vrot.slane %v801_v32, 4  ;;  %v10734_v32 = vld [vmem:[#allocation2 + $0x18] sm:$0xf] }
  0xf9   : > { %v677_v59 = vshrl.u32 %v463_v33, 16  ;;  %v1148_v61 = vor.u32 %v1147_v52, %v1144_v45  ;;  %v680_v63 = vshll.u32 %v463_v33, 16  ;;  %v685_v0 = vshrl.u32 %v464_v38, 16 }
  0xfa   : > { %v1493_v60 = vsel %vm471_vm1, %v1484_v42, %v1492_v51  ;;  %v1156_v3 = vor.u32 %v1155_v56, %v1152_v55  ;;  %v879_v5 = vsel %vm840_vm0, %v877_v53, %v878_v58  ;;  %v688_v7 = vshll.u32 %v464_v38, 16 }
  0xfb   : > { %3899 = vmatprep.mubr.bf16.mxu1 %v1493_v60  ;;  %v679_v6 = vrot.slane %v677_v59, 3  ;;  %3746 = vmatprep.mubr.bf16.mxu0 %v879_v5  ;;  %v682_v10 = vrot.slane %v680_v63, 4  ;;  %v687_v11 = vrot.slane %v685_v0, 3  ;;  %v387_v12 = vrot.slane %v355_v57, 4 }
  0xfc   : > { %v1159_v13 = vshrl.u32 %v945_v54, 16  ;;  %v1157_v14 = vsel %vm953_vm2, %v1148_v61, %v1156_v3  ;;  %v690_v15 = vrot.slane %v688_v7, 4  ;;  %v1162_v16 = vshll.u32 %v945_v54, 16 }
  0xfd   : > { %v1167_v17 = vshrl.u32 %v946_v1, 16  ;;  %3900 = vmatmul.mubr.bf16.gmra.mrb[44].mxu1 %v1157_v14  ;;  %v683_v20 = vor.u32 %v682_v10, %v679_v6  ;;  %431 = vst [vmem:[#allocation2 + $0xd8] ss:$-4 sps:$4 sm:$0xff] %v387_v12   ;;  %v1170_v22 = vshll.u32 %v946_v1, 16  ;;  %v388_v24 = vrot.slane %v356_v4, 4 }
  0xfe   : > { %v1161_v21 = vrot.slane %v1159_v13, 4  ;;  %v691_v39 = vor.u32 %v690_v15, %v687_v11  ;;  %v1164_v40 = vrot.slane %v1162_v16, 5  ;;  %v357_v27 = vpack.c.bf16 %v302_v8, %v301_v2  ;;  %v2411_v4 = vld [vmem:[#allocation2 + $0x20] sm:$0xf0] }
  0xff   : > { %v1169_v57 = vrot.slane %v1167_v17, 4  ;;  %v1172_v31 = vrot.slane %v1170_v22, 5  ;;  %433 = vst [vmem:[#allocation2 + $0xe8] ss:$-4 sps:$4 sm:$0xff] %v388_v24   ;;  %v358_v23 = vpack.c.bf16 %v304_v18, %v303_v9  ;;  %v1771_v25 = vshrl.u32 %v1738_v19, 16 }
 0x100   : > { %v1774_v43 = vshll.u32 %v1738_v19, 16  ;;  %v692_v33 = vsel %vm471_vm1, %v683_v20, %v691_v39  ;;  %v1165_v34 = vor.u32 %v1164_v40, %v1161_v21  ;;  %v389_v47 = vrot.slane %v357_v27, 4 }
 0x101   : > { %v1779_v48 = vshrl.u32 %v10730_v26, 16  ;;  %3747 = vmatmul.mubr.bf16.gmra.mrb[48].mxu0 %v692_v33  ;;  %v1173_v36 = vor.u32 %v1172_v31, %v1169_v57  ;;  %v390_v37 = vrot.slane %v358_v23, 4  ;;  %v10738_v38 = vrot.slane %v1771_v25, 4 }
 0x102   : > { %435 = vst [vmem:[#allocation2 + $0xf8] ss:$-4 sps:$4 sm:$0xff] %v389_v47   ;;  %v10740_v28 = vrot.slane %v1774_v43, 5  ;;  %v1782_v44 = vshll.u32 %v10730_v26, 16  ;;  %v1658_v41 = vrot.slane %v10732_v30, 4  ;;  %v1659_v42 = vrot.slane %v10734_v32, 4 }
 0x103   : > { %v10742_v29 = vrot.slane %v1779_v48, 4  ;;  %437 = vst [vmem:[#allocation2 + $0x108] ss:$-4 sps:$4 sm:$0xff] %v390_v37   ;;  %v2475_v45 = vrot.slane %v2411_v4, 4  ;;  %v2476_v46 = vrot.slane %v2412_v35, 4  ;;  %v1174_v51 = vsel %vm953_vm2, %v1165_v34, %v1173_v36 }
 0x104   : > { %v1282_v49 = vld [vmem:[#allocation2 + $0xd0] sm:$0xf8]  ;;  %v1283_v50 = vld [vmem:[#allocation2 + $0xd8] sm:$0xf]  ;;  %v1777_v0 = vor.u32 %v10740_v28, %v10738_v38  ;;  %v1660_v38 = vsel %vm840_vm0, %v1658_v41, %v1659_v42 }
 0x105   : > { %v802_v52 = vld [vmem:[#allocation2 + $0xd0] sm:$0xf0]  ;;  %v1495_v53 = vshrl.u32 %v1282_v49, 16  ;;  %v1498_v54 = vshll.u32 %v1282_v49, 16  ;;  %v1503_v55 = vshrl.u32 %v1283_v50, 16  ;;  %v1506_v56 = vshll.u32 %v1283_v50, 16 }
 0x106   : > { %v803_v58 = vld [vmem:[#allocation2 + $0xd8] sm:$0xf]  ;;  %v880_v59 = vrot.slane %v802_v52, 4  ;;  %v465_v61 = vld [vmem:[#allocation2 + $0xd0] sm:$0xf8]  ;;  %v10751_v1 = vsel %vm840_vm0, %v2475_v45, %v2476_v46 }
 0x107   : > { %v881_v60 = vrot.slane %v803_v58, 4  ;;  %v466_v63 = vld [vmem:[#allocation2 + $0xd8] sm:$0xf]  ;;  %v1497_v2 = vrot.slane %v1495_v53, 3  ;;  %v1500_v3 = vrot.slane %v1498_v54, 4  ;;  %v1505_v5 = vrot.slane %v1503_v55, 3 }
 0x108   : > { %v1508_v6 = vrot.slane %v1506_v56, 4  ;;  %v1284_v7 = vld [vmem:[#allocation2 + $0xe0] sm:$0xf8]  ;;  %v694_v9 = vshrl.u32 %v465_v61, 16  ;;  %v697_v10 = vshll.u32 %v465_v61, 16  ;;  %v702_v11 = vshrl.u32 %v466_v63, 16 }
 0x109   : > { %v882_v8 = vsel %vm840_vm0, %v880_v59, %v881_v60  ;;  %v1285_v12 = vld [vmem:[#allocation2 + $0xe8] sm:$0xf]  ;;  %v1501_v13 = vor.u32 %v1500_v3, %v1497_v2  ;;  %v705_v15 = vshll.u32 %v466_v63, 16  ;;  %v1512_v16 = vshrl.u32 %v1284_v7, 16  ;;  %v947_v17 = vld [vmem:[#allocation2 + $0xd0] sm:$0xf0] }
 0x10a   : > { %v1509_v14 = vor.u32 %v1508_v6, %v1505_v5  ;;  %3754 = vmatprep.mubr.bf16.mxu0 %v882_v8  ;;  %v696_v18 = vrot.slane %v694_v9, 3  ;;  %v699_v19 = vrot.slane %v697_v10, 4  ;;  %v704_v20 = vrot.slane %v702_v11, 3  ;;  %v948_v22 = vld [vmem:[#allocation2 + $0xd8] sm:$0x1f] }
 0x10b   : > { %v1515_v21 = vshll.u32 %v1284_v7, 16  ;;  %v707_v39 = vrot.slane %v705_v15, 4  ;;  %v1514_v40 = vrot.slane %v1512_v16, 3  ;;  %v1520_v57 = vshrl.u32 %v1285_v12, 16  ;;  %v804_v27 = vld [vmem:[#allocation2 + $0xe0] sm:$0xf0] }
 0x10c   : > { %v1510_v24 = vsel %vm471_vm1, %v1501_v13, %v1509_v14  ;;  %v700_v31 = vor.u32 %v699_v19, %v696_v18  ;;  %v1523_v25 = vshll.u32 %v1285_v12, 16  ;;  %v1176_v43 = vshrl.u32 %v947_v17, 16  ;;  %v805_v33 = vld [vmem:[#allocation2 + $0xe8] sm:$0xf]  ;;  %v467_v35 = vld [vmem:[#allocation2 + $0xe0] sm:$0xf8] }
 0x10d   : > { %3907 = vmatprep.mubr.bf16.mxu1 %v1510_v24  ;;  %v1517_v23 = vrot.slane %v1515_v21, 4  ;;  %v708_v34 = vor.u32 %v707_v39, %v704_v20  ;;  %v1522_v47 = vrot.slane %v1520_v57, 3  ;;  %v1179_v48 = vshll.u32 %v947_v17, 16  ;;  %v468_v49 = vld [vmem:[#allocation2 + $0xe8] sm:$0xf] }
 0x10e   : > { %3908 = vmatmul.mubr.bf16.gmra.mrb[48].mxu1 %v1174_v51  ;;  %v1184_v4 = vshrl.u32 %v948_v22, 16  ;;  %v1525_v37 = vrot.slane %v1523_v25, 4  ;;  %v1178_v45 = vrot.slane %v1176_v43, 4  ;;  %v1187_v46 = vshll.u32 %v948_v22, 16  ;;  %v1286_v59 = vld [vmem:[#allocation2 + $0xf0] sm:$0xf8] }
 0x10f   : > { %v1518_v36 = vor.u32 %v1517_v23, %v1514_v40  ;;  %v709_v50 = vsel %vm471_vm1, %v700_v31, %v708_v34  ;;  %v1181_v52 = vrot.slane %v1179_v48, 5  ;;  %v883_v54 = vrot.slane %v804_v27, 4  ;;  %v1287_v3 = vld [vmem:[#allocation2 + $0xf8] sm:$0xf]  ;;  %v949_v9 = vld [vmem:[#allocation2 + $0xe0] sm:$0xf0] }
 0x110   : > { %v1186_v53 = vrot.slane %v1184_v4, 4  ;;  %3755 = vmatmul.mubr.bf16.gmra.mrb[52].mxu0 %v709_v50  ;;  %v1526_v55 = vor.u32 %v1525_v37, %v1522_v47  ;;  %v1189_v56 = vrot.slane %v1187_v46, 5  ;;  %v884_v58 = vrot.slane %v805_v33, 4  ;;  %v950_v18 = vld [vmem:[#allocation2 + $0xe8] sm:$0x1f] }
 0x111   : > { %v711_v51 = vshrl.u32 %v467_v35, 16  ;;  %v1182_v60 = vor.u32 %v1181_v52, %v1178_v45  ;;  %v714_v61 = vshll.u32 %v467_v35, 16  ;;  %v719_v63 = vshrl.u32 %v468_v49, 16  ;;  %v806_v24 = vld [vmem:[#allocation2 + $0xf0] sm:$0xf0] }
 0x112   : > { %v722_v2 = vshll.u32 %v468_v49, 16  ;;  %v1527_v5 = vsel %vm471_vm1, %v1518_v36, %v1526_v55  ;;  %v1190_v6 = vor.u32 %v1189_v56, %v1186_v53  ;;  %v885_v7 = vsel %vm840_vm0, %v883_v54, %v884_v58  ;;  %v807_v39 = vld [vmem:[#allocation2 + $0xf8] sm:$0xf]  ;;  %v469_v23 = vld [vmem:[#allocation2 + $0xf0] sm:$0xf8] }
 0x113   : > { %v713_v8 = vrot.slane %v711_v51, 3  ;;  %3915 = vmatprep.mubr.bf16.mxu1 %v1527_v5  ;;  %3762 = vmatprep.mubr.bf16.mxu0 %v885_v7  ;;  %v716_v10 = vrot.slane %v714_v61, 4  ;;  %v721_v11 = vrot.slane %v719_v63, 3  ;;  %v1529_v13 = vshrl.u32 %v1286_v59, 16  ;;  %v470_v47 = vld [vmem:[#allocation2 + $0xf8] sm:$0xf] }
 0x114   : > { %v724_v12 = vrot.slane %v722_v2, 4  ;;  %v1191_v14 = vsel %vm953_vm2, %v1182_v60, %v1190_v6  ;;  %v1532_v15 = vshll.u32 %v1286_v59, 16  ;;  %v1537_v16 = vshrl.u32 %v1287_v3, 16  ;;  %v1288_v50 = vld [vmem:[#allocation2 + $0x100] sm:$0xf8] }
 0x115   : > { %v1540_v17 = vshll.u32 %v1287_v3, 16  ;;  %v717_v19 = vor.u32 %v716_v10, %v713_v8  ;;  %v1531_v21 = vrot.slane %v1529_v13, 3  ;;  %v1193_v22 = vshrl.u32 %v949_v9, 16  ;;  %v1289_v56 = vld [vmem:[#allocation2 + $0x108] sm:$0xf] }
 0x116   : > { %3916 = vmatmul.mubr.bf16.gmra.mrb[52].mxu1 %v1191_v14  ;;  %v725_v20 = vor.u32 %v724_v12, %v721_v11  ;;  %v1534_v40 = vrot.slane %v1532_v15, 4  ;;  %v1539_v57 = vrot.slane %v1537_v16, 3  ;;  %v1196_v31 = vshll.u32 %v949_v9, 16  ;;  %v951_v58 = vld [vmem:[#allocation2 + $0xf0] sm:$0xf0] }
 0x117   : > { %v1542_v27 = vrot.slane %v1540_v17, 4  ;;  %v1195_v43 = vrot.slane %v1193_v22, 4  ;;  %v1201_v33 = vshrl.u32 %v950_v18, 16  ;;  %v1204_v34 = vshll.u32 %v950_v18, 16  ;;  %v952_v10 = vld [vmem:[#allocation2 + $0xf8] sm:$0x1f] }
 0x118   : > { %v726_v25 = vsel %vm471_vm1, %v717_v19, %v725_v20  ;;  %v1535_v48 = vor.u32 %v1534_v40, %v1531_v21  ;;  %v1198_v35 = vrot.slane %v1196_v31, 5  ;;  %v886_v36 = vrot.slane %v806_v24, 4  ;;  %v2075_v19 = vld [vmem:[#allocation2 + $0x20] sm:$0xf8] }
 0x119   : > { %3763 = vmatmul.mubr.bf16.gmra.mrb[56].mxu0 %v726_v25  ;;  %v1543_v4 = vor.u32 %v1542_v27, %v1539_v57  ;;  %v1203_v37 = vrot.slane %v1201_v33, 4  ;;  %v1206_v45 = vrot.slane %v1204_v34, 5  ;;  %v887_v46 = vrot.slane %v807_v39, 4  ;;  %v2076_v39 = vld [vmem:[#allocation2 + $0x28] sm:$0xf] }
 0x11a   : > { %v728_v49 = vshrl.u32 %v469_v23, 16  ;;  %v1199_v53 = vor.u32 %v1198_v35, %v1195_v43  ;;  %v731_v54 = vshll.u32 %v469_v23, 16  ;;  %v736_v55 = vshrl.u32 %v470_v47, 16  ;;  %v1740_v34 = vld [vmem:[#allocation2 + $0x20] sm:$0xf0] }
 0x11b   : > { %v1544_v52 = vsel %vm471_vm1, %v1535_v48, %v1543_v4  ;;  %v1207_v51 = vor.u32 %v1206_v45, %v1203_v37  ;;  %v888_v59 = vsel %vm840_vm0, %v886_v36, %v887_v46  ;;  %v739_v61 = vshll.u32 %v470_v47, 16  ;;  %v1741_v36 = vld [vmem:[#allocation2 + $0x28] sm:$0x1f]  ;;  %v10768_v37 = vld [vmem:[#allocation2 + $0x20] sm:$0xf0] }
 0x11c   : > { %3923 = vmatprep.mubr.bf16.mxu1 %v1544_v52  ;;  %v730_v60 = vrot.slane %v728_v49, 3  ;;  %3770 = vmatprep.mubr.bf16.mxu0 %v888_v59  ;;  %v733_v63 = vrot.slane %v731_v54, 4  ;;  %v738_v2 = vrot.slane %v736_v55, 3  ;;  %v1546_v3 = vshrl.u32 %v1288_v50, 16  ;;  %v2413_v49 = vld [vmem:[#allocation2 + $0x30] sm:$0xf0] }
 0x11d   : > { %v1549_v5 = vshll.u32 %v1288_v50, 16  ;;  %v1208_v6 = vsel %vm953_vm2, %v1199_v53, %v1207_v51  ;;  %v741_v7 = vrot.slane %v739_v61, 4  ;;  %v1554_v8 = vshrl.u32 %v1289_v56, 16  ;;  %v1597_v55 = vld [vmem:[#allocation2 + $0x28] sm:$0xf] }
 0x11e   : > { %v1557_v9 = vshll.u32 %v1289_v56, 16  ;;  %3924 = vmatmul.mubr.bf16.gmra.mrb[56].mxu1 %v1208_v6  ;;  %v734_v11 = vor.u32 %v733_v63, %v730_v60  ;;  %v1548_v12 = vrot.slane %v1546_v3, 3  ;;  %v1210_v14 = vshrl.u32 %v951_v58, 16  ;;  %v2077_v60 = vld [vmem:[#allocation2 + $0x30] sm:$0xf8] }
 0x11f   : > { %v1551_v13 = vrot.slane %v1549_v5, 4  ;;  %v742_v15 = vor.u32 %v741_v7, %v738_v2  ;;  %v1556_v16 = vrot.slane %v1554_v8, 3  ;;  %v1213_v18 = vshll.u32 %v951_v58, 16  ;;  %v2078_v61 = vld [vmem:[#allocation2 + $0x38] sm:$0xf] }
 0x120   : > { %v1559_v17 = vrot.slane %v1557_v9, 4  ;;  %v1212_v21 = vrot.slane %v1210_v14, 4  ;;  %v1218_v22 = vshrl.u32 %v952_v10, 16  ;;  %v1221_v24 = vshll.u32 %v952_v10, 16  ;;  %v1742_v2 = vld [vmem:[#allocation2 + $0x30] sm:$0xf0] }
 0x121   : > { %v1552_v20 = vor.u32 %v1551_v13, %v1548_v12  ;;  %v743_v40 = vsel %vm471_vm1, %v734_v11, %v742_v15  ;;  %v1215_v27 = vrot.slane %v1213_v18, 5  ;;  %v1784_v31 = vrot.slane %v1782_v44, 5  ;;  %v1743_v8 = vld [vmem:[#allocation2 + $0x38] sm:$0x1f]  ;;  %v10110_v9 = vld [vmem:[#allocation7 + $0x208] sm:$0xff]   ;;  %v10111_v18 = vld [vmem:[#allocation7 + $0x210] sm:$0xff]  }
 0x122   : > { %v1560_v57 = vor.u32 %v1559_v17, %v1556_v16  ;;  %3771 = vmatmul.mubr.bf16.gmra.mrb[60].mxu0 %v743_v40  ;;  %v1220_v23 = vrot.slane %v1218_v22, 4  ;;  %v1223_v25 = vrot.slane %v1221_v24, 5  ;;  %v2108_v43 = vshrl.u32 %v2075_v19, 16  ;;  %v10785_v17 = vld [vmem:[#allocation2 + $0x30] sm:$0xf0] }
 0x123   : > { %v2111_v33 = vshll.u32 %v2075_v19, 16  ;;  %v1216_v48 = vor.u32 %v1215_v27, %v1212_v21  ;;  %v1785_v4 = vor.u32 %v1784_v31, %v10742_v29  ;;  %v2116_v35 = vshrl.u32 %v2076_v39, 16  ;;  %v2414_v29 = vld [vmem:[#allocation2 + $0x38] sm:$0xf] }
 0x124   : > { %v1561_v47 = vsel %vm471_vm1, %v1552_v20, %v1560_v57  ;;  %v1224_v45 = vor.u32 %v1223_v25, %v1220_v23  ;;  %v2110_v46 = vrot.slane %v2108_v43, 3  ;;  %v2119_v44 = vshll.u32 %v2076_v39, 16  ;;  %v1599_v24 = vld [vmem:[#allocation2 + $0x38] sm:$0xf]  ;;  %v2415_v43 = vld [vmem:[#allocation2 + $0x40] sm:$0xf0] }
 0x125   : > { %3931 = vmatprep.mubr.bf16.mxu1 %v1561_v47  ;;  %v2113_v26 = vrot.slane %v2111_v33, 4  ;;  %v1786_v50 = vsel %vm953_vm2, %v1777_v0, %v1785_v4  ;;  %v2118_v52 = vrot.slane %v2116_v35, 3  ;;  %v1788_v53 = vshrl.u32 %v1740_v34, 16  ;;  %v2416_v33 = vld [vmem:[#allocation2 + $0x48] sm:$0xf] }
 0x126   : > { %v1791_v54 = vshll.u32 %v1740_v34, 16  ;;  %v1225_v56 = vsel %vm953_vm2, %v1216_v48, %v1224_v45  ;;  %3972 = vmatprep.mubr.bf16.mxu0 %v1786_v50  ;;  %v2121_v51 = vrot.slane %v2119_v44, 4  ;;  %v1796_v59 = vshrl.u32 %v1741_v36, 16  ;;  %v2080_v35 = vld [vmem:[#allocation2 + $0x48] sm:$0xf]  ;;  %v10112_v44 = vld [vmem:[#allocation7 + $0x218] sm:$0xff]  }
 0x127   : > { %v2114_v58 = vor.u32 %v2113_v26, %v2110_v46  ;;  %3932 = vmatmul.mubr.bf16.gmra.mrb[60].mxu1 %v1225_v56  ;;  %v1790_v28 = vrot.slane %v1788_v53, 4  ;;  %v1799_v63 = vshll.u32 %v1741_v36, 16  ;;  %v1661_v6 = vrot.slane %v10768_v37, 4  ;;  %v1744_v26 = vld [vmem:[#allocation2 + $0x40] sm:$0xf0] }
 0x128   : > { %v1793_v0 = vrot.slane %v1791_v54, 5  ;;  %4133 = vmatprep.mubr.bf16.mxu1 %v10751_v1  ;;  %v2122_v3 = vor.u32 %v2121_v51, %v2118_v52  ;;  %v1798_v5 = vrot.slane %v1796_v59, 4  ;;  %v2478_v7 = vrot.slane %v2413_v49, 4  ;;  %v1745_v54 = vld [vmem:[#allocation2 + $0x48] sm:$0x1f] }
 0x129   : > { %v1801_v11 = vrot.slane %v1799_v63, 5  ;;  %v2479_v32 = vrot.slane %v2414_v29, 4  ;;  %v2125_v12 = vshrl.u32 %v2077_v60, 16  ;;  %v1662_v41 = vrot.slane %v1597_v55, 4  ;;  %v1600_v51 = vld [vmem:[#allocation2 + $0x40] sm:$0xf0] }
 0x12a   : > { %v1794_v10 = vor.u32 %v1793_v0, %v1790_v28  ;;  %3973 = vmatmul.mubr.bf16.vlgmr.msra.gmra.mrb[64].mxu0 %v1660_v38  ;;  %v2123_v30 = vsel %vm471_vm1, %v2114_v58, %v2122_v3  ;;  %v2128_v42 = vshll.u32 %v2077_v60, 16  ;;  %v2133_v13 = vshrl.u32 %v2078_v61, 16  ;;  %v1601_v28 = vld [vmem:[#allocation2 + $0x48] sm:$0xf]  ;;  %v10113_v0 = vld [vmem:[#allocation7 + $0x220] sm:$0xff]  }
 0x12b   : > { %9876 = vmatpush3.bf16.msra.mxu0 %v10705_v62  ;;  %v1802_v1 = vor.u32 %v1801_v11, %v1798_v5  ;;  %v2480_v14 = vsel %vm840_vm0, %v2478_v7, %v2479_v32  ;;  %v2127_v15 = vrot.slane %v2125_v12, 3  ;;  %v2136_v16 = vshll.u32 %v2078_v61, 16  ;;  %v2079_v62 = vld [vmem:[#allocation2 + $0x40] sm:$0xf8]  ;;  %v2418_v11 = vld [vmem:[#allocation2 + $0x58] sm:$0xf] }
 0x12c   : > { %v2130_v19 = vrot.slane %v2128_v42, 4  ;;  %v2135_v20 = vrot.slane %v2133_v13, 3  ;;  %v1805_v21 = vshrl.u32 %v1742_v2, 16  ;;  %v1808_v22 = vshll.u32 %v1742_v2, 16  ;;  %9877 = vmatprep.subr.bf16.mxu0 %v10110_v9  ;;  %v2082_v42 = vld [vmem:[#allocation2 + $0x58] sm:$0xf] }
 0x12d   : > { %v1803_v39 = vsel %vm953_vm2, %v1794_v10, %v1802_v1  ;;  %v2138_v40 = vrot.slane %v2136_v16, 4  ;;  %v1813_v57 = vshrl.u32 %v1743_v8, 16  ;;  %v1816_v27 = vshll.u32 %v1743_v8, 16  ;;  %v2417_v10 = vld [vmem:[#allocation2 + $0x50] sm:$0xf0] }
 0x12e   : > { %3980 = vmatprep.mubr.bf16.mxu0 %v1803_v39  ;;  %v2131_v31 = vor.u32 %v2130_v19, %v2127_v15  ;;  %v1807_v23 = vrot.slane %v1805_v21, 4  ;;  %v1810_v25 = vrot.slane %v1808_v22, 5  ;;  %v1663_v34 = vsel %vm840_vm0, %v1661_v6, %v1662_v41  ;;  %v2081_v6 = vld [vmem:[#allocation2 + $0x50] sm:$0xf8] }
 0x12f   : > { %4134 = vmatmul.mubr.bf16.vlgmr.msra.gmra.mrb[64].mxu1 %v2123_v30  ;;  %v2139_v47 = vor.u32 %v2138_v40, %v2135_v20  ;;  %v1815_v48 = vrot.slane %v1813_v57, 4  ;;  %v1818_v4 = vrot.slane %v1816_v27, 5  ;;  %9878 = vmatpush3.bf16.msra.mxu0 %v10110_v9  ;;  %v1664_v37 = vrot.slane %v10785_v17, 4  ;;  %v1746_v13 = vld [vmem:[#allocation2 + $0x50] sm:$0xf0] }
 0x130   : > { %4141 = vmatprep.mubr.bf16.mxu1 %v2480_v14  ;;  %v1811_v36 = vor.u32 %v1810_v25, %v1807_v23  ;;  %v1665_v45 = vrot.slane %v1599_v24, 4  ;;  %v2142_v46 = vshrl.u32 %v2079_v62, 16  ;;  %9879 = vmatprep.subr.bf16.mxu0 %v10111_v18  ;;  %v2481_v50 = vrot.slane %v2415_v43, 4  ;;  %v1747_v17 = vld [vmem:[#allocation2 + $0x58] sm:$0x1f]  ;;  %v10115_v43 = vld [vmem:[#allocation7 + $0x230] sm:$0xff]  }
 0x131   : > { %v1819_v49 = vor.u32 %v1818_v4, %v1815_v48  ;;  %v2482_v52 = vrot.slane %v2416_v33, 4  ;;  %v2145_v53 = vshll.u32 %v2079_v62, 16  ;;  %v2140_v55 = vsel %vm471_vm1, %v2131_v31, %v2139_v47  ;;  %v1602_v25 = vld [vmem:[#allocation2 + $0x50] sm:$0xf0]  ;;  %v2083_v4 = vld [vmem:[#allocation2 + $0x60] sm:$0xf8] }
 0x132   : > { %3981 = vmatmul.mubr.bf16.gmra.mrb[68].mxu0 %v1663_v34  ;;  %v10791_v29 = vrot.slane %v2142_v46, 3  ;;  %v2150_v56 = vshrl.u32 %v2080_v35, 16  ;;  %v2153_v58 = vshll.u32 %v2080_v35, 16  ;;  %v1822_v61 = vshrl.u32 %v1744_v26, 16  ;;  %v1603_v46 = vld [vmem:[#allocation2 + $0x58] sm:$0xf] }
 0x133   : > { %v1820_v59 = vsel %vm953_vm2, %v1811_v36, %v1819_v49  ;;  %v2147_v60 = vrot.slane %v2145_v53, 4  ;;  %v1825_v38 = vshll.u32 %v1744_v26, 16  ;;  %9880 = vmatpush3.bf16.msra.mxu0 %v10111_v18  ;;  %v1830_v3 = vshrl.u32 %v1745_v54, 16  ;;  %v10114_v18 = vld [vmem:[#allocation7 + $0x228] sm:$0xff]   ;;  %v2419_v26 = vld [vmem:[#allocation2 + $0x60] sm:$0xf0] }
 0x134   : > { %3988 = vmatprep.mubr.bf16.mxu0 %v1820_v59  ;;  %v2152_v63 = vrot.slane %v2150_v56, 3  ;;  %v2155_v2 = vrot.slane %v2153_v58, 4  ;;  %v1833_v5 = vshll.u32 %v1745_v54, 16  ;;  %9881 = vmatprep.subr.bf16.mxu0 %v10112_v44  ;;  %v2483_v7 = vsel %vm840_vm0, %v2481_v50, %v2482_v52  ;;  %v2420_v53 = vld [vmem:[#allocation2 + $0x68] sm:$0xf] }
 0x135   : > { %v1824_v8 = vrot.slane %v1822_v61, 4  ;;  %v1827_v9 = vrot.slane %v1825_v38, 5  ;;  %v1666_v32 = vsel %vm840_vm0, %v1664_v37, %v1665_v45  ;;  %v2148_v12 = vor.u32 %v2147_v60, %v10791_v29  ;;  %v2084_v54 = vld [vmem:[#allocation2 + $0x68] sm:$0xf] }
 0x136   : > { %v1832_v30 = vrot.slane %v1830_v3, 4  ;;  %v1835_v41 = vrot.slane %v1833_v5, 5  ;;  %v1667_v14 = vrot.slane %v1600_v51, 4  ;;  %v1668_v15 = vrot.slane %v1601_v28, 4  ;;  %v1748_v51 = vld [vmem:[#allocation2 + $0x60] sm:$0xf0] }
 0x137   : > { %4142 = vmatmul.mubr.bf16.gmra.mrb[68].mxu1 %v2140_v55  ;;  %v1828_v1 = vor.u32 %v1827_v9, %v1824_v8  ;;  %v2159_v16 = vshrl.u32 %v2081_v6, 16  ;;  %9882 = vmatpush3.bf16.msra.mxu0 %v10112_v44  ;;  %v2156_v19 = vor.u32 %v2155_v2, %v2152_v63  ;;  %v2484_v21 = vrot.slane %v2417_v10, 4  ;;  %v1749_v28 = vld [vmem:[#allocation2 + $0x68] sm:$0x1f]  ;;  %v10116_v5 = vld [vmem:[#allocation7 + $0x238] sm:$0xff]  }
 0x138   : > { %4149 = vmatprep.mubr.bf16.mxu1 %v2483_v7  ;;  %v1836_v20 = vor.u32 %v1835_v41, %v1832_v30  ;;  %v2162_v22 = vshll.u32 %v2081_v6, 16  ;;  %9883 = vmatprep.subr.bf16.mxu0 %v10113_v0  ;;  %v2485_v24 = vrot.slane %v2418_v11, 4  ;;  %v2167_v40 = vshrl.u32 %v2082_v42, 16  ;;  %v1604_v10 = vld [vmem:[#allocation2 + $0x60] sm:$0xf0] }
 0x139   : > { %v2161_v39 = vrot.slane %v2159_v16, 3  ;;  %v2170_v57 = vshll.u32 %v2082_v42, 16  ;;  %v1839_v31 = vshrl.u32 %v1746_v13, 16  ;;  %v1842_v23 = vshll.u32 %v1746_v13, 16  ;;  %v2085_v41 = vld [vmem:[#allocation2 + $0x70] sm:$0xf8] }
 0x13a   : > { %3989 = vmatmul.mubr.bf16.gmra.mrb[72].mxu0 %v1666_v32  ;;  %v1837_v27 = vsel %vm953_vm2, %v1828_v1, %v1836_v20  ;;  %v2164_v62 = vrot.slane %v2162_v22, 4  ;;  %v2169_v33 = vrot.slane %v2167_v40, 3  ;;  %v1847_v47 = vshrl.u32 %v1747_v17, 16  ;;  %v2421_v16 = vld [vmem:[#allocation2 + $0x70] sm:$0xf0] }
 0x13b   : > { %3996 = vmatprep.mubr.bf16.mxu0 %v1837_v27  ;;  %v2172_v34 = vrot.slane %v2170_v57, 4  ;;  %v1850_v48 = vshll.u32 %v1747_v17, 16  ;;  %9884 = vmatpush3.bf16.msra.mxu0 %v10113_v0  ;;  %v2157_v35 = vsel %vm471_vm1, %v2148_v12, %v2156_v19  ;;  %v1669_v36 = vsel %vm840_vm0, %v1667_v14, %v1668_v15  ;;  %v1605_v15 = vld [vmem:[#allocation2 + $0x68] sm:$0xf]  ;;  %v2086_v22 = vld [vmem:[#allocation2 + $0x78] sm:$0xf] }
 0x13c   : > { %v1841_v37 = vrot.slane %v1839_v31, 4  ;;  %v1844_v45 = vrot.slane %v1842_v23, 5  ;;  %9885 = vmatprep.subr.bf16.mxu0 %v10114_v18  ;;  %v2486_v44 = vsel %vm840_vm0, %v2484_v21, %v2485_v24  ;;  %v2165_v49 = vor.u32 %v2164_v62, %v2161_v39  ;;  %v2422_v21 = vld [vmem:[#allocation2 + $0x78] sm:$0xf]  ;;  %v1750_v27 = vld [vmem:[#allocation2 + $0x70] sm:$0xf0] }
 0x13d   : > { %v1849_v50 = vrot.slane %v1847_v47, 4  ;;  %v1852_v52 = vrot.slane %v1850_v48, 5  ;;  %v2173_v55 = vor.u32 %v2172_v34, %v2169_v33  ;;  %v1670_v56 = vrot.slane %v1602_v25, 4  ;;  %v1751_v33 = vld [vmem:[#allocation2 + $0x78] sm:$0x1f] }
 0x13e   : > { %v1845_v29 = vor.u32 %v1844_v45, %v1841_v37  ;;  %v2176_v58 = vshrl.u32 %v2083_v4, 16  ;;  %v1671_v60 = vrot.slane %v1603_v46, 4  ;;  %v2487_v61 = vrot.slane %v2419_v26, 4 }
 0x13f   : > { %4150 = vmatmul.mubr.bf16.gmra.mrb[72].mxu1 %v2157_v35  ;;  %v1853_v59 = vor.u32 %v1852_v52, %v1849_v50  ;;  %v2179_v38 = vshll.u32 %v2083_v4, 16  ;;  %9886 = vmatpush3.bf16.msra.mxu0 %v10114_v18  ;;  %v2488_v0 = vrot.slane %v2420_v53, 4  ;;  %v2184_v2 = vshrl.u32 %v2084_v54, 16  ;;  %v10805_v4 = vld [vmem:[#allocation2 + $0x70] sm:$0xf0] }
 0x140   : > { %4157 = vmatprep.mubr.bf16.mxu1 %v2486_v44  ;;  %v2178_v63 = vrot.slane %v2176_v58, 3  ;;  %v2187_v3 = vshll.u32 %v2084_v54, 16  ;;  %9887 = vmatprep.subr.bf16.mxu0 %v10115_v43  ;;  %v1856_v8 = vshrl.u32 %v1748_v51, 16  ;;  %v1859_v9 = vshll.u32 %v1748_v51, 16  ;;  %v2087_v50 = vld [vmem:[#allocation2 + $0x80] sm:$0xf8] }
 0x141   : > { %v1854_v6 = vsel %vm953_vm2, %v1845_v29, %v1853_v59  ;;  %v2181_v7 = vrot.slane %v2179_v38, 4  ;;  %v2186_v11 = vrot.slane %v2184_v2, 3  ;;  %v1864_v12 = vshrl.u32 %v1749_v28, 16  ;;  %v1607_v29 = vld [vmem:[#allocation2 + $0x78] sm:$0xf] }
 0x142   : > { %3997 = vmatmul.mubr.bf16.gmra.mrb[76].mxu0 %v1669_v36  ;;  %v2189_v32 = vrot.slane %v2187_v3, 4  ;;  %v1867_v30 = vshll.u32 %v1749_v28, 16  ;;  %v2174_v42 = vsel %vm471_vm1, %v2165_v49, %v2173_v55  ;;  %v1672_v13 = vsel %vm840_vm0, %v1670_v56, %v1671_v60  ;;  %v2423_v56 = vld [vmem:[#allocation2 + $0x80] sm:$0xf0]  ;;  %v2088_v38 = vld [vmem:[#allocation2 + $0x88] sm:$0xf] }
 0x143   : > { %4004 = vmatprep.mubr.bf16.mxu0 %v1854_v6  ;;  %v1858_v1 = vrot.slane %v1856_v8, 4  ;;  %v1861_v14 = vrot.slane %v1859_v9, 5  ;;  %9888 = vmatpush3.bf16.msra.mxu0 %v10115_v43  ;;  %v2489_v17 = vsel %vm840_vm0, %v2487_v61, %v2488_v0  ;;  %v2182_v18 = vor.u32 %v2181_v7, %v2178_v63  ;;  %v2424_v61 = vld [vmem:[#allocation2 + $0x88] sm:$0xf]  ;;  %v1752_v3 = vld [vmem:[#allocation2 + $0x80] sm:$0xf0] }
 0x144   : > { %v1866_v19 = vrot.slane %v1864_v12, 4  ;;  %v1869_v20 = vrot.slane %v1867_v30, 5  ;;  %9889 = vmatprep.subr.bf16.mxu0 %v10116_v5  ;;  %v2190_v24 = vor.u32 %v2189_v32, %v2186_v11  ;;  %v1673_v40 = vrot.slane %v1604_v10, 4  ;;  %v1753_v9 = vld [vmem:[#allocation2 + $0x88] sm:$0x1f] }
 0x145   : > { %v1862_v39 = vor.u32 %v1861_v14, %v1858_v1  ;;  %v2193_v57 = vshrl.u32 %v2085_v41, 16  ;;  %v1674_v31 = vrot.slane %v1605_v15, 4  ;;  %v2490_v23 = vrot.slane %v2421_v16, 4 }
 0x146   : > { %v1870_v62 = vor.u32 %v1869_v20, %v1866_v19  ;;  %v2196_v25 = vshll.u32 %v2085_v41, 16  ;;  %v2491_v43 = vrot.slane %v2422_v21, 4  ;;  %v2201_v47 = vshrl.u32 %v2086_v22, 16  ;;  %v2425_v20 = vld [vmem:[#allocation2 + $0x90] sm:$0xf0] }
 0x147   : > { %4158 = vmatmul.mubr.bf16.gmra.mrb[76].mxu1 %v2174_v42  ;;  %v2195_v34 = vrot.slane %v2193_v57, 3  ;;  %v2204_v48 = vshll.u32 %v2086_v22, 16  ;;  %9890 = vmatpush3.bf16.msra.mxu0 %v10116_v5  ;;  %v1873_v37 = vshrl.u32 %v1750_v27, 16  ;;  %v1876_v45 = vshll.u32 %v1750_v27, 16 }
 0x148   : > { %4165 = vmatprep.mubr.bf16.mxu1 %v2489_v17  ;;  %v1871_v35 = vsel %vm953_vm2, %v1862_v39, %v1870_v62  ;;  %v2198_v36 = vrot.slane %v2196_v25, 4  ;;  %v2203_v46 = vrot.slane %v2201_v47, 3  ;;  %v1881_v44 = vshrl.u32 %v1751_v33, 16  ;;  %v2089_v17 = vld [vmem:[#allocation2 + $0x90] sm:$0xf8] }
 0x149   : > { %v2206_v26 = vrot.slane %v2204_v48, 4  ;;  %v1884_v49 = vshll.u32 %v1751_v33, 16  ;;  %v2191_v52 = vsel %vm471_vm1, %v2182_v18, %v2190_v24  ;;  %v1675_v53 = vsel %vm840_vm0, %v1673_v40, %v1674_v31  ;;  %v2426_v39 = vld [vmem:[#allocation2 + $0x98] sm:$0xf] }
 0x14a   : > { %4005 = vmatmul.mubr.bf16.gmra.mrb[80].mxu0 %v1672_v13  ;;  %v1875_v54 = vrot.slane %v1873_v37, 4  ;;  %v1878_v55 = vrot.slane %v1876_v45, 5  ;;  %v2492_v58 = vsel %vm840_vm0, %v2490_v23, %v2491_v43  ;;  %v2199_v51 = vor.u32 %v2198_v36, %v2195_v34  ;;  %v2090_v40 = vld [vmem:[#allocation2 + $0x98] sm:$0xf]  ;;  %v1754_v23 = vld [vmem:[#allocation2 + $0x90] sm:$0xf0] }
 0x14b   : > { %4012 = vmatprep.mubr.bf16.mxu0 %v1871_v35  ;;  %v1883_v59 = vrot.slane %v1881_v44, 4  ;;  %v1886_v60 = vrot.slane %v1884_v49, 5  ;;  %v2207_v28 = vor.u32 %v2206_v26, %v2203_v46  ;;  %v1676_v63 = vrot.slane %v10805_v4, 4  ;;  %v10819_v34 = vld [vmem:[#allocation2 + $0x80] sm:$0xf0] }
 0x14c   : > { %v1879_v0 = vor.u32 %v1878_v55, %v1875_v54  ;;  %v2210_v2 = vshrl.u32 %v2087_v50, 16  ;;  %v1677_v6 = vrot.slane %v1607_v29, 4  ;;  %v2493_v7 = vrot.slane %v2423_v56, 4  ;;  %v1755_v48 = vld [vmem:[#allocation2 + $0x98] sm:$0x1f] }
 0x14d   : > { %v1887_v5 = vor.u32 %v1886_v60, %v1883_v59  ;;  %v2213_v8 = vshll.u32 %v2087_v50, 16  ;;  %v2494_v10 = vrot.slane %v2424_v61, 4  ;;  %v2218_v32 = vshrl.u32 %v2088_v38, 16  ;;  %v1609_v4 = vld [vmem:[#allocation2 + $0x88] sm:$0xf] }
 0x14e   : > { %v10812_v11 = vrot.slane %v2210_v2, 3  ;;  %v2221_v12 = vshll.u32 %v2088_v38, 16  ;;  %v1890_v42 = vshrl.u32 %v1752_v3, 16  ;;  %v1893_v13 = vshll.u32 %v1752_v3, 16  ;;  %v10825_v50 = vld [vmem:[#allocation2 + $0xa0] sm:$0xf0] }
 0x14f   : > { %4166 = vmatmul.mubr.bf16.gmra.mrb[80].mxu1 %v2191_v52  ;;  %v1888_v30 = vsel %vm953_vm2, %v1879_v0, %v1887_v5  ;;  %v2215_v41 = vrot.slane %v2213_v8, 4  ;;  %v2220_v1 = vrot.slane %v2218_v32, 3  ;;  %v1898_v15 = vshrl.u32 %v1753_v9, 16  ;;  %v2091_v52 = vld [vmem:[#allocation2 + $0xa0] sm:$0xf8] }
 0x150   : > { %4173 = vmatprep.mubr.bf16.mxu1 %v2492_v58  ;;  %v2223_v14 = vrot.slane %v2221_v12, 4  ;;  %v1901_v16 = vshll.u32 %v1753_v9, 16  ;;  %v1892_v18 = vrot.slane %v1890_v42, 4  ;;  %v1895_v19 = vrot.slane %v1893_v13, 5  ;;  %v2428_v59 = vld [vmem:[#allocation2 + $0xa8] sm:$0xf] }
 0x151   : > { %v2208_v21 = vsel %vm471_vm1, %v2199_v51, %v2207_v28  ;;  %v1900_v22 = vrot.slane %v1898_v15, 4  ;;  %v1678_v57 = vsel %vm840_vm0, %v1676_v63, %v1677_v6  ;;  %v2495_v27 = vsel %vm840_vm0, %v2493_v7, %v2494_v10  ;;  %v2092_v0 = vld [vmem:[#allocation2 + $0xa8] sm:$0xf]  ;;  %v1756_v6 = vld [vmem:[#allocation2 + $0xa0] sm:$0xf0] }
 0x152   : > { %4013 = vmatmul.mubr.bf16.gmra.mrb[84].mxu0 %v1675_v53  ;;  %v1903_v24 = vrot.slane %v1901_v16, 5  ;;  %v2216_v62 = vor.u32 %v2215_v41, %v10812_v11  ;;  %v2227_v31 = vshrl.u32 %v2089_v17, 16  ;;  %v2224_v25 = vor.u32 %v2223_v14, %v2220_v1  ;;  %v1757_v32 = vld [vmem:[#allocation2 + $0xa8] sm:$0x1f]  ;;  %v1610_v41 = vld [vmem:[#allocation2 + $0x90] sm:$0xf0] }
 0x153   : > { %4020 = vmatprep.mubr.bf16.mxu0 %v1888_v30  ;;  %v1896_v33 = vor.u32 %v1895_v19, %v1892_v18  ;;  %v2230_v47 = vshll.u32 %v2089_v17, 16  ;;  %v2496_v35 = vrot.slane %v2425_v20, 4  ;;  %v2497_v36 = vrot.slane %v2426_v39, 4  ;;  %v1611_v42 = vld [vmem:[#allocation2 + $0x98] sm:$0xf] }
 0x154   : > { %v1904_v43 = vor.u32 %v1903_v24, %v1900_v22  ;;  %v2235_v37 = vshrl.u32 %v2090_v40, 16  ;;  %v2238_v45 = vshll.u32 %v2090_v40, 16  ;;  %v10821_v46 = vrot.slane %v2227_v31, 3  ;;  %v2093_v40 = vld [vmem:[#allocation2 + $0xb0] sm:$0xf8] }
 0x155   : > { %v10823_v26 = vrot.slane %v2230_v47, 4  ;;  %v1907_v44 = vshrl.u32 %v1754_v23, 16  ;;  %v1910_v49 = vshll.u32 %v1754_v23, 16  ;;  %v1915_v55 = vshrl.u32 %v1755_v48, 16  ;;  %v2429_v31 = vld [vmem:[#allocation2 + $0xb0] sm:$0xf0] }
 0x156   : > { %v2237_v53 = vrot.slane %v2235_v37, 3  ;;  %v2240_v54 = vrot.slane %v2238_v45, 4  ;;  %v1918_v29 = vshll.u32 %v1755_v48, 16  ;;  %v1905_v56 = vsel %vm953_vm2, %v1896_v33, %v1904_v43  ;;  %v2430_v43 = vld [vmem:[#allocation2 + $0xb8] sm:$0xf] }
 0x157   : > { %4174 = vmatmul.mubr.bf16.gmra.mrb[84].mxu1 %v2208_v21  ;;  %v1909_v58 = vrot.slane %v1907_v44, 4  ;;  %v1912_v51 = vrot.slane %v1910_v49, 5  ;;  %v1679_v60 = vrot.slane %v10819_v34, 4  ;;  %v1680_v61 = vrot.slane %v1609_v4, 4  ;;  %v2094_v34 = vld [vmem:[#allocation2 + $0xb8] sm:$0xf] }
 0x158   : > { %4181 = vmatprep.mubr.bf16.mxu1 %v2495_v27  ;;  %v1917_v38 = vrot.slane %v1915_v55, 4  ;;  %v1920_v28 = vrot.slane %v1918_v29, 5  ;;  %v2225_v63 = vsel %vm471_vm1, %v2216_v62, %v2224_v25  ;;  %v2498_v2 = vsel %vm840_vm0, %v2496_v35, %v2497_v36  ;;  %v1758_v36 = vld [vmem:[#allocation2 + $0xb0] sm:$0xf0]  ;;  %v1759_v44 = vld [vmem:[#allocation2 + $0xb8] sm:$0x1f] }
 0x159   : > { %v2233_v3 = vor.u32 %v10823_v26, %v10821_v46  ;;  %v2244_v5 = vshrl.u32 %v2091_v52, 16  ;;  %v2241_v8 = vor.u32 %v2240_v54, %v2237_v53  ;;  %v1913_v9 = vor.u32 %v1912_v51, %v1909_v58  ;;  %v10854_v29 = vld [vmem:[#allocation2 + $0xa8] sm:$0xf] }
 0x15a   : > { %4021 = vmatmul.mubr.bf16.gmra.mrb[88].mxu0 %v1678_v57  ;;  %v2499_v10 = vrot.slane %v10825_v50, 4  ;;  %v2247_v11 = vshll.u32 %v2091_v52, 16  ;;  %v1921_v30 = vor.u32 %v1920_v28, %v1917_v38  ;;  %v2500_v13 = vrot.slane %v2428_v59, 4  ;;  %v10852_v50 = vld [vmem:[#allocation2 + $0xa0] sm:$0xf0] }
 0x15b   : > { %4028 = vmatprep.mubr.bf16.mxu0 %v1905_v56  ;;  %v2252_v1 = vshrl.u32 %v2092_v0, 16  ;;  %v2255_v14 = vshll.u32 %v2092_v0, 16  ;;  %v10840_v16 = vrot.slane %v2244_v5, 3  ;;  %v1924_v18 = vshrl.u32 %v1756_v6, 16  ;;  %v10860_v28 = vld [vmem:[#allocation2 + $0xb0] sm:$0xf0] }
 0x15c   : > { %v10842_v17 = vrot.slane %v2247_v11, 4  ;;  %v1927_v19 = vshll.u32 %v1756_v6, 16  ;;  %v1932_v24 = vshrl.u32 %v1757_v32, 16  ;;  %v1935_v39 = vshll.u32 %v1757_v32, 16  ;;  %v2096_v5 = vld [vmem:[#allocation2 + $0xc8] sm:$0xf] }
 0x15d   : > { %v2254_v21 = vrot.slane %v2252_v1, 3  ;;  %v2257_v22 = vrot.slane %v2255_v14, 4  ;;  %v1681_v57 = vsel %vm840_vm0, %v1679_v60, %v1680_v61  ;;  %v1926_v27 = vrot.slane %v1924_v18, 4  ;;  %v1615_v11 = vld [vmem:[#allocation2 + $0xb8] sm:$0xf] }
 0x15e   : > { %v1929_v62 = vrot.slane %v1927_v19, 5  ;;  %v1922_v23 = vsel %vm953_vm2, %v1913_v9, %v1921_v30  ;;  %v1934_v25 = vrot.slane %v1932_v24, 4  ;;  %v1937_v33 = vrot.slane %v1935_v39, 5  ;;  %v2431_v32 = vld [vmem:[#allocation2 + $0xc0] sm:$0xf0] }
 0x15f   : > { %4182 = vmatmul.mubr.bf16.gmra.mrb[88].mxu1 %v2225_v63  ;;  %v2242_v47 = vsel %vm471_vm1, %v2233_v3, %v2241_v8  ;;  %v1682_v48 = vrot.slane %v1610_v41, 4  ;;  %v1683_v4 = vrot.slane %v1611_v42, 4  ;;  %v2261_v35 = vshrl.u32 %v2093_v40, 16  ;;  %v2095_v3 = vld [vmem:[#allocation2 + $0xc0] sm:$0xf8] }
 0x160   : > { %4189 = vmatprep.mubr.bf16.mxu1 %v2498_v2  ;;  %v2501_v37 = vsel %vm840_vm0, %v2499_v10, %v2500_v13  ;;  %v2250_v45 = vor.u32 %v10842_v17, %v10840_v16  ;;  %v2258_v46 = vor.u32 %v2257_v22, %v2254_v21  ;;  %v2264_v26 = vshll.u32 %v2093_v40, 16  ;;  %v1760_v30 = vld [vmem:[#allocation2 + $0xc0] sm:$0xf0]  ;;  %v2432_v39 = vld [vmem:[#allocation2 + $0xc8] sm:$0xf] }
 0x161   : > { %v10833_v7 = vpop.f32.mrb[0].mxu0  ;;  %v1930_v49 = vor.u32 %v1929_v62, %v1926_v27  ;;  %v2502_v52 = vrot.slane %v2429_v31, 4  ;;  %v2269_v53 = vshrl.u32 %v2094_v34, 16  ;;  %v2272_v54 = vshll.u32 %v2094_v34, 16 }
 0x162   : > { %v10836_v12 = vpop.f32.mrb[1].mxu0  ;;  %4029 = vmatmul.mubr.bf16.gmra.mrb[92].mxu0 %v1681_v57  ;;  %v1938_v55 = vor.u32 %v1937_v33, %v1934_v25  ;;  %v2503_v56 = vrot.slane %v2430_v43, 4  ;;  %v1941_v58 = vshrl.u32 %v1758_v36, 16  ;;  %v1944_v51 = vshll.u32 %v1758_v36, 16  ;;  %v1761_v33 = vld [vmem:[#allocation2 + $0xc8] sm:$0x1f] }
 0x163   : > { %v10838_v15 = vpop.f32.mrb[2].mxu0  ;;  %4036 = vmatprep.mubr.bf16.mxu0 %v1922_v23  ;;  %v10856_v59 = vrot.slane %v2261_v35, 3  ;;  %v10858_v60 = vrot.slane %v2264_v26, 4  ;;  %v1949_v61 = vshrl.u32 %v1759_v44, 16  ;;  %v1952_v38 = vshll.u32 %v1759_v44, 16 }
 0x164   : > { %v10844_v20 = vpop.f32.mrb[3].mxu0  ;;  %v1684_v0 = vsel %vm840_vm0, %v1682_v48, %v1683_v4  ;;  %v10863_v63 = vrot.slane %v2269_v53, 3  ;;  %v10865_v2 = vrot.slane %v2272_v54, 4  ;;  %v1943_v6 = vrot.slane %v1941_v58, 4  ;;  %v1616_v54 = vld [vmem:[#allocation2 + $0xc0] sm:$0xf0] }
 0x165   : > { %v1946_v8 = vrot.slane %v1944_v51, 5  ;;  %v1951_v9 = vrot.slane %v1949_v61, 4  ;;  %v1954_v10 = vrot.slane %v1952_v38, 5  ;;  %v2259_v41 = vsel %vm471_vm1, %v2250_v45, %v2258_v46 }
 0x166   : > { %v1939_v42 = vsel %vm953_vm2, %v1930_v49, %v1938_v55  ;;  %v1685_v13 = vrot.slane %v10852_v50, 4  ;;  %v1686_v1 = vrot.slane %v10854_v29, 4  ;;  %v2504_v16 = vsel %vm840_vm0, %v2502_v52, %v2503_v56  ;;  %v1617_v55 = vld [vmem:[#allocation2 + $0xc8] sm:$0xf]  ;;  %v2097_v29 = vld [vmem:[#allocation2 + $0xd0] sm:$0xf8] }
 0x167   : > { %4190 = vmatmul.mubr.bf16.gmra.mrb[92].mxu1 %v2242_v47  ;;  %v2267_v17 = vor.u32 %v10858_v60, %v10856_v59  ;;  %v2278_v18 = vshrl.u32 %v2095_v3, 16  ;;  %v2281_v19 = vshll.u32 %v2095_v3, 16  ;;  %v2275_v22 = vor.u32 %v10865_v2, %v10863_v63  ;;  %v2098_v56 = vld [vmem:[#allocation2 + $0xd8] sm:$0xf]  ;;  %v2433_v63 = vld [vmem:[#allocation2 + $0xd0] sm:$0xf0] }
 0x168   : > { %4197 = vmatprep.mubr.bf16.mxu1 %v2501_v37  ;;  %v1688_v24 = vrot.slane %v10860_v28, 4  ;;  %v2286_v40 = vshrl.u32 %v2096_v5, 16  ;;  %v2289_v57 = vshll.u32 %v2096_v5, 16  ;;  %v1947_v62 = vor.u32 %v1946_v8, %v1943_v6  ;;  %v2434_v2 = vld [vmem:[#allocation2 + $0xd8] sm:$0xf] }
 0x169   : > { %v1955_v31 = vor.u32 %v1954_v10, %v1951_v9  ;;  %v10879_v23 = vadd.f32 %v10836_v12, %v10833_v7  ;;  %v10883_v25 = vadd.f32 %v10844_v20, %v10838_v15  ;;  %v1689_v47 = vrot.slane %v1615_v11, 4  ;;  %v1762_v11 = vld [vmem:[#allocation2 + $0xd0] sm:$0xf0] }
 0x16a   : > { %v9059_v14 = vpop.f32.mrb[0].mxu1  ;;  %4037 = vmatmul.mubr.bf16.gmra.mrb[96].mxu0 %v1684_v0  ;;  %v2505_v48 = vrot.slane %v2431_v32, 4  ;;  %v1958_v35 = vshrl.u32 %v1760_v30, 16  ;;  %v2506_v37 = vrot.slane %v2432_v39, 4  ;;  %v10887_v45 = vrot.slane %v2278_v18, 3 }
 0x16b   : > { %v9060_v21 = vpop.f32.mrb[1].mxu1  ;;  %4044 = vmatprep.mubr.bf16.mxu0 %v1939_v42  ;;  %v10889_v46 = vrot.slane %v2281_v19, 4  ;;  %v1961_v7 = vshll.u32 %v1760_v30, 16  ;;  %v10891_v26 = vrot.slane %v2286_v40, 3  ;;  %v10893_v15 = vrot.slane %v2289_v57, 4 }
 0x16c   : > { %v9062_v27 = vpop.f32.mrb[2].mxu1  ;;  %v8953_v34 = vpop.f32.mrb[4].mxu0  ;;  %v10885_v4 = vadd.f32 %v9060_v21, %v9059_v14  ;;  %v1966_v20 = vshrl.u32 %v1761_v33, 16  ;;  %v1969_v44 = vshll.u32 %v1761_v33, 16  ;;  %v1687_v50 = vsel %vm840_vm0, %v1685_v13, %v1686_v1  ;;  %v1763_v13 = vld [vmem:[#allocation2 + $0xd8] sm:$0x1f] }
 0x16d   : > { %v9063_v43 = vpop.f32.mrb[3].mxu1  ;;  %v8954_v36 = vpop.f32.mrb[5].mxu0  ;;  %v1956_v52 = vsel %vm953_vm2, %v1947_v62, %v1955_v31  ;;  %v1960_v58 = vrot.slane %v1958_v35, 4  ;;  %v1963_v51 = vrot.slane %v1961_v7, 5  ;;  %v2276_v38 = vsel %vm471_vm1, %v2267_v17, %v2275_v22  ;;  %v2099_v57 = vld [vmem:[#allocation2 + $0xe0] sm:$0xf8] }
 0x16e   : > { %v8956_v12 = vpop.f32.mrb[6].mxu0  ;;  %v10897_v53 = vadd.f32 %v9063_v43, %v9062_v27  ;;  %v1968_v59 = vrot.slane %v1966_v20, 4  ;;  %v1971_v60 = vrot.slane %v1969_v44, 5  ;;  %v1690_v28 = vsel %vm840_vm0, %v1688_v24, %v1689_v47  ;;  %v2100_v47 = vld [vmem:[#allocation2 + $0xe8] sm:$0xf] }
 0x16f   : > { %v8957_v49 = vpop.f32.mrb[7].mxu0  ;;  %4198 = vmatmul.mubr.bf16.gmra.mrb[96].mxu1 %v2259_v41  ;;  %v2507_v0 = vsel %vm840_vm0, %v2505_v48, %v2506_v37  ;;  %v2284_v5 = vor.u32 %v10889_v46, %v10887_v45  ;;  %v2292_v6 = vor.u32 %v10893_v15, %v10891_v26  ;;  %v2295_v8 = vshrl.u32 %v2097_v29, 16 }
 0x170   : > { %4205 = vmatprep.mubr.bf16.mxu1 %v2504_v16  ;;  %v2298_v9 = vshll.u32 %v2097_v29, 16  ;;  %v2303_v32 = vshrl.u32 %v2098_v56, 16  ;;  %v2306_v30 = vshll.u32 %v2098_v56, 16  ;;  %v10906_v41 = vadd.f32 %v8954_v36, %v8953_v34  ;;  %v10916_v34 = vld [vmem:[#allocation2 + $0xd0] sm:$0xf0] }
 0x171   : > { %v10908_v42 = vadd.f32 %v8957_v49, %v8956_v12  ;;  %v1964_v16 = vor.u32 %v1963_v51, %v1960_v58  ;;  %v1972_v17 = vor.u32 %v1971_v60, %v1968_v59  ;;  %v1691_v18 = vrot.slane %v1616_v54, 4  ;;  %v1619_v49 = vld [vmem:[#allocation2 + $0xd8] sm:$0xf]  ;;  %v1764_v51 = vld [vmem:[#allocation2 + $0xe0] sm:$0xf0] }
 0x172   : > { %v9065_v61 = vpop.f32.mrb[4].mxu1  ;;  %4045 = vmatmul.mubr.bf16.gmra.mrb[100].mxu0 %v1687_v50  ;;  %v1692_v19 = vrot.slane %v1617_v55, 4  ;;  %v2508_v22 = vrot.slane %v2433_v63, 4  ;;  %v2509_v24 = vrot.slane %v2434_v2, 4  ;;  %v1975_v40 = vshrl.u32 %v1762_v11, 16 }
 0x173   : > { %v9066_v3 = vpop.f32.mrb[5].mxu1  ;;  %4052 = vmatprep.mubr.bf16.mxu0 %v1956_v52  ;;  %v10912_v62 = vrot.slane %v2295_v8, 3  ;;  %v10914_v31 = vrot.slane %v2298_v9, 4  ;;  %v1978_v33 = vshll.u32 %v1762_v11, 16  ;;  %v1983_v43 = vshrl.u32 %v1763_v13, 16 }
 0x174   : > { %v9068_v10 = vpop.f32.mrb[6].mxu1  ;;  %v10910_v39 = vadd.f32 %v9066_v3, %v9065_v61  ;;  %v2305_v35 = vrot.slane %v2303_v32, 3  ;;  %v2308_v36 = vrot.slane %v2306_v30, 4  ;;  %v1986_v37 = vshll.u32 %v1763_v13, 16  ;;  %v2435_v50 = vld [vmem:[#allocation2 + $0xe0] sm:$0xf0] }
 0x175   : > { %v9069_v1 = vpop.f32.mrb[7].mxu1  ;;  %v8959_v14 = vpop.f32.mrb[8].mxu0  ;;  %v1973_v46 = vsel %vm953_vm2, %v1964_v16, %v1972_v17  ;;  %v1977_v7 = vrot.slane %v1975_v40, 4  ;;  %v1980_v12 = vrot.slane %v1978_v33, 5  ;;  %v1985_v26 = vrot.slane %v1983_v43, 4 }
 0x176   : > { %v8960_v21 = vpop.f32.mrb[9].mxu0  ;;  %v10918_v45 = vadd.f32 %v9069_v1, %v9068_v10  ;;  %v2293_v15 = vsel %vm471_vm1, %v2284_v5, %v2292_v6  ;;  %v1693_v20 = vsel %vm840_vm0, %v1691_v18, %v1692_v19  ;;  %v1988_v44 = vrot.slane %v1986_v37, 5  ;;  %v2436_v61 = vld [vmem:[#allocation2 + $0xe8] sm:$0xf]  ;;  %v2101_v30 = vld [vmem:[#allocation2 + $0xf0] sm:$0xf8] }
 0x177   : > { %v8962_v27 = vpop.f32.mrb[10].mxu0  ;;  %4206 = vmatmul.mubr.bf16.gmra.mrb[100].mxu1 %v2276_v38  ;;  %v2510_v54 = vsel %vm840_vm0, %v2508_v22, %v2509_v24  ;;  %v2301_v55 = vor.u32 %v10914_v31, %v10912_v62  ;;  %v2312_v29 = vshrl.u32 %v2099_v57, 16  ;;  %v2315_v56 = vshll.u32 %v2099_v57, 16  ;;  %v1765_v6 = vld [vmem:[#allocation2 + $0xe8] sm:$0x1f] }
 0x178   : > { %v8963_v48 = vpop.f32.mrb[11].mxu0  ;;  %4213 = vmatprep.mubr.bf16.mxu1 %v2507_v0  ;;  %v2309_v59 = vor.u32 %v2308_v36, %v2305_v35  ;;  %v1694_v60 = vrot.slane %v10916_v34, 4  ;;  %v2320_v38 = vshrl.u32 %v2100_v47, 16  ;;  %v2323_v0 = vshll.u32 %v2100_v47, 16  ;;  %v2102_v33 = vld [vmem:[#allocation2 + $0xf8] sm:$0xf] }
 0x179   : > { %v1981_v2 = vor.u32 %v1980_v12, %v1977_v7  ;;  %v1989_v3 = vor.u32 %v1988_v44, %v1985_v26  ;;  %v10929_v5 = vadd.f32 %v8963_v48, %v8962_v27  ;;  %v1695_v9 = vrot.slane %v1619_v49, 4  ;;  %v1620_v35 = vld [vmem:[#allocation2 + $0xe0] sm:$0xf0]  ;;  %v1621_v36 = vld [vmem:[#allocation2 + $0xe8] sm:$0xf] }
 0x17a   : > { %v9071_v52 = vpop.f32.mrb[8].mxu1  ;;  %4053 = vmatmul.mubr.bf16.gmra.mrb[104].mxu0 %v1690_v28  ;;  %v10927_v28 = vadd.f32 %v8960_v21, %v8959_v14  ;;  %v2511_v10 = vrot.slane %v2435_v50, 4  ;;  %v1992_v32 = vshrl.u32 %v1764_v51, 16  ;;  %v2512_v1 = vrot.slane %v2436_v61, 4  ;;  %v2437_v12 = vld [vmem:[#allocation2 + $0xf0] sm:$0xf0] }
 0x17b   : > { %v9072_v58 = vpop.f32.mrb[9].mxu1  ;;  %4060 = vmatprep.mubr.bf16.mxu0 %v1973_v46  ;;  %v10933_v16 = vrot.slane %v2312_v29, 3  ;;  %v10935_v17 = vrot.slane %v2315_v56, 4  ;;  %v1995_v18 = vshll.u32 %v1764_v51, 16  ;;  %v10937_v14 = vrot.slane %v2320_v38, 3 }
 0x17c   : > { %v9074_v63 = vpop.f32.mrb[10].mxu1  ;;  %v10931_v11 = vadd.f32 %v9072_v58, %v9071_v52  ;;  %v10939_v21 = vrot.slane %v2323_v0, 4  ;;  %v2000_v22 = vshrl.u32 %v1765_v6, 16  ;;  %v2003_v24 = vshll.u32 %v1765_v6, 16  ;;  %v2438_v26 = vld [vmem:[#allocation2 + $0xf8] sm:$0xf] }
 0x17d   : > { %v9075_v8 = vpop.f32.mrb[11].mxu1  ;;  %v1990_v57 = vsel %vm953_vm2, %v1981_v2, %v1989_v3  ;;  %v1994_v27 = vrot.slane %v1992_v32, 4  ;;  %v1997_v62 = vrot.slane %v1995_v18, 5  ;;  %v2310_v34 = vsel %vm471_vm1, %v2301_v55, %v2309_v59  ;;  %v10954_v29 = vld [vmem:[%s12090_s2] ss:$0 sm:$0xff] }
 0x17e   : > { %v8965_v13 = vpop.f32.mrb[12].mxu0  ;;  %v10942_v31 = vadd.f32 %v9075_v8, %v9074_v63  ;;  %v2002_v47 = vrot.slane %v2000_v22, 4  ;;  %v2005_v48 = vrot.slane %v2003_v24, 5  ;;  %v1696_v37 = vsel %vm840_vm0, %v1694_v60, %v1695_v9  ;;  %v1767_v61 = vld [vmem:[#allocation2 + $0xf8] sm:$0x1f] }
 0x17f   : > { %v8966_v19 = vpop.f32.mrb[13].mxu0  ;;  %4214 = vmatmul.mubr.bf16.gmra.mrb[104].mxu1 %v2293_v15  ;;  %v2513_v46 = vsel %vm840_vm0, %v2511_v10, %v2512_v1  ;;  %v2318_v7 = vor.u32 %v10935_v17, %v10933_v16  ;;  %v2329_v15 = vshrl.u32 %v2101_v30, 16  ;;  %v2326_v49 = vor.u32 %v10939_v21, %v10937_v14  ;;  %v2103_v32 = vld [vmem:[#allocation2 + $0x100] sm:$0xf8]  ;;  %v2104_v24 = vld [vmem:[#allocation2 + $0x108] sm:$0xf] }
 0x180   : > { %v8968_v40 = vpop.f32.mrb[14].mxu0  ;;  %4221 = vmatprep.mubr.bf16.mxu1 %v2510_v54  ;;  %v2332_v50 = vshll.u32 %v2101_v30, 16  ;;  %v2337_v52 = vshrl.u32 %v2102_v33, 16  ;;  %v2340_v54 = vshll.u32 %v2102_v33, 16  ;;  %v1998_v56 = vor.u32 %v1997_v62, %v1994_v27 }
 0x181   : > { %v8969_v43 = vpop.f32.mrb[15].mxu0  ;;  %v2006_v58 = vor.u32 %v2005_v48, %v2002_v47  ;;  %v10956_v51 = vadd.f32 %v8966_v19, %v8965_v13  ;;  %v1697_v38 = vrot.slane %v1620_v35, 4  ;;  %v1698_v0 = vrot.slane %v1621_v36, 4  ;;  %v1623_v36 = vld [vmem:[#allocation2 + $0xf8] sm:$0xf] }
 0x182   : > { %4061 = vmatmul.mubr.bf16.gmra.mrb[108].mxu0 %v1693_v20  ;;  %v1766_v20 = vld [vmem:[#allocation2 + $0xf0] sm:$0xf0]  ;;  %v10958_v59 = vadd.f32 %v8969_v43, %v8968_v40  ;;  %v2514_v63 = vrot.slane %v2437_v12, 4  ;;  %v2515_v2 = vrot.slane %v2438_v26, 4  ;;  %v10960_v6 = vrot.slane %v2329_v15, 3 }
 0x183   : > { %v9077_v44 = vpop.f32.mrb[12].mxu1  ;;  %4068 = vmatprep.mubr.bf16.mxu0 %v1990_v57  ;;  %v10962_v8 = vrot.slane %v2332_v50, 4  ;;  %v2009_v10 = vshrl.u32 %v1766_v20, 16  ;;  %v10966_v13 = vrot.slane %v2337_v52, 3  ;;  %v10968_v1 = vrot.slane %v2340_v54, 4 }
 0x184   : > { %v9078_v55 = vpop.f32.mrb[13].mxu1  ;;  %v2012_v16 = vshll.u32 %v1766_v20, 16  ;;  %v2017_v17 = vshrl.u32 %v1767_v61, 16  ;;  %v2007_v19 = vsel %vm953_vm2, %v1998_v56, %v2006_v58  ;;  %v2020_v21 = vshll.u32 %v1767_v61, 16  ;;  %v10978_v43 = vld [vmem:[#allocation2 + $0xf0] sm:$0xf0] }
 0x185   : > { %v9080_v60 = vpop.f32.mrb[14].mxu1  ;;  %v10964_v9 = vadd.f32 %v9078_v55, %v9077_v44  ;;  %v2011_v14 = vrot.slane %v2009_v10, 4  ;;  %v10975_v57 = vadd.f32 %v10879_v23, %v10954_v29  ;;  %v2327_v27 = vsel %vm471_vm1, %v2318_v7, %v2326_v49  ;;  %v1768_v49 = vld [vmem:[#allocation2 + $0x100] sm:$0xf0]  ;;  %v2440_v54 = vld [vmem:[#allocation2 + $0x108] sm:$0xf] }
 0x186   : > { %v9081_v3 = vpop.f32.mrb[15].mxu1  ;;  %v2014_v62 = vrot.slane %v2012_v16, 5  ;;  %v2019_v33 = vrot.slane %v2017_v17, 4  ;;  %v1699_v47 = vsel %vm840_vm0, %v1697_v38, %v1698_v0  ;;  %v2516_v48 = vsel %vm840_vm0, %v2514_v63, %v2515_v2  ;;  %v1769_v0 = vld [vmem:[#allocation2 + $0x108] sm:$0x1f] }
 0x187   : > { %v8971_v30 = vpop.f32.mrb[16].mxu0  ;;  %4222 = vmatmul.mubr.bf16.gmra.mrb[108].mxu1 %v2310_v34  ;;  %v10971_v22 = vadd.f32 %v9081_v3, %v9080_v60  ;;  %v2022_v35 = vrot.slane %v2020_v21, 5  ;;  %v2346_v12 = vshrl.u32 %v2103_v32, 16  ;;  %v2335_v23 = vor.u32 %v10962_v8, %v10960_v6 }
 0x188   : > { %v8972_v18 = vpop.f32.mrb[17].mxu0  ;;  %4229 = vmatprep.mubr.bf16.mxu1 %v2513_v46  ;;  %v2439_v46 = vld [vmem:[#allocation2 + $0x100] sm:$0xf0]  ;;  %v2343_v7 = vor.u32 %v10968_v1, %v10966_v13  ;;  %v2349_v26 = vshll.u32 %v2103_v32, 16  ;;  %v2354_v15 = vshrl.u32 %v2104_v24, 16  ;;  %v1700_v52 = vrot.slane %v10978_v43, 4 }
 0x189   : > { %v8974_v40 = vpop.f32.mrb[18].mxu0  ;;  %v2023_v50 = vor.u32 %v2022_v35, %v2019_v33  ;;  %v2357_v55 = vshll.u32 %v2104_v24, 16  ;;  %v2348_v56 = vrot.slane %v2346_v12, 3  ;;  %v10987_v60 = vadd.f32 %v8972_v18, %v8971_v30  ;;  %v1624_v33 = vld [vmem:[#allocation2 + $0x100] sm:$0xf0] }
 0x18a   : > { %v8975_v34 = vpop.f32.mrb[19].mxu0  ;;  %4069 = vmatmul.mubr.bf16.gmra.mrb[112].mxu0 %v1696_v37  ;;  %v2015_v37 = vor.u32 %v2014_v62, %v2011_v14  ;;  %v2351_v58 = vrot.slane %v2349_v26, 4  ;;  %v2356_v63 = vrot.slane %v2354_v15, 3  ;;  %v2026_v6 = vshrl.u32 %v1768_v49, 16  ;;  %v2105_v14 = vld [vmem:[#allocation2 + $0x110] sm:$0xf8] }
 0x18b   : > { %4076 = vmatprep.mubr.bf16.mxu0 %v2007_v19  ;;  %v10989_v61 = vadd.f32 %v8975_v34, %v8974_v40  ;;  %v2359_v2 = vrot.slane %v2357_v55, 4  ;;  %v1701_v10 = vrot.slane %v1623_v36, 4  ;;  %v2517_v32 = vrot.slane %v2439_v46, 4  ;;  %v2106_v43 = vld [vmem:[#allocation2 + $0x118] sm:$0xf] }
 0x18c   : > { %v9083_v44 = vpop.f32.mrb[16].mxu1  ;;  %v2518_v13 = vrot.slane %v2440_v54, 4  ;;  %v2029_v1 = vshll.u32 %v1768_v49, 16  ;;  %v2024_v30 = vsel %vm953_vm2, %v2015_v37, %v2023_v50  ;;  %v2028_v17 = vrot.slane %v2026_v6, 4  ;;  %v1625_v12 = vld [vmem:[#allocation2 + $0x108] sm:$0xf] }
 0x18d   : > { %v9084_v20 = vpop.f32.mrb[17].mxu1  ;;  %v2034_v18 = vshrl.u32 %v1769_v0, 16  ;;  %v2037_v19 = vshll.u32 %v1769_v0, 16  ;;  %v10996_v24 = vadd.f32 %v10883_v25, %v10954_v29  ;;  %v2344_v40 = vsel %vm471_vm1, %v2335_v23, %v2343_v7  ;;  %v2441_v23 = vld [vmem:[#allocation2 + $0x110] sm:$0xf0] }
 0x18e   : > { %v9086_v38 = vpop.f32.mrb[18].mxu1  ;;  %v10991_v3 = vadd.f32 %v9084_v20, %v9083_v44  ;;  %v2360_v35 = vor.u32 %v2359_v2, %v2356_v63  ;;  %v1702_v15 = vsel %vm840_vm0, %v1700_v52, %v1701_v10  ;;  %v2519_v25 = vsel %vm840_vm0, %v2517_v32, %v2518_v13  ;;  %v2442_v7 = vld [vmem:[#allocation2 + $0x118] sm:$0xf]  ;;  %v10117_v20 = vld [vmem:[#allocation9 + $0x40] sm:$0xff]   ;;  %v2556_v63 = vld [vmem:[#allocation2 + $0x28] sm:$0x1f] }
 0x18f   : > { %v9087_v8 = vpop.f32.mrb[19].mxu1  ;;  %4230 = vmatmul.mubr.bf16.gmra.mrb[112].mxu1 %v2327_v27  ;;  %v2031_v27 = vrot.slane %v2029_v1, 5  ;;  %v2036_v36 = vrot.slane %v2034_v18, 4  ;;  %v2039_v46 = vrot.slane %v2037_v19, 5  ;;  %v2363_v49 = vshrl.u32 %v2105_v14, 16  ;;  %v10118_v52 = vld [vmem:[#allocation9] sm:$0xff]   ;;  %9403 = vmatprep.subr.bf16.mxu1 %v10117_v20 }
 0x190   : > { %v8977_v16 = vpop.f32.mrb[20].mxu0  ;;  %4237 = vmatprep.mubr.bf16.mxu1 %v2516_v48  ;;  %v10999_v62 = vadd.f32 %v9087_v8, %v9086_v38  ;;  %v2352_v48 = vor.u32 %v2351_v58, %v2348_v56  ;;  %v2366_v50 = vshll.u32 %v2105_v14, 16  ;;  %v2371_v54 = vshrl.u32 %v2106_v43, 16  ;;  %v2557_v32 = vld [vmem:[#allocation2 + $0x30] sm:$0xf0]  ;;  %9404 = vmatpush3.bf16.msra.mxu1 %v10118_v52 }
 0x191   : > { %v8978_v21 = vpop.f32.mrb[21].mxu0  ;;  %v2032_v44 = vor.u32 %v2031_v27, %v2028_v17  ;;  %v2040_v37 = vor.u32 %v2039_v46, %v2036_v36  ;;  %v2374_v55 = vshll.u32 %v2106_v43, 16  ;;  %v1703_v56 = vrot.slane %v1624_v33, 4  ;;  %v2558_v17 = vld [vmem:[#allocation2 + $0x38] sm:$0x1f] }
 0x192   : > { %v8980_v34 = vpop.f32.mrb[22].mxu0  ;;  %4077 = vmatmul.mubr.bf16.gmra.mrb[116].mxu0 %v1699_v47  ;;  %v2555_v47 = vld [vmem:[#allocation2 + $0x20] sm:$0xf0]  ;;  %v1704_v58 = vrot.slane %v1625_v12, 4  ;;  %v11003_v38 = vadd.f32 %v8978_v21, %v8977_v16  ;;  %v2361_v2 = vsel %vm471_vm1, %v2352_v48, %v2360_v35  ;;  %v2520_v6 = vrot.slane %v2441_v23, 4 }
 0x193   : > { %v8981_v26 = vpop.f32.mrb[23].mxu0  ;;  %4084 = vmatprep.mubr.bf16.mxu0 %v2024_v30  ;;  %v2521_v8 = vrot.slane %v2442_v7, 4  ;;  %v11008_v10 = vrot.slane %v2363_v49, 3  ;;  %v2041_v13 = vsel %vm953_vm2, %v2032_v44, %v2040_v37  ;;  %v11011_v1 = vrot.slane %v2366_v50, 4  ;;  %v2560_v12 = vld [vmem:[#allocation2 + $0x48] sm:$0x1f] }
 0x194   : > { %v11005_v0 = vadd.f32 %v8981_v26, %v8980_v34  ;;  %v2588_v30 = vshrl.u32 %v2555_v47, 16  ;;  %v2591_v16 = vshll.u32 %v2555_v47, 16  ;;  %v11013_v18 = vrot.slane %v2371_v54, 3  ;;  %v2562_v52 = vld [vmem:[#allocation2 + $0x58] sm:$0x1f] }
 0x195   : > { %v11015_v19 = vrot.slane %v2374_v55, 4  ;;  %v2596_v14 = vshrl.u32 %v2556_v63, 16  ;;  %v2599_v21 = vshll.u32 %v2556_v63, 16  ;;  %v2605_v43 = vshrl.u32 %v2557_v32, 16  ;;  %v2561_v55 = vld [vmem:[#allocation2 + $0x50] sm:$0xf0] }
 0x196   : > { %v2590_v27 = vrot.slane %v2588_v30, 4  ;;  %v2593_v33 = vrot.slane %v2591_v16, 5  ;;  %v2608_v34 = vshll.u32 %v2557_v32, 16  ;;  %v1705_v48 = vsel %vm840_vm0, %v1703_v56, %v1704_v58  ;;  %v2563_v30 = vld [vmem:[#allocation2 + $0x60] sm:$0xf0] }
 0x197   : > { %4238 = vmatmul.mubr.bf16.gmra.mrb[116].mxu1 %v2344_v40  ;;  %v2559_v40 = vld [vmem:[#allocation2 + $0x40] sm:$0xf0]  ;;  %v2598_v35 = vrot.slane %v2596_v14, 4  ;;  %v2601_v36 = vrot.slane %v2599_v21, 5  ;;  %v2613_v46 = vshrl.u32 %v2558_v17, 16  ;;  %v2522_v26 = vsel %vm840_vm0, %v2520_v6, %v2521_v8 }
 0x198   : > { %4245 = vmatprep.mubr.bf16.mxu1 %v2519_v25  ;;  %v2369_v25 = vor.u32 %v11011_v1, %v11008_v10  ;;  %v2594_v23 = vor.u32 %v2593_v33, %v2590_v27  ;;  %v2616_v7 = vshll.u32 %v2558_v17, 16  ;;  %v2377_v49 = vor.u32 %v11015_v19, %v11013_v18  ;;  %v2564_v21 = vld [vmem:[#allocation2 + $0x68] sm:$0x1f] }
 0x199   : > { %v2622_v50 = vshrl.u32 %v2559_v40, 16  ;;  %v2625_v54 = vshll.u32 %v2559_v40, 16  ;;  %v11025_v56 = vrot.slane %v2605_v43, 4  ;;  %v11027_v58 = vrot.slane %v2608_v34, 5 }
 0x19a   : > { %4085 = vmatmul.mubr.bf16.gmra.mrb[120].mxu0 %v1702_v15  ;;  %v2602_v15 = vor.u32 %v2601_v36, %v2598_v35  ;;  %v2630_v63 = vshrl.u32 %v2560_v12, 16  ;;  %v2615_v10 = vrot.slane %v2613_v46, 4  ;;  %v2618_v32 = vrot.slane %v2616_v7, 5 }
 0x19b   : > { %4092 = vmatprep.mubr.bf16.mxu0 %v2041_v13  ;;  %v2633_v1 = vshll.u32 %v2560_v12, 16  ;;  %v2624_v18 = vrot.slane %v2622_v50, 4  ;;  %v2627_v19 = vrot.slane %v2625_v54, 5  ;;  %v2639_v14 = vshrl.u32 %v2561_v55, 16 }
 0x19c   : > { %v2603_v6 = vsel %vm953_vm2, %v2594_v23, %v2602_v15  ;;  %v2632_v43 = vrot.slane %v2630_v63, 4  ;;  %v2642_v40 = vshll.u32 %v2561_v55, 16  ;;  %v11036_v35 = vadd.f32 %v10906_v41, %v10954_v29  ;;  %v2566_v41 = vld [vmem:[#allocation2 + $0x78] sm:$0x1f] }
 0x19d   : > { %v9089_v44 = vpop.f32.mrb[20].mxu1  ;;  %v2635_v34 = vrot.slane %v2633_v1, 5  ;;  %v2647_v46 = vshrl.u32 %v2562_v52, 16  ;;  %v2650_v12 = vshll.u32 %v2562_v52, 16  ;;  %v2611_v23 = vor.u32 %v11027_v58, %v11025_v56  ;;  %v10119_v56 = vld [vmem:[#allocation9 + $0x48] sm:$0xff]  }
 0x19e   : > { %v9090_v37 = vpop.f32.mrb[21].mxu1  ;;  %v2619_v7 = vor.u32 %v2618_v32, %v2615_v10  ;;  %v11052_v50 = vrot.slane %v2642_v40, 5  ;;  %v2656_v54 = vshrl.u32 %v2563_v30, 16  ;;  %v2659_v55 = vshll.u32 %v2563_v30, 16  ;;  %v10120_v58 = vld [vmem:[#allocation9 + $0x8] sm:$0xff]   ;;  %9405 = vmatprep.subr.bf16.mxu1 %v10119_v56 }
 0x19f   : > { %v11023_v47 = vadd.f32 %v9090_v37, %v9089_v44  ;;  %v9092_v20 = vpop.f32.mrb[22].mxu1  ;;  %v8983_v13 = vpop.f32.mrb[24].mxu0  ;;  %4246 = vmatmul.mubr.bf16.gmra.mrb[120].mxu1 %v2361_v2  ;;  %v11040_v2 = vadd.f32 %v10908_v42, %v10954_v29  ;;  %v2565_v44 = vld [vmem:[#allocation2 + $0x70] sm:$0xf0]  ;;  %v11050_v42 = vrot.slane %v2639_v14, 4  ;;  %v2628_v63 = vor.u32 %v2627_v19, %v2624_v18 }
 0x1a0   : > { %v9093_v8 = vpop.f32.mrb[23].mxu1  ;;  %v8984_v17 = vpop.f32.mrb[25].mxu0  ;;  %4253 = vmatprep.mubr.bf16.mxu1 %v2522_v26  ;;  %v11044_v26 = vadd.f32 %v10927_v28, %v10954_v29  ;;  %v2664_v52 = vshrl.u32 %v2564_v21, 16  ;;  %v11057_v1 = vrot.slane %v2656_v54, 4  ;;  %v2667_v30 = vshll.u32 %v2564_v21, 16  ;;  %9406 = vmatpush3.bf16.msra.mxu1 %v10120_v58 }
 0x1a1   : > { %v11030_v16 = vadd.f32 %v9093_v8, %v9092_v20  ;;  %v11032_v27 = vadd.f32 %v8984_v17, %v8983_v13  ;;  %v8986_v33 = vpop.f32.mrb[26].mxu0  ;;  %v2378_v20 = vsel %vm471_vm1, %v2369_v25, %v2377_v49  ;;  %v2567_v8 = vld [vmem:[#allocation2 + $0x80] sm:$0xf0]  ;;  %v2652_v13 = vrot.slane %v2650_v12, 5  ;;  %v2568_v49 = vld [vmem:[#allocation2 + $0x88] sm:$0x1f] }
 0x1a2   : > { %v8987_v36 = vpop.f32.mrb[27].mxu0  ;;  %4093 = vmatmul.mubr.bf16.gmra.mrb[124].mxu0 %v1705_v48  ;;  %v2636_v48 = vor.u32 %v2635_v34, %v2632_v43  ;;  %v2673_v40 = vshrl.u32 %v2565_v44, 16  ;;  %v2676_v25 = vshll.u32 %v2565_v44, 16  ;;  %v11061_v18 = vadd.f32 %v10929_v5, %v10954_v29  ;;  %v2569_v54 = vld [vmem:[#allocation2 + $0x90] sm:$0xf0] }
 0x1a3   : > { %12107 = vst [vmem:[#allocation14_spill] sm:$0xff] %v11030_v16  ;;  %v11048_v37 = vadd.f32 %v8987_v36, %v8986_v33  ;;  %9891 = vmatprep.mubr.bf16.mxu0 %v2603_v6  ;;  %v2649_v6 = vrot.slane %v2647_v46, 4  ;;  %v2661_v33 = vrot.slane %v2659_v55, 5  ;;  %v2620_v19 = vsel %vm953_vm2, %v2611_v23, %v2619_v7 }
 0x1a4   : > { %v2681_v36 = vshrl.u32 %v2566_v41, 16  ;;  %v2637_v46 = vsel %vm953_vm2, %v2628_v63, %v2636_v48  ;;  %v2669_v44 = vrot.slane %v2667_v30, 5  ;;  %v11071_v5 = vadd.f32 %v10956_v51, %v10954_v29 }
 0x1a5   : > { %v9095_v15 = vpop.f32.mrb[24].mxu1  ;;  %v2690_v23 = vshrl.u32 %v2567_v8, 16  ;;  %v2693_v7 = vshll.u32 %v2567_v8, 16  ;;  %v2645_v63 = vor.u32 %v11052_v50, %v11050_v42  ;;  %v2653_v48 = vor.u32 %v2652_v13, %v2649_v6 }
 0x1a6   : > { %v9096_v28 = vpop.f32.mrb[25].mxu1  ;;  %v2675_v58 = vrot.slane %v2673_v40, 4  ;;  %v2698_v51 = vshrl.u32 %v2568_v49, 16  ;;  %v2701_v8 = vshll.u32 %v2568_v49, 16  ;;  %v2707_v6 = vshrl.u32 %v2569_v54, 16 }
 0x1a7   : > { %v11055_v10 = vadd.f32 %v9096_v28, %v9095_v15  ;;  %v9098_v32 = vpop.f32.mrb[26].mxu1  ;;  %v8989_v14 = vpop.f32.mrb[28].mxu0  ;;  %4254 = vmatmul.mubr.bf16.gmra.mrb[124].mxu1 %v2378_v20  ;;  %v2666_v15 = vrot.slane %v2664_v52, 4  ;;  %v2684_v20 = vshll.u32 %v2566_v41, 16  ;;  %v2570_v28 = vld [vmem:[#allocation2 + $0x98] sm:$0x1f]  ;;  %v2662_v52 = vor.u32 %v2661_v33, %v11057_v1 }
 0x1a8   : > { %v9099_v17 = vpop.f32.mrb[27].mxu1  ;;  %v8990_v34 = vpop.f32.mrb[29].mxu0  ;;  %v2695_v50 = vrot.slane %v2693_v7, 5  ;;  %v2710_v13 = vshll.u32 %v2569_v54, 16  ;;  %v2700_v40 = vrot.slane %v2698_v51, 4  ;;  %v11090_v49 = vadd.f32 %v10989_v61, %v10954_v29 }
 0x1a9   : > { %12108 = vst [vmem:[#allocation15_spill] sm:$0xff] %v11055_v10  ;;  %v11064_v43 = vadd.f32 %v9099_v17, %v9098_v32  ;;  %v11067_v12 = vadd.f32 %v8990_v34, %v8989_v14  ;;  %v8992_v21 = vpop.f32.mrb[30].mxu0  ;;  %v2678_v32 = vrot.slane %v2676_v25, 5  ;;  %v2683_v17 = vrot.slane %v2681_v36, 4  ;;  %v2573_v54 = vld [vmem:[#allocation2 + $0xb0] sm:$0xf0] }
 0x1aa   : > { %v8993_v55 = vpop.f32.mrb[31].mxu0  ;;  %9892 = vmatmul.mubr.bf16.vlgmr.msra.gmra.mrb[128].mxu0 %v2620_v19  ;;  %v2670_v30 = vor.u32 %v2669_v44, %v2666_v15  ;;  %v2686_v41 = vrot.slane %v2684_v20, 5  ;;  %v2692_v34 = vrot.slane %v2690_v23, 4  ;;  %v11080_v19 = vadd.f32 %v10958_v59, %v10954_v29 }
 0x1ab   : > { %12109 = vst [vmem:[#allocation16_spill] sm:$0xff] %v11064_v43  ;;  %v11075_v56 = vadd.f32 %v8993_v55, %v8992_v21  ;;  %9895 = vmatprep.mubr.bf16.mxu0 %v2637_v46  ;;  %v2571_v43 = vld [vmem:[#allocation2 + $0xa0] sm:$0xf0]  ;;  %v2703_v25 = vrot.slane %v2701_v8, 5  ;;  %v2715_v36 = vshrl.u32 %v2570_v28, 16  ;;  %v11086_v21 = vadd.f32 %v10987_v60, %v10954_v29 }
 0x1ac   : > { %v2572_v46 = vld [vmem:[#allocation2 + $0xa8] sm:$0x1f]  ;;  %v2654_v59 = vsel %vm953_vm2, %v2645_v63, %v2653_v48  ;;  %v2718_v44 = vshll.u32 %v2570_v28, 16  ;;  %v2671_v55 = vsel %vm953_vm2, %v2662_v52, %v2670_v30  ;;  %v2679_v23 = vor.u32 %v2678_v32, %v2675_v58 }
 0x1ad   : > { %v9101_v14 = vpop.f32.mrb[28].mxu1  ;;  %v2687_v7 = vor.u32 %v2686_v41, %v2683_v17  ;;  %v2696_v60 = vor.u32 %v2695_v50, %v2692_v34  ;;  %v2724_v61 = vshrl.u32 %v2571_v43, 16  ;;  %v2704_v28 = vor.u32 %v2703_v25, %v2700_v40  ;;  %v2575_v34 = vld [vmem:[#allocation2 + $0xc0] sm:$0xf0]  ;;  %v10121_v40 = vld [vmem:[#allocation9 + $0x50] sm:$0xff]  }
 0x1ae   : > { %v9102_v42 = vpop.f32.mrb[29].mxu1  ;;  %v11100_v10 = vrot.slane %v2715_v36, 4  ;;  %v2727_v52 = vshll.u32 %v2571_v43, 16  ;;  %v11104_v58 = vadd.f32 %v11003_v38, %v10954_v29  ;;  %v11106_v17 = vrot.slane %v2718_v44, 5  ;;  %v10122_v43 = vld [vmem:[#allocation9 + $0x10] sm:$0xff]   ;;  %9407 = vmatprep.subr.bf16.mxu1 %v10121_v40 }
 0x1af   : > { %v11082_v1 = vadd.f32 %v9102_v42, %v9101_v14  ;;  %v9104_v33 = vpop.f32.mrb[30].mxu1  ;;  %v2574_v14 = vld [vmem:[#allocation2 + $0xb8] sm:$0x1f]  ;;  %v11096_v42 = vrot.slane %v2707_v6, 4  ;;  %v2732_v30 = vshrl.u32 %v2572_v46, 16  ;;  %v2735_v41 = vshll.u32 %v2572_v46, 16  ;;  %9408 = vmatpush3.bf16.msra.mxu1 %v10122_v43 }
 0x1b0   : > { %v9105_v15 = vpop.f32.mrb[31].mxu1  ;;  %v8995_v51 = vpop.f32.mrb[32].mxu0  ;;  %v11110_v50 = vadd.f32 %v11005_v0, %v10954_v29  ;;  %v2688_v25 = vsel %vm953_vm2, %v2679_v23, %v2687_v7  ;;  %v2576_v46 = vld [vmem:[#allocation2 + $0xc8] sm:$0x1f]  ;;  %v2726_v0 = vrot.slane %v2724_v61, 4  ;;  %v2758_v61 = vshrl.u32 %v2575_v34, 16 }
 0x1b1   : > { %12110 = vst [vmem:[#allocation17_spill] sm:$0xff] %v11082_v1  ;;  %v11094_v20 = vadd.f32 %v9105_v15, %v9104_v33  ;;  %v8996_v8 = vpop.f32.mrb[33].mxu0  ;;  %v11098_v1 = vrot.slane %v2710_v13, 5  ;;  %v2741_v13 = vshrl.u32 %v2573_v54, 16  ;;  %v2744_v33 = vshll.u32 %v2573_v54, 16 }
 0x1b2   : > { %9896 = vmatmul.mubr.bf16.gmra.mrb[132].mxu0 %v2654_v59  ;;  %v8997_v63 = vadd.f32 %v8996_v8, %v8995_v51  ;;  %v8998_v48 = vpop.f32.mrb[34].mxu0  ;;  %12112 = vst [vmem:[#allocation19_spill] sm:$0xff] %v11110_v50  ;;  %v2749_v15 = vshrl.u32 %v2574_v14, 16  ;;  %v2729_v51 = vrot.slane %v2727_v52, 5  ;;  %v2752_v8 = vshll.u32 %v2574_v14, 16 }
 0x1b3   : > { %12111 = vst [vmem:[#allocation18_spill] sm:$0xff] %v11094_v20  ;;  %9899 = vmatprep.mubr.bf16.mxu0 %v2671_v55  ;;  %v8999_v32 = vpop.f32.mrb[35].mxu0  ;;  %v2713_v59 = vor.u32 %v11098_v1, %v11096_v42  ;;  %v2705_v55 = vsel %vm953_vm2, %v2696_v60, %v2704_v28  ;;  %v2734_v7 = vrot.slane %v2732_v30, 4  ;;  %v2578_v20 = vld [vmem:[#allocation2 + $0xd8] sm:$0x1f]  ;;  %v2721_v1 = vor.u32 %v11106_v17, %v11100_v10 }
 0x1b4   : > { %v9000_v6 = vadd.f32 %v8999_v32, %v8998_v48  ;;  %v3717_v38 = vadd.f32 %v8997_v63, %v10954_v29  ;;  %v2577_v48 = vld [vmem:[#allocation2 + $0xd0] sm:$0xf0]  ;;  %v2737_v63 = vrot.slane %v2735_v41, 5  ;;  %v11120_v42 = vrot.slane %v2741_v13, 4 }
 0x1b5   : > { %v9107_v36 = vpop.f32.mrb[32].mxu1  ;;  %v11122_v60 = vrot.slane %v2744_v33, 5  ;;  %v2761_v40 = vshll.u32 %v2575_v34, 16  ;;  %v2730_v41 = vor.u32 %v2729_v51, %v2726_v0  ;;  %v2754_v43 = vrot.slane %v2752_v8, 5  ;;  %v2580_v8 = vld [vmem:[#allocation2 + $0xe8] sm:$0x1f] }
 0x1b6   : > { %v9108_v44 = vpop.f32.mrb[33].mxu1  ;;  %v3720_v54 = vadd.f32 %v9000_v6, %v10954_v29  ;;  %v11126_v6 = vrot.slane %v2749_v15, 4  ;;  %v2738_v33 = vor.u32 %v2737_v63, %v2734_v7  ;;  %v2775_v50 = vshrl.u32 %v2577_v48, 16 }
 0x1b7   : > { %v9109_v32 = vadd.f32 %v9108_v44, %v9107_v36  ;;  %v9110_v23 = vpop.f32.mrb[34].mxu1  ;;  %v2766_v36 = vshrl.u32 %v2576_v46, 16  ;;  %v2769_v44 = vshll.u32 %v2576_v46, 16  ;;  %v2760_v15 = vrot.slane %v2758_v61, 4 }
 0x1b8   : > { %v9111_v16 = vpop.f32.mrb[35].mxu1  ;;  %v2778_v34 = vshll.u32 %v2577_v48, 16  ;;  %v11136_v0 = vadd.f32 %v11048_v37, %v10954_v29  ;;  %v2786_v51 = vshll.u32 %v2578_v20, 16  ;;  %v2739_v48 = vsel %vm953_vm2, %v2730_v41, %v2738_v33 }
 0x1b9   : > { %v11124_v14 = vadd.f32 %v9109_v32, %v3717_v38  ;;  %v9112_v28 = vadd.f32 %v9111_v16, %v9110_v23  ;;  %v9001_v52 = vpop.f32.mrb[36].mxu0  ;;  %v11132_v16 = vadd.f32 %v11032_v27, %v10954_v29  ;;  %v2579_v32 = vld [vmem:[#allocation2 + $0xe0] sm:$0xf0]  ;;  %v2768_v27 = vrot.slane %v2766_v36, 4 }
 0x1ba   : > { %9900 = vmatmul.mubr.bf16.gmra.mrb[136].mxu0 %v2688_v25  ;;  %v9002_v30 = vpop.f32.mrb[37].mxu0  ;;  %v2783_v25 = vshrl.u32 %v2578_v20, 16  ;;  %v2771_v63 = vrot.slane %v2769_v44, 5  ;;  %v2755_v37 = vor.u32 %v2754_v43, %v11126_v6  ;;  %v2582_v20 = vld [vmem:[#allocation2 + $0xf8] sm:$0x1f]  ;;  %v2792_v41 = vshrl.u32 %v2579_v32, 16 }
 0x1bb   : > { %9903 = vmatprep.mubr.bf16.mxu0 %v2705_v55  ;;  %v11128_v10 = vadd.f32 %v9112_v28, %v3720_v54  ;;  %v9003_v17 = vadd.f32 %v9002_v30, %v9001_v52  ;;  %v9004_v13 = vpop.f32.mrb[38].mxu0  ;;  %v2763_v55 = vrot.slane %v2761_v40, 5  ;;  %v2722_v54 = vsel %vm953_vm2, %v2713_v59, %v2721_v1  ;;  %v2581_v28 = vld [vmem:[#allocation2 + $0xf0] sm:$0xf0] }
 0x1bc   : > { %v9005_v38 = vpop.f32.mrb[39].mxu0  ;;  %v2747_v52 = vor.u32 %v11122_v60, %v11120_v42  ;;  %v11144_v30 = vrot.slane %v2775_v50, 4  ;;  %v11149_v36 = vrot.slane %v2783_v25, 4  ;;  %v2795_v33 = vshll.u32 %v2579_v32, 16  ;;  %v2583_v42 = vld [vmem:[#allocation2 + $0x100] sm:$0xf0] }
 0x1bd   : > { %12113 = vst [vmem:[#allocation20_spill] sm:$0xff] %v11128_v10  ;;  %v9006_v46 = vadd.f32 %v9005_v38, %v9004_v13  ;;  %v3725_v23 = vadd.f32 %v9003_v17, %v10954_v29  ;;  %v11147_v17 = vrot.slane %v2778_v34, 5  ;;  %v2764_v13 = vor.u32 %v2763_v55, %v2760_v15 }
 0x1be   : > { %v9113_v7 = vpop.f32.mrb[36].mxu1  ;;  %v11151_v38 = vrot.slane %v2786_v51, 5  ;;  %v2772_v43 = vor.u32 %v2771_v63, %v2768_v27  ;;  %v11157_v34 = vadd.f32 %v11067_v12, %v10954_v29  ;;  %v2809_v15 = vshrl.u32 %v2581_v28, 16  ;;  %v2584_v51 = vld [vmem:[#allocation2 + $0x108] sm:$0x1f]  ;;  %v10124_v27 = vld [vmem:[#allocation9 + $0x18] sm:$0xff]  }
 0x1bf   : > { %v9114_v61 = vpop.f32.mrb[37].mxu1  ;;  %v3728_v40 = vadd.f32 %v9006_v46, %v10954_v29  ;;  %v2800_v46 = vshrl.u32 %v2580_v8, 16  ;;  %v2812_v55 = vshll.u32 %v2581_v28, 16  ;;  %v2756_v32 = vsel %vm953_vm2, %v2747_v52, %v2755_v37 }
 0x1c0   : > { %v9115_v59 = vadd.f32 %v9114_v61, %v9113_v7  ;;  %v9116_v1 = vpop.f32.mrb[38].mxu1  ;;  %v2803_v7 = vshll.u32 %v2580_v8, 16  ;;  %v2781_v12 = vor.u32 %v11147_v17, %v11144_v30  ;;  %v2773_v28 = vsel %vm953_vm2, %v2764_v13, %v2772_v43 }
 0x1c1   : > { %v9117_v44 = vpop.f32.mrb[39].mxu1  ;;  %v2826_v10 = vshrl.u32 %v2583_v42, 16  ;;  %v11172_v17 = vrot.slane %v2812_v55, 5 }
 0x1c2   : > { %9904 = vmatmul.mubr.bf16.gmra.mrb[140].mxu0 %v2722_v54  ;;  %v11153_v60 = vadd.f32 %v9115_v59, %v3725_v23  ;;  %v9118_v50 = vadd.f32 %v9117_v44, %v9116_v1  ;;  %v9007_v6 = vpop.f32.mrb[40].mxu0  ;;  %v2817_v59 = vshrl.u32 %v2582_v20, 16  ;;  %v10123_v1 = vld [vmem:[#allocation9 + $0x58] sm:$0xff]   ;;  %v2794_v44 = vrot.slane %v2792_v41, 4 }
 0x1c3   : > { %9907 = vmatprep.mubr.bf16.mxu0 %v2739_v48  ;;  %v9008_v25 = vpop.f32.mrb[41].mxu0  ;;  %v2797_v48 = vrot.slane %v2795_v33, 5  ;;  %9409 = vmatprep.subr.bf16.mxu1 %v10123_v1  ;;  %v2834_v41 = vshrl.u32 %v2584_v51, 16 }
 0x1c4   : > { %12114 = vst [vmem:[#allocation21_spill] sm:$0xff] %v11153_v60  ;;  %v11159_v61 = vadd.f32 %v9118_v50, %v3728_v40  ;;  %v9009_v54 = vadd.f32 %v9008_v25, %v9007_v6  ;;  %v9010_v23 = vpop.f32.mrb[42].mxu0  ;;  %v2820_v60 = vshll.u32 %v2582_v20, 16  ;;  %v2829_v40 = vshll.u32 %v2583_v42, 16  ;;  %9410 = vmatpush3.bf16.msra.mxu1 %v10124_v27 }
 0x1c5   : > { %v9011_v63 = vpop.f32.mrb[43].mxu0  ;;  %v2802_v50 = vrot.slane %v2800_v46, 4  ;;  %v2805_v6 = vrot.slane %v2803_v7, 5  ;;  %v11166_v25 = vrot.slane %v2809_v15, 4  ;;  %v2789_v20 = vor.u32 %v11151_v38, %v11149_v36 }
 0x1c6   : > { %12115 = vst [vmem:[#allocation22_spill] sm:$0xff] %v11159_v61  ;;  %v9012_v8 = vadd.f32 %v9011_v63, %v9010_v23  ;;  %v3733_v52 = vadd.f32 %v9009_v54, %v10954_v29  ;;  %v11168_v61 = vld [vmem:[#allocation2 + $0x110] sm:$0xf0]  ;;  %v11174_v13 = vrot.slane %v2817_v59, 4  ;;  %v11177_v46 = vrot.slane %v2820_v60, 5 }
 0x1c7   : > { %v9119_v37 = vpop.f32.mrb[40].mxu1  ;;  %v2837_v7 = vshll.u32 %v2584_v51, 16  ;;  %v2798_v54 = vor.u32 %v2797_v48, %v2794_v44  ;;  %v11179_v23 = vrot.slane %v2826_v10, 4  ;;  %v11181_v1 = vrot.slane %v2829_v40, 5  ;;  %v2586_v44 = vld [vmem:[#allocation2 + $0x118] sm:$0x1f] }
 0x1c8   : > { %v9120_v30 = vpop.f32.mrb[41].mxu1  ;;  %v3736_v33 = vadd.f32 %v9012_v8, %v10954_v29  ;;  %v2843_v36 = vshrl.u32 %v11168_v61, 16  ;;  %v2806_v27 = vor.u32 %v2805_v6, %v2802_v50  ;;  %v2846_v63 = vshll.u32 %v11168_v61, 16  ;;  %v12120_v6 = vld [vmem:[#allocation17_spill] sm:$0xff] }
 0x1c9   : > { %v9121_v42 = vadd.f32 %v9120_v30, %v9119_v37  ;;  %v9122_v43 = vpop.f32.mrb[42].mxu1  ;;  %v3712_v60 = vadd.f32 %v11075_v56, %v10954_v29  ;;  %v11191_v10 = vadd.f32 %v10885_v4, %v10975_v57  ;;  %v11195_v48 = vadd.f32 %v10897_v53, %v10996_v24 }
 0x1ca   : > { %9908 = vmatmul.mubr.bf16.gmra.mrb[144].mxu0 %v2756_v32  ;;  %v9123_v15 = vpop.f32.mrb[43].mxu1  ;;  %v2836_v32 = vrot.slane %v2834_v41, 4  ;;  %v11202_v56 = vadd.f32 %v10910_v39, %v11036_v35  ;;  %v11206_v4 = vadd.f32 %v10918_v45, %v11040_v2  ;;  %v11210_v53 = vadd.f32 %v10931_v11, %v11044_v26 }
 0x1cb   : > { %v11184_v38 = vadd.f32 %v9121_v42, %v3733_v52  ;;  %9911 = vmatprep.mubr.bf16.mxu0 %v2773_v28  ;;  %v9124_v55 = vadd.f32 %v9123_v15, %v9122_v43  ;;  %v9013_v59 = vpop.f32.mrb[44].mxu0  ;;  %v2790_v28 = vsel %vm953_vm2, %v2781_v12, %v2789_v20  ;;  %v2839_v52 = vrot.slane %v2837_v7, 5  ;;  %v12121_v20 = vld [vmem:[#allocation18_spill] sm:$0xff] }
 0x1cc   : > { %v9014_v51 = vpop.f32.mrb[45].mxu0  ;;  %v11214_v57 = vadd.f32 %v10942_v31, %v11061_v18  ;;  %v2807_v50 = vsel %vm953_vm2, %v2798_v54, %v2806_v27  ;;  %v11220_v39 = vadd.f32 %v10964_v9, %v11071_v5  ;;  %v11224_v45 = vadd.f32 %v10971_v22, %v11080_v19  ;;  %v11241_v9 = vld [vmem:[%s12090_s2] ss:$0 sm:$0xff]  ;;  %v12116_v18 = vld [vmem:[#allocation19_spill] sm:$0xff] }
 0x1cd   : > { %v11197_v8 = vadd.f32 %v9124_v55, %v3736_v33  ;;  %v9015_v40 = vadd.f32 %v9014_v51, %v9013_v59  ;;  %v9016_v61 = vpop.f32.mrb[46].mxu0  ;;  %v11228_v11 = vadd.f32 %v10991_v3, %v11086_v21  ;;  %v11232_v31 = vadd.f32 %v10999_v62, %v11090_v49  ;;  %v12117_v3 = vld [vmem:[#allocation14_spill] sm:$0xff]  ;;  %v12118_v62 = vld [vmem:[#allocation15_spill] sm:$0xff]  ;;  %v12119_v49 = vld [vmem:[#allocation16_spill] sm:$0xff] }
 0x1ce   : > { %v9017_v37 = vpop.f32.mrb[47].mxu0  ;;  %v2851_v26 = vshrl.u32 %v2586_v44, 16  ;;  %v11246_v5 = vadd.f32 %v12117_v3, %v12116_v18  ;;  %v11250_v19 = vadd.f32 %v12118_v62, %v11132_v16  ;;  %v11258_v30 = vadd.f32 %v12120_v6, %v11157_v34  ;;  %v10125_v59 = vld [vmem:[#allocation9 + $0x60] sm:$0xff]   ;;  %v10127_v3 = vld [vmem:[#allocation9 + $0x68] sm:$0xff]  }
 0x1cf   : > { %v3741_v24 = vadd.f32 %v9015_v40, %v10954_v29  ;;  %v9018_v12 = vadd.f32 %v9017_v37, %v9016_v61  ;;  %v11236_v29 = vadd.f32 %v11023_v47, %v11104_v58  ;;  %v11254_v58 = vadd.f32 %v12119_v49, %v11136_v0  ;;  %v10126_v27 = vld [vmem:[#allocation9 + $0x20] sm:$0xff]   ;;  %9411 = vmatprep.subr.bf16.mxu1 %v10125_v59  ;;  %v10128_v62 = vld [vmem:[#allocation9 + $0x28] sm:$0xff]  }
 0x1d0   : > { %v9125_v35 = vpop.f32.mrb[44].mxu1  ;;  %v11261_v41 = vadd.f32 %v12121_v20, %v3712_v60  ;;  %v2815_v16 = vor.u32 %v11172_v17, %v11166_v25  ;;  %v2823_v42 = vor.u32 %v11177_v46, %v11174_v13  ;;  %v2832_v43 = vor.u32 %v11181_v1, %v11179_v23  ;;  %9412 = vmatpush3.bf16.msra.mxu1 %v10126_v27 }
 0x1d1   : > { %v3744_v22 = vadd.f32 %v11241_v9, %v9018_v12  ;;  %v9126_v2 = vpop.f32.mrb[45].mxu1  ;;  %v2854_v0 = vshll.u32 %v2586_v44, 16  ;;  %v2840_v54 = vor.u32 %v2839_v52, %v2836_v32  ;;  %v2845_v55 = vrot.slane %v2843_v36, 4  ;;  %9413 = vmatprep.subr.bf16.mxu1 %v10127_v3 }
 0x1d2   : > { %9912 = vmatmul.mubr.bf16.gmra.mrb[148].mxu0 %v2790_v28  ;;  %v9127_v47 = vadd.f32 %v9126_v2, %v9125_v35  ;;  %v9128_v21 = vpop.f32.mrb[46].mxu1  ;;  %v2848_v51 = vrot.slane %v2846_v63, 5  ;;  %v2853_v40 = vrot.slane %v2851_v26, 4  ;;  %v2824_v13 = vsel %vm953_vm2, %v2815_v16, %v2823_v42 }
 0x1d3   : > { %9915 = vmatprep.mubr.bf16.mxu0 %v2807_v50  ;;  %v9129_v33 = vpop.f32.mrb[47].mxu1  ;;  %v2856_v23 = vrot.slane %v2854_v0, 5  ;;  %v2841_v44 = vsel %vm953_vm2, %v2832_v43, %v2840_v54 }
 0x1d4   : > { %v11269_v7 = vadd.f32 %v9127_v47, %v3741_v24  ;;  %v9130_v15 = vadd.f32 %v9129_v33, %v9128_v21  ;;  %v9019_v34 = vpop.f32.mrb[48].mxu0  ;;  %v2849_v36 = vor.u32 %v2848_v51, %v2845_v55  ;;  %9414 = vmatpush3.bf16.msra.mxu1 %v10128_v62 }
 0x1d5   : > { %v9020_v60 = vpop.f32.mrb[49].mxu0  ;;  %v2857_v32 = vor.u32 %v2856_v23, %v2853_v40 }
 0x1d6   : > { %v11271_v28 = vadd.f32 %v9130_v15, %v3744_v22  ;;  %v9021_v25 = vadd.f32 %v9020_v60, %v9019_v34  ;;  %v9022_v17 = vpop.f32.mrb[50].mxu0 }
 0x1d7   : > { %v9023_v46 = vpop.f32.mrb[51].mxu0  ;;  %v2858_v63 = vsel %vm953_vm2, %v2849_v36, %v2857_v32 }
 0x1d8   : > { %v9024_v1 = vadd.f32 %v9023_v46, %v9022_v17  ;;  %v3749_v61 = vadd.f32 %v11241_v9, %v9021_v25 }
 0x1da   : > { %9916 = vmatmul.mubr.bf16.gmra.mrb[152].mxu0 %v2824_v13  ;;  %v3752_v24 = vadd.f32 %v11241_v9, %v9024_v1 }
 0x1db   : > { %9919 = vmatprep.mubr.bf16.mxu0 %v2841_v44 }
 0x1e1   : > { %v9131_v52 = vpop.f32.mrb[48].mxu1 }
 0x1e2   : > { %v9132_v37 = vpop.f32.mrb[49].mxu1  ;;  %9920 = vmatmul.mubr.bf16.gmra.mrb[156].mxu0 %v2858_v63  ;;  %v10129_v63 = vld [vmem:[#allocation9 + $0x70] sm:$0xff]  }
 0x1e3   : > { %v9133_v12 = vadd.f32 %v9132_v37, %v9131_v52  ;;  %v9134_v50 = vpop.f32.mrb[50].mxu1  ;;  %v9025_v22 = vpop.f32.mrb[52].mxu0  ;;  %9415 = vmatprep.subr.bf16.mxu1 %v10129_v63 }
 0x1e4   : > { %v9135_v35 = vpop.f32.mrb[51].mxu1  ;;  %v9026_v18 = vpop.f32.mrb[53].mxu0 }
 0x1e5   : > { %v11278_v2 = vadd.f32 %v9133_v12, %v3749_v61  ;;  %v9136_v26 = vadd.f32 %v9135_v35, %v9134_v50  ;;  %v9027_v47 = vadd.f32 %v9026_v18, %v9025_v22  ;;  %v9028_v21 = vpop.f32.mrb[54].mxu0  ;;  %v10130_v61 = vld [vmem:[#allocation9 + $0x30] sm:$0xff]  }
 0x1e6   : > { %v9029_v6 = vpop.f32.mrb[55].mxu0  ;;  %9416 = vmatpush3.bf16.msra.mxu1 %v10130_v61 }
 0x1e7   : > { %v11280_v49 = vadd.f32 %v9136_v26, %v3752_v24  ;;  %v9030_v20 = vadd.f32 %v9029_v6, %v9028_v21  ;;  %v3757_v33 = vadd.f32 %v11241_v9, %v9027_v47 }
 0x1e9   : > { %v9137_v16 = vpop.f32.mrb[52].mxu1  ;;  %v3760_v43 = vadd.f32 %v11241_v9, %v9030_v20 }
 0x1ea   : > { %v9138_v42 = vpop.f32.mrb[53].mxu1 }
 0x1eb   : > { %v9139_v0 = vadd.f32 %v9138_v42, %v9137_v16  ;;  %v9140_v15 = vpop.f32.mrb[54].mxu1 }
 0x1ec   : > { %v9141_v34 = vpop.f32.mrb[55].mxu1  ;;  %v9031_v54 = vpop.f32.mrb[56].mxu0 }
 0x1ed   : > { %v11284_v55 = vadd.f32 %v9139_v0, %v3757_v33  ;;  %v9142_v59 = vadd.f32 %v9141_v34, %v9140_v15  ;;  %v9032_v27 = vpop.f32.mrb[57].mxu0  ;;  %v10131_v33 = vld [vmem:[#allocation9 + $0xc0] sm:$0xff]  }
 0x1ee   : > { %v9033_v60 = vadd.f32 %v9032_v27, %v9031_v54  ;;  %v9034_v51 = vpop.f32.mrb[58].mxu0  ;;  %9515 = vmatprep.subr.bf16.mxu0 %v10131_v33  ;;  %v10132_v34 = vld [vmem:[#allocation9 + $0x80] sm:$0xff]  }
 0x1ef   : > { %v11286_v25 = vadd.f32 %v9142_v59, %v3760_v43  ;;  %v9035_v17 = vpop.f32.mrb[59].mxu0  ;;  %9516 = vmatpush3.bf16.msra.mxu0 %v10132_v34 }
 0x1f0   : > { %v9036_v40 = vadd.f32 %v9035_v17, %v9034_v51  ;;  %v3765_v13 = vadd.f32 %v11241_v9, %v9033_v60  ;;  %v10133_v51 = vld [vmem:[#allocation9 + $0xc8] sm:$0xff]  }
 0x1f1   : > { %v9143_v46 = vpop.f32.mrb[56].mxu1  ;;  %9517 = vmatprep.subr.bf16.mxu0 %v10133_v51 }
 0x1f2   : > { %v9144_v23 = vpop.f32.mrb[57].mxu1  ;;  %v3768_v1 = vadd.f32 %v11241_v9, %v9036_v40  ;;  %v10134_v40 = vld [vmem:[#allocation9 + $0x88] sm:$0xff]  }
 0x1f3   : > { %v9145_v44 = vadd.f32 %v9144_v23, %v9143_v46  ;;  %v9146_v36 = vpop.f32.mrb[58].mxu1  ;;  %9518 = vmatpush3.bf16.msra.mxu0 %v10134_v40  ;;  %v10141_v40 = vld [vmem:[#allocation9 + $0xe0] sm:$0xff]  }
 0x1f4   : > { %v9147_v32 = vpop.f32.mrb[59].mxu1 }
 0x1f5   : > { %v11290_v52 = vadd.f32 %v9145_v44, %v3765_v13  ;;  %v9148_v37 = vadd.f32 %v9147_v32, %v9146_v36  ;;  %v9037_v24 = vpop.f32.mrb[60].mxu0 }
 0x1f6   : > { %v9038_v12 = vpop.f32.mrb[61].mxu0 }
 0x1f7   : > { %v11292_v50 = vadd.f32 %v9148_v37, %v3768_v1  ;;  %v9039_v35 = vadd.f32 %v9038_v12, %v9037_v24  ;;  %v9040_v22 = vpop.f32.mrb[62].mxu0 }
 0x1f8   : > { %v9041_v26 = vpop.f32.mrb[63].mxu0 }
 0x1f9   : > { %v9042_v18 = vadd.f32 %v9041_v26, %v9040_v22  ;;  %v3773_v3 = vadd.f32 %v11241_v9, %v9039_v35 }
 0x1fa   : > { %v9149_v62 = vpop.f32.mrb[60].mxu1 }
 0x1fb   : > { %v9150_v47 = vpop.f32.mrb[61].mxu1  ;;  %v3776_v21 = vadd.f32 %v11241_v9, %v9042_v18  ;;  %v10135_v18 = vld [vmem:[#allocation9 + $0x78] sm:$0xff]  }
 0x1fc   : > { %v9151_v6 = vadd.f32 %v9150_v47, %v9149_v62  ;;  %v9152_v20 = vpop.f32.mrb[62].mxu1  ;;  %v10138_v47 = vld [vmem:[#allocation9 + $0x90] sm:$0xff]   ;;  %9417 = vmatprep.subr.bf16.mxu1 %v10135_v18 }
 0x1fd   : > { %v9153_v16 = vpop.f32.mrb[63].mxu1  ;;  %v9171_v42 = vpop.f32.mrb[64].mxu0 }
 0x1fe   : > { %v11296_v43 = vadd.f32 %v9151_v6, %v3773_v3  ;;  %v9154_v0 = vadd.f32 %v9153_v16, %v9152_v20  ;;  %v9172_v15 = vpop.f32.mrb[65].mxu0  ;;  %v10137_v3 = vld [vmem:[#allocation9 + $0xd0] sm:$0xff]  }
 0x1ff   : > { %v9173_v54 = vadd.f32 %v9172_v15, %v9171_v42  ;;  %v9174_v59 = vpop.f32.mrb[66].mxu0  ;;  %9519 = vmatprep.subr.bf16.mxu0 %v10137_v3  ;;  %v10140_v42 = vld [vmem:[#allocation9 + $0x98] sm:$0xff]  }
 0x200   : > { %v11298_v27 = vadd.f32 %v9154_v0, %v3776_v21  ;;  %v9175_v60 = vpop.f32.mrb[67].mxu0  ;;  %v10139_v21 = vld [vmem:[#allocation9 + $0xd8] sm:$0xff]   ;;  %9520 = vmatpush3.bf16.msra.mxu0 %v10138_v47 }
 0x201   : > { %v3975_v9 = vadd.f32 %v9173_v54, %v11191_v10  ;;  %v9176_v17 = vadd.f32 %v9175_v60, %v9174_v59  ;;  %9521 = vmatprep.subr.bf16.mxu0 %v10139_v21 }
 0x202   : > { %v9283_v13 = vpop.f32.mrb[64].mxu1 }
 0x203   : > { %v3978_v46 = vadd.f32 %v9176_v17, %v11195_v48  ;;  %v9284_v23 = vpop.f32.mrb[65].mxu1  ;;  %v10136_v48 = vld [vmem:[#allocation9 + $0x38] sm:$0xff]  }
 0x204   : > { %v9285_v1 = vadd.f32 %v9284_v23, %v9283_v13  ;;  %v9286_v44 = vpop.f32.mrb[66].mxu1  ;;  %9418 = vmatpush3.bf16.msra.mxu1 %v10136_v48  ;;  %9522 = vmatpush3.bf16.msra.mxu0 %v10140_v42  ;;  %v10142_v13 = vld [vmem:[#allocation9 + $0xa0] sm:$0xff]   ;;  %v10144_v48 = vld [vmem:[#allocation9 + $0xa8] sm:$0xff]  }
 0x205   : > { %v9287_v36 = vpop.f32.mrb[67].mxu1  ;;  %v9177_v32 = vpop.f32.mrb[68].mxu0  ;;  %9523 = vmatprep.subr.bf16.mxu0 %v10141_v40 }
 0x206   : > { %v9288_v63 = vadd.f32 %v9287_v36, %v9286_v44  ;;  %v9178_v61 = vpop.f32.mrb[69].mxu0  ;;  %v11302_v37 = vadd.f32 %v9285_v1, %v3975_v9  ;;  %v4888_v1 = vld [vmem:[#allocation2 + $0x8] sm:$0xf] }
 0x207   : > { %v9179_v24 = vadd.f32 %v9178_v61, %v9177_v32  ;;  %v9180_v12 = vpop.f32.mrb[70].mxu0  ;;  %v10143_v36 = vld [vmem:[#allocation9 + $0xe8] sm:$0xff]   ;;  %v4952_v61 = vrot.slane %v4888_v1, 4  ;;  %v10148_v1 = vld [vmem:[#allocation9 + $0xb0] sm:$0xff]  }
 0x208   : > { %v9181_v35 = vpop.f32.mrb[71].mxu0  ;;  %v11304_v10 = vadd.f32 %v9288_v63, %v3978_v46  ;;  %v4887_v46 = vld [vmem:[#allocation2] sm:$0xf0]  ;;  %9524 = vmatpush3.bf16.msra.mxu0 %v10142_v13 }
 0x209   : > { %v3983_v22 = vadd.f32 %v9179_v24, %v11202_v56  ;;  %v9182_v26 = vadd.f32 %v9181_v35, %v9180_v12  ;;  %v4951_v44 = vrot.slane %v4887_v46, 4  ;;  %v4551_v24 = vld [vmem:[#allocation2] sm:$0xf8]  ;;  %v4552_v12 = vld [vmem:[#allocation2 + $0x8] sm:$0xf]  ;;  %9525 = vmatprep.subr.bf16.mxu0 %v10143_v36  ;;  %v10146_v46 = vld [vmem:[#allocation9 + $0xf0] sm:$0xff]  }
 0x20a   : > { %v9289_v62 = vpop.f32.mrb[68].mxu1  ;;  %v4592_v18 = vshrl.u32 %v4552_v12, 16  ;;  %v4595_v21 = vshll.u32 %v4552_v12, 16  ;;  %v10145_v13 = vld [vmem:[#allocation9 + $0x140] sm:$0xff]  }
 0x20b   : > { %v3986_v6 = vadd.f32 %v9182_v26, %v11206_v4  ;;  %v9290_v20 = vpop.f32.mrb[69].mxu1  ;;  %v4584_v26 = vshrl.u32 %v4551_v24, 16  ;;  %v4953_v47 = vsel %vm840_vm0, %v4951_v44, %v4952_v61  ;;  %v10149_v44 = vld [vmem:[#allocation9 + $0xf8] sm:$0xff]   ;;  %9627 = vmatprep.subr.bf16.mxu1 %v10145_v13 }
 0x20c   : > { %v9291_v33 = vadd.f32 %v9290_v20, %v9289_v62  ;;  %v9292_v16 = vpop.f32.mrb[70].mxu1  ;;  %7751 = vmatprep.mubr.bf16.mxu1 %v4953_v47  ;;  %9526 = vmatpush3.bf16.msra.mxu0 %v10144_v48 }
 0x20d   : > { %v9293_v0 = vpop.f32.mrb[71].mxu1  ;;  %v9183_v15 = vpop.f32.mrb[72].mxu0  ;;  %9527 = vmatprep.subr.bf16.mxu0 %v10146_v46  ;;  %v10151_v46 = vld [vmem:[#allocation9 + $0x148] sm:$0xff]  }
 0x20e   : > { %v9294_v56 = vadd.f32 %v9293_v0, %v9292_v16  ;;  %v9184_v34 = vpop.f32.mrb[73].mxu0  ;;  %v11308_v54 = vadd.f32 %v9291_v33, %v3983_v22  ;;  %v4586_v33 = vrot.slane %v4584_v26, 3 }
 0x20f   : > { %v9185_v59 = vadd.f32 %v9184_v34, %v9183_v15  ;;  %v9186_v60 = vpop.f32.mrb[74].mxu0  ;;  %v4594_v15 = vrot.slane %v4592_v18, 3 }
 0x210   : > { %v9187_v51 = vpop.f32.mrb[75].mxu0  ;;  %v11310_v9 = vadd.f32 %v9294_v56, %v3986_v6  ;;  %v4597_v56 = vrot.slane %v4595_v21, 4  ;;  %9528 = vmatpush3.bf16.msra.mxu0 %v10148_v1 }
 0x211   : > { %v3991_v4 = vadd.f32 %v9185_v59, %v11210_v53  ;;  %v9188_v17 = vadd.f32 %v9187_v51, %v9186_v60  ;;  %v4587_v53 = vshll.u32 %v4551_v24, 16  ;;  %9529 = vmatprep.subr.bf16.mxu0 %v10149_v44 }
 0x212   : > { %v9295_v23 = vpop.f32.mrb[72].mxu1  ;;  %v4598_v40 = vor.u32 %v4597_v56, %v4594_v15 }
 0x213   : > { %v3994_v32 = vadd.f32 %v9188_v17, %v11214_v57  ;;  %v9296_v63 = vpop.f32.mrb[73].mxu1  ;;  %v4589_v16 = vrot.slane %v4587_v53, 4 }
 0x214   : > { %v9297_v35 = vadd.f32 %v9296_v63, %v9295_v23  ;;  %v9298_v22 = vpop.f32.mrb[74].mxu1 }
 0x215   : > { %v9299_v3 = vpop.f32.mrb[75].mxu1  ;;  %v9189_v62 = vpop.f32.mrb[76].mxu0  ;;  %v4590_v60 = vor.u32 %v4589_v16, %v4586_v33 }
 0x216   : > { %v9300_v6 = vadd.f32 %v9299_v3, %v9298_v22  ;;  %v9190_v57 = vpop.f32.mrb[77].mxu0  ;;  %v11315_v20 = vadd.f32 %v9297_v35, %v3991_v4  ;;  %v10147_v4 = vld [vmem:[#allocation9 + $0x100] sm:$0xff]  }
 0x217   : > { %v9191_v42 = vadd.f32 %v9190_v57, %v9189_v62  ;;  %v9192_v0 = vpop.f32.mrb[78].mxu0  ;;  %v4599_v61 = vsel %vm471_vm1, %v4590_v60, %v4598_v40 }
 0x218   : > { %v9193_v34 = vpop.f32.mrb[79].mxu0  ;;  %v11317_v59 = vadd.f32 %v9300_v6, %v3994_v32  ;;  %7752 = vmatmul.mubr.bf16.vlgmr.msra.gmra.mrb[128].mxu1 %v4599_v61  ;;  %v10152_v61 = vld [vmem:[#allocation9 + $0x108] sm:$0xff]  }
 0x219   : > { %v3999_v51 = vadd.f32 %v9191_v42, %v11220_v39  ;;  %v9194_v17 = vadd.f32 %v9193_v34, %v9192_v0  ;;  %v10150_v39 = vld [vmem:[#allocation9 + $0xb8] sm:$0xff]   ;;  %9628 = vmatpush3.bf16.msra.mxu1 %v10147_v4 }
 0x21a   : > { %v9301_v23 = vpop.f32.mrb[76].mxu1  ;;  %9530 = vmatpush3.bf16.msra.mxu0 %v10150_v39  ;;  %9629 = vmatprep.subr.bf16.mxu1 %v10151_v46 }
 0x21b   : > { %v4002_v36 = vadd.f32 %v9194_v17, %v11224_v45  ;;  %v9302_v63 = vpop.f32.mrb[77].mxu1 }
 0x21c   : > { %v9303_v32 = vadd.f32 %v9302_v63, %v9301_v23  ;;  %v9304_v24 = vpop.f32.mrb[78].mxu1 }
 0x21d   : > { %v9305_v12 = vpop.f32.mrb[79].mxu1  ;;  %v9195_v35 = vpop.f32.mrb[80].mxu0  ;;  %9630 = vmatpush3.bf16.msra.mxu1 %v10152_v61 }
 0x21e   : > { %v9306_v22 = vadd.f32 %v9305_v12, %v9304_v24  ;;  %v9196_v26 = vpop.f32.mrb[81].mxu0  ;;  %v11322_v53 = vadd.f32 %v9303_v32, %v3999_v51 }
 0x21f   : > { %v9197_v18 = vadd.f32 %v9196_v26, %v9195_v35  ;;  %v9198_v45 = vpop.f32.mrb[82].mxu0 }
 0x220   : > { %v9199_v48 = vpop.f32.mrb[83].mxu0  ;;  %v11324_v3 = vadd.f32 %v9306_v22, %v4002_v36 }
 0x221   : > { %v4007_v62 = vadd.f32 %v9197_v18, %v11228_v11  ;;  %v9200_v47 = vadd.f32 %v9199_v48, %v9198_v45 }
 0x222   : > { %v9307_v21 = vpop.f32.mrb[80].mxu1 }
 0x223   : > { %v4010_v6 = vadd.f32 %v9200_v47, %v11232_v31  ;;  %v9308_v57 = vpop.f32.mrb[81].mxu1 }
 0x224   : > { %v9309_v33 = vadd.f32 %v9308_v57, %v9307_v21  ;;  %v9310_v16 = vpop.f32.mrb[82].mxu1 }
 0x225   : > { %v9311_v42 = vpop.f32.mrb[83].mxu1  ;;  %v9201_v0 = vpop.f32.mrb[84].mxu0 }
 0x226   : > { %v9312_v15 = vadd.f32 %v9311_v42, %v9310_v16  ;;  %v9202_v56 = vpop.f32.mrb[85].mxu0  ;;  %v11328_v34 = vadd.f32 %v9309_v33, %v4007_v62 }
 0x227   : > { %v9203_v60 = vadd.f32 %v9202_v56, %v9201_v0  ;;  %v9204_v51 = vpop.f32.mrb[86].mxu0 }
 0x228   : > { %v9205_v17 = vpop.f32.mrb[87].mxu0  ;;  %v11330_v40 = vadd.f32 %v9312_v15, %v4010_v6 }
 0x229   : > { %v4015_v11 = vadd.f32 %v9203_v60, %v11236_v29  ;;  %v9206_v13 = vadd.f32 %v9205_v17, %v9204_v51 }
 0x22a   : > { %v9313_v4 = vpop.f32.mrb[84].mxu1 }
 0x22b   : > { %v4018_v31 = vadd.f32 %v9206_v13, %v11246_v5  ;;  %v9314_v23 = vpop.f32.mrb[85].mxu1 }
 0x22c   : > { %v9315_v1 = vadd.f32 %v9314_v23, %v9313_v4  ;;  %v9316_v44 = vpop.f32.mrb[86].mxu1 }
 0x22d   : > { %v9317_v36 = vpop.f32.mrb[87].mxu1  ;;  %v9207_v63 = vpop.f32.mrb[88].mxu0 }
 0x22e   : > { %v9318_v32 = vadd.f32 %v9317_v36, %v9316_v44  ;;  %v9208_v24 = vpop.f32.mrb[89].mxu0  ;;  %v11334_v39 = vadd.f32 %v9315_v1, %v4015_v11 }
 0x22f   : > { %v9209_v12 = vadd.f32 %v9208_v24, %v9207_v63  ;;  %v9210_v35 = vpop.f32.mrb[90].mxu0  ;;  %v10153_v24 = vld [vmem:[#allocation9 + $0x150] sm:$0xff]  }
 0x230   : > { %v9211_v29 = vpop.f32.mrb[91].mxu0  ;;  %v11336_v22 = vadd.f32 %v9318_v32, %v4018_v31  ;;  %9631 = vmatprep.subr.bf16.mxu1 %v10153_v24 }
 0x231   : > { %v4023_v26 = vadd.f32 %v9209_v12, %v11250_v19  ;;  %v9212_v5 = vadd.f32 %v9211_v29, %v9210_v35 }
 0x232   : > { %v9319_v18 = vpop.f32.mrb[88].mxu1 }
 0x233   : > { %v4026_v45 = vadd.f32 %v9212_v5, %v11254_v58  ;;  %v9320_v48 = vpop.f32.mrb[89].mxu1 }
 0x234   : > { %v9321_v62 = vadd.f32 %v9320_v48, %v9319_v18  ;;  %v9322_v47 = vpop.f32.mrb[90].mxu1 }
 0x235   : > { %v9323_v21 = vpop.f32.mrb[91].mxu1  ;;  %v9213_v6 = vpop.f32.mrb[92].mxu0 }
 0x236   : > { %v9324_v57 = vadd.f32 %v9323_v21, %v9322_v47  ;;  %v9214_v33 = vpop.f32.mrb[93].mxu0  ;;  %v11340_v16 = vadd.f32 %v9321_v62, %v4023_v26  ;;  %v10154_v21 = vld [vmem:[#allocation9 + $0x110] sm:$0xff]  }
 0x237   : > { %v9215_v42 = vadd.f32 %v9214_v33, %v9213_v6  ;;  %v9216_v0 = vpop.f32.mrb[94].mxu0  ;;  %9632 = vmatpush3.bf16.msra.mxu1 %v10154_v21  ;;  %v10155_v21 = vld [vmem:[#allocation9 + $0x158] sm:$0xff]  }
 0x238   : > { %v9217_v15 = vpop.f32.mrb[95].mxu0  ;;  %v11342_v56 = vadd.f32 %v9324_v57, %v4026_v45  ;;  %9633 = vmatprep.subr.bf16.mxu1 %v10155_v21 }
 0x239   : > { %v4031_v19 = vadd.f32 %v9215_v42, %v11258_v30  ;;  %v9218_v60 = vadd.f32 %v9217_v15, %v9216_v0  ;;  %v12123_v42 = vld [vmem:[#allocation21_spill] sm:$0xff] }
 0x23a   : > { %v9325_v51 = vpop.f32.mrb[92].mxu1 }
 0x23b   : > { %v4034_v58 = vadd.f32 %v9218_v60, %v11261_v41  ;;  %v9326_v17 = vpop.f32.mrb[93].mxu1  ;;  %v12122_v41 = vld [vmem:[#allocation20_spill] sm:$0xff]  ;;  %v12124_v60 = vld [vmem:[#allocation22_spill] sm:$0xff] }
 0x23c   : > { %v9327_v11 = vadd.f32 %v9326_v17, %v9325_v51  ;;  %v9328_v13 = vpop.f32.mrb[94].mxu1 }
 0x23d   : > { %v9329_v46 = vpop.f32.mrb[95].mxu1  ;;  %v9219_v4 = vpop.f32.mrb[96].mxu0 }
 0x23e   : > { %v9330_v31 = vadd.f32 %v9329_v46, %v9328_v13  ;;  %v9220_v23 = vpop.f32.mrb[97].mxu0  ;;  %v11346_v1 = vadd.f32 %v9327_v11, %v4031_v19 }
 0x23f   : > { %v9221_v44 = vadd.f32 %v9220_v23, %v9219_v4  ;;  %v9222_v36 = vpop.f32.mrb[98].mxu0 }
 0x240   : > { %v9223_v63 = vpop.f32.mrb[99].mxu0  ;;  %v11348_v61 = vadd.f32 %v9330_v31, %v4034_v58 }
 0x241   : > { %v4039_v30 = vadd.f32 %v9221_v44, %v11124_v14  ;;  %v9224_v32 = vadd.f32 %v9223_v63, %v9222_v36 }
 0x242   : > { %v9331_v12 = vpop.f32.mrb[96].mxu1 }
 0x243   : > { %v4042_v35 = vadd.f32 %v9224_v32, %v12122_v41  ;;  %v9332_v29 = vpop.f32.mrb[97].mxu1 }
 0x244   : > { %v9333_v26 = vadd.f32 %v9332_v29, %v9331_v12  ;;  %v9334_v5 = vpop.f32.mrb[98].mxu1 }
 0x245   : > { %v9335_v18 = vpop.f32.mrb[99].mxu1  ;;  %v9225_v45 = vpop.f32.mrb[100].mxu0 }
 0x246   : > { %v9336_v48 = vadd.f32 %v9335_v18, %v9334_v5  ;;  %v9226_v62 = vpop.f32.mrb[101].mxu0  ;;  %v11352_v47 = vadd.f32 %v9333_v26, %v4039_v30 }
 0x247   : > { %v9227_v6 = vadd.f32 %v9226_v62, %v9225_v45  ;;  %v9228_v57 = vpop.f32.mrb[102].mxu0 }
 0x248   : > { %v9229_v33 = vpop.f32.mrb[103].mxu0  ;;  %v11354_v14 = vadd.f32 %v9336_v48, %v4042_v35 }
 0x249   : > { %v4047_v0 = vadd.f32 %v9227_v6, %v12123_v42  ;;  %v9230_v15 = vadd.f32 %v9229_v33, %v9228_v57 }
 0x24a   : > { %v9337_v19 = vpop.f32.mrb[100].mxu1 }
 0x24b   : > { %v4050_v51 = vadd.f32 %v9230_v15, %v12124_v60  ;;  %v9338_v58 = vpop.f32.mrb[101].mxu1  ;;  %v10156_v15 = vld [vmem:[#allocation9 + $0x118] sm:$0xff]  }
 0x24c   : > { %v9339_v17 = vadd.f32 %v9338_v58, %v9337_v19  ;;  %v9340_v11 = vpop.f32.mrb[102].mxu1  ;;  %9634 = vmatpush3.bf16.msra.mxu1 %v10156_v15 }
 0x24d   : > { %v9341_v13 = vpop.f32.mrb[103].mxu1  ;;  %v9231_v46 = vpop.f32.mrb[104].mxu0 }
 0x24e   : > { %v9342_v4 = vadd.f32 %v9341_v13, %v9340_v11  ;;  %v9232_v31 = vpop.f32.mrb[105].mxu0  ;;  %v11358_v23 = vadd.f32 %v9339_v17, %v4047_v0 }
 0x24f   : > { %v9233_v44 = vadd.f32 %v9232_v31, %v9231_v46  ;;  %v9234_v36 = vpop.f32.mrb[106].mxu0 }
 0x250   : > { %v9235_v63 = vpop.f32.mrb[107].mxu0  ;;  %v11360_v30 = vadd.f32 %v9342_v4, %v4050_v51 }
 0x251   : > { %v4055_v32 = vadd.f32 %v9233_v44, %v11184_v38  ;;  %v9236_v24 = vadd.f32 %v9235_v63, %v9234_v36 }
 0x252   : > { %v9343_v12 = vpop.f32.mrb[104].mxu1 }
 0x253   : > { %v4058_v41 = vadd.f32 %v9236_v24, %v11197_v8  ;;  %v9344_v35 = vpop.f32.mrb[105].mxu1 }
 0x254   : > { %v9345_v29 = vadd.f32 %v9344_v35, %v9343_v12  ;;  %v9346_v26 = vpop.f32.mrb[106].mxu1 }
 0x255   : > { %v9347_v5 = vpop.f32.mrb[107].mxu1  ;;  %v9237_v18 = vpop.f32.mrb[108].mxu0 }
 0x256   : > { %v9348_v45 = vadd.f32 %v9347_v5, %v9346_v26  ;;  %v9238_v48 = vpop.f32.mrb[109].mxu0  ;;  %v11364_v62 = vadd.f32 %v9345_v29, %v4055_v32 }
 0x257   : > { %v9239_v6 = vadd.f32 %v9238_v48, %v9237_v18  ;;  %v9240_v57 = vpop.f32.mrb[110].mxu0  ;;  %v10157_v48 = vld [vmem:[#allocation9 + $0x1c0] sm:$0xff]  }
 0x258   : > { %v9241_v33 = vpop.f32.mrb[111].mxu0  ;;  %v11366_v42 = vadd.f32 %v9348_v45, %v4058_v41  ;;  %9739 = vmatprep.subr.bf16.mxu0 %v10157_v48 }
 0x259   : > { %v4063_v38 = vadd.f32 %v9239_v6, %v11269_v7  ;;  %v9242_v0 = vadd.f32 %v9241_v33, %v9240_v57 }
 0x25a   : > { %v9349_v8 = vpop.f32.mrb[108].mxu1 }
 0x25b   : > { %v4066_v19 = vadd.f32 %v9242_v0, %v11271_v28  ;;  %v9350_v60 = vpop.f32.mrb[109].mxu1 }
 0x25c   : > { %v9351_v51 = vadd.f32 %v9350_v60, %v9349_v8  ;;  %v9352_v58 = vpop.f32.mrb[110].mxu1 }
 0x25d   : > { %v9353_v17 = vpop.f32.mrb[111].mxu1  ;;  %v9243_v11 = vpop.f32.mrb[112].mxu0 }
 0x25e   : > { %v9354_v13 = vadd.f32 %v9353_v17, %v9352_v58  ;;  %v9244_v46 = vpop.f32.mrb[113].mxu0  ;;  %v11370_v4 = vadd.f32 %v9351_v51, %v4063_v38  ;;  %v10160_v51 = vld [vmem:[#allocation9 + $0x120] sm:$0xff]  }
 0x25f   : > { %v9245_v31 = vadd.f32 %v9244_v46, %v9243_v11  ;;  %v9246_v44 = vpop.f32.mrb[114].mxu0 }
 0x260   : > { %v9247_v36 = vpop.f32.mrb[115].mxu0  ;;  %v11372_v63 = vadd.f32 %v9354_v13, %v4066_v19 }
 0x261   : > { %v4071_v7 = vadd.f32 %v9245_v31, %v11278_v2  ;;  %v9248_v32 = vadd.f32 %v9247_v36, %v9246_v44  ;;  %v10159_v2 = vld [vmem:[#allocation9 + $0x160] sm:$0xff]  }
 0x262   : > { %v9355_v24 = vpop.f32.mrb[112].mxu1  ;;  %9635 = vmatprep.subr.bf16.mxu1 %v10159_v2 }
 0x263   : > { %v4074_v28 = vadd.f32 %v9248_v32, %v11280_v49  ;;  %v9356_v12 = vpop.f32.mrb[113].mxu1  ;;  %9636 = vmatpush3.bf16.msra.mxu1 %v10160_v51 }
 0x264   : > { %v9357_v41 = vadd.f32 %v9356_v12, %v9355_v24  ;;  %v9358_v35 = vpop.f32.mrb[114].mxu1 }
 0x265   : > { %v9359_v29 = vpop.f32.mrb[115].mxu1  ;;  %v9249_v26 = vpop.f32.mrb[116].mxu0 }
 0x266   : > { %v9360_v5 = vadd.f32 %v9359_v29, %v9358_v35  ;;  %v9250_v18 = vpop.f32.mrb[117].mxu0  ;;  %v11376_v45 = vadd.f32 %v9357_v41, %v4071_v7 }
 0x267   : > { %v9251_v21 = vadd.f32 %v9250_v18, %v9249_v26  ;;  %v9252_v6 = vpop.f32.mrb[118].mxu0 }
 0x268   : > { %v9253_v57 = vpop.f32.mrb[119].mxu0  ;;  %v11378_v33 = vadd.f32 %v9360_v5, %v4074_v28 }
 0x269   : > { %v4079_v38 = vadd.f32 %v9251_v21, %v11284_v55  ;;  %v9254_v49 = vadd.f32 %v9253_v57, %v9252_v6 }
 0x26a   : > { %v9361_v0 = vpop.f32.mrb[116].mxu1 }
 0x26b   : > { %v4082_v8 = vadd.f32 %v9254_v49, %v11286_v25  ;;  %v9362_v15 = vpop.f32.mrb[117].mxu1  ;;  %v10163_v49 = vld [vmem:[#allocation9 + $0x168] sm:$0xff]  }
 0x26c   : > { %v9363_v19 = vadd.f32 %v9362_v15, %v9361_v0  ;;  %v9364_v60 = vpop.f32.mrb[118].mxu1  ;;  %9637 = vmatprep.subr.bf16.mxu1 %v10163_v49 }
 0x26d   : > { %v9365_v58 = vpop.f32.mrb[119].mxu1  ;;  %v9255_v17 = vpop.f32.mrb[120].mxu0 }
 0x26e   : > { %v9366_v11 = vadd.f32 %v9365_v58, %v9364_v60  ;;  %v9256_v13 = vpop.f32.mrb[121].mxu0  ;;  %v11382_v46 = vadd.f32 %v9363_v19, %v4079_v38 }
 0x26f   : > { %v9257_v31 = vadd.f32 %v9256_v13, %v9255_v17  ;;  %v9258_v44 = vpop.f32.mrb[122].mxu0  ;;  %v10164_v13 = vld [vmem:[#allocation9 + $0x128] sm:$0xff]  }
 0x270   : > { %v9259_v36 = vpop.f32.mrb[123].mxu0  ;;  %v11384_v55 = vadd.f32 %v9366_v11, %v4082_v8  ;;  %9638 = vmatpush3.bf16.msra.mxu1 %v10164_v13 }
 0x271   : > { %v4087_v7 = vadd.f32 %v9257_v31, %v11290_v52  ;;  %v9260_v32 = vadd.f32 %v9259_v36, %v9258_v44 }
 0x272   : > { %v9367_v25 = vpop.f32.mrb[120].mxu1 }
 0x273   : > { %v4090_v24 = vadd.f32 %v9260_v32, %v11292_v50  ;;  %v9368_v28 = vpop.f32.mrb[121].mxu1 }
 0x274   : > { %v9369_v12 = vadd.f32 %v9368_v28, %v9367_v25  ;;  %v9370_v41 = vpop.f32.mrb[122].mxu1  ;;  %v5032_v25 = vld [vmem:[#allocation2 + $0x8] sm:$0x1f] }
 0x275   : > { %v9371_v35 = vpop.f32.mrb[123].mxu1  ;;  %v9261_v29 = vpop.f32.mrb[124].mxu0 }
 0x276   : > { %v9372_v26 = vadd.f32 %v9371_v35, %v9370_v41  ;;  %v9262_v5 = vpop.f32.mrb[125].mxu0  ;;  %v11388_v18 = vadd.f32 %v9369_v12, %v4087_v7 }
 0x277   : > { %v9263_v48 = vadd.f32 %v9262_v5, %v9261_v29  ;;  %v9264_v21 = vpop.f32.mrb[126].mxu0 }
 0x278   : > { %v9265_v6 = vpop.f32.mrb[127].mxu0  ;;  %v11390_v57 = vadd.f32 %v9372_v26, %v4090_v24  ;;  %v5072_v26 = vshrl.u32 %v5032_v25, 16 }
 0x279   : > { %v4095_v52 = vadd.f32 %v9263_v48, %v11296_v43  ;;  %v9266_v2 = vadd.f32 %v9265_v6, %v9264_v21 }
 0x27a   : > { %v9373_v38 = vpop.f32.mrb[124].mxu1 }
 0x27b   : > { %v4098_v50 = vadd.f32 %v9266_v2, %v11298_v27  ;;  %v9374_v0 = vpop.f32.mrb[125].mxu1  ;;  %v5031_v27 = vld [vmem:[#allocation2] sm:$0xf0] }
 0x27c   : > { %v9375_v8 = vadd.f32 %v9374_v0, %v9373_v38  ;;  %v9376_v15 = vpop.f32.mrb[126].mxu1  ;;  %v5064_v41 = vshrl.u32 %v5031_v27, 16  ;;  %v5067_v29 = vshll.u32 %v5031_v27, 16 }
 0x27d   : > { %v9377_v19 = vpop.f32.mrb[127].mxu1  ;;  %v9893_v60 = vpop.f32.mrb[128].mxu0 }
 0x27e   : > { %v9378_v51 = vadd.f32 %v9377_v19, %v9376_v15  ;;  %v4305_v58 = vadd.f32 %v9893_v60, %v11308_v54  ;;  %v4296_v17 = vpop.f32.mrb[129].mxu0  ;;  %v11395_v11 = vadd.f32 %v9375_v8, %v4095_v52  ;;  %v5066_v38 = vrot.slane %v5064_v41, 4 }
 0x27f   : > { %v4297_v43 = vadd.f32 %v4296_v17, %v11302_v37  ;;  %v9894_v31 = vpop.f32.mrb[130].mxu0  ;;  %v5075_v37 = vshll.u32 %v5032_v25, 16  ;;  %v5069_v0 = vrot.slane %v5067_v29, 5  ;;  %v5074_v8 = vrot.slane %v5072_v26, 4 }
 0x280   : > { %v4308_v44 = vadd.f32 %v9894_v31, %v11310_v9  ;;  %v4299_v36 = vpop.f32.mrb[131].mxu0  ;;  %v11399_v7 = vadd.f32 %v9378_v51, %v4098_v50  ;;  %v4425_v24 = vmax.f32 %v4305_v58, 0.0 }
 0x281   : > { %v4300_v32 = vadd.f32 %v4299_v36, %v11304_v10  ;;  %v4423_v54 = vmax.f32 %v4297_v43, 0.0  ;;  %v5077_v15 = vrot.slane %v5075_v37, 5  ;;  %v5070_v13 = vor.u32 %v5069_v0, %v5066_v38 }
 0x282   : > { %v4426_v28 = vmax.f32 %v4308_v44, 0.0 }
 0x283   : > { %v4424_v12 = vmax.f32 %v4300_v32, 0.0  ;;  %v5078_v43 = vor.u32 %v5077_v15, %v5074_v8 }
 0x284   : > { %v4456_v35 = vpack.c.bf16 %v4426_v28, %v4425_v24 }
 0x285   : > { %v4455_v5 = vpack.c.bf16 %v4424_v12, %v4423_v54  ;;  %v9897_v48 = vpop.f32.mrb[132].mxu0  ;;  %v11412_v29 = vsel %vm953_vm2, %v5070_v13, %v5078_v43 }
 0x286   : > { %v4488_v9 = vrot.slane %v4456_v35, 4  ;;  %v4321_v21 = vadd.f32 %v9897_v48, %v11322_v53  ;;  %v4312_v6 = vpop.f32.mrb[133].mxu0  ;;  %v10168_v48 = vld [vmem:[#allocation9 + $0x130] sm:$0xff]  }
 0x287   : > { %v4487_v52 = vrot.slane %v4455_v5, 4  ;;  %v4313_v2 = vadd.f32 %v4312_v6, %v11315_v20  ;;  %v9898_v10 = vpop.f32.mrb[134].mxu0  ;;  %v10167_v20 = vld [vmem:[#allocation9 + $0x170] sm:$0xff]  }
 0x288   : > { %4521 = vst [vmem:[#allocation2 + $0x28] ss:$-4 sps:$4 sm:$0xff] %v4488_v9   ;;  %v4324_v49 = vadd.f32 %v9898_v10, %v11324_v3  ;;  %v4315_v50 = vpop.f32.mrb[135].mxu0  ;;  %v4429_v60 = vmax.f32 %v4321_v21, 0.0  ;;  %9639 = vmatprep.subr.bf16.mxu1 %v10167_v20 }
 0x289   : > { %4519 = vst [vmem:[#allocation2 + $0x18] ss:$-4 sps:$4 sm:$0xff] %v4487_v52   ;;  %v4316_v19 = vadd.f32 %v4315_v50, %v11317_v59  ;;  %v4427_v58 = vmax.f32 %v4313_v2, 0.0  ;;  %9640 = vmatpush3.bf16.msra.mxu1 %v10168_v48 }
 0x28a   : > { %v4430_v51 = vmax.f32 %v4324_v49, 0.0 }
 0x28b   : > { %v4428_v53 = vmax.f32 %v4316_v19, 0.0 }
 0x28c   : > { %v4458_v17 = vpack.c.bf16 %v4430_v51, %v4429_v60 }
 0x28d   : > { %v4457_v31 = vpack.c.bf16 %v4428_v53, %v4427_v58  ;;  %v9901_v44 = vpop.f32.mrb[136].mxu0 }
 0x28e   : > { %v4490_v36 = vrot.slane %v4458_v17, 4  ;;  %v4337_v3 = vadd.f32 %v9901_v44, %v11334_v39  ;;  %v4328_v27 = vpop.f32.mrb[137].mxu0 }
 0x28f   : > { %v4489_v32 = vrot.slane %v4457_v31, 4  ;;  %v4329_v25 = vadd.f32 %v4328_v27, %v11328_v34  ;;  %v9902_v24 = vpop.f32.mrb[138].mxu0  ;;  %v11408_v59 = vld [vmem:[#allocation2 + $0x20] sm:$0xf0] }
 0x290   : > { %4525 = vst [vmem:[#allocation2 + $0x48] ss:$-4 sps:$4 sm:$0xff] %v4490_v36   ;;  %v4433_v28 = vmax.f32 %v4337_v3, 0.0  ;;  %v4340_v54 = vadd.f32 %v9902_v24, %v11336_v22  ;;  %v4331_v12 = vpop.f32.mrb[139].mxu0  ;;  %v4889_v41 = vld [vmem:[#allocation2 + $0x10] sm:$0xf0] }
 0x291   : > { %v4890_v35 = vld [vmem:[#allocation2 + $0x18] sm:$0xf]  ;;  %4523 = vst [vmem:[#allocation2 + $0x38] ss:$-4 sps:$4 sm:$0xff] %v4489_v32   ;;  %v4431_v39 = vmax.f32 %v4329_v25, 0.0  ;;  %v4332_v26 = vadd.f32 %v4331_v12, %v11330_v40  ;;  %v4954_v37 = vrot.slane %v4889_v41, 4 }
 0x292   : > { %v4955_v5 = vrot.slane %v4890_v35, 4  ;;  %v4553_v34 = vld [vmem:[#allocation2 + $0x10] sm:$0xf8]  ;;  %v4434_v9 = vmax.f32 %v4340_v54, 0.0  ;;  %v4554_v21 = vld [vmem:[#allocation2 + $0x18] sm:$0xf] }
 0x293   : > { %v4601_v6 = vshrl.u32 %v4553_v34, 16  ;;  %v4604_v52 = vshll.u32 %v4553_v34, 16  ;;  %v4957_v22 = vrot.slane %v11408_v59, 4  ;;  %v4432_v2 = vmax.f32 %v4332_v26, 0.0  ;;  %v5367_v50 = vld [vmem:[#allocation2 + $0x10] sm:$0xf8] }
 0x294   : > { %v4956_v10 = vsel %vm840_vm0, %v4954_v37, %v4955_v5  ;;  %v4609_v38 = vshrl.u32 %v4554_v21, 16  ;;  %v4612_v49 = vshll.u32 %v4554_v21, 16  ;;  %v4460_v0 = vpack.c.bf16 %v4434_v9, %v4433_v28  ;;  %v5368_v53 = vld [vmem:[#allocation2 + $0x18] sm:$0xf]  ;;  %v4892_v36 = vld [vmem:[#allocation2 + $0x28] sm:$0xf] }
 0x295   : > { %7759 = vmatprep.mubr.bf16.mxu1 %v4956_v10  ;;  %v4603_v40 = vrot.slane %v4601_v6, 3  ;;  %v4606_v8 = vrot.slane %v4604_v52, 4  ;;  %v5400_v15 = vshrl.u32 %v5367_v50, 16  ;;  %v4459_v19 = vpack.c.bf16 %v4432_v2, %v4431_v39  ;;  %v9905_v60 = vpop.f32.mrb[140].mxu0  ;;  %v5369_v59 = vld [vmem:[#allocation2 + $0x20] sm:$0xf8] }
 0x296   : > { %v4611_v51 = vrot.slane %v4609_v38, 3  ;;  %v4614_v58 = vrot.slane %v4612_v49, 4  ;;  %v5403_v17 = vshll.u32 %v5367_v50, 16  ;;  %v4492_v13 = vrot.slane %v4460_v0, 4  ;;  %v4344_v20 = vpop.f32.mrb[141].mxu0 }
 0x297   : > { %v4353_v43 = vadd.f32 %v9905_v60, %v11346_v1  ;;  %v4607_v31 = vor.u32 %v4606_v8, %v4603_v40  ;;  %v5402_v44 = vrot.slane %v5400_v15, 3  ;;  %v4491_v3 = vrot.slane %v4459_v19, 4  ;;  %v9906_v32 = vpop.f32.mrb[142].mxu0  ;;  %v5370_v39 = vld [vmem:[#allocation2 + $0x28] sm:$0xf]  ;;  %v10158_v19 = vld [vmem:[#allocation9 + $0x180] sm:$0xff]  }
 0x298   : > { %v4345_v27 = vadd.f32 %v4344_v20, %v11340_v16  ;;  %v4615_v25 = vor.u32 %v4614_v58, %v4611_v51  ;;  %v5405_v24 = vrot.slane %v5403_v17, 4  ;;  %4529 = vst [vmem:[#allocation2 + $0x68] ss:$-4 sps:$4 sm:$0xff] %v4492_v13   ;;  %v4356_v54 = vadd.f32 %v9906_v32, %v11348_v61  ;;  %v4347_v12 = vpop.f32.mrb[143].mxu0  ;;  %v4555_v50 = vld [vmem:[#allocation2 + $0x20] sm:$0xf8] }
 0x299   : > { %v4437_v28 = vmax.f32 %v4353_v43, 0.0  ;;  %v5408_v41 = vshrl.u32 %v5368_v53, 16  ;;  %v5411_v35 = vshll.u32 %v5368_v53, 16  ;;  %4527 = vst [vmem:[#allocation2 + $0x58] ss:$-4 sps:$4 sm:$0xff] %v4491_v3   ;;  %v4348_v26 = vadd.f32 %v4347_v12, %v11342_v56  ;;  %v10161_v43 = vld [vmem:[#allocation9 + $0x1c8] sm:$0xff]  }
 0x29a   : > { %v4435_v1 = vmax.f32 %v4345_v27, 0.0  ;;  %v4616_v37 = vsel %vm471_vm1, %v4607_v31, %v4615_v25  ;;  %v5406_v5 = vor.u32 %v5405_v24, %v5402_v44  ;;  %v4438_v16 = vmax.f32 %v4356_v54, 0.0  ;;  %v4556_v13 = vld [vmem:[#allocation2 + $0x28] sm:$0xf]  ;;  %v4893_v3 = vld [vmem:[#allocation2 + $0x30] sm:$0xf0] }
 0x29b   : > { %7760 = vmatmul.mubr.bf16.gmra.mrb[132].mxu1 %v4616_v37  ;;  %v5410_v34 = vrot.slane %v5408_v41, 3  ;;  %v5413_v48 = vrot.slane %v5411_v35, 4  ;;  %v4958_v9 = vrot.slane %v4892_v36, 4  ;;  %v4436_v21 = vmax.f32 %v4348_v26, 0.0  ;;  %v10171_v27 = vld [vmem:[#allocation9 + $0x178] sm:$0xff]   ;;  %v10162_v54 = vld [vmem:[#allocation9 + $0x188] sm:$0xff]  }
 0x29c   : > { %v5417_v6 = vshrl.u32 %v5369_v59, 16  ;;  %v5420_v52 = vshll.u32 %v5369_v59, 16  ;;  %v5425_v61 = vshrl.u32 %v5370_v39, 16  ;;  %v4462_v2 = vpack.c.bf16 %v4438_v16, %v4437_v28  ;;  %v4894_v28 = vld [vmem:[#allocation2 + $0x38] sm:$0xf]  ;;  %9641 = vmatprep.subr.bf16.mxu1 %v10171_v27 }
 0x29d   : > { %v5414_v10 = vor.u32 %v5413_v48, %v5410_v34  ;;  %v4959_v38 = vsel %vm840_vm0, %v4957_v22, %v4958_v9  ;;  %v5428_v49 = vshll.u32 %v5370_v39, 16  ;;  %v4461_v0 = vpack.c.bf16 %v4436_v21, %v4435_v1  ;;  %v9909_v15 = vpop.f32.mrb[144].mxu0  ;;  %v5033_v39 = vld [vmem:[#allocation2 + $0x10] sm:$0xf0]  ;;  %v10172_v16 = vld [vmem:[#allocation9 + $0x138] sm:$0xff]  }
 0x29e   : > { %7767 = vmatprep.mubr.bf16.mxu1 %v4959_v38  ;;  %v5419_v56 = vrot.slane %v5417_v6, 3  ;;  %v5422_v40 = vrot.slane %v5420_v52, 4  ;;  %v5427_v8 = vrot.slane %v5425_v61, 3  ;;  %v4494_v60 = vrot.slane %v4462_v2, 4  ;;  %v4360_v17 = vpop.f32.mrb[145].mxu0  ;;  %v10165_v1 = vld [vmem:[#allocation9 + $0x1d0] sm:$0xff]   ;;  %9642 = vmatpush3.bf16.msra.mxu1 %v10172_v16 }
 0x29f   : > { %v5415_v51 = vsel %vm471_vm1, %v5406_v5, %v5414_v10  ;;  %v5430_v58 = vrot.slane %v5428_v49, 4  ;;  %v4369_v53 = vadd.f32 %v9909_v15, %v11358_v23  ;;  %v4493_v20 = vrot.slane %v4461_v0, 4  ;;  %v9910_v44 = vpop.f32.mrb[146].mxu0  ;;  %v5371_v2 = vld [vmem:[#allocation2 + $0x30] sm:$0xf8] }
 0x2a0   : > { %7912 = vmatprep.mubr.bf16.mxu0 %v5415_v51  ;;  %v5423_v22 = vor.u32 %v5422_v40, %v5419_v56  ;;  %v4361_v31 = vadd.f32 %v4360_v17, %v11352_v47  ;;  %v4618_v36 = vshrl.u32 %v4555_v50, 16  ;;  %4533 = vst [vmem:[#allocation2 + $0x88] ss:$-4 sps:$4 sm:$0xff] %v4494_v60   ;;  %v4372_v24 = vadd.f32 %v9910_v44, %v11360_v30  ;;  %v4363_v23 = vpop.f32.mrb[147].mxu0  ;;  %v5034_v30 = vld [vmem:[#allocation2 + $0x18] sm:$0x1f] }
 0x2a1   : > { %7913 = vmatmul.mubr.bf16.vlgmr.msra.gmra.mrb[160].mxu0 %v11412_v29  ;;  %v5431_v32 = vor.u32 %v5430_v58, %v5427_v8  ;;  %v4441_v25 = vmax.f32 %v4369_v53, 0.0  ;;  %v4621_v59 = vshll.u32 %v4555_v50, 16  ;;  %4531 = vst [vmem:[#allocation2 + $0x78] ss:$-4 sps:$4 sm:$0xff] %v4493_v20   ;;  %v4364_v41 = vadd.f32 %v4363_v23, %v11354_v14  ;;  %v5372_v0 = vld [vmem:[#allocation2 + $0x38] sm:$0xf] }
 0x2a2   : > { %v4439_v12 = vmax.f32 %v4361_v31, 0.0  ;;  %v4620_v47 = vrot.slane %v4618_v36, 3  ;;  %v4626_v35 = vshrl.u32 %v4556_v13, 16  ;;  %9740 = vmatpush3.bf16.msra.mxu0 %v10158_v19  ;;  %v4442_v26 = vmax.f32 %v4372_v24, 0.0  ;;  %v10166_v40 = vld [vmem:[#allocation9 + $0x190] sm:$0xff]   ;;  %v10169_v58 = vld [vmem:[#allocation9 + $0x1d8] sm:$0xff]  }
 0x2a3   : > { %v5432_v29 = vsel %vm471_vm1, %v5423_v22, %v5431_v32  ;;  %v4623_v37 = vrot.slane %v4621_v59, 4  ;;  %v4629_v5 = vshll.u32 %v4556_v13, 16  ;;  %9741 = vmatprep.subr.bf16.mxu0 %v10161_v43  ;;  %v4440_v34 = vmax.f32 %v4364_v41, 0.0  ;;  %v4557_v23 = vld [vmem:[#allocation2 + $0x30] sm:$0xf8]  ;;  %v10170_v41 = vld [vmem:[#allocation9 + $0x198] sm:$0xff]  }
 0x2a4   : > { %7920 = vmatprep.mubr.bf16.mxu0 %v5432_v29  ;;  %v4628_v48 = vrot.slane %v4626_v35, 3  ;;  %v4960_v9 = vrot.slane %v4893_v3, 4  ;;  %v4961_v21 = vrot.slane %v4894_v28, 4  ;;  %v4464_v14 = vpack.c.bf16 %v4442_v26, %v4441_v25  ;;  %v4558_v29 = vld [vmem:[#allocation2 + $0x38] sm:$0xf] }
 0x2a5   : > { %v4624_v6 = vor.u32 %v4623_v37, %v4620_v47  ;;  %v4631_v52 = vrot.slane %v4629_v5, 4  ;;  %v5081_v61 = vshrl.u32 %v5033_v39, 16  ;;  %v4463_v10 = vpack.c.bf16 %v4440_v34, %v4439_v12  ;;  %v9913_v56 = vpop.f32.mrb[148].mxu0  ;;  %v4895_v26 = vld [vmem:[#allocation2 + $0x40] sm:$0xf0] }
 0x2a6   : > { %v4962_v38 = vsel %vm840_vm0, %v4960_v9, %v4961_v21  ;;  %v5084_v49 = vshll.u32 %v5033_v39, 16  ;;  %v5089_v50 = vshrl.u32 %v5034_v30, 16  ;;  %9742 = vmatpush3.bf16.msra.mxu0 %v10162_v54  ;;  %v4496_v8 = vrot.slane %v4464_v14, 4  ;;  %v4376_v51 = vpop.f32.mrb[149].mxu0  ;;  %v4896_v16 = vld [vmem:[#allocation2 + $0x48] sm:$0xf] }
 0x2a7   : > { %v4632_v15 = vor.u32 %v4631_v52, %v4628_v48  ;;  %v5083_v19 = vrot.slane %v5081_v61, 4  ;;  %v5092_v60 = vshll.u32 %v5034_v30, 16  ;;  %9743 = vmatprep.subr.bf16.mxu0 %v10165_v1  ;;  %v4495_v53 = vrot.slane %v4463_v10, 4  ;;  %v9914_v20 = vpop.f32.mrb[150].mxu0  ;;  %v5035_v21 = vld [vmem:[#allocation2 + $0x20] sm:$0xf0] }
 0x2a8   : > { %v5086_v17 = vrot.slane %v5084_v49, 5  ;;  %v5091_v13 = vrot.slane %v5089_v50, 4  ;;  %v5434_v43 = vshrl.u32 %v5371_v2, 16  ;;  %4537 = vst [vmem:[#allocation2 + $0xa8] ss:$-4 sps:$4 sm:$0xff] %v4496_v8   ;;  %v5437_v44 = vshll.u32 %v5371_v2, 16 }
 0x2a9   : > { %v4633_v22 = vsel %vm471_vm1, %v4624_v6, %v4632_v15  ;;  %v5094_v31 = vrot.slane %v5092_v60, 5  ;;  %v5442_v36 = vshrl.u32 %v5372_v0, 16  ;;  %v4379_v3 = vpop.f32.mrb[151].mxu0  ;;  %4535 = vst [vmem:[#allocation2 + $0x98] ss:$-4 sps:$4 sm:$0xff] %v4495_v53   ;;  %v5445_v25 = vshll.u32 %v5372_v0, 16 }
 0x2aa   : > { %7768 = vmatmul.mubr.bf16.gmra.mrb[136].mxu1 %v4633_v22  ;;  %v5087_v27 = vor.u32 %v5086_v17, %v5083_v19  ;;  %v5436_v32 = vrot.slane %v5434_v43, 3  ;;  %v4385_v24 = vadd.f32 %v9913_v56, %v11370_v4  ;;  %9744 = vmatpush3.bf16.msra.mxu0 %v10166_v40  ;;  %v5439_v28 = vrot.slane %v5437_v44, 4  ;;  %v10173_v2 = vld [vmem:[#allocation9 + $0x1e0] sm:$0xff]   ;;  %v5036_v0 = vld [vmem:[#allocation2 + $0x28] sm:$0x1f] }
 0x2ab   : > { %7775 = vmatprep.mubr.bf16.mxu1 %v4962_v38  ;;  %v5095_v59 = vor.u32 %v5094_v31, %v5091_v13  ;;  %v5444_v54 = vrot.slane %v5442_v36, 3  ;;  %v4377_v12 = vadd.f32 %v4376_v51, %v11364_v62  ;;  %9745 = vmatprep.subr.bf16.mxu0 %v10169_v58  ;;  %v5447_v47 = vrot.slane %v5445_v25, 4  ;;  %v5373_v56 = vld [vmem:[#allocation2 + $0x40] sm:$0xf8]  ;;  %v10175_v22 = vld [vmem:[#allocation9 + $0x1e8] sm:$0xff]  }
 0x2ac   : > { %v4445_v35 = vmax.f32 %v4385_v24, 0.0  ;;  %v4388_v39 = vadd.f32 %v9914_v20, %v11372_v63  ;;  %v4380_v1 = vadd.f32 %v4379_v3, %v11366_v42  ;;  %v5440_v37 = vor.u32 %v5439_v28, %v5436_v32  ;;  %v10174_v58 = vld [vmem:[#allocation9 + $0x1a0] sm:$0xff]   ;;  %v5374_v20 = vld [vmem:[#allocation2 + $0x48] sm:$0xf] }
 0x2ad   : > { %v5096_v4 = vsel %vm953_vm2, %v5087_v27, %v5095_v59  ;;  %v4443_v5 = vmax.f32 %v4377_v12, 0.0  ;;  %v4635_v30 = vshrl.u32 %v4557_v23, 16  ;;  %v5448_v34 = vor.u32 %v5447_v47, %v5444_v54  ;;  %v9917_v14 = vpop.f32.mrb[152].mxu0  ;;  %v10176_v12 = vld [vmem:[#allocation9 + $0x1a8] sm:$0xff]  }
 0x2ae   : > { %7921 = vmatmul.mubr.bf16.gmra.mrb[164].mxu0 %v5096_v4  ;;  %v4446_v48 = vmax.f32 %v4388_v39, 0.0  ;;  %v4444_v62 = vmax.f32 %v4380_v1, 0.0  ;;  %v4638_v9 = vshll.u32 %v4557_v23, 16  ;;  %v4643_v52 = vshrl.u32 %v4558_v29, 16  ;;  %v4392_v42 = vpop.f32.mrb[153].mxu0 }
 0x2af   : > { %v4637_v6 = vrot.slane %v4635_v30, 3  ;;  %v4646_v63 = vshll.u32 %v4558_v29, 16  ;;  %v4963_v61 = vrot.slane %v4895_v26, 4  ;;  %9746 = vmatpush3.bf16.msra.mxu0 %v10170_v41  ;;  %v5449_v10 = vsel %vm471_vm1, %v5440_v37, %v5448_v34  ;;  %v9918_v40 = vpop.f32.mrb[154].mxu0  ;;  %v4559_v1 = vld [vmem:[#allocation2 + $0x40] sm:$0xf8] }
 0x2b0   : > { %v4466_v38 = vpack.c.bf16 %v4446_v48, %v4445_v35  ;;  %v4465_v49 = vpack.c.bf16 %v4444_v62, %v4443_v5  ;;  %v4640_v50 = vrot.slane %v4638_v9, 4  ;;  %7928 = vmatprep.mubr.bf16.mxu0 %v5449_v10  ;;  %v4645_v8 = vrot.slane %v4643_v52, 3  ;;  %v4395_v51 = vpop.f32.mrb[155].mxu0  ;;  %9747 = vmatprep.subr.bf16.mxu0 %v10173_v2 }
 0x2b1   : > { %v4648_v15 = vrot.slane %v4646_v63, 4  ;;  %v4964_v19 = vrot.slane %v4896_v16, 4  ;;  %v5098_v60 = vshrl.u32 %v5035_v21, 16  ;;  %v5101_v43 = vshll.u32 %v5035_v21, 16  ;;  %v10177_v16 = vld [vmem:[#allocation9 + $0x200] sm:$0xff]   ;;  %v10178_v63 = vld [vmem:[#allocation9 + $0x1f0] sm:$0xff]  }
 0x2b2   : > { %v4498_v53 = vrot.slane %v4466_v38, 4  ;;  %v4497_v17 = vrot.slane %v4465_v49, 4  ;;  %v4641_v13 = vor.u32 %v4640_v50, %v4637_v6  ;;  %v5106_v3 = vshrl.u32 %v5036_v0, 16  ;;  %v4560_v21 = vld [vmem:[#allocation2 + $0x48] sm:$0xf]  ;;  %9923 = vmatprep.subr.bf16.mxu1 %v10177_v16 }
 0x2b3   : > { %v4649_v31 = vor.u32 %v4648_v15, %v4645_v8  ;;  %v4965_v44 = vsel %vm840_vm0, %v4963_v61, %v4964_v19  ;;  %v5100_v36 = vrot.slane %v5098_v60, 4  ;;  %9748 = vmatpush3.bf16.msra.mxu0 %v10174_v58  ;;  %v5103_v27 = vrot.slane %v5101_v43, 5  ;;  %v4897_v6 = vld [vmem:[#allocation2 + $0x50] sm:$0xf0]  ;;  %v10180_v15 = vld [vmem:[#allocation9 + $0x1f8] sm:$0xff]  }
 0x2b4   : > { %4541 = vst [vmem:[#allocation2 + $0xc8] ss:$-4 sps:$4 sm:$0xff] %v4498_v53   ;;  %4539 = vst [vmem:[#allocation2 + $0xb8] ss:$-4 sps:$4 sm:$0xff] %v4497_v17   ;;  %v5109_v32 = vshll.u32 %v5036_v0, 16  ;;  %v5451_v25 = vshrl.u32 %v5373_v56, 16  ;;  %9749 = vmatprep.subr.bf16.mxu0 %v10175_v22  ;;  %v4401_v37 = vadd.f32 %v9917_v14, %v11382_v46  ;;  %v4393_v5 = vadd.f32 %v4392_v42, %v11376_v45 }
 0x2b5   : > { %v5454_v24 = vshll.u32 %v5373_v56, 16  ;;  %v4650_v23 = vsel %vm471_vm1, %v4641_v13, %v4649_v31  ;;  %v5108_v59 = vrot.slane %v5106_v3, 4  ;;  %v5459_v28 = vshrl.u32 %v5374_v20, 16  ;;  %v11440_v29 = vpop.f32.mrb[156].mxu0  ;;  %v4898_v45 = vld [vmem:[#allocation2 + $0x58] sm:$0xf] }
 0x2b6   : > { %v5462_v54 = vshll.u32 %v5374_v20, 16  ;;  %7776 = vmatmul.mubr.bf16.gmra.mrb[140].mxu1 %v4650_v23  ;;  %v5104_v41 = vor.u32 %v5103_v27, %v5100_v36  ;;  %v5111_v47 = vrot.slane %v5109_v32, 5  ;;  %v5453_v35 = vrot.slane %v5451_v25, 3  ;;  %v11444_v30 = vpop.f32.mrb[157].mxu0  ;;  %v5037_v50 = vld [vmem:[#allocation2 + $0x30] sm:$0xf0] }
 0x2b7   : > { %v5456_v39 = vrot.slane %v5454_v24, 4  ;;  %7783 = vmatprep.mubr.bf16.mxu1 %v4965_v44  ;;  %v5461_v26 = vrot.slane %v5459_v28, 3  ;;  %9750 = vmatpush3.bf16.msra.mxu0 %v10176_v12  ;;  %v4404_v62 = vadd.f32 %v9918_v40, %v11384_v55  ;;  %v4396_v9 = vadd.f32 %v4395_v51, %v11378_v33  ;;  %v11448_v52 = vpop.f32.mrb[158].mxu0  ;;  %v10179_v33 = vld [vmem:[#allocation9 + $0x1b0] sm:$0xff]   ;;  %v5038_v53 = vld [vmem:[#allocation2 + $0x38] sm:$0x1f] }
 0x2b8   : > { %v5464_v4 = vrot.slane %v5462_v54, 4  ;;  %v5112_v34 = vor.u32 %v5111_v47, %v5108_v59  ;;  %v4449_v2 = vmax.f32 %v4401_v37, 0.0  ;;  %v4447_v46 = vmax.f32 %v4393_v5, 0.0  ;;  %v11450_v42 = vpop.f32.mrb[159].mxu0  ;;  %9751 = vmatprep.subr.bf16.mxu0 %v10178_v63  ;;  %v5375_v22 = vld [vmem:[#allocation2 + $0x50] sm:$0xf8] }
 0x2b9   : > { %v5457_v48 = vor.u32 %v5456_v39, %v5453_v35  ;;  %v4652_v14 = vshrl.u32 %v4559_v1, 16  ;;  %v4450_v38 = vmax.f32 %v4404_v62, 0.0  ;;  %v4448_v49 = vmax.f32 %v4396_v9, 0.0  ;;  %v5376_v27 = vld [vmem:[#allocation2 + $0x58] sm:$0xf] }
 0x2ba   : > { %v5465_v61 = vor.u32 %v5464_v4, %v5461_v26  ;;  %v5113_v10 = vsel %vm953_vm2, %v5104_v41, %v5112_v34  ;;  %v4655_v55 = vshll.u32 %v4559_v1, 16  ;;  %v4660_v40 = vshrl.u32 %v4560_v21, 16  ;;  %v10181_v32 = vld [vmem:[#allocation9 + $0x1b8] sm:$0xff]   ;;  %v4561_v16 = vld [vmem:[#allocation2 + $0x50] sm:$0xf8] }
 0x2bb   : > { %7929 = vmatmul.mubr.bf16.gmra.mrb[168].mxu0 %v5113_v10  ;;  %v4654_v56 = vrot.slane %v4652_v14, 3  ;;  %v4663_v8 = vshll.u32 %v4560_v21, 16  ;;  %v4468_v19 = vpack.c.bf16 %v4450_v38, %v4449_v2  ;;  %v4467_v60 = vpack.c.bf16 %v4448_v49, %v4447_v46  ;;  %v4562_v2 = vld [vmem:[#allocation2 + $0x58] sm:$0xf]  ;;  %v4899_v46 = vld [vmem:[#allocation2 + $0x60] sm:$0xf0] }
 0x2bc   : > { %v5466_v0 = vsel %vm471_vm1, %v5457_v48, %v5465_v61  ;;  %v4657_v51 = vrot.slane %v4655_v55, 4  ;;  %v4966_v58 = vrot.slane %v4897_v6, 4  ;;  %9752 = vmatpush3.bf16.msra.mxu0 %v10179_v33  ;;  %v4662_v17 = vrot.slane %v4660_v40, 3  ;;  %v4900_v49 = vld [vmem:[#allocation2 + $0x68] sm:$0xf] }
 0x2bd   : > { %7936 = vmatprep.mubr.bf16.mxu0 %v5466_v0  ;;  %v4665_v13 = vrot.slane %v4663_v8, 4  ;;  %v4967_v43 = vrot.slane %v4898_v45, 4  ;;  %v5115_v20 = vshrl.u32 %v5037_v50, 16  ;;  %9753 = vmatprep.subr.bf16.mxu0 %v10180_v15  ;;  %v4500_v31 = vrot.slane %v4468_v19, 4  ;;  %v5040_v40 = vld [vmem:[#allocation2 + $0x48] sm:$0x1f] }
 0x2be   : > { %v4499_v44 = vrot.slane %v4467_v60, 4  ;;  %v4658_v36 = vor.u32 %v4657_v51, %v4654_v56  ;;  %v5118_v3 = vshll.u32 %v5037_v50, 16  ;;  %v5123_v59 = vshrl.u32 %v5038_v53, 16  ;;  %v5377_v51 = vld [vmem:[#allocation2 + $0x60] sm:$0xf8] }
 0x2bf   : > { %v4666_v25 = vor.u32 %v4665_v13, %v4662_v17  ;;  %v4968_v24 = vsel %vm840_vm0, %v4966_v58, %v4967_v43  ;;  %v5117_v23 = vrot.slane %v5115_v20, 4  ;;  %4545 = vst [vmem:[#allocation2 + $0xe8] ss:$-4 sps:$4 sm:$0xff] %v4500_v31   ;;  %v5126_v54 = vshll.u32 %v5038_v53, 16  ;;  %v5378_v43 = vld [vmem:[#allocation2 + $0x68] sm:$0xf] }
 0x2c0   : > { %4543 = vst [vmem:[#allocation2 + $0xd8] ss:$-4 sps:$4 sm:$0xff] %v4499_v44   ;;  %v5120_v28 = vrot.slane %v5118_v3, 5  ;;  %v5468_v12 = vshrl.u32 %v5375_v22, 16  ;;  %v5471_v41 = vshll.u32 %v5375_v22, 16  ;;  %9754 = vmatpush3.bf16.msra.mxu0 %v10181_v32  ;;  %v5125_v35 = vrot.slane %v5123_v59, 4 }
 0x2c1   : > { %v4667_v47 = vsel %vm471_vm1, %v4658_v36, %v4666_v25  ;;  %v5476_v39 = vshrl.u32 %v5376_v27, 16  ;;  %v5479_v1 = vshll.u32 %v5376_v27, 16  ;;  %v5128_v4 = vrot.slane %v5126_v54, 5  ;;  %v4563_v25 = vld [vmem:[#allocation2 + $0x60] sm:$0xf8] }
 0x2c2   : > { %7784 = vmatmul.mubr.bf16.gmra.mrb[144].mxu1 %v4667_v47  ;;  %v5121_v26 = vor.u32 %v5120_v28, %v5117_v23  ;;  %v5470_v37 = vrot.slane %v5468_v12, 3  ;;  %v5473_v5 = vrot.slane %v5471_v41, 4  ;;  %v4417_v62 = vadd.f32 %v11440_v29, %v11395_v11  ;;  %v4564_v54 = vld [vmem:[#allocation2 + $0x68] sm:$0xf] }
 0x2c3   : > { %7791 = vmatprep.mubr.bf16.mxu1 %v4968_v24  ;;  %v5478_v34 = vrot.slane %v5476_v39, 3  ;;  %v5481_v48 = vrot.slane %v5479_v1, 4  ;;  %v4409_v9 = vadd.f32 %v11444_v30, %v11388_v18  ;;  %v5129_v21 = vor.u32 %v5128_v4, %v5125_v35  ;;  %v5039_v30 = vld [vmem:[#allocation2 + $0x40] sm:$0xf0]  ;;  %v4901_v39 = vld [vmem:[#allocation2 + $0x70] sm:$0xf0] }
 0x2c4   : > { %v5474_v6 = vor.u32 %v5473_v5, %v5470_v37  ;;  %v4420_v63 = vadd.f32 %v11448_v52, %v11399_v7  ;;  %v4412_v61 = vadd.f32 %v11450_v42, %v11390_v57  ;;  %v4453_v45 = vmax.f32 %v4417_v62, 0.0  ;;  %v4902_v5 = vld [vmem:[#allocation2 + $0x78] sm:$0xf] }
 0x2c5   : > { %v5482_v14 = vor.u32 %v5481_v48, %v5478_v34  ;;  %v4451_v10 = vmax.f32 %v4409_v9, 0.0  ;;  %v4669_v38 = vshrl.u32 %v4561_v16, 16  ;;  %v5130_v11 = vsel %vm953_vm2, %v5121_v26, %v5129_v21  ;;  %v5041_v9 = vld [vmem:[#allocation2 + $0x50] sm:$0xf0] }
 0x2c6   : > { %v4454_v29 = vmax.f32 %v4420_v63, 0.0  ;;  %v4452_v55 = vmax.f32 %v4412_v61, 0.0  ;;  %v4672_v18 = vshll.u32 %v4561_v16, 16  ;;  %7937 = vmatmul.mubr.bf16.gmra.mrb[172].mxu0 %v5130_v11  ;;  %v4677_v52 = vshrl.u32 %v4562_v2, 16 }
 0x2c7   : > { %v5483_v50 = vsel %vm471_vm1, %v5474_v6, %v5482_v14  ;;  %v4671_v7 = vrot.slane %v4669_v38, 3  ;;  %v4680_v33 = vshll.u32 %v4562_v2, 16  ;;  %v4969_v56 = vrot.slane %v4899_v46, 4  ;;  %v5042_v2 = vld [vmem:[#allocation2 + $0x58] sm:$0x1f] }
 0x2c8   : > { %7944 = vmatprep.mubr.bf16.mxu0 %v5483_v50  ;;  %v4470_v57 = vpack.c.bf16 %v4454_v29, %v4453_v45  ;;  %v4469_v42 = vpack.c.bf16 %v4452_v55, %v4451_v10  ;;  %v4674_v0 = vrot.slane %v4672_v18, 4  ;;  %v4679_v8 = vrot.slane %v4677_v52, 3  ;;  %v5379_v38 = vld [vmem:[#allocation2 + $0x70] sm:$0xf8]  ;;  %v5380_v18 = vld [vmem:[#allocation2 + $0x78] sm:$0xf] }
 0x2c9   : > { %v4682_v15 = vrot.slane %v4680_v33, 4  ;;  %v4970_v19 = vrot.slane %v4900_v49, 4  ;;  %v5132_v60 = vshrl.u32 %v5039_v30, 16  ;;  %v5135_v13 = vshll.u32 %v5039_v30, 16  ;;  %v4565_v33 = vld [vmem:[#allocation2 + $0x70] sm:$0xf8] }
 0x2ca   : > { %v4502_v58 = vrot.slane %v4470_v57, 4  ;;  %v4501_v53 = vrot.slane %v4469_v42, 4  ;;  %v4675_v17 = vor.u32 %v4674_v0, %v4671_v7  ;;  %v5140_v44 = vshrl.u32 %v5040_v40, 16 }
 0x2cb   : > { %v4683_v20 = vor.u32 %v4682_v15, %v4679_v8  ;;  %v4971_v22 = vsel %vm840_vm0, %v4969_v56, %v4970_v19  ;;  %v5134_v31 = vrot.slane %v5132_v60, 4  ;;  %v5137_v36 = vrot.slane %v5135_v13, 5 }
 0x2cc   : > { %4549 = vst [vmem:[#allocation2 + $0x108] ss:$-4 sps:$4 sm:$0xff] %v4502_v58   ;;  %4547 = vst [vmem:[#allocation2 + $0xf8] ss:$-4 sps:$4 sm:$0xff] %v4501_v53   ;;  %v5143_v3 = vshll.u32 %v5040_v40, 16  ;;  %v5485_v27 = vshrl.u32 %v5377_v51, 16 }
 0x2cd   : > { %v5488_v32 = vshll.u32 %v5377_v51, 16  ;;  %v4684_v24 = vsel %vm471_vm1, %v4675_v17, %v4683_v20  ;;  %v5142_v23 = vrot.slane %v5140_v44, 4  ;;  %v5493_v59 = vshrl.u32 %v5378_v43, 16  ;;  %v4566_v40 = vld [vmem:[#allocation2 + $0x78] sm:$0xf] }
 0x2ce   : > { %v5496_v28 = vshll.u32 %v5378_v43, 16  ;;  %7792 = vmatmul.mubr.bf16.gmra.mrb[148].mxu1 %v4684_v24  ;;  %v5138_v12 = vor.u32 %v5137_v36, %v5134_v31  ;;  %v5145_v41 = vrot.slane %v5143_v3, 5  ;;  %v5487_v47 = vrot.slane %v5485_v27, 3  ;;  %v4903_v51 = vld [vmem:[#allocation2 + $0x80] sm:$0xf0] }
 0x2cf   : > { %v5490_v35 = vrot.slane %v5488_v32, 4  ;;  %7799 = vmatprep.mubr.bf16.mxu1 %v4971_v22  ;;  %v5495_v1 = vrot.slane %v5493_v59, 3  ;;  %v4686_v4 = vshrl.u32 %v4563_v25, 16  ;;  %v4689_v37 = vshll.u32 %v4563_v25, 16  ;;  %v4904_v43 = vld [vmem:[#allocation2 + $0x88] sm:$0xf] }
 0x2d0   : > { %v5498_v26 = vrot.slane %v5496_v28, 4  ;;  %v5146_v16 = vor.u32 %v5145_v41, %v5142_v23  ;;  %v4694_v48 = vshrl.u32 %v4564_v54, 16  ;;  %v4697_v62 = vshll.u32 %v4564_v54, 16  ;;  %v5043_v36 = vld [vmem:[#allocation2 + $0x60] sm:$0xf0] }
 0x2d1   : > { %v5491_v34 = vor.u32 %v5490_v35, %v5487_v47  ;;  %v4688_v6 = vrot.slane %v4686_v4, 3  ;;  %v4691_v63 = vrot.slane %v4689_v37, 4  ;;  %v4972_v61 = vrot.slane %v4901_v39, 4  ;;  %v5044_v24 = vld [vmem:[#allocation2 + $0x68] sm:$0x1f] }
 0x2d2   : > { %v5499_v21 = vor.u32 %v5498_v26, %v5495_v1  ;;  %v5147_v46 = vsel %vm953_vm2, %v5138_v12, %v5146_v16  ;;  %v4696_v14 = vrot.slane %v4694_v48, 3  ;;  %v4699_v45 = vrot.slane %v4697_v62, 4  ;;  %v5381_v39 = vld [vmem:[#allocation2 + $0x80] sm:$0xf8] }
 0x2d3   : > { %v4973_v10 = vrot.slane %v4902_v5, 4  ;;  %7945 = vmatmul.mubr.bf16.gmra.mrb[176].mxu0 %v5147_v46  ;;  %v4692_v11 = vor.u32 %v4691_v63, %v4688_v6  ;;  %v5149_v29 = vshrl.u32 %v5041_v9, 16  ;;  %v5152_v55 = vshll.u32 %v5041_v9, 16  ;;  %v5382_v5 = vld [vmem:[#allocation2 + $0x88] sm:$0xf] }
 0x2d4   : > { %v5500_v49 = vsel %vm471_vm1, %v5491_v34, %v5499_v21  ;;  %v4700_v30 = vor.u32 %v4699_v45, %v4696_v14  ;;  %v5157_v7 = vshrl.u32 %v5042_v2, 16  ;;  %v5160_v52 = vshll.u32 %v5042_v2, 16  ;;  %v4567_v9 = vld [vmem:[#allocation2 + $0x80] sm:$0xf8]  ;;  %v4568_v2 = vld [vmem:[#allocation2 + $0x88] sm:$0xf] }
 0x2d5   : > { %7952 = vmatprep.mubr.bf16.mxu0 %v5500_v49  ;;  %v4974_v50 = vsel %vm840_vm0, %v4972_v61, %v4973_v10  ;;  %v5151_v57 = vrot.slane %v5149_v29, 4  ;;  %v5154_v42 = vrot.slane %v5152_v55, 5  ;;  %v5502_v0 = vshrl.u32 %v5379_v38, 16 }
 0x2d6   : > { %v5505_v56 = vshll.u32 %v5379_v38, 16  ;;  %v4701_v8 = vsel %vm471_vm1, %v4692_v11, %v4700_v30  ;;  %v5159_v15 = vrot.slane %v5157_v7, 4  ;;  %v5162_v19 = vrot.slane %v5160_v52, 5  ;;  %v4905_v38 = vld [vmem:[#allocation2 + $0x90] sm:$0xf0] }
 0x2d7   : > { %v5510_v60 = vshrl.u32 %v5380_v18, 16  ;;  %7800 = vmatmul.mubr.bf16.gmra.mrb[152].mxu1 %v4701_v8  ;;  %v5155_v58 = vor.u32 %v5154_v42, %v5151_v57  ;;  %v5504_v53 = vrot.slane %v5502_v0, 3  ;;  %v5513_v13 = vshll.u32 %v5380_v18, 16  ;;  %v4906_v18 = vld [vmem:[#allocation2 + $0x98] sm:$0xf] }
 0x2d8   : > { %v5507_v17 = vrot.slane %v5505_v56, 4  ;;  %7807 = vmatprep.mubr.bf16.mxu1 %v4974_v50  ;;  %v5163_v20 = vor.u32 %v5162_v19, %v5159_v15  ;;  %v4703_v31 = vshrl.u32 %v4565_v33, 16  ;;  %v4706_v44 = vshll.u32 %v4565_v33, 16  ;;  %v5045_v33 = vld [vmem:[#allocation2 + $0x70] sm:$0xf0] }
 0x2d9   : > { %v5512_v22 = vrot.slane %v5510_v60, 3  ;;  %v5515_v27 = vrot.slane %v5513_v13, 4  ;;  %v4711_v32 = vshrl.u32 %v4566_v40, 16  ;;  %v4714_v25 = vshll.u32 %v4566_v40, 16  ;;  %v5046_v40 = vld [vmem:[#allocation2 + $0x78] sm:$0x1f] }
 0x2da   : > { %v5508_v3 = vor.u32 %v5507_v17, %v5504_v53  ;;  %v5164_v23 = vsel %vm953_vm2, %v5155_v58, %v5163_v20  ;;  %v4705_v59 = vrot.slane %v4703_v31, 3  ;;  %v4708_v28 = vrot.slane %v4706_v44, 4  ;;  %v5383_v13 = vld [vmem:[#allocation2 + $0x90] sm:$0xf8]  ;;  %v5384_v44 = vld [vmem:[#allocation2 + $0x98] sm:$0xf] }
 0x2db   : > { %v4975_v54 = vrot.slane %v4903_v51, 4  ;;  %7953 = vmatmul.mubr.bf16.gmra.mrb[180].mxu0 %v5164_v23  ;;  %v5516_v12 = vor.u32 %v5515_v27, %v5512_v22  ;;  %v4713_v41 = vrot.slane %v4711_v32, 3  ;;  %v4716_v47 = vrot.slane %v4714_v25, 4  ;;  %v4569_v25 = vld [vmem:[#allocation2 + $0x90] sm:$0xf8] }
 0x2dc   : > { %v4976_v35 = vrot.slane %v4904_v43, 4  ;;  %v4709_v1 = vor.u32 %v4708_v28, %v4705_v59  ;;  %v5166_v26 = vshrl.u32 %v5043_v36, 16  ;;  %v5169_v4 = vshll.u32 %v5043_v36, 16 }
 0x2dd   : > { %v5174_v37 = vshrl.u32 %v5044_v24, 16  ;;  %v5517_v16 = vsel %vm471_vm1, %v5508_v3, %v5516_v12  ;;  %v4717_v34 = vor.u32 %v4716_v47, %v4713_v41  ;;  %v5177_v62 = vshll.u32 %v5044_v24, 16 }
 0x2de   : > { %v4977_v48 = vsel %vm840_vm0, %v4975_v54, %v4976_v35  ;;  %7960 = vmatprep.mubr.bf16.mxu0 %v5517_v16  ;;  %v5168_v21 = vrot.slane %v5166_v26, 4  ;;  %v5171_v6 = vrot.slane %v5169_v4, 5  ;;  %v5519_v61 = vshrl.u32 %v5381_v39, 16  ;;  %v4570_v54 = vld [vmem:[#allocation2 + $0x98] sm:$0xf] }
 0x2df   : > { %v5176_v63 = vrot.slane %v5174_v37, 4  ;;  %v4718_v46 = vsel %vm471_vm1, %v4709_v1, %v4717_v34  ;;  %v5179_v14 = vrot.slane %v5177_v62, 5  ;;  %v5522_v45 = vshll.u32 %v5381_v39, 16  ;;  %v4907_v39 = vld [vmem:[#allocation2 + $0xa0] sm:$0xf0] }
 0x2e0   : > { %v5527_v10 = vshrl.u32 %v5382_v5, 16  ;;  %7808 = vmatmul.mubr.bf16.gmra.mrb[156].mxu1 %v4718_v46  ;;  %v5172_v49 = vor.u32 %v5171_v6, %v5168_v21  ;;  %v5521_v11 = vrot.slane %v5519_v61, 3  ;;  %v5530_v29 = vshll.u32 %v5382_v5, 16  ;;  %v4908_v5 = vld [vmem:[#allocation2 + $0xa8] sm:$0xf] }
 0x2e1   : > { %v4720_v55 = vshrl.u32 %v4567_v9, 16  ;;  %7815 = vmatprep.mubr.bf16.mxu1 %v4977_v48  ;;  %v5180_v30 = vor.u32 %v5179_v14, %v5176_v63  ;;  %v5524_v50 = vrot.slane %v5522_v45, 4  ;;  %v4723_v52 = vshll.u32 %v4567_v9, 16  ;;  %v5047_v9 = vld [vmem:[#allocation2 + $0x80] sm:$0xf0] }
 0x2e2   : > { %v5529_v7 = vrot.slane %v5527_v10, 3  ;;  %v5532_v57 = vrot.slane %v5530_v29, 4  ;;  %v4728_v0 = vshrl.u32 %v4568_v2, 16  ;;  %v4731_v56 = vshll.u32 %v4568_v2, 16  ;;  %v5048_v2 = vld [vmem:[#allocation2 + $0x88] sm:$0x1f] }
 0x2e3   : > { %v4722_v42 = vrot.slane %v4720_v55, 3  ;;  %v5181_v8 = vsel %vm953_vm2, %v5172_v49, %v5180_v30  ;;  %v5525_v15 = vor.u32 %v5524_v50, %v5521_v11  ;;  %v4725_v19 = vrot.slane %v4723_v52, 4  ;;  %v5385_v55 = vld [vmem:[#allocation2 + $0xa0] sm:$0xf8]  ;;  %v5386_v52 = vld [vmem:[#allocation2 + $0xa8] sm:$0xf] }
 0x2e4   : > { %v4978_v60 = vrot.slane %v4905_v38, 4  ;;  %7961 = vmatmul.mubr.bf16.gmra.mrb[184].mxu0 %v5181_v8  ;;  %v5533_v51 = vor.u32 %v5532_v57, %v5529_v7  ;;  %v4730_v58 = vrot.slane %v4728_v0, 3  ;;  %v4733_v53 = vrot.slane %v4731_v56, 4  ;;  %v4571_v56 = vld [vmem:[#allocation2 + $0xa0] sm:$0xf8] }
 0x2e5   : > { %v4979_v17 = vrot.slane %v4906_v18, 4  ;;  %v4726_v43 = vor.u32 %v4725_v19, %v4722_v42  ;;  %v5183_v20 = vshrl.u32 %v5045_v33, 16  ;;  %v5186_v22 = vshll.u32 %v5045_v33, 16 }
 0x2e6   : > { %v5191_v31 = vshrl.u32 %v5046_v40, 16  ;;  %v5534_v36 = vsel %vm471_vm1, %v5525_v15, %v5533_v51  ;;  %v4734_v3 = vor.u32 %v4733_v53, %v4730_v58  ;;  %v5194_v32 = vshll.u32 %v5046_v40, 16 }
 0x2e7   : > { %v4980_v27 = vsel %vm840_vm0, %v4978_v60, %v4979_v17  ;;  %7968 = vmatprep.mubr.bf16.mxu0 %v5534_v36  ;;  %v5185_v24 = vrot.slane %v5183_v20, 4  ;;  %v5188_v23 = vrot.slane %v5186_v22, 5  ;;  %v5536_v28 = vshrl.u32 %v5383_v13, 16  ;;  %v4572_v60 = vld [vmem:[#allocation2 + $0xa8] sm:$0xf] }
 0x2e8   : > { %v5193_v59 = vrot.slane %v5191_v31, 4  ;;  %v4735_v12 = vsel %vm471_vm1, %v4726_v43, %v4734_v3  ;;  %v5196_v41 = vrot.slane %v5194_v32, 5  ;;  %v5539_v47 = vshll.u32 %v5383_v13, 16  ;;  %v4909_v13 = vld [vmem:[#allocation2 + $0xb0] sm:$0xf0] }
 0x2e9   : > { %v5544_v35 = vshrl.u32 %v5384_v44, 16  ;;  %7816 = vmatmul.mubr.bf16.gmra.mrb[160].mxu1 %v4735_v12  ;;  %v5189_v1 = vor.u32 %v5188_v23, %v5185_v24  ;;  %v5538_v26 = vrot.slane %v5536_v28, 3  ;;  %v5547_v4 = vshll.u32 %v5384_v44, 16  ;;  %v4910_v44 = vld [vmem:[#allocation2 + $0xb8] sm:$0xf] }
 0x2ea   : > { %v4737_v37 = vshrl.u32 %v4569_v25, 16  ;;  %7823 = vmatprep.mubr.bf16.mxu1 %v4980_v27  ;;  %v5197_v16 = vor.u32 %v5196_v41, %v5193_v59  ;;  %v5541_v34 = vrot.slane %v5539_v47, 4  ;;  %v4740_v62 = vshll.u32 %v4569_v25, 16  ;;  %v5049_v25 = vld [vmem:[#allocation2 + $0x90] sm:$0xf0] }
 0x2eb   : > { %v5546_v48 = vrot.slane %v5544_v35, 3  ;;  %v5549_v21 = vrot.slane %v5547_v4, 4  ;;  %v4745_v63 = vshrl.u32 %v4570_v54, 16  ;;  %v4748_v61 = vshll.u32 %v4570_v54, 16  ;;  %v5050_v54 = vld [vmem:[#allocation2 + $0x98] sm:$0x1f] }
 0x2ec   : > { %v4739_v6 = vrot.slane %v4737_v37, 3  ;;  %v5198_v46 = vsel %vm953_vm2, %v5189_v1, %v5197_v16  ;;  %v5542_v14 = vor.u32 %v5541_v34, %v5538_v26  ;;  %v4742_v45 = vrot.slane %v4740_v62, 4  ;;  %v5387_v37 = vld [vmem:[#allocation2 + $0xb0] sm:$0xf8]  ;;  %v5388_v62 = vld [vmem:[#allocation2 + $0xb8] sm:$0xf] }
 0x2ed   : > { %v4981_v10 = vrot.slane %v4907_v39, 4  ;;  %7969 = vmatmul.mubr.bf16.gmra.mrb[188].mxu0 %v5198_v46  ;;  %v5550_v38 = vor.u32 %v5549_v21, %v5546_v48  ;;  %v4747_v49 = vrot.slane %v4745_v63, 3  ;;  %v4750_v11 = vrot.slane %v4748_v61, 4  ;;  %v4573_v61 = vld [vmem:[#allocation2 + $0xb0] sm:$0xf8] }
 0x2ee   : > { %v4982_v29 = vrot.slane %v4908_v5, 4  ;;  %v4743_v18 = vor.u32 %v4742_v45, %v4739_v6  ;;  %v5200_v30 = vshrl.u32 %v5047_v9, 16  ;;  %v5203_v50 = vshll.u32 %v5047_v9, 16 }
 0x2ef   : > { %v5208_v7 = vshrl.u32 %v5048_v2, 16  ;;  %v5551_v33 = vsel %vm471_vm1, %v5542_v14, %v5550_v38  ;;  %v4751_v57 = vor.u32 %v4750_v11, %v4747_v49  ;;  %v5211_v0 = vshll.u32 %v5048_v2, 16 }
 0x2f0   : > { %v4983_v42 = vsel %vm840_vm0, %v4981_v10, %v4982_v29  ;;  %7976 = vmatprep.mubr.bf16.mxu0 %v5551_v33  ;;  %v5202_v40 = vrot.slane %v5200_v30, 4  ;;  %v5205_v8 = vrot.slane %v5203_v50, 5  ;;  %v5553_v19 = vshrl.u32 %v5385_v55, 16  ;;  %v4574_v10 = vld [vmem:[#allocation2 + $0xb8] sm:$0xf] }
 0x2f1   : > { %v5210_v15 = vrot.slane %v5208_v7, 4  ;;  %v4752_v51 = vsel %vm471_vm1, %v4743_v18, %v4751_v57  ;;  %v5213_v58 = vrot.slane %v5211_v0, 5  ;;  %v5556_v53 = vshll.u32 %v5385_v55, 16  ;;  %v4911_v55 = vld [vmem:[#allocation2 + $0xc0] sm:$0xf0] }
 0x2f2   : > { %v5561_v17 = vshrl.u32 %v5386_v52, 16  ;;  %7824 = vmatmul.mubr.bf16.gmra.mrb[164].mxu1 %v4752_v51  ;;  %v5206_v43 = vor.u32 %v5205_v8, %v5202_v40  ;;  %v5555_v20 = vrot.slane %v5553_v19, 3  ;;  %v5564_v22 = vshll.u32 %v5386_v52, 16  ;;  %v4912_v52 = vld [vmem:[#allocation2 + $0xc8] sm:$0xf] }
 0x2f3   : > { %v4754_v31 = vshrl.u32 %v4571_v56, 16  ;;  %7831 = vmatprep.mubr.bf16.mxu1 %v4983_v42  ;;  %v5214_v36 = vor.u32 %v5213_v58, %v5210_v15  ;;  %v5558_v3 = vrot.slane %v5556_v53, 4  ;;  %v4757_v32 = vshll.u32 %v4571_v56, 16  ;;  %v5051_v56 = vld [vmem:[#allocation2 + $0xa0] sm:$0xf0] }
 0x2f4   : > { %v5563_v27 = vrot.slane %v5561_v17, 3  ;;  %v5566_v24 = vrot.slane %v5564_v22, 4  ;;  %v4762_v59 = vshrl.u32 %v4572_v60, 16  ;;  %v4765_v28 = vshll.u32 %v4572_v60, 16  ;;  %v5052_v60 = vld [vmem:[#allocation2 + $0xa8] sm:$0x1f] }
 0x2f5   : > { %v4756_v23 = vrot.slane %v4754_v31, 3  ;;  %v5215_v12 = vsel %vm953_vm2, %v5206_v43, %v5214_v36  ;;  %v5559_v41 = vor.u32 %v5558_v3, %v5555_v20  ;;  %v4759_v47 = vrot.slane %v4757_v32, 4  ;;  %v5389_v31 = vld [vmem:[#allocation2 + $0xc0] sm:$0xf8]  ;;  %v5390_v32 = vld [vmem:[#allocation2 + $0xc8] sm:$0xf] }
 0x2f6   : > { %v4984_v35 = vrot.slane %v4909_v13, 4  ;;  %7977 = vmatmul.mubr.bf16.gmra.mrb[192].mxu0 %v5215_v12  ;;  %v5567_v39 = vor.u32 %v5566_v24, %v5563_v27  ;;  %v4764_v1 = vrot.slane %v4762_v59, 3  ;;  %v4767_v26 = vrot.slane %v4765_v28, 4  ;;  %v4575_v28 = vld [vmem:[#allocation2 + $0xc0] sm:$0xf8] }
 0x2f7   : > { %v4985_v4 = vrot.slane %v4910_v44, 4  ;;  %v4760_v5 = vor.u32 %v4759_v47, %v4756_v23  ;;  %v5217_v16 = vshrl.u32 %v5049_v25, 16  ;;  %v5220_v34 = vshll.u32 %v5049_v25, 16 }
 0x2f8   : > { %v5225_v48 = vshrl.u32 %v5050_v54, 16  ;;  %v5568_v9 = vsel %vm471_vm1, %v5559_v41, %v5567_v39  ;;  %v4768_v21 = vor.u32 %v4767_v26, %v4764_v1  ;;  %v5228_v63 = vshll.u32 %v5050_v54, 16  ;;  %v11491_v54 = vpop.f32.mrb[128].mxu1  ;;  %v4576_v39 = vld [vmem:[#allocation2 + $0xc8] sm:$0xf] }
 0x2f9   : > { %v4986_v6 = vsel %vm840_vm0, %v4984_v35, %v4985_v4  ;;  %7984 = vmatprep.mubr.bf16.mxu0 %v5568_v9  ;;  %v5219_v2 = vrot.slane %v5217_v16, 4  ;;  %v5222_v46 = vrot.slane %v5220_v34, 5  ;;  %v5570_v45 = vshrl.u32 %v5387_v37, 16  ;;  %v4914_v9 = vld [vmem:[#allocation2 + $0xd8] sm:$0xf] }
 0x2fa   : > { %v5227_v14 = vrot.slane %v5225_v48, 4  ;;  %v4769_v38 = vsel %vm471_vm1, %v4760_v5, %v4768_v21  ;;  %v5230_v49 = vrot.slane %v5228_v63, 5  ;;  %v5573_v11 = vshll.u32 %v5387_v37, 16  ;;  %v4913_v5 = vld [vmem:[#allocation2 + $0xd0] sm:$0xf0] }
 0x2fb   : > { %v5578_v29 = vshrl.u32 %v5388_v62, 16  ;;  %7832 = vmatmul.mubr.bf16.gmra.mrb[168].mxu1 %v4769_v38  ;;  %v5223_v18 = vor.u32 %v5222_v46, %v5219_v2  ;;  %v5572_v30 = vrot.slane %v5570_v45, 3  ;;  %v5581_v50 = vshll.u32 %v5388_v62, 16  ;;  %v5053_v2 = vld [vmem:[#allocation2 + $0xb0] sm:$0xf0] }
 0x2fc   : > { %v4771_v7 = vshrl.u32 %v4573_v61, 16  ;;  %7839 = vmatprep.mubr.bf16.mxu1 %v4986_v6  ;;  %v5231_v33 = vor.u32 %v5230_v49, %v5227_v14  ;;  %v5575_v57 = vrot.slane %v5573_v11, 4  ;;  %v4774_v0 = vshll.u32 %v4573_v61, 16  ;;  %v5054_v38 = vld [vmem:[#allocation2 + $0xb8] sm:$0x1f] }
 0x2fd   : > { %v5580_v42 = vrot.slane %v5578_v29, 3  ;;  %v5583_v40 = vrot.slane %v5581_v50, 4  ;;  %v4779_v15 = vshrl.u32 %v4574_v10, 16  ;;  %v4782_v19 = vshll.u32 %v4574_v10, 16 }
 0x2fe   : > { %v4773_v8 = vrot.slane %v4771_v7, 3  ;;  %v5232_v51 = vsel %vm953_vm2, %v5223_v18, %v5231_v33  ;;  %v5576_v58 = vor.u32 %v5575_v57, %v5572_v30  ;;  %v4776_v53 = vrot.slane %v4774_v0, 4  ;;  %v11495_v33 = vpop.f32.mrb[129].mxu1 }
 0x2ff   : > { %v4987_v17 = vrot.slane %v4911_v55, 4  ;;  %7985 = vmatmul.mubr.bf16.gmra.mrb[196].mxu0 %v5232_v51  ;;  %v5584_v13 = vor.u32 %v5583_v40, %v5580_v42  ;;  %v4781_v43 = vrot.slane %v4779_v15, 3  ;;  %v4784_v20 = vrot.slane %v4782_v19, 4  ;;  %v5392_v40 = vld [vmem:[#allocation2 + $0xd8] sm:$0xf] }
 0x300   : > { %v4988_v22 = vrot.slane %v4912_v52, 4  ;;  %v4777_v44 = vor.u32 %v4776_v53, %v4773_v8  ;;  %v5234_v36 = vshrl.u32 %v5051_v56, 16  ;;  %v5237_v3 = vshll.u32 %v5051_v56, 16  ;;  %v5391_v52 = vld [vmem:[#allocation2 + $0xd0] sm:$0xf8]  ;;  %v11497_v8 = vpop.f32.mrb[130].mxu1 }
 0x301   : > { %v5242_v27 = vshrl.u32 %v5052_v60, 16  ;;  %v5585_v25 = vsel %vm471_vm1, %v5576_v58, %v5584_v13  ;;  %v4785_v24 = vor.u32 %v4784_v20, %v4781_v43  ;;  %v5245_v59 = vshll.u32 %v5052_v60, 16  ;;  %v4577_v58 = vld [vmem:[#allocation2 + $0xd0] sm:$0xf8]  ;;  %v11501_v53 = vpop.f32.mrb[131].mxu1 }
 0x302   : > { %v4989_v23 = vsel %vm840_vm0, %v4987_v17, %v4988_v22  ;;  %7992 = vmatprep.mubr.bf16.mxu0 %v5585_v25  ;;  %v5236_v12 = vrot.slane %v5234_v36, 4  ;;  %v5239_v41 = vrot.slane %v5237_v3, 5  ;;  %v5587_v35 = vshrl.u32 %v5389_v31, 16  ;;  %v4578_v22 = vld [vmem:[#allocation2 + $0xd8] sm:$0xf] }
 0x303   : > { %v5244_v47 = vrot.slane %v5242_v27, 4  ;;  %v4786_v1 = vsel %vm471_vm1, %v4777_v44, %v4785_v24  ;;  %v5247_v26 = vrot.slane %v5245_v59, 5  ;;  %v5590_v4 = vshll.u32 %v5389_v31, 16  ;;  %v4915_v27 = vld [vmem:[#allocation2 + $0xe0] sm:$0xf0] }
 0x304   : > { %v5595_v37 = vshrl.u32 %v5390_v32, 16  ;;  %7840 = vmatmul.mubr.bf16.gmra.mrb[172].mxu1 %v4786_v1  ;;  %v5240_v16 = vor.u32 %v5239_v41, %v5236_v12  ;;  %v5589_v34 = vrot.slane %v5587_v35, 3  ;;  %v5598_v48 = vshll.u32 %v5390_v32, 16  ;;  %v4916_v59 = vld [vmem:[#allocation2 + $0xe8] sm:$0xf] }
 0x305   : > { %v4788_v62 = vshrl.u32 %v4575_v28, 16  ;;  %7847 = vmatprep.mubr.bf16.mxu1 %v4989_v23  ;;  %v5248_v21 = vor.u32 %v5247_v26, %v5244_v47  ;;  %v5592_v6 = vrot.slane %v5590_v4, 4  ;;  %v4791_v61 = vshll.u32 %v4575_v28, 16  ;;  %v5055_v35 = vld [vmem:[#allocation2 + $0xc0] sm:$0xf0] }
 0x306   : > { %v5597_v63 = vrot.slane %v5595_v37, 3  ;;  %v5600_v46 = vrot.slane %v5598_v48, 4  ;;  %v4796_v45 = vshrl.u32 %v4576_v39, 16  ;;  %v4799_v10 = vshll.u32 %v4576_v39, 16  ;;  %v5056_v37 = vld [vmem:[#allocation2 + $0xc8] sm:$0x1f] }
 0x307   : > { %v4790_v14 = vrot.slane %v4788_v62, 3  ;;  %v5249_v49 = vsel %vm953_vm2, %v5240_v16, %v5248_v21  ;;  %v5593_v11 = vor.u32 %v5592_v6, %v5589_v34  ;;  %v4793_v29 = vrot.slane %v4791_v61, 4 }
 0x308   : > { %v4990_v55 = vrot.slane %v4913_v5, 4  ;;  %7993 = vmatmul.mubr.bf16.gmra.mrb[200].mxu0 %v5249_v49  ;;  %v5601_v18 = vor.u32 %v5600_v46, %v5597_v63  ;;  %v4798_v30 = vrot.slane %v4796_v45, 3  ;;  %v4801_v50 = vrot.slane %v4799_v10, 4  ;;  %v5393_v63 = vld [vmem:[#allocation2 + $0xe0] sm:$0xf8] }
 0x309   : > { %v4991_v7 = vrot.slane %v4914_v9, 4  ;;  %v4794_v57 = vor.u32 %v4793_v29, %v4790_v14  ;;  %v5251_v42 = vshrl.u32 %v5053_v2, 16  ;;  %v5254_v0 = vshll.u32 %v5053_v2, 16  ;;  %v5394_v45 = vld [vmem:[#allocation2 + $0xe8] sm:$0xf] }
 0x30a   : > { %v5259_v56 = vshrl.u32 %v5054_v38, 16  ;;  %v5602_v15 = vsel %vm471_vm1, %v5593_v11, %v5601_v18  ;;  %v4802_v19 = vor.u32 %v4801_v50, %v4798_v30  ;;  %v5262_v51 = vshll.u32 %v5054_v38, 16  ;;  %v4579_v29 = vld [vmem:[#allocation2 + $0xe0] sm:$0xf8] }
 0x30b   : > { %v4992_v60 = vsel %vm840_vm0, %v4990_v55, %v4991_v7  ;;  %8000 = vmatprep.mubr.bf16.mxu0 %v5602_v15  ;;  %v5253_v17 = vrot.slane %v5251_v42, 4  ;;  %v5256_v13 = vrot.slane %v5254_v0, 5  ;;  %v5604_v20 = vshrl.u32 %v5391_v52, 16  ;;  %v4580_v7 = vld [vmem:[#allocation2 + $0xe8] sm:$0xf] }
 0x30c   : > { %v5261_v43 = vrot.slane %v5259_v56, 4  ;;  %v4803_v31 = vsel %vm471_vm1, %v4794_v57, %v4802_v19  ;;  %v5264_v44 = vrot.slane %v5262_v51, 5  ;;  %v5607_v36 = vshll.u32 %v5391_v52, 16  ;;  %v4917_v56 = vld [vmem:[#allocation2 + $0xf0] sm:$0xf0] }
 0x30d   : > { %v5612_v3 = vshrl.u32 %v5392_v40, 16  ;;  %7848 = vmatmul.mubr.bf16.gmra.mrb[176].mxu1 %v4803_v31  ;;  %v5257_v32 = vor.u32 %v5256_v13, %v5253_v17  ;;  %v5606_v25 = vrot.slane %v5604_v20, 3  ;;  %v5615_v24 = vshll.u32 %v5392_v40, 16  ;;  %v4918_v51 = vld [vmem:[#allocation2 + $0xf8] sm:$0xf] }
 0x30e   : > { %v4805_v23 = vshrl.u32 %v4577_v58, 16  ;;  %7855 = vmatprep.mubr.bf16.mxu1 %v4992_v60  ;;  %v5265_v28 = vor.u32 %v5264_v44, %v5261_v43  ;;  %v5609_v12 = vrot.slane %v5607_v36, 4  ;;  %v4808_v47 = vshll.u32 %v4577_v58, 16  ;;  %v5057_v20 = vld [vmem:[#allocation2 + $0xd0] sm:$0xf0] }
 0x30f   : > { %v5614_v41 = vrot.slane %v5612_v3, 3  ;;  %v5617_v39 = vrot.slane %v5615_v24, 4  ;;  %v4813_v26 = vshrl.u32 %v4578_v22, 16  ;;  %v4816_v4 = vshll.u32 %v4578_v22, 16  ;;  %v5058_v3 = vld [vmem:[#allocation2 + $0xd8] sm:$0x1f] }
 0x310   : > { %v4807_v1 = vrot.slane %v4805_v23, 3  ;;  %v5266_v5 = vsel %vm953_vm2, %v5257_v32, %v5265_v28  ;;  %v5610_v16 = vor.u32 %v5609_v12, %v5606_v25  ;;  %v4810_v34 = vrot.slane %v4808_v47, 4 }
 0x311   : > { %v4993_v48 = vrot.slane %v4915_v27, 4  ;;  %8001 = vmatmul.mubr.bf16.gmra.mrb[204].mxu0 %v5266_v5  ;;  %v5618_v62 = vor.u32 %v5617_v39, %v5614_v41  ;;  %v4815_v9 = vrot.slane %v4813_v26, 3  ;;  %v4818_v21 = vrot.slane %v4816_v4, 4  ;;  %v5395_v41 = vld [vmem:[#allocation2 + $0xf0] sm:$0xf8] }
 0x312   : > { %v4994_v6 = vrot.slane %v4916_v59, 4  ;;  %v4811_v61 = vor.u32 %v4810_v34, %v4807_v1  ;;  %v5268_v2 = vshrl.u32 %v5055_v35, 16  ;;  %v5271_v46 = vshll.u32 %v5055_v35, 16  ;;  %v5396_v26 = vld [vmem:[#allocation2 + $0xf8] sm:$0xf] }
 0x313   : > { %v5276_v14 = vshrl.u32 %v5056_v37, 16  ;;  %v5619_v10 = vsel %vm471_vm1, %v5610_v16, %v5618_v62  ;;  %v4819_v38 = vor.u32 %v4818_v21, %v4815_v9  ;;  %v5279_v11 = vshll.u32 %v5056_v37, 16  ;;  %v4581_v34 = vld [vmem:[#allocation2 + $0xf0] sm:$0xf8] }
 0x314   : > { %v4995_v49 = vsel %vm840_vm0, %v4993_v48, %v4994_v6  ;;  %8008 = vmatprep.mubr.bf16.mxu0 %v5619_v10  ;;  %v5270_v55 = vrot.slane %v5268_v2, 4  ;;  %v5273_v18 = vrot.slane %v5271_v46, 5  ;;  %v5621_v50 = vshrl.u32 %v5393_v63, 16  ;;  %v4582_v46 = vld [vmem:[#allocation2 + $0xf8] sm:$0xf] }
 0x315   : > { %v5278_v30 = vrot.slane %v5276_v14, 4  ;;  %v4820_v52 = vsel %vm471_vm1, %v4811_v61, %v4819_v38  ;;  %v5281_v57 = vrot.slane %v5279_v11, 5  ;;  %v5624_v42 = vshll.u32 %v5393_v63, 16 }
 0x316   : > { %v5629_v0 = vshrl.u32 %v5394_v45, 16  ;;  %7856 = vmatmul.mubr.bf16.gmra.mrb[180].mxu1 %v4820_v52  ;;  %v5274_v40 = vor.u32 %v5273_v18, %v5270_v55  ;;  %v5623_v15 = vrot.slane %v5621_v50, 3  ;;  %v5632_v19 = vshll.u32 %v5394_v45, 16 }
 0x317   : > { %v4822_v60 = vshrl.u32 %v4579_v29, 16  ;;  %7863 = vmatprep.mubr.bf16.mxu1 %v4995_v49  ;;  %v5282_v58 = vor.u32 %v5281_v57, %v5278_v30  ;;  %v5626_v17 = vrot.slane %v5624_v42, 4  ;;  %v4825_v43 = vshll.u32 %v4579_v29, 16  ;;  %v5059_v49 = vld [vmem:[#allocation2 + $0xe0] sm:$0xf0] }
 0x318   : > { %v5631_v13 = vrot.slane %v5629_v0, 3  ;;  %v5634_v22 = vrot.slane %v5632_v19, 4  ;;  %v4830_v44 = vshrl.u32 %v4580_v7, 16  ;;  %v4833_v36 = vshll.u32 %v4580_v7, 16  ;;  %v5060_v57 = vld [vmem:[#allocation2 + $0xe8] sm:$0x1f] }
 0x319   : > { %v4824_v31 = vrot.slane %v4822_v60, 3  ;;  %v5283_v27 = vsel %vm953_vm2, %v5274_v40, %v5282_v58  ;;  %v5627_v32 = vor.u32 %v5626_v17, %v5623_v15  ;;  %v4827_v25 = vrot.slane %v4825_v43, 4  ;;  %v5847_v15 = vld [vmem:[#allocation2 + $0x10] sm:$0xf0]  ;;  %v5848_v17 = vld [vmem:[#allocation2 + $0x18] sm:$0x1f] }
 0x31a   : > { %v4996_v24 = vrot.slane %v4917_v56, 4  ;;  %8009 = vmatmul.mubr.bf16.gmra.mrb[208].mxu0 %v5283_v27  ;;  %v5635_v23 = vor.u32 %v5634_v22, %v5631_v13  ;;  %v4832_v59 = vrot.slane %v4830_v44, 3  ;;  %v4835_v28 = vrot.slane %v4833_v36, 4  ;;  %v5397_v27 = vld [vmem:[#allocation2 + $0x100] sm:$0xf8] }
 0x31b   : > { %v4997_v12 = vrot.slane %v4918_v51, 4  ;;  %v4828_v47 = vor.u32 %v4827_v25, %v4824_v31  ;;  %v5285_v35 = vshrl.u32 %v5057_v20, 16  ;;  %v5288_v39 = vshll.u32 %v5057_v20, 16 }
 0x31c   : > { %v5293_v1 = vshrl.u32 %v5058_v3, 16  ;;  %v5636_v4 = vsel %vm471_vm1, %v5627_v32, %v5635_v23  ;;  %v4836_v37 = vor.u32 %v4835_v28, %v4832_v59  ;;  %v5296_v16 = vshll.u32 %v5058_v3, 16  ;;  %v5398_v59 = vld [vmem:[#allocation2 + $0x108] sm:$0xf] }
 0x31d   : > { %v4998_v5 = vsel %vm840_vm0, %v4996_v24, %v4997_v12  ;;  %8016 = vmatprep.mubr.bf16.mxu0 %v5636_v4  ;;  %v5287_v48 = vrot.slane %v5285_v35, 4  ;;  %v5290_v62 = vrot.slane %v5288_v39, 5  ;;  %v5638_v21 = vshrl.u32 %v5395_v41, 16  ;;  %v5703_v35 = vld [vmem:[#allocation2 + $0x10] sm:$0xf0] }
 0x31e   : > { %v5295_v9 = vrot.slane %v5293_v1, 4  ;;  %v4837_v6 = vsel %vm471_vm1, %v4828_v47, %v4836_v37  ;;  %v5298_v63 = vrot.slane %v5296_v16, 5  ;;  %v5641_v61 = vshll.u32 %v5395_v41, 16  ;;  %v5704_v39 = vld [vmem:[#allocation2 + $0x18] sm:$0xf] }
 0x31f   : > { %v5646_v2 = vshrl.u32 %v5396_v26, 16  ;;  %7864 = vmatmul.mubr.bf16.gmra.mrb[184].mxu1 %v4837_v6  ;;  %v5291_v14 = vor.u32 %v5290_v62, %v5287_v48  ;;  %v5640_v45 = vrot.slane %v5638_v21, 3  ;;  %v5649_v10 = vshll.u32 %v5396_v26, 16 }
 0x320   : > { %v4839_v38 = vshrl.u32 %v4581_v34, 16  ;;  %7871 = vmatprep.mubr.bf16.mxu1 %v4998_v5  ;;  %v5299_v11 = vor.u32 %v5298_v63, %v5295_v9  ;;  %v5643_v29 = vrot.slane %v5641_v61, 4  ;;  %v4842_v18 = vshll.u32 %v4581_v34, 16  ;;  %v5061_v5 = vld [vmem:[#allocation2 + $0xf0] sm:$0xf0] }
 0x321   : > { %v5648_v55 = vrot.slane %v5646_v2, 3  ;;  %v5651_v30 = vrot.slane %v5649_v10, 4  ;;  %v4847_v7 = vshrl.u32 %v4582_v46, 16  ;;  %v4850_v52 = vshll.u32 %v4582_v46, 16  ;;  %v5062_v9 = vld [vmem:[#allocation2 + $0xf8] sm:$0x1f] }
 0x322   : > { %v4841_v50 = vrot.slane %v4839_v38, 3  ;;  %v5300_v42 = vsel %vm953_vm2, %v5291_v14, %v5299_v11  ;;  %v5644_v0 = vor.u32 %v5643_v29, %v5640_v45  ;;  %v4844_v56 = vrot.slane %v4842_v18, 4  ;;  %v5849_v10 = vld [vmem:[#allocation2 + $0x20] sm:$0xf0] }
 0x323   : > { %v5302_v40 = vshrl.u32 %v5059_v49, 16  ;;  %8017 = vmatmul.mubr.bf16.gmra.mrb[212].mxu0 %v5300_v42  ;;  %v5652_v19 = vor.u32 %v5651_v30, %v5648_v55  ;;  %v4849_v60 = vrot.slane %v4847_v7, 3  ;;  %v4852_v51 = vrot.slane %v4850_v52, 4  ;;  %v5850_v55 = vld [vmem:[#allocation2 + $0x28] sm:$0x1f] }
 0x324   : > { %v5305_v58 = vshll.u32 %v5059_v49, 16  ;;  %v4845_v13 = vor.u32 %v4844_v56, %v4841_v50  ;;  %v5310_v20 = vshrl.u32 %v5060_v57, 16  ;;  %v5313_v22 = vshll.u32 %v5060_v57, 16  ;;  %v6519_v52 = vld [vmem:[#allocation2 + $0x20] sm:$0xf0] }
 0x325   : > { %v5304_v43 = vrot.slane %v5302_v40, 4  ;;  %v5653_v31 = vsel %vm471_vm1, %v5644_v0, %v5652_v19  ;;  %v4853_v44 = vor.u32 %v4852_v51, %v4849_v60  ;;  %v5880_v3 = vshrl.u32 %v5847_v15, 16  ;;  %v6520_v57 = vld [vmem:[#allocation2 + $0x28] sm:$0xf] }
 0x326   : > { %v5307_v36 = vrot.slane %v5305_v58, 5  ;;  %8024 = vmatprep.mubr.bf16.mxu0 %v5653_v31  ;;  %v5312_v32 = vrot.slane %v5310_v20, 4  ;;  %v5315_v25 = vrot.slane %v5313_v22, 5  ;;  %v5883_v24 = vshll.u32 %v5847_v15, 16  ;;  %v5705_v15 = vld [vmem:[#allocation2 + $0x20] sm:$0xf0] }
 0x327   : > { %v5888_v23 = vshrl.u32 %v5848_v17, 16  ;;  %v4854_v28 = vsel %vm471_vm1, %v4845_v13, %v4853_v44  ;;  %v5882_v41 = vrot.slane %v5880_v3, 4  ;;  %v5891_v47 = vshll.u32 %v5848_v17, 16  ;;  %v10182_v19 = vld [vmem:[#allocation9 + $0x208] sm:$0xff]   ;;  %v5851_v44 = vld [vmem:[#allocation2 + $0x30] sm:$0xf0] }
 0x328   : > { %v5308_v12 = vor.u32 %v5307_v36, %v5304_v43  ;;  %7872 = vmatmul.mubr.bf16.gmra.mrb[188].mxu1 %v4854_v28  ;;  %v5316_v1 = vor.u32 %v5315_v25, %v5312_v32  ;;  %v5885_v26 = vrot.slane %v5883_v24, 5  ;;  %v5655_v37 = vshrl.u32 %v5397_v27, 16  ;;  %v5706_v13 = vld [vmem:[#allocation2 + $0x28] sm:$0xf]  ;;  %v10190_v32 = vld [vmem:[#allocation9 + $0x200] sm:$0xff]  }
 0x329   : > { %v5890_v4 = vrot.slane %v5888_v23, 4  ;;  %v5893_v16 = vrot.slane %v5891_v47, 5  ;;  %v5658_v34 = vshll.u32 %v5397_v27, 16  ;;  %v5663_v48 = vshrl.u32 %v5398_v59, 16  ;;  %v5852_v24 = vld [vmem:[#allocation2 + $0x38] sm:$0x1f] }
 0x32a   : > { %v5666_v62 = vshll.u32 %v5398_v59, 16  ;;  %v5317_v21 = vsel %vm953_vm2, %v5308_v12, %v5316_v1  ;;  %v5886_v6 = vor.u32 %v5885_v26, %v5882_v41  ;;  %v5657_v63 = vrot.slane %v5655_v37, 3  ;;  %v10183_v23 = vld [vmem:[#allocation9 + $0x210] sm:$0xff]   ;;  %v6183_v47 = vld [vmem:[#allocation2 + $0x20] sm:$0xf8] }
 0x32b   : > { %v5767_v61 = vrot.slane %v5703_v35, 4  ;;  %8025 = vmatmul.mubr.bf16.gmra.mrb[216].mxu0 %v5317_v21  ;;  %v5894_v2 = vor.u32 %v5893_v16, %v5890_v4  ;;  %v5660_v46 = vrot.slane %v5658_v34, 4  ;;  %v5665_v14 = vrot.slane %v5663_v48, 3  ;;  %v6184_v4 = vld [vmem:[#allocation2 + $0x28] sm:$0xf] }
 0x32c   : > { %v5668_v45 = vrot.slane %v5666_v62, 4  ;;  %v5768_v38 = vrot.slane %v5704_v39, 4  ;;  %v5319_v49 = vshrl.u32 %v5061_v5, 16  ;;  %v5322_v11 = vshll.u32 %v5061_v5, 16  ;;  %v6521_v48 = vld [vmem:[#allocation2 + $0x30] sm:$0xf0] }
 0x32d   : > { %v5327_v29 = vshrl.u32 %v5062_v9, 16  ;;  %v5895_v18 = vsel %vm953_vm2, %v5886_v6, %v5894_v2  ;;  %v5661_v30 = vor.u32 %v5660_v46, %v5657_v63  ;;  %v5330_v7 = vshll.u32 %v5062_v9, 16  ;;  %v6522_v62 = vld [vmem:[#allocation2 + $0x38] sm:$0xf] }
 0x32e   : > { %v5669_v50 = vor.u32 %v5668_v45, %v5665_v14  ;;  %8073 = vmatprep.mubr.bf16.mxu1 %v5895_v18  ;;  %v5769_v42 = vsel %vm840_vm0, %v5767_v61, %v5768_v38  ;;  %v5321_v0 = vrot.slane %v5319_v49, 4  ;;  %v5324_v56 = vrot.slane %v5322_v11, 5  ;;  %v5707_v61 = vld [vmem:[#allocation2 + $0x30] sm:$0xf0]  ;;  %v10184_v38 = vld [vmem:[#allocation9 + $0x218] sm:$0xff]  }
 0x32f   : > { %v5329_v40 = vrot.slane %v5327_v29, 4  ;;  %v5332_v51 = vrot.slane %v5330_v7, 5  ;;  %v5897_v58 = vshrl.u32 %v5849_v10, 16  ;;  %v5900_v17 = vshll.u32 %v5849_v10, 16  ;;  %v5708_v10 = vld [vmem:[#allocation2 + $0x38] sm:$0xf] }
 0x330   : > { %v5670_v60 = vsel %vm471_vm1, %v5661_v30, %v5669_v50  ;;  %8074 = vmatmul.mubr.bf16.vlgmr.msra.gmra.mrb[192].mxu1 %v5769_v42  ;;  %v5325_v43 = vor.u32 %v5324_v56, %v5321_v0  ;;  %v5905_v20 = vshrl.u32 %v5850_v55, 16  ;;  %v5908_v22 = vshll.u32 %v5850_v55, 16  ;;  %v5853_v18 = vld [vmem:[#allocation2 + $0x40] sm:$0xf0] }
 0x331   : > { %8032 = vmatprep.mubr.bf16.mxu0 %v5670_v60  ;;  %v6583_v31 = vrot.slane %v6519_v52, 4  ;;  %v5333_v36 = vor.u32 %v5332_v51, %v5329_v40  ;;  %v5899_v3 = vrot.slane %v5897_v58, 4  ;;  %v5902_v27 = vrot.slane %v5900_v17, 5  ;;  %9924 = vmatpush3.bf16.msra.mxu1 %v10190_v32  ;;  %v6186_v17 = vld [vmem:[#allocation2 + $0x38] sm:$0xf] }
 0x332   : > { %v6584_v25 = vrot.slane %v6520_v57, 4  ;;  %v5907_v59 = vrot.slane %v5905_v20, 4  ;;  %v5910_v28 = vrot.slane %v5908_v22, 5  ;;  %v5770_v12 = vrot.slane %v5705_v15, 4  ;;  %9925 = vmatprep.subr.bf16.mxu1 %v10182_v19  ;;  %v5854_v57 = vld [vmem:[#allocation2 + $0x48] sm:$0x1f] }
 0x333   : > { %v5771_v41 = vrot.slane %v5706_v13, 4  ;;  %v5334_v35 = vsel %vm953_vm2, %v5325_v43, %v5333_v36  ;;  %v5903_v39 = vor.u32 %v5902_v27, %v5899_v3  ;;  %v5914_v26 = vshrl.u32 %v5851_v44, 16  ;;  %v6185_v15 = vld [vmem:[#allocation2 + $0x30] sm:$0xf8]  ;;  %v10185_v13 = vld [vmem:[#allocation9 + $0x220] sm:$0xff]  }
 0x334   : > { %v6585_v1 = vsel %vm840_vm0, %v6583_v31, %v6584_v25  ;;  %8033 = vmatmul.mubr.bf16.gmra.mrb[220].mxu0 %v5334_v35  ;;  %v5911_v37 = vor.u32 %v5910_v28, %v5907_v59  ;;  %v5917_v16 = vshll.u32 %v5851_v44, 16  ;;  %v5922_v34 = vshrl.u32 %v5852_v24, 16  ;;  %v6523_v44 = vld [vmem:[#allocation2 + $0x40] sm:$0xf0]  ;;  %v6524_v36 = vld [vmem:[#allocation2 + $0x48] sm:$0xf] }
 0x335   : > { %v5772_v5 = vsel %vm840_vm0, %v5770_v12, %v5771_v41  ;;  %8234 = vmatprep.mubr.bf16.mxu0 %v6585_v1  ;;  %v5916_v9 = vrot.slane %v5914_v26, 4  ;;  %v5925_v21 = vshll.u32 %v5852_v24, 16  ;;  %v6216_v6 = vshrl.u32 %v6183_v47, 16  ;;  %9926 = vmatpush3.bf16.msra.mxu1 %v10182_v19  ;;  %v5709_v24 = vld [vmem:[#allocation2 + $0x40] sm:$0xf0] }
 0x336   : > { %v6219_v63 = vshll.u32 %v6183_v47, 16  ;;  %v5912_v2 = vsel %vm953_vm2, %v5903_v39, %v5911_v37  ;;  %v5919_v46 = vrot.slane %v5917_v16, 5  ;;  %v5924_v14 = vrot.slane %v5922_v34, 4  ;;  %9927 = vmatprep.subr.bf16.mxu1 %v10183_v23  ;;  %v5710_v41 = vld [vmem:[#allocation2 + $0x48] sm:$0xf] }
 0x337   : > { %v6224_v45 = vshrl.u32 %v6184_v4, 16  ;;  %8081 = vmatprep.mubr.bf16.mxu1 %v5912_v2  ;;  %v5927_v49 = vrot.slane %v5925_v21, 5  ;;  %v6218_v11 = vrot.slane %v6216_v6, 3  ;;  %v6227_v55 = vshll.u32 %v6184_v4, 16  ;;  %v5855_v26 = vld [vmem:[#allocation2 + $0x50] sm:$0xf0] }
 0x338   : > { %v6221_v29 = vrot.slane %v6219_v63, 4  ;;  %8082 = vmatmul.mubr.bf16.gmra.mrb[196].mxu1 %v5772_v5  ;;  %v5920_v30 = vor.u32 %v5919_v46, %v5916_v9  ;;  %v6586_v7 = vrot.slane %v6521_v48, 4  ;;  %v6587_v52 = vrot.slane %v6522_v62, 4  ;;  %v10186_v4 = vld [vmem:[#allocation9 + $0x228] sm:$0xff]   ;;  %v5856_v48 = vld [vmem:[#allocation2 + $0x58] sm:$0x1f] }
 0x339   : > { %v6226_v50 = vrot.slane %v6224_v45, 3  ;;  %v5928_v42 = vor.u32 %v5927_v49, %v5924_v14  ;;  %v6229_v56 = vrot.slane %v6227_v55, 4  ;;  %v5773_v40 = vrot.slane %v5707_v61, 4  ;;  %9928 = vmatpush3.bf16.msra.mxu1 %v10183_v23  ;;  %v6187_v6 = vld [vmem:[#allocation2 + $0x40] sm:$0xf8]  ;;  %v10187_v55 = vld [vmem:[#allocation9 + $0x230] sm:$0xff]  }
 0x33a   : > { %v6222_v0 = vor.u32 %v6221_v29, %v6218_v11  ;;  %v6588_v19 = vsel %vm840_vm0, %v6586_v7, %v6587_v52  ;;  %v5774_v60 = vrot.slane %v5708_v10, 4  ;;  %v5931_v51 = vshrl.u32 %v5853_v18, 16  ;;  %9929 = vmatprep.subr.bf16.mxu1 %v10184_v38  ;;  %v6188_v14 = vld [vmem:[#allocation2 + $0x48] sm:$0xf]  ;;  %v6525_v45 = vld [vmem:[#allocation2 + $0x50] sm:$0xf0] }
 0x33b   : > { %v5934_v58 = vshll.u32 %v5853_v18, 16  ;;  %v5929_v43 = vsel %vm953_vm2, %v5920_v30, %v5928_v42  ;;  %v6230_v20 = vor.u32 %v6229_v56, %v6226_v50  ;;  %v5939_v22 = vshrl.u32 %v5854_v57, 16  ;;  %v6526_v29 = vld [vmem:[#allocation2 + $0x58] sm:$0xf]  ;;  %v5711_v52 = vld [vmem:[#allocation2 + $0x50] sm:$0xf0] }
 0x33c   : > { %v5942_v31 = vshll.u32 %v5854_v57, 16  ;;  %8089 = vmatprep.mubr.bf16.mxu1 %v5929_v43  ;;  %v5775_v3 = vsel %vm840_vm0, %v5773_v40, %v5774_v60  ;;  %v5933_v27 = vrot.slane %v5931_v51, 4  ;;  %v6233_v25 = vshrl.u32 %v6185_v15, 16  ;;  %v5712_v40 = vld [vmem:[#allocation2 + $0x58] sm:$0xf] }
 0x33d   : > { %v5936_v32 = vrot.slane %v5934_v58, 5  ;;  %v6231_v23 = vsel %vm471_vm1, %v6222_v0, %v6230_v20  ;;  %v5941_v59 = vrot.slane %v5939_v22, 4  ;;  %v6236_v12 = vshll.u32 %v6185_v15, 16  ;;  %9930 = vmatpush3.bf16.msra.mxu1 %v10184_v38  ;;  %v5857_v58 = vld [vmem:[#allocation2 + $0x60] sm:$0xf0] }
 0x33e   : > { %v5944_v28 = vrot.slane %v5942_v31, 5  ;;  %8235 = vmatmul.mubr.bf16.vlgmr.msra.gmra.mrb[224].mxu0 %v6231_v23  ;;  %v6235_v35 = vrot.slane %v6233_v25, 3  ;;  %v6241_v39 = vshrl.u32 %v6186_v17, 16  ;;  %v6244_v1 = vshll.u32 %v6186_v17, 16  ;;  %9931 = vmatprep.subr.bf16.mxu1 %v10185_v13  ;;  %v5858_v22 = vld [vmem:[#allocation2 + $0x68] sm:$0x1f] }
 0x33f   : > { %v5937_v47 = vor.u32 %v5936_v32, %v5933_v27  ;;  %8242 = vmatprep.mubr.bf16.mxu0 %v6588_v19  ;;  %v6238_v5 = vrot.slane %v6236_v12, 4  ;;  %v6589_v16 = vrot.slane %v6523_v44, 4  ;;  %v6590_v34 = vrot.slane %v6524_v36, 4  ;;  %v10188_v31 = vld [vmem:[#allocation9 + $0x238] sm:$0xff]   ;;  %v6189_v32 = vld [vmem:[#allocation2 + $0x50] sm:$0xf8] }
 0x340   : > { %v5945_v37 = vor.u32 %v5944_v28, %v5941_v59  ;;  %8090 = vmatmul.mubr.bf16.gmra.mrb[200].mxu1 %v5775_v3  ;;  %v6243_v62 = vrot.slane %v6241_v39, 3  ;;  %v6246_v9 = vrot.slane %v6244_v1, 4  ;;  %v5776_v21 = vrot.slane %v5709_v24, 4  ;;  %v6190_v28 = vld [vmem:[#allocation2 + $0x58] sm:$0xf] }
 0x341   : > { %v6239_v61 = vor.u32 %v6238_v5, %v6235_v35  ;;  %v5777_v2 = vrot.slane %v5710_v41, 4  ;;  %v5948_v46 = vshrl.u32 %v5855_v26, 16  ;;  %9932 = vmatpush3.bf16.msra.mxu1 %v10185_v13  ;;  %v6591_v38 = vsel %vm840_vm0, %v6589_v16, %v6590_v34  ;;  %v6527_v39 = vld [vmem:[#allocation2 + $0x60] sm:$0xf0]  ;;  %v6528_v1 = vld [vmem:[#allocation2 + $0x68] sm:$0xf] }
 0x342   : > { %v5946_v63 = vsel %vm953_vm2, %v5937_v47, %v5945_v37  ;;  %v6247_v10 = vor.u32 %v6246_v9, %v6243_v62  ;;  %v5951_v49 = vshll.u32 %v5855_v26, 16  ;;  %v5956_v11 = vshrl.u32 %v5856_v48, 16  ;;  %9933 = vmatprep.subr.bf16.mxu1 %v10186_v4  ;;  %v5713_v5 = vld [vmem:[#allocation2 + $0x60] sm:$0xf0]  ;;  %v5714_v9 = vld [vmem:[#allocation2 + $0x68] sm:$0xf] }
 0x343   : > { %8097 = vmatprep.mubr.bf16.mxu1 %v5946_v63  ;;  %v5950_v18 = vrot.slane %v5948_v46, 4  ;;  %v5959_v30 = vshll.u32 %v5856_v48, 16  ;;  %v6250_v50 = vshrl.u32 %v6187_v6, 16  ;;  %v6253_v7 = vshll.u32 %v6187_v6, 16 }
 0x344   : > { %v6248_v57 = vsel %vm471_vm1, %v6239_v61, %v6247_v10  ;;  %v5953_v42 = vrot.slane %v5951_v49, 5  ;;  %v5958_v0 = vrot.slane %v5956_v11, 4  ;;  %v6258_v56 = vshrl.u32 %v6188_v14, 16 }
 0x345   : > { %v5961_v15 = vrot.slane %v5959_v30, 5  ;;  %v6252_v19 = vrot.slane %v6250_v50, 3  ;;  %v6255_v60 = vrot.slane %v6253_v7, 4  ;;  %v6261_v51 = vshll.u32 %v6188_v14, 16  ;;  %9934 = vmatpush3.bf16.msra.mxu1 %v10186_v4 }
 0x346   : > { %8243 = vmatmul.mubr.bf16.gmra.mrb[228].mxu0 %v6248_v57  ;;  %v5778_v17 = vsel %vm840_vm0, %v5776_v21, %v5777_v2  ;;  %v5954_v13 = vor.u32 %v5953_v42, %v5950_v18  ;;  %v6260_v43 = vrot.slane %v6258_v56, 3  ;;  %v6592_v20 = vrot.slane %v6525_v45, 4  ;;  %9935 = vmatprep.subr.bf16.mxu1 %v10187_v55  ;;  %v5859_v2 = vld [vmem:[#allocation2 + $0x70] sm:$0xf0]  ;;  %v6191_v18 = vld [vmem:[#allocation2 + $0x60] sm:$0xf8] }
 0x347   : > { %8250 = vmatprep.mubr.bf16.mxu0 %v6591_v38  ;;  %v5962_v44 = vor.u32 %v5961_v15, %v5958_v0  ;;  %v6256_v36 = vor.u32 %v6255_v60, %v6252_v19  ;;  %v6263_v3 = vrot.slane %v6261_v51, 4  ;;  %v6593_v27 = vrot.slane %v6526_v29, 4  ;;  %v5860_v38 = vld [vmem:[#allocation2 + $0x78] sm:$0x1f]  ;;  %v6192_v57 = vld [vmem:[#allocation2 + $0x68] sm:$0xf] }
 0x348   : > { %8098 = vmatmul.mubr.bf16.gmra.mrb[204].mxu1 %v5778_v17  ;;  %v5779_v25 = vrot.slane %v5711_v52, 4  ;;  %v5780_v24 = vrot.slane %v5712_v40, 4  ;;  %v5965_v23 = vshrl.u32 %v5857_v58, 16  ;;  %v5968_v59 = vshll.u32 %v5857_v58, 16  ;;  %v6529_v15 = vld [vmem:[#allocation2 + $0x70] sm:$0xf0] }
 0x349   : > { %v5963_v12 = vsel %vm953_vm2, %v5954_v13, %v5962_v44  ;;  %v6264_v41 = vor.u32 %v6263_v3, %v6260_v43  ;;  %v5973_v47 = vshrl.u32 %v5858_v22, 16  ;;  %v5976_v35 = vshll.u32 %v5858_v22, 16  ;;  %9936 = vmatpush3.bf16.msra.mxu1 %v10187_v55  ;;  %v6530_v17 = vld [vmem:[#allocation2 + $0x78] sm:$0xf] }
 0x34a   : > { %8105 = vmatprep.mubr.bf16.mxu1 %v5963_v12  ;;  %v5967_v26 = vrot.slane %v5965_v23, 4  ;;  %v5970_v4 = vrot.slane %v5968_v59, 5  ;;  %v6267_v37 = vshrl.u32 %v6189_v32, 16  ;;  %9937 = vmatprep.subr.bf16.mxu1 %v10188_v31  ;;  %v6594_v16 = vsel %vm840_vm0, %v6592_v20, %v6593_v27  ;;  %v5862_v12 = vld [vmem:[#allocation2 + $0x88] sm:$0x1f] }
 0x34b   : > { %v5975_v34 = vrot.slane %v5973_v47, 4  ;;  %v5978_v48 = vrot.slane %v5976_v35, 5  ;;  %v6270_v62 = vshll.u32 %v6189_v32, 16  ;;  %v6275_v63 = vshrl.u32 %v6190_v28, 16  ;;  %v5861_v32 = vld [vmem:[#allocation2 + $0x80] sm:$0xf0] }
 0x34c   : > { %v5971_v21 = vor.u32 %v5970_v4, %v5967_v26  ;;  %v6269_v6 = vrot.slane %v6267_v37, 3  ;;  %v6278_v61 = vshll.u32 %v6190_v28, 16  ;;  %v6265_v46 = vsel %vm471_vm1, %v6256_v36, %v6264_v41  ;;  %v5716_v28 = vld [vmem:[#allocation2 + $0x78] sm:$0xf] }
 0x34d   : > { %v5781_v14 = vsel %vm840_vm0, %v5779_v25, %v5780_v24  ;;  %v5979_v45 = vor.u32 %v5978_v48, %v5975_v34  ;;  %v6272_v10 = vrot.slane %v6270_v62, 4  ;;  %9938 = vmatpush3.bf16.msra.mxu1 %v10188_v31  ;;  %v6277_v49 = vrot.slane %v6275_v63, 3  ;;  %v5715_v31 = vld [vmem:[#allocation2 + $0x70] sm:$0xf0] }
 0x34e   : > { %8251 = vmatmul.mubr.bf16.gmra.mrb[232].mxu0 %v6265_v46  ;;  %v6280_v11 = vrot.slane %v6278_v61, 4  ;;  %v6595_v29 = vrot.slane %v6527_v39, 4  ;;  %v6596_v55 = vrot.slane %v6528_v1, 4  ;;  %v5782_v50 = vrot.slane %v5713_v5, 4  ;;  %v6193_v1 = vld [vmem:[#allocation2 + $0x70] sm:$0xf8] }
 0x34f   : > { %8258 = vmatprep.mubr.bf16.mxu0 %v6594_v16  ;;  %v5980_v30 = vsel %vm953_vm2, %v5971_v21, %v5979_v45  ;;  %v5783_v7 = vrot.slane %v5714_v9, 4  ;;  %v5982_v52 = vshrl.u32 %v5859_v2, 16  ;;  %v6273_v42 = vor.u32 %v6272_v10, %v6269_v6  ;;  %v6194_v16 = vld [vmem:[#allocation2 + $0x78] sm:$0xf]  ;;  %v6531_v21 = vld [vmem:[#allocation2 + $0x80] sm:$0xf0] }
 0x350   : > { %8106 = vmatmul.mubr.bf16.gmra.mrb[208].mxu1 %v5781_v14  ;;  %v6281_v0 = vor.u32 %v6280_v11, %v6277_v49  ;;  %v5985_v56 = vshll.u32 %v5859_v2, 16  ;;  %v5990_v40 = vshrl.u32 %v5860_v38, 16  ;;  %v5993_v60 = vshll.u32 %v5860_v38, 16  ;;  %v6532_v6 = vld [vmem:[#allocation2 + $0x88] sm:$0xf] }
 0x351   : > { %8113 = vmatprep.mubr.bf16.mxu1 %v5980_v30  ;;  %v5984_v19 = vrot.slane %v5982_v52, 4  ;;  %v6284_v51 = vshrl.u32 %v6191_v18, 16  ;;  %v6287_v58 = vshll.u32 %v6191_v18, 16  ;;  %v6597_v13 = vsel %vm840_vm0, %v6595_v29, %v6596_v55  ;;  %v5717_v14 = vld [vmem:[#allocation2 + $0x80] sm:$0xf0] }
 0x352   : > { %v5987_v43 = vrot.slane %v5985_v56, 5  ;;  %v5992_v20 = vrot.slane %v5990_v40, 4  ;;  %v6292_v22 = vshrl.u32 %v6192_v57, 16  ;;  %v5995_v44 = vrot.slane %v5993_v60, 5  ;;  %v5718_v11 = vld [vmem:[#allocation2 + $0x88] sm:$0xf] }
 0x353   : > { %v6286_v36 = vrot.slane %v6284_v51, 3  ;;  %v6289_v3 = vrot.slane %v6287_v58, 4  ;;  %v6295_v27 = vshll.u32 %v6192_v57, 16  ;;  %v6282_v25 = vsel %vm471_vm1, %v6273_v42, %v6281_v0  ;;  %v5864_v0 = vld [vmem:[#allocation2 + $0x98] sm:$0x1f] }
 0x354   : > { %v5784_v24 = vsel %vm840_vm0, %v5782_v50, %v5783_v7  ;;  %v5988_v23 = vor.u32 %v5987_v43, %v5984_v19  ;;  %v6294_v59 = vrot.slane %v6292_v22, 3  ;;  %v5996_v41 = vor.u32 %v5995_v44, %v5992_v20  ;;  %v5863_v50 = vld [vmem:[#allocation2 + $0x90] sm:$0xf0]  ;;  %v6195_v60 = vld [vmem:[#allocation2 + $0x80] sm:$0xf8] }
 0x355   : > { %v6297_v47 = vrot.slane %v6295_v27, 4  ;;  %v6598_v35 = vrot.slane %v6529_v15, 4  ;;  %v6599_v39 = vrot.slane %v6530_v17, 4  ;;  %v6290_v26 = vor.u32 %v6289_v3, %v6286_v36  ;;  %v6196_v43 = vld [vmem:[#allocation2 + $0x88] sm:$0xf] }
 0x356   : > { %8259 = vmatmul.mubr.bf16.gmra.mrb[236].mxu0 %v6282_v25  ;;  %v5785_v4 = vrot.slane %v5715_v31, 4  ;;  %v5999_v37 = vshrl.u32 %v5861_v32, 16  ;;  %v6002_v5 = vshll.u32 %v5861_v32, 16  ;;  %v5786_v48 = vrot.slane %v5716_v28, 4  ;;  %v6533_v36 = vld [vmem:[#allocation2 + $0x90] sm:$0xf0] }
 0x357   : > { %8266 = vmatprep.mubr.bf16.mxu0 %v6597_v13  ;;  %v6298_v34 = vor.u32 %v6297_v47, %v6294_v59  ;;  %v6007_v62 = vshrl.u32 %v5862_v12, 16  ;;  %v6010_v9 = vshll.u32 %v5862_v12, 16  ;;  %v5997_v63 = vsel %vm953_vm2, %v5988_v23, %v5996_v41  ;;  %v6534_v3 = vld [vmem:[#allocation2 + $0x98] sm:$0xf]  ;;  %v5719_v23 = vld [vmem:[#allocation2 + $0x90] sm:$0xf0] }
 0x358   : > { %8114 = vmatmul.mubr.bf16.gmra.mrb[212].mxu1 %v5784_v24  ;;  %v6001_v61 = vrot.slane %v5999_v37, 4  ;;  %v6004_v2 = vrot.slane %v6002_v5, 5  ;;  %v6301_v46 = vshrl.u32 %v6193_v1, 16  ;;  %v6600_v45 = vsel %vm840_vm0, %v6598_v35, %v6599_v39  ;;  %v5720_v47 = vld [vmem:[#allocation2 + $0x98] sm:$0xf] }
 0x359   : > { %8121 = vmatprep.mubr.bf16.mxu1 %v5997_v63  ;;  %v6009_v10 = vrot.slane %v6007_v62, 4  ;;  %v6012_v38 = vrot.slane %v6010_v9, 5  ;;  %v6304_v49 = vshll.u32 %v6193_v1, 16  ;;  %v6309_v18 = vshrl.u32 %v6194_v16, 16  ;;  %v6197_v63 = vld [vmem:[#allocation2 + $0x90] sm:$0xf8] }
 0x35a   : > { %v6005_v29 = vor.u32 %v6004_v2, %v6001_v61  ;;  %v6303_v55 = vrot.slane %v6301_v46, 3  ;;  %v6312_v30 = vshll.u32 %v6194_v16, 16  ;;  %v6299_v7 = vsel %vm471_vm1, %v6290_v26, %v6298_v34 }
 0x35b   : > { %v5787_v52 = vsel %vm840_vm0, %v5785_v4, %v5786_v48  ;;  %v6013_v57 = vor.u32 %v6012_v38, %v6009_v10  ;;  %v6306_v42 = vrot.slane %v6304_v49, 4  ;;  %v6311_v56 = vrot.slane %v6309_v18, 3  ;;  %v5865_v4 = vld [vmem:[#allocation2 + $0xa0] sm:$0xf0]  ;;  %v5866_v48 = vld [vmem:[#allocation2 + $0xa8] sm:$0x1f] }
 0x35c   : > { %v6314_v40 = vrot.slane %v6312_v30, 4  ;;  %v6601_v15 = vrot.slane %v6531_v21, 4  ;;  %v6602_v19 = vrot.slane %v6532_v6, 4  ;;  %v5788_v58 = vrot.slane %v5717_v14, 4 }
 0x35d   : > { %v6014_v51 = vsel %vm953_vm2, %v6005_v29, %v6013_v57  ;;  %v5789_v17 = vrot.slane %v5718_v11, 4  ;;  %v6016_v13 = vshrl.u32 %v5863_v50, 16  ;;  %v6307_v20 = vor.u32 %v6306_v42, %v6303_v55  ;;  %v6535_v29 = vld [vmem:[#allocation2 + $0xa0] sm:$0xf0]  ;;  %v6536_v55 = vld [vmem:[#allocation2 + $0xa8] sm:$0xf] }
 0x35e   : > { %8267 = vmatmul.mubr.bf16.gmra.mrb[240].mxu0 %v6299_v7  ;;  %v6315_v22 = vor.u32 %v6314_v40, %v6311_v56  ;;  %v6019_v31 = vshll.u32 %v5863_v50, 16  ;;  %v6024_v44 = vshrl.u32 %v5864_v0, 16  ;;  %v6027_v32 = vshll.u32 %v5864_v0, 16  ;;  %v5722_v40 = vld [vmem:[#allocation2 + $0xa8] sm:$0xf] }
 0x35f   : > { %8274 = vmatprep.mubr.bf16.mxu0 %v6600_v45  ;;  %v6018_v27 = vrot.slane %v6016_v13, 4  ;;  %v6318_v25 = vshrl.u32 %v6195_v60, 16  ;;  %v6321_v24 = vshll.u32 %v6195_v60, 16  ;;  %v6603_v59 = vsel %vm840_vm0, %v6601_v15, %v6602_v19  ;;  %v6198_v45 = vld [vmem:[#allocation2 + $0x98] sm:$0xf] }
 0x360   : > { %8122 = vmatmul.mubr.bf16.gmra.mrb[216].mxu1 %v5787_v52  ;;  %v6021_v28 = vrot.slane %v6019_v31, 5  ;;  %v6026_v12 = vrot.slane %v6024_v44, 4  ;;  %v6326_v41 = vshrl.u32 %v6196_v43, 16  ;;  %v6029_v35 = vrot.slane %v6027_v32, 5  ;;  %v5721_v52 = vld [vmem:[#allocation2 + $0xa0] sm:$0xf0] }
 0x361   : > { %8129 = vmatprep.mubr.bf16.mxu1 %v6014_v51  ;;  %v6320_v39 = vrot.slane %v6318_v25, 3  ;;  %v6323_v1 = vrot.slane %v6321_v24, 4  ;;  %v6329_v26 = vshll.u32 %v6196_v43, 16  ;;  %v5790_v37 = vsel %vm840_vm0, %v5788_v58, %v5789_v17  ;;  %v5867_v58 = vld [vmem:[#allocation2 + $0xb0] sm:$0xf0] }
 0x362   : > { %v6328_v5 = vrot.slane %v6326_v41, 3  ;;  %v6604_v16 = vrot.slane %v6533_v36, 4  ;;  %v6605_v34 = vrot.slane %v6534_v3, 4  ;;  %v6316_v62 = vsel %vm471_vm1, %v6307_v20, %v6315_v22  ;;  %v5868_v22 = vld [vmem:[#allocation2 + $0xb8] sm:$0x1f] }
 0x363   : > { %v6022_v9 = vor.u32 %v6021_v28, %v6018_v27  ;;  %v6030_v21 = vor.u32 %v6029_v35, %v6026_v12  ;;  %v6331_v6 = vrot.slane %v6329_v26, 4  ;;  %v6324_v61 = vor.u32 %v6323_v1, %v6320_v39  ;;  %v6199_v27 = vld [vmem:[#allocation2 + $0xa0] sm:$0xf8]  ;;  %v6537_v35 = vld [vmem:[#allocation2 + $0xb0] sm:$0xf0] }
 0x364   : > { %v5791_v2 = vrot.slane %v5719_v23, 4  ;;  %v6033_v46 = vshrl.u32 %v5865_v4, 16  ;;  %v6036_v14 = vshll.u32 %v5865_v4, 16  ;;  %v5792_v38 = vrot.slane %v5720_v47, 4  ;;  %v6538_v39 = vld [vmem:[#allocation2 + $0xb8] sm:$0xf] }
 0x365   : > { %v6332_v10 = vor.u32 %v6331_v6, %v6328_v5  ;;  %v6041_v49 = vshrl.u32 %v5866_v48, 16  ;;  %v6044_v11 = vshll.u32 %v5866_v48, 16  ;;  %v6606_v18 = vsel %vm840_vm0, %v6604_v16, %v6605_v34  ;;  %v11552_v5 = vld [vmem:[#allocation2 + $0xb0] sm:$0xf0] }
 0x366   : > { %8275 = vmatmul.mubr.bf16.gmra.mrb[244].mxu0 %v6316_v62  ;;  %v6035_v30 = vrot.slane %v6033_v46, 4  ;;  %v6038_v50 = vrot.slane %v6036_v14, 5  ;;  %v6335_v7 = vshrl.u32 %v6197_v63, 16  ;;  %v6031_v57 = vsel %vm953_vm2, %v6022_v9, %v6030_v21  ;;  %v11555_v9 = vld [vmem:[#allocation2 + $0xb8] sm:$0xf] }
 0x367   : > { %8282 = vmatprep.mubr.bf16.mxu0 %v6603_v59  ;;  %v6043_v42 = vrot.slane %v6041_v49, 4  ;;  %v6046_v0 = vrot.slane %v6044_v11, 5  ;;  %v6338_v56 = vshll.u32 %v6197_v63, 16  ;;  %v6343_v60 = vshrl.u32 %v6198_v45, 16  ;;  %v6200_v59 = vld [vmem:[#allocation2 + $0xa8] sm:$0xf] }
 0x368   : > { %8130 = vmatmul.mubr.bf16.gmra.mrb[220].mxu1 %v5790_v37  ;;  %v6039_v15 = vor.u32 %v6038_v50, %v6035_v30  ;;  %v6337_v19 = vrot.slane %v6335_v7, 3  ;;  %v6346_v51 = vshll.u32 %v6198_v45, 16  ;;  %v6333_v17 = vsel %vm471_vm1, %v6324_v61, %v6332_v10  ;;  %v5869_v21 = vld [vmem:[#allocation2 + $0xc0] sm:$0xf0]  ;;  %v5870_v11 = vld [vmem:[#allocation2 + $0xc8] sm:$0x1f] }
 0x369   : > { %8137 = vmatprep.mubr.bf16.mxu1 %v6031_v57  ;;  %v5793_v13 = vsel %vm840_vm0, %v5791_v2, %v5792_v38  ;;  %v6047_v43 = vor.u32 %v6046_v0, %v6043_v42  ;;  %v6340_v20 = vrot.slane %v6338_v56, 4  ;;  %v6345_v31 = vrot.slane %v6343_v60, 3  ;;  %v6201_v7 = vld [vmem:[#allocation2 + $0xb0] sm:$0xf8] }
 0x36a   : > { %v6348_v44 = vrot.slane %v6346_v51, 4  ;;  %v6607_v36 = vrot.slane %v6535_v29, 4  ;;  %v6608_v3 = vrot.slane %v6536_v55, 4  ;;  %v5794_v25 = vrot.slane %v5721_v52, 4 }
 0x36b   : > { %v6048_v32 = vsel %vm953_vm2, %v6039_v15, %v6047_v43  ;;  %v5795_v24 = vrot.slane %v5722_v40, 4  ;;  %v6050_v23 = vshrl.u32 %v5867_v58, 16  ;;  %v6341_v28 = vor.u32 %v6340_v20, %v6337_v19  ;;  %v6202_v40 = vld [vmem:[#allocation2 + $0xb8] sm:$0xf] }
 0x36c   : > { %v6349_v12 = vor.u32 %v6348_v44, %v6345_v31  ;;  %v6053_v41 = vshll.u32 %v5867_v58, 16  ;;  %v6058_v47 = vshrl.u32 %v5868_v22, 16  ;;  %v6061_v26 = vshll.u32 %v5868_v22, 16  ;;  %v6539_v58 = vld [vmem:[#allocation2 + $0xc0] sm:$0xf0] }
 0x36d   : > { %v6052_v1 = vrot.slane %v6050_v23, 4  ;;  %v6352_v4 = vshrl.u32 %v6199_v27, 16  ;;  %v6355_v37 = vshll.u32 %v6199_v27, 16  ;;  %v6609_v16 = vsel %vm840_vm0, %v6607_v36, %v6608_v3  ;;  %v6540_v22 = vld [vmem:[#allocation2 + $0xc8] sm:$0xf] }
 0x36e   : > { %8283 = vmatmul.mubr.bf16.gmra.mrb[248].mxu0 %v6333_v17  ;;  %v6055_v34 = vrot.slane %v6053_v41, 5  ;;  %v6060_v48 = vrot.slane %v6058_v47, 4  ;;  %v6360_v62 = vshrl.u32 %v6200_v59, 16  ;;  %v11557_v6 = vpop.f32.mrb[132].mxu1  ;;  %v6063_v63 = vrot.slane %v6061_v26, 5 }
 0x36f   : > { %8290 = vmatprep.mubr.bf16.mxu0 %v6606_v18  ;;  %v11559_v61 = vrot.slane %v6352_v4, 3  ;;  %v11561_v2 = vrot.slane %v6355_v37, 4  ;;  %v6363_v46 = vshll.u32 %v6200_v59, 16  ;;  %v11563_v14 = vpop.f32.mrb[133].mxu1  ;;  %v5796_v45 = vsel %vm840_vm0, %v5794_v25, %v5795_v24  ;;  %v5726_v25 = vld [vmem:[#allocation2 + $0xc8] sm:$0xf] }
 0x370   : > { %8138 = vmatmul.mubr.bf16.gmra.mrb[224].mxu1 %v5793_v13  ;;  %v6056_v10 = vor.u32 %v6055_v34, %v6052_v1  ;;  %v6610_v38 = vrot.slane %v6537_v35, 4  ;;  %v6611_v49 = vrot.slane %v6538_v39, 4  ;;  %v11566_v29 = vpop.f32.mrb[134].mxu1  ;;  %v6350_v55 = vsel %vm471_vm1, %v6341_v28, %v6349_v12  ;;  %v5871_v41 = vld [vmem:[#allocation2 + $0xd0] sm:$0xf0] }
 0x371   : > { %8145 = vmatprep.mubr.bf16.mxu1 %v6048_v32  ;;  %v6064_v18 = vor.u32 %v6063_v63, %v6060_v48  ;;  %v6362_v30 = vrot.slane %v6360_v62, 3  ;;  %v6365_v50 = vrot.slane %v6363_v46, 4  ;;  %v11569_v52 = vpop.f32.mrb[135].mxu1  ;;  %v6358_v57 = vor.u32 %v11561_v2, %v11559_v61  ;;  %v5725_v32 = vld [vmem:[#allocation2 + $0xc0] sm:$0xf0] }
 0x372   : > { %v5797_v42 = vrot.slane %v11552_v5, 4  ;;  %v6067_v0 = vshrl.u32 %v5869_v21, 16  ;;  %v6070_v56 = vshll.u32 %v5869_v21, 16  ;;  %v11575_v15 = vsel %vm840_vm0, %v6610_v38, %v6611_v49  ;;  %v5872_v4 = vld [vmem:[#allocation2 + $0xd8] sm:$0x1f] }
 0x373   : > { %v5798_v19 = vrot.slane %v11555_v9, 4  ;;  %v6075_v60 = vshrl.u32 %v5870_v11, 16  ;;  %v6078_v51 = vshll.u32 %v5870_v11, 16  ;;  %v6065_v17 = vsel %vm953_vm2, %v6056_v10, %v6064_v18  ;;  %v6203_v9 = vld [vmem:[#allocation2 + $0xc0] sm:$0xf8] }
 0x374   : > { %v6069_v13 = vrot.slane %v6067_v0, 4  ;;  %v6072_v43 = vrot.slane %v6070_v56, 5  ;;  %v6369_v20 = vshrl.u32 %v6201_v7, 16  ;;  %v11579_v31 = vpop.f32.mrb[160].mxu0  ;;  %v6366_v44 = vor.u32 %v6365_v50, %v6362_v30  ;;  %v6542_v50 = vld [vmem:[#allocation2 + $0xd8] sm:$0xf] }
 0x375   : > { %v6077_v36 = vrot.slane %v6075_v60, 4  ;;  %v6080_v3 = vrot.slane %v6078_v51, 5  ;;  %v6372_v27 = vshll.u32 %v6201_v7, 16  ;;  %v11581_v24 = vpop.f32.mrb[161].mxu0  ;;  %v6377_v28 = vshrl.u32 %v6202_v40, 16 }
 0x376   : > { %8291 = vmatmul.mubr.bf16.gmra.mrb[252].mxu0 %v6350_v55  ;;  %v6073_v23 = vor.u32 %v6072_v43, %v6069_v13  ;;  %v11583_v59 = vrot.slane %v6369_v20, 3  ;;  %v6380_v12 = vshll.u32 %v6202_v40, 16  ;;  %v11585_v47 = vpop.f32.mrb[162].mxu0  ;;  %v11589_v1 = vadd.f32 %v11495_v33, %v11491_v54 }
 0x377   : > { %8298 = vmatprep.mubr.bf16.mxu0 %v6609_v16  ;;  %v6081_v35 = vor.u32 %v6080_v3, %v6077_v36  ;;  %v6374_v39 = vrot.slane %v6372_v27, 4  ;;  %v6613_v26 = vrot.slane %v6539_v58, 4  ;;  %v9535_v37 = vpop.f32.mrb[163].mxu0  ;;  %v6379_v5 = vrot.slane %v6377_v28, 3 }
 0x378   : > { %8146 = vmatmul.mubr.bf16.gmra.mrb[228].mxu1 %v5796_v45  ;;  %v6382_v34 = vrot.slane %v6380_v12, 4  ;;  %v6614_v48 = vrot.slane %v6540_v22, 4  ;;  %v9424_v62 = vadd.f32 %v11501_v53, %v11497_v8  ;;  %v6367_v16 = vsel %vm471_vm1, %v6358_v57, %v6366_v44  ;;  %v6204_v45 = vld [vmem:[#allocation2 + $0xc8] sm:$0xf]  ;;  %v6541_v8 = vld [vmem:[#allocation2 + $0xd0] sm:$0xf0] }
 0x379   : > { %8153 = vmatprep.mubr.bf16.mxu1 %v6065_v17  ;;  %v5799_v21 = vsel %vm840_vm0, %v5797_v42, %v5798_v19  ;;  %v6082_v63 = vsel %vm953_vm2, %v6073_v23, %v6081_v35  ;;  %v6375_v54 = vor.u32 %v6374_v39, %v11583_v59  ;;  %v5800_v33 = vrot.slane %v5725_v32, 4  ;;  %v5727_v22 = vld [vmem:[#allocation2 + $0xd0] sm:$0xf0]  ;;  %v5873_v44 = vld [vmem:[#allocation2 + $0xe0] sm:$0xf0] }
 0x37a   : > { %v5801_v61 = vrot.slane %v5726_v25, 4  ;;  %v6084_v2 = vshrl.u32 %v5871_v41, 16  ;;  %v6087_v46 = vshll.u32 %v5871_v41, 16  ;;  %v6383_v10 = vor.u32 %v6382_v34, %v6379_v5  ;;  %v5874_v25 = vld [vmem:[#allocation2 + $0xe8] sm:$0x1f] }
 0x37b   : > { %v6092_v38 = vshrl.u32 %v5872_v4, 16  ;;  %v6095_v49 = vshll.u32 %v5872_v4, 16  ;;  %v6386_v11 = vshrl.u32 %v6203_v9, 16  ;;  %v11598_v53 = vsel %vm840_vm0, %v6613_v26, %v6614_v48  ;;  %v5728_v12 = vld [vmem:[#allocation2 + $0xd8] sm:$0xf] }
 0x37c   : > { %v6086_v55 = vrot.slane %v6084_v2, 4  ;;  %v6089_v18 = vrot.slane %v6087_v46, 5  ;;  %v6389_v30 = vshll.u32 %v6203_v9, 16  ;;  %v6394_v0 = vshrl.u32 %v6204_v45, 16  ;;  %v6205_v41 = vld [vmem:[#allocation2 + $0xd0] sm:$0xf8] }
 0x37d   : > { %v6094_v7 = vrot.slane %v6092_v38, 4  ;;  %v6097_v57 = vrot.slane %v6095_v49, 5  ;;  %v11600_v42 = vrot.slane %v6386_v11, 3  ;;  %v11602_v56 = vpop.f32.mrb[136].mxu1  ;;  %v6397_v60 = vshll.u32 %v6204_v45, 16 }
 0x37e   : > { %8299 = vmatmul.mubr.bf16.gmra.mrb[0].mxu0 %v6367_v16  ;;  %v6090_v40 = vor.u32 %v6089_v18, %v6086_v55  ;;  %v11604_v19 = vrot.slane %v6389_v30, 4  ;;  %v6616_v51 = vrot.slane %v6541_v8, 4  ;;  %v9432_v58 = vpop.f32.mrb[137].mxu1  ;;  %v5802_v17 = vsel %vm840_vm0, %v5800_v33, %v5801_v61  ;;  %v6206_v39 = vld [vmem:[#allocation2 + $0xd8] sm:$0xf] }
 0x37f   : > { %8306 = vmatprep.mubr.bf16.mxu0 %v11575_v15  ;;  %v6098_v13 = vor.u32 %v6097_v57, %v6094_v7  ;;  %v6617_v43 = vrot.slane %v6542_v50, 4  ;;  %v11610_v20 = vadd.f32 %v11563_v14, %v11557_v6  ;;  %v9434_v36 = vpop.f32.mrb[138].mxu1  ;;  %v6396_v3 = vrot.slane %v6394_v0, 3  ;;  %v6543_v9 = vld [vmem:[#allocation2 + $0xe0] sm:$0xf0] }
 0x380   : > { %8154 = vmatmul.mubr.bf16.gmra.mrb[232].mxu1 %v5799_v21  ;;  %v6399_v27 = vrot.slane %v6397_v60, 4  ;;  %v9533_v32 = vadd.f32 %v11581_v24, %v11579_v31  ;;  %v11616_v15 = vadd.f32 %v11569_v52, %v11566_v29  ;;  %v9435_v23 = vpop.f32.mrb[139].mxu1  ;;  %v6384_v59 = vsel %vm471_vm1, %v6375_v54, %v6383_v10  ;;  %v6544_v54 = vld [vmem:[#allocation2 + $0xe8] sm:$0xf]  ;;  %v5875_v57 = vld [vmem:[#allocation2 + $0xf0] sm:$0xf0] }
 0x381   : > { %8161 = vmatprep.mubr.bf16.mxu1 %v6082_v63  ;;  %v6099_v6 = vsel %vm953_vm2, %v6090_v40, %v6098_v13  ;;  %v6392_v14 = vor.u32 %v11604_v19, %v11600_v42  ;;  %v9536_v28 = vadd.f32 %v9535_v37, %v11585_v47  ;;  %v9537_v35 = vpop.f32.mrb[164].mxu0  ;;  %v11624_v31 = vsel %vm840_vm0, %v6616_v51, %v6617_v43  ;;  %v5876_v42 = vld [vmem:[#allocation2 + $0xf8] sm:$0x1f]  ;;  %v5729_v60 = vld [vmem:[#allocation2 + $0xe0] sm:$0xf0] }
 0x382   : > { %v11627_v29 = vadd.f32 %v9533_v32, %v11589_v1  ;;  %v5803_v52 = vrot.slane %v5727_v22, 4  ;;  %v6101_v24 = vshrl.u32 %v5873_v44, 16  ;;  %v9538_v26 = vpop.f32.mrb[165].mxu0  ;;  %v6104_v5 = vshll.u32 %v5873_v44, 16  ;;  %v6207_v51 = vld [vmem:[#allocation2 + $0xe0] sm:$0xf8] }
 0x383   : > { %v11629_v4 = vadd.f32 %v9536_v28, %v9424_v62  ;;  %v6109_v34 = vshrl.u32 %v5874_v25, 16  ;;  %v6112_v48 = vshll.u32 %v5874_v25, 16  ;;  %v9540_v47 = vpop.f32.mrb[166].mxu0  ;;  %v6400_v37 = vor.u32 %v6399_v27, %v6396_v3  ;;  %v5730_v22 = vld [vmem:[#allocation2 + $0xe8] sm:$0xf] }
 0x384   : > { %v5804_v16 = vrot.slane %v5728_v12, 4  ;;  %v6103_v21 = vrot.slane %v6101_v24, 4  ;;  %v6403_v63 = vshrl.u32 %v6205_v41, 16  ;;  %v9541_v33 = vpop.f32.mrb[167].mxu0  ;;  %v6106_v61 = vrot.slane %v6104_v5, 5 }
 0x385   : > { %v6111_v1 = vrot.slane %v6109_v34, 4  ;;  %v6114_v2 = vrot.slane %v6112_v48, 5  ;;  %v6406_v46 = vshll.u32 %v6205_v41, 16  ;;  %v6411_v10 = vshrl.u32 %v6206_v39, 16  ;;  %v6208_v44 = vld [vmem:[#allocation2 + $0xe8] sm:$0xf] }
 0x386   : > { %8307 = vmatmul.mubr.bf16.gmra.mrb[4].mxu0 %v6384_v59  ;;  %v6405_v45 = vrot.slane %v6403_v63, 3  ;;  %v6414_v62 = vshll.u32 %v6206_v39, 16  ;;  %v6619_v38 = vrot.slane %v6543_v9, 4  ;;  %v6107_v49 = vor.u32 %v6106_v61, %v6103_v21  ;;  %v6546_v41 = vld [vmem:[#allocation2 + $0xf8] sm:$0xf] }
 0x387   : > { %8314 = vmatprep.mubr.bf16.mxu0 %v11598_v53  ;;  %v6115_v11 = vor.u32 %v6114_v2, %v6111_v1  ;;  %v6408_v8 = vrot.slane %v6406_v46, 4  ;;  %v6620_v55 = vrot.slane %v6544_v54, 4  ;;  %v6413_v18 = vrot.slane %v6411_v10, 3  ;;  %v5731_v2 = vld [vmem:[#allocation2 + $0xf0] sm:$0xf0] }
 0x388   : > { %8162 = vmatmul.mubr.bf16.gmra.mrb[236].mxu1 %v5802_v17  ;;  %v6416_v30 = vrot.slane %v6414_v62, 4  ;;  %v11633_v50 = vadd.f32 %v9432_v58, %v11602_v56  ;;  %v9539_v7 = vadd.f32 %v9538_v26, %v9537_v35  ;;  %v6401_v0 = vsel %vm471_vm1, %v6392_v14, %v6400_v37  ;;  %v5877_v46 = vld [vmem:[#allocation2 + $0x100] sm:$0xf0] }
 0x389   : > { %8169 = vmatprep.mubr.bf16.mxu1 %v6099_v6  ;;  %v5805_v40 = vsel %vm840_vm0, %v5803_v52, %v5804_v16  ;;  %v6116_v53 = vsel %vm953_vm2, %v6107_v49, %v6115_v11  ;;  %v11638_v19 = vadd.f32 %v9435_v23, %v9434_v36  ;;  %v9437_v17 = vpop.f32.mrb[140].mxu1  ;;  %v6409_v13 = vor.u32 %v6408_v8, %v6405_v45  ;;  %v6545_v36 = vld [vmem:[#allocation2 + $0xf0] sm:$0xf0]  ;;  %v5878_v49 = vld [vmem:[#allocation2 + $0x108] sm:$0x1f] }
 0x38a   : > { %v11641_v43 = vsel %vm840_vm0, %v6619_v38, %v6620_v55  ;;  %v11644_v56 = vadd.f32 %v9539_v7, %v11610_v20  ;;  %v9542_v58 = vadd.f32 %v9541_v33, %v9540_v47  ;;  %v9438_v3 = vpop.f32.mrb[141].mxu1  ;;  %v6417_v27 = vor.u32 %v6416_v30, %v6413_v18  ;;  %v5732_v30 = vld [vmem:[#allocation2 + $0xf8] sm:$0xf]  ;;  %v6209_v7 = vld [vmem:[#allocation2 + $0xf0] sm:$0xf8] }
 0x38b   : > { %v6118_v32 = vshrl.u32 %v5875_v57, 16  ;;  %v6121_v25 = vshll.u32 %v5875_v57, 16  ;;  %v6126_v59 = vshrl.u32 %v5876_v42, 16  ;;  %v9440_v23 = vpop.f32.mrb[142].mxu1  ;;  %v5806_v14 = vrot.slane %v5729_v60, 4 }
 0x38c   : > { %v11647_v6 = vadd.f32 %v9542_v58, %v11616_v15  ;;  %v6129_v28 = vshll.u32 %v5876_v42, 16  ;;  %v6420_v12 = vshrl.u32 %v6207_v51, 16  ;;  %v9441_v35 = vpop.f32.mrb[143].mxu1  ;;  %v5807_v20 = vrot.slane %v5730_v22, 4  ;;  %v6547_v60 = vld [vmem:[#allocation2 + $0x100] sm:$0xf0] }
 0x38d   : > { %v6120_v52 = vrot.slane %v6118_v32, 4  ;;  %v6123_v24 = vrot.slane %v6121_v25, 5  ;;  %v6128_v39 = vrot.slane %v6126_v59, 4  ;;  %v6423_v34 = vshll.u32 %v6207_v51, 16  ;;  %v6548_v22 = vld [vmem:[#allocation2 + $0x108] sm:$0xf] }
 0x38e   : > { %8315 = vmatmul.mubr.bf16.gmra.mrb[8].mxu0 %v6401_v0  ;;  %v6131_v26 = vrot.slane %v6129_v28, 5  ;;  %v11649_v5 = vrot.slane %v6420_v12, 3  ;;  %v6428_v48 = vshrl.u32 %v6208_v44, 16  ;;  %v9543_v9 = vpop.f32.mrb[168].mxu0  ;;  %v6431_v47 = vshll.u32 %v6208_v44, 16 }
 0x38f   : > { %8322 = vmatprep.mubr.bf16.mxu0 %v11624_v31  ;;  %v6124_v15 = vor.u32 %v6123_v24, %v6120_v52  ;;  %v6622_v37 = vrot.slane %v6545_v36, 4  ;;  %v6623_v16 = vrot.slane %v6546_v41, 4  ;;  %v9544_v21 = vpop.f32.mrb[169].mxu0  ;;  %v6418_v63 = vsel %vm471_vm1, %v6409_v13, %v6417_v27  ;;  %v11672_v59 = vld [vmem:[#allocation2 + $0x100] sm:$0xf0] }
 0x390   : > { %8170 = vmatmul.mubr.bf16.gmra.mrb[240].mxu1 %v5805_v40  ;;  %v6132_v54 = vor.u32 %v6131_v26, %v6128_v39  ;;  %v11653_v33 = vrot.slane %v6423_v34, 4  ;;  %v11655_v61 = vadd.f32 %v9438_v3, %v9437_v17  ;;  %v9546_v1 = vpop.f32.mrb[170].mxu0  ;;  %v6430_v45 = vrot.slane %v6428_v48, 3  ;;  %v5734_v12 = vld [vmem:[#allocation2 + $0x108] sm:$0xf] }
 0x391   : > { %8177 = vmatprep.mubr.bf16.mxu1 %v6116_v53  ;;  %v6433_v10 = vrot.slane %v6431_v47, 4  ;;  %v9545_v31 = vadd.f32 %v9544_v21, %v9543_v9  ;;  %v11657_v62 = vadd.f32 %v9441_v35, %v9440_v23  ;;  %v9547_v38 = vpop.f32.mrb[171].mxu0  ;;  %v5808_v11 = vsel %vm840_vm0, %v5806_v14, %v5807_v20  ;;  %v6210_v53 = vld [vmem:[#allocation2 + $0xf8] sm:$0xf]  ;;  %v6211_v48 = vld [vmem:[#allocation2 + $0x100] sm:$0xf8] }
 0x392   : > { %v6133_v8 = vsel %vm953_vm2, %v6124_v15, %v6132_v54  ;;  %v11662_v55 = vsel %vm840_vm0, %v6622_v37, %v6623_v16  ;;  %v9548_v18 = vadd.f32 %v9547_v38, %v9546_v1  ;;  %v6426_v57 = vor.u32 %v11653_v33, %v11649_v5  ;;  %v6663_v16 = vld [vmem:[#allocation2 + $0x20] sm:$0xf0] }
 0x393   : > { %v11667_v42 = vadd.f32 %v9545_v31, %v11633_v50  ;;  %v5809_v0 = vrot.slane %v5731_v2, 4  ;;  %v6135_v40 = vshrl.u32 %v5877_v46, 16  ;;  %v6138_v17 = vshll.u32 %v5877_v46, 16 }
 0x394   : > { %v11670_v51 = vadd.f32 %v9548_v18, %v11638_v19  ;;  %v6143_v13 = vshrl.u32 %v5878_v49, 16  ;;  %v6146_v58 = vshll.u32 %v5878_v49, 16  ;;  %v6434_v44 = vor.u32 %v6433_v10, %v6430_v45  ;;  %v6664_v18 = vld [vmem:[#allocation2 + $0x28] sm:$0x1f] }
 0x395   : > { %v5810_v3 = vrot.slane %v5732_v30, 4  ;;  %v6137_v27 = vrot.slane %v6135_v40, 4  ;;  %v6437_v32 = vshrl.u32 %v6209_v7, 16  ;;  %v9443_v25 = vpop.f32.mrb[144].mxu1  ;;  %v6140_v50 = vrot.slane %v6138_v17, 5 }
 0x396   : > { %8323 = vmatmul.mubr.bf16.gmra.mrb[12].mxu0 %v6418_v63  ;;  %v6145_v36 = vrot.slane %v6143_v13, 4  ;;  %v6148_v23 = vrot.slane %v6146_v58, 5  ;;  %v6440_v14 = vshll.u32 %v6209_v7, 16  ;;  %v9444_v28 = vpop.f32.mrb[145].mxu1  ;;  %v6445_v41 = vshrl.u32 %v6210_v53, 16 }
 0x397   : > { %8330 = vmatprep.mubr.bf16.mxu0 %v11641_v43  ;;  %v6439_v19 = vrot.slane %v6437_v32, 3  ;;  %v6448_v35 = vshll.u32 %v6210_v53, 16  ;;  %v6625_v20 = vrot.slane %v6547_v60, 4  ;;  %v9446_v52 = vpop.f32.mrb[146].mxu1  ;;  %v6141_v24 = vor.u32 %v6140_v50, %v6137_v27  ;;  %v6212_v43 = vld [vmem:[#allocation2 + $0x108] sm:$0xf] }
 0x398   : > { %8178 = vmatmul.mubr.bf16.gmra.mrb[244].mxu1 %v5808_v11  ;;  %v6149_v39 = vor.u32 %v6148_v23, %v6145_v36  ;;  %v6442_v26 = vrot.slane %v6440_v14, 4  ;;  %v6626_v5 = vrot.slane %v6548_v22, 4  ;;  %v9447_v34 = vpop.f32.mrb[147].mxu1  ;;  %v6447_v9 = vrot.slane %v6445_v41, 3  ;;  %v11687_v22 = vld [vmem:[#allocation2 + $0x110] sm:$0xf0] }
 0x399   : > { %8185 = vmatprep.mubr.bf16.mxu1 %v6133_v8  ;;  %v6450_v15 = vrot.slane %v6448_v35, 4  ;;  %v11675_v47 = vadd.f32 %v9444_v28, %v9443_v25  ;;  %v11677_v37 = vadd.f32 %v9447_v34, %v9446_v52  ;;  %v6435_v21 = vsel %vm471_vm1, %v6426_v57, %v6434_v44  ;;  %v9549_v33 = vpop.f32.mrb[172].mxu0  ;;  %v6665_v44 = vld [vmem:[#allocation2 + $0x30] sm:$0xf0]  ;;  %v6550_v14 = vld [vmem:[#allocation2 + $0x118] sm:$0xf] }
 0x39a   : > { %v5811_v63 = vsel %vm840_vm0, %v5809_v0, %v5810_v3  ;;  %v6443_v54 = vor.u32 %v6442_v26, %v6439_v19  ;;  %v5812_v1 = vrot.slane %v11672_v59, 4  ;;  %v9550_v46 = vpop.f32.mrb[173].mxu0  ;;  %v5813_v45 = vrot.slane %v5734_v12, 4  ;;  %v6666_v59 = vld [vmem:[#allocation2 + $0x38] sm:$0x1f] }
 0x39b   : > { %v6451_v2 = vor.u32 %v6450_v15, %v6447_v9  ;;  %v6454_v10 = vshrl.u32 %v6211_v48, 16  ;;  %v6457_v31 = vshll.u32 %v6211_v48, 16  ;;  %v9551_v38 = vadd.f32 %v9550_v46, %v9549_v33  ;;  %v9552_v49 = vpop.f32.mrb[174].mxu0  ;;  %v6213_v28 = vld [vmem:[#allocation2 + $0x110] sm:$0xf8] }
 0x39c   : > { %v6462_v11 = vshrl.u32 %v6212_v43, 16  ;;  %v6465_v8 = vshll.u32 %v6212_v43, 16  ;;  %v6696_v30 = vshrl.u32 %v6663_v16, 16  ;;  %v6150_v7 = vsel %vm953_vm2, %v6141_v24, %v6149_v39  ;;  %v9553_v0 = vpop.f32.mrb[175].mxu0  ;;  %v6667_v33 = vld [vmem:[#allocation2 + $0x40] sm:$0xf0] }
 0x39d   : > { %v6627_v57 = vsel %vm840_vm0, %v6625_v20, %v6626_v5  ;;  %v6456_v40 = vrot.slane %v6454_v10, 3  ;;  %v6459_v53 = vrot.slane %v6457_v31, 4  ;;  %v11685_v60 = vadd.f32 %v9551_v38, %v11655_v61  ;;  %v6214_v20 = vld [vmem:[#allocation2 + $0x118] sm:$0xf] }
 0x39e   : > { %8331 = vmatmul.mubr.bf16.gmra.mrb[16].mxu0 %v6435_v21  ;;  %v9554_v17 = vadd.f32 %v9553_v0, %v9552_v49  ;;  %v6464_v13 = vrot.slane %v6462_v11, 3  ;;  %v6467_v58 = vrot.slane %v6465_v8, 4  ;;  %v6452_v3 = vsel %vm471_vm1, %v6443_v54, %v6451_v2  ;;  %v6668_v8 = vld [vmem:[#allocation2 + $0x48] sm:$0x1f] }
 0x39f   : > { %8338 = vmatprep.mubr.bf16.mxu0 %v11662_v55  ;;  %v6698_v27 = vrot.slane %v6696_v30, 4  ;;  %v6699_v32 = vshll.u32 %v6663_v16, 16  ;;  %v6704_v25 = vshrl.u32 %v6664_v18, 16  ;;  %v5814_v61 = vsel %vm840_vm0, %v5812_v1, %v5813_v45 }
 0x3a0   : > { %8186 = vmatmul.mubr.bf16.gmra.mrb[248].mxu1 %v5811_v63  ;;  %v11692_v50 = vadd.f32 %v9554_v17, %v11657_v62  ;;  %v6460_v36 = vor.u32 %v6459_v53, %v6456_v40  ;;  %v6707_v23 = vshll.u32 %v6664_v18, 16  ;;  %v6468_v12 = vor.u32 %v6467_v58, %v6464_v13 }
 0x3a1   : > { %8193 = vmatprep.mubr.bf16.mxu1 %v6150_v7  ;;  %v6701_v19 = vrot.slane %v6699_v32, 5  ;;  %v6706_v55 = vrot.slane %v6704_v25, 4  ;;  %v9449_v41 = vpop.f32.mrb[148].mxu1  ;;  %v6713_v35 = vshrl.u32 %v6665_v44, 16  ;;  %v6628_v39 = vrot.slane %v11687_v22, 4 }
 0x3a2   : > { %v6709_v52 = vrot.slane %v6707_v23, 5  ;;  %v9450_v24 = vpop.f32.mrb[149].mxu1  ;;  %v6716_v26 = vshll.u32 %v6665_v44, 16  ;;  %v6721_v62 = vshrl.u32 %v6666_v59, 16  ;;  %v6629_v9 = vrot.slane %v6550_v14, 4 }
 0x3a3   : > { %v6702_v5 = vor.u32 %v6701_v19, %v6698_v27  ;;  %v11696_v34 = vadd.f32 %v9450_v24, %v9449_v41  ;;  %v9452_v48 = vpop.f32.mrb[150].mxu1  ;;  %v6715_v15 = vrot.slane %v6713_v35, 4  ;;  %v6724_v54 = vshll.u32 %v6666_v59, 16  ;;  %v6669_v44 = vld [vmem:[#allocation2 + $0x50] sm:$0xf0] }
 0x3a4   : > { %v6710_v43 = vor.u32 %v6709_v52, %v6706_v55  ;;  %v9453_v16 = vpop.f32.mrb[151].mxu1  ;;  %v6718_v21 = vrot.slane %v6716_v26, 5  ;;  %v6723_v63 = vrot.slane %v6721_v62, 4  ;;  %v6471_v2 = vshrl.u32 %v6213_v28, 16  ;;  %v6672_v62 = vld [vmem:[#allocation2 + $0x68] sm:$0x1f] }
 0x3a5   : > { %v11698_v1 = vadd.f32 %v9453_v16, %v9452_v48  ;;  %v6474_v46 = vshll.u32 %v6213_v28, 16  ;;  %v6479_v45 = vshrl.u32 %v6214_v20, 16  ;;  %v6469_v10 = vsel %vm471_vm1, %v6460_v36, %v6468_v12  ;;  %v6670_v28 = vld [vmem:[#allocation2 + $0x58] sm:$0x1f]  ;;  %v6671_v12 = vld [vmem:[#allocation2 + $0x60] sm:$0xf0] }
 0x3a6   : > { %8339 = vmatmul.mubr.bf16.gmra.mrb[20].mxu0 %v6452_v3  ;;  %v6711_v31 = vsel %vm953_vm2, %v6702_v5, %v6710_v43  ;;  %v9555_v38 = vpop.f32.mrb[176].mxu0  ;;  %v6726_v49 = vrot.slane %v6724_v54, 5  ;;  %v6482_v11 = vshll.u32 %v6214_v20, 16  ;;  %v6719_v30 = vor.u32 %v6718_v21, %v6715_v15 }
 0x3a7   : > { %8346 = vmatprep.mubr.bf16.mxu0 %v6627_v57  ;;  %v9556_v18 = vpop.f32.mrb[177].mxu0  ;;  %v11702_v7 = vrot.slane %v6471_v2, 3  ;;  %v11704_v0 = vrot.slane %v6474_v46, 4  ;;  %v6730_v40 = vshrl.u32 %v6667_v33, 16  ;;  %v6481_v58 = vrot.slane %v6479_v45, 3 }
 0x3a8   : > { %8194 = vmatmul.mubr.bf16.gmra.mrb[252].mxu1 %v5814_v61  ;;  %v9557_v53 = vadd.f32 %v9556_v18, %v9555_v38  ;;  %v9558_v17 = vpop.f32.mrb[178].mxu0  ;;  %v6727_v13 = vor.u32 %v6726_v49, %v6723_v63  ;;  %v6733_v22 = vshll.u32 %v6667_v33, 16  ;;  %v6484_v27 = vrot.slane %v6482_v11, 4  ;;  %v6673_v33 = vld [vmem:[#allocation2 + $0x70] sm:$0xf0] }
 0x3a9   : > { %9939 = vmatprep.mubr.bf16.mxu1 %v6711_v31  ;;  %v9559_v3 = vpop.f32.mrb[179].mxu0  ;;  %v6732_v32 = vrot.slane %v6730_v40, 4  ;;  %v6738_v25 = vshrl.u32 %v6668_v8, 16  ;;  %v6741_v57 = vshll.u32 %v6668_v8, 16  ;;  %v6630_v23 = vsel %vm840_vm0, %v6628_v39, %v6629_v9 }
 0x3aa   : > { %v11707_v59 = vadd.f32 %v9557_v53, %v11675_v47  ;;  %v9560_v36 = vadd.f32 %v9559_v3, %v9558_v17  ;;  %v6477_v61 = vor.u32 %v11704_v0, %v11702_v7  ;;  %v9455_v14 = vpop.f32.mrb[152].mxu1  ;;  %v6735_v19 = vrot.slane %v6733_v22, 5  ;;  %v6675_v3 = vld [vmem:[#allocation2 + $0x80] sm:$0xf0] }
 0x3ab   : > { %v6740_v55 = vrot.slane %v6738_v25, 4  ;;  %v6743_v41 = vrot.slane %v6741_v57, 5  ;;  %v9456_v35 = vpop.f32.mrb[153].mxu1  ;;  %v6747_v20 = vshrl.u32 %v6669_v44, 16  ;;  %v6728_v47 = vsel %vm953_vm2, %v6719_v30, %v6727_v13  ;;  %v6674_v30 = vld [vmem:[#allocation2 + $0x78] sm:$0x1f] }
 0x3ac   : > { %v11713_v52 = vadd.f32 %v9560_v36, %v11677_v37  ;;  %v11716_v24 = vadd.f32 %v9456_v35, %v9455_v14  ;;  %v9458_v26 = vpop.f32.mrb[154].mxu1  ;;  %v6750_v39 = vshll.u32 %v6669_v44, 16  ;;  %v6485_v5 = vor.u32 %v6484_v27, %v6481_v58 }
 0x3ad   : > { %v6736_v48 = vor.u32 %v6735_v19, %v6732_v32  ;;  %v6744_v9 = vor.u32 %v6743_v41, %v6740_v55  ;;  %v9459_v15 = vpop.f32.mrb[155].mxu1  ;;  %v6755_v43 = vshrl.u32 %v6670_v28, 16  ;;  %v6749_v63 = vrot.slane %v6747_v20, 4 }
 0x3ae   : > { %8347 = vmatmul.mubr.bf16.gmra.mrb[24].mxu0 %v6469_v10  ;;  %v9561_v16 = vpop.f32.mrb[180].mxu0  ;;  %v11718_v21 = vadd.f32 %v9459_v15, %v9458_v26  ;;  %v6758_v54 = vshll.u32 %v6670_v28, 16  ;;  %v6764_v37 = vshrl.u32 %v6671_v12, 16  ;;  %v6752_v46 = vrot.slane %v6750_v39, 5  ;;  %v6678_v26 = vld [vmem:[#allocation2 + $0x98] sm:$0x1f] }
 0x3af   : > { %8354 = vmatprep.mubr.bf16.mxu0 %v6630_v23  ;;  %v9562_v2 = vpop.f32.mrb[181].mxu0  ;;  %v6757_v45 = vrot.slane %v6755_v43, 4  ;;  %v6767_v31 = vshll.u32 %v6671_v12, 16  ;;  %v6772_v38 = vshrl.u32 %v6672_v62, 16  ;;  %v6745_v49 = vsel %vm953_vm2, %v6736_v48, %v6744_v9  ;;  %v6676_v23 = vld [vmem:[#allocation2 + $0x88] sm:$0x1f] }
 0x3b0   : > { %9940 = vmatmul.mubr.bf16.vlgmr.msra.gmra.mrb[0].mxu1 %v6728_v47  ;;  %v9563_v11 = vadd.f32 %v9562_v2, %v9561_v16  ;;  %v9564_v8 = vpop.f32.mrb[182].mxu0  ;;  %v6760_v18 = vrot.slane %v6758_v54, 5  ;;  %v6766_v10 = vrot.slane %v6764_v37, 4  ;;  %v6775_v53 = vshll.u32 %v6672_v62, 16 }
 0x3b1   : > { %9943 = vmatprep.mubr.bf16.mxu1 %v6745_v49  ;;  %v9565_v7 = vpop.f32.mrb[183].mxu0  ;;  %v6769_v0 = vrot.slane %v6767_v31, 5  ;;  %v6774_v40 = vrot.slane %v6772_v38, 4  ;;  %v6781_v17 = vshrl.u32 %v6673_v33, 16  ;;  %v6486_v13 = vsel %vm471_vm1, %v6477_v61, %v6485_v5  ;;  %v6677_v61 = vld [vmem:[#allocation2 + $0x90] sm:$0xf0] }
 0x3b2   : > { %v11723_v58 = vadd.f32 %v9563_v11, %v11696_v34  ;;  %v9566_v22 = vadd.f32 %v9565_v7, %v9564_v8  ;;  %v6784_v44 = vshll.u32 %v6673_v33, 16  ;;  %v6753_v27 = vor.u32 %v6752_v46, %v6749_v63  ;;  %v6679_v8 = vld [vmem:[#allocation2 + $0xa0] sm:$0xf0] }
 0x3b3   : > { %v6761_v32 = vor.u32 %v6760_v18, %v6757_v45  ;;  %v6777_v25 = vrot.slane %v6775_v53, 5  ;;  %v9461_v57 = vpop.f32.mrb[156].mxu1  ;;  %v6789_v36 = vshrl.u32 %v6674_v30, 16  ;;  %v6770_v28 = vor.u32 %v6769_v0, %v6766_v10  ;;  %v6680_v0 = vld [vmem:[#allocation2 + $0xa8] sm:$0x1f] }
 0x3b4   : > { %v11726_v14 = vadd.f32 %v9566_v22, %v11698_v1  ;;  %v9462_v12 = vpop.f32.mrb[157].mxu1  ;;  %v6783_v19 = vrot.slane %v6781_v17, 4  ;;  %v6792_v55 = vshll.u32 %v6674_v30, 16  ;;  %v6786_v20 = vrot.slane %v6784_v44, 5 }
 0x3b5   : > { %v6778_v41 = vor.u32 %v6777_v25, %v6774_v40  ;;  %v11728_v34 = vadd.f32 %v9462_v12, %v9461_v57  ;;  %v9464_v35 = vpop.f32.mrb[158].mxu1  ;;  %v6798_v47 = vshrl.u32 %v6675_v3, 16  ;;  %v6791_v62 = vrot.slane %v6789_v36, 4 }
 0x3b6   : > { %8355 = vmatmul.mubr.bf16.gmra.mrb[28].mxu0 %v6486_v13  ;;  %v9465_v39 = vpop.f32.mrb[159].mxu1  ;;  %v6794_v5 = vrot.slane %v6792_v55, 5  ;;  %v6801_v48 = vshll.u32 %v6675_v3, 16  ;;  %v6806_v9 = vshrl.u32 %v6676_v23, 16  ;;  %v6762_v1 = vsel %vm953_vm2, %v6753_v27, %v6761_v32  ;;  %v6681_v55 = vld [vmem:[#allocation2 + $0xb0] sm:$0xf0] }
 0x3b7   : > { %v9567_v15 = vpop.f32.mrb[184].mxu0  ;;  %v11731_v43 = vadd.f32 %v9465_v39, %v9464_v35  ;;  %v6800_v16 = vrot.slane %v6798_v47, 4  ;;  %v6809_v63 = vshll.u32 %v6676_v23, 16  ;;  %v6779_v54 = vsel %vm953_vm2, %v6770_v28, %v6778_v41 }
 0x3b8   : > { %9944 = vmatmul.mubr.bf16.gmra.mrb[4].mxu1 %v6762_v1  ;;  %v9568_v37 = vpop.f32.mrb[185].mxu0  ;;  %v6803_v33 = vrot.slane %v6801_v48, 5  ;;  %v6808_v2 = vrot.slane %v6806_v9, 4  ;;  %v6815_v46 = vshrl.u32 %v6677_v61, 16  ;;  %v6818_v49 = vshll.u32 %v6677_v61, 16 }
 0x3b9   : > { %9947 = vmatprep.mubr.bf16.mxu1 %v6779_v54  ;;  %v9569_v45 = vadd.f32 %v9568_v37, %v9567_v15  ;;  %v9570_v31 = vpop.f32.mrb[186].mxu0  ;;  %v6811_v38 = vrot.slane %v6809_v63, 5  ;;  %v6823_v11 = vshrl.u32 %v6678_v26, 16  ;;  %v6787_v10 = vor.u32 %v6786_v20, %v6783_v19  ;;  %v6682_v61 = vld [vmem:[#allocation2 + $0xb8] sm:$0x1f] }
 0x3ba   : > { %v9571_v18 = vpop.f32.mrb[187].mxu0  ;;  %v6795_v30 = vor.u32 %v6794_v5, %v6791_v62  ;;  %v6826_v7 = vshll.u32 %v6678_v26, 16  ;;  %v6804_v17 = vor.u32 %v6803_v33, %v6800_v16  ;;  %v6817_v13 = vrot.slane %v6815_v46, 4  ;;  %v6683_v5 = vld [vmem:[#allocation2 + $0xc0] sm:$0xf0] }
 0x3bb   : > { %v11735_v40 = vadd.f32 %v9569_v45, %v11716_v24  ;;  %v9572_v53 = vadd.f32 %v9571_v18, %v9570_v31  ;;  %v6812_v22 = vor.u32 %v6811_v38, %v6808_v2  ;;  %v6820_v3 = vrot.slane %v6818_v49, 5  ;;  %v6684_v63 = vld [vmem:[#allocation2 + $0xc8] sm:$0x1f] }
 0x3bc   : > { %v9467_v44 = vpop.f32.mrb[160].mxu1  ;;  %v6832_v27 = vshrl.u32 %v6679_v8, 16  ;;  %v6835_v32 = vshll.u32 %v6679_v8, 16  ;;  %v6825_v36 = vrot.slane %v6823_v11, 4  ;;  %v6828_v23 = vrot.slane %v6826_v7, 5 }
 0x3bd   : > { %v11738_v25 = vadd.f32 %v9572_v53, %v11718_v21  ;;  %v9468_v57 = vpop.f32.mrb[161].mxu1  ;;  %v6840_v28 = vshrl.u32 %v6680_v0, 16  ;;  %v6796_v12 = vsel %vm953_vm2, %v6787_v10, %v6795_v30  ;;  %v6843_v26 = vshll.u32 %v6680_v0, 16  ;;  %v6685_v30 = vld [vmem:[#allocation2 + $0xd0] sm:$0xf0] }
 0x3be   : > { %v11741_v19 = vadd.f32 %v9468_v57, %v9467_v44  ;;  %v9470_v24 = vpop.f32.mrb[162].mxu1  ;;  %v6834_v35 = vrot.slane %v6832_v27, 4  ;;  %v6837_v20 = vrot.slane %v6835_v32, 5  ;;  %v6813_v21 = vsel %vm953_vm2, %v6804_v17, %v6812_v22  ;;  %v6687_v57 = vld [vmem:[#allocation2 + $0xe0] sm:$0xf0] }
 0x3bf   : > { %v9471_v41 = vpop.f32.mrb[163].mxu1  ;;  %v6842_v47 = vrot.slane %v6840_v28, 4  ;;  %v6821_v9 = vor.u32 %v6820_v3, %v6817_v13  ;;  %v6829_v1 = vor.u32 %v6828_v23, %v6825_v36  ;;  %v6845_v15 = vrot.slane %v6843_v26, 5  ;;  %v6686_v13 = vld [vmem:[#allocation2 + $0xd8] sm:$0x1f] }
 0x3c0   : > { %9948 = vmatmul.mubr.bf16.gmra.mrb[8].mxu1 %v6796_v12  ;;  %v9573_v39 = vpop.f32.mrb[188].mxu0  ;;  %v11744_v62 = vadd.f32 %v9471_v41, %v9470_v24  ;;  %v6849_v16 = vshrl.u32 %v6681_v55, 16  ;;  %v6852_v33 = vshll.u32 %v6681_v55, 16  ;;  %v6857_v2 = vshrl.u32 %v6682_v61, 16  ;;  %v6688_v24 = vld [vmem:[#allocation2 + $0xe8] sm:$0x1f] }
 0x3c1   : > { %9951 = vmatprep.mubr.bf16.mxu1 %v6813_v21  ;;  %v9574_v48 = vpop.f32.mrb[189].mxu0  ;;  %v6860_v46 = vshll.u32 %v6682_v61, 16  ;;  %v6838_v31 = vor.u32 %v6837_v20, %v6834_v35  ;;  %v6846_v38 = vor.u32 %v6845_v15, %v6842_v47  ;;  %v6866_v49 = vshrl.u32 %v6683_v5, 16 }
 0x3c2   : > { %v9575_v54 = vadd.f32 %v9574_v48, %v9573_v39  ;;  %v9576_v37 = vpop.f32.mrb[190].mxu0  ;;  %v6869_v11 = vshll.u32 %v6683_v5, 16  ;;  %v6874_v10 = vshrl.u32 %v6684_v63, 16  ;;  %v6830_v7 = vsel %vm953_vm2, %v6821_v9, %v6829_v1 }
 0x3c3   : > { %v9577_v45 = vpop.f32.mrb[191].mxu0  ;;  %v6851_v53 = vrot.slane %v6849_v16, 4  ;;  %v6877_v17 = vshll.u32 %v6684_v63, 16  ;;  %v6854_v3 = vrot.slane %v6852_v33, 5  ;;  %v6859_v27 = vrot.slane %v6857_v2, 4 }
 0x3c4   : > { %v11747_v8 = vadd.f32 %v9575_v54, %v11728_v34  ;;  %v9578_v18 = vadd.f32 %v9577_v45, %v9576_v37  ;;  %v6862_v32 = vrot.slane %v6860_v46, 5  ;;  %v6847_v34 = vsel %vm953_vm2, %v6838_v31, %v6846_v38 }
 0x3c5   : > { %v9473_v0 = vpop.f32.mrb[164].mxu1  ;;  %v6868_v28 = vrot.slane %v6866_v49, 4  ;;  %v6871_v12 = vrot.slane %v6869_v11, 5  ;;  %v6876_v61 = vrot.slane %v6874_v10, 4  ;;  %v6879_v41 = vrot.slane %v6877_v17, 5 }
 0x3c6   : > { %v11751_v22 = vadd.f32 %v9578_v18, %v11731_v43  ;;  %v9474_v44 = vpop.f32.mrb[165].mxu1  ;;  %v6883_v35 = vshrl.u32 %v6685_v30, 16  ;;  %v6886_v43 = vshll.u32 %v6685_v30, 16  ;;  %v6891_v26 = vshrl.u32 %v6686_v13, 16 }
 0x3c7   : > { %v11754_v36 = vadd.f32 %v9474_v44, %v9473_v0  ;;  %v9476_v23 = vpop.f32.mrb[166].mxu1  ;;  %v6894_v21 = vshll.u32 %v6686_v13, 16  ;;  %v6855_v5 = vor.u32 %v6854_v3, %v6851_v53  ;;  %v6900_v48 = vshrl.u32 %v6687_v57, 16  ;;  %v6690_v3 = vld [vmem:[#allocation2 + $0xf8] sm:$0x1f] }
 0x3c8   : > { %9952 = vmatmul.mubr.bf16.gmra.mrb[12].mxu1 %v6830_v7  ;;  %v9477_v55 = vpop.f32.mrb[167].mxu1  ;;  %v6903_v9 = vshll.u32 %v6687_v57, 16  ;;  %v6863_v16 = vor.u32 %v6862_v32, %v6859_v27  ;;  %v6908_v63 = vshrl.u32 %v6688_v24, 16  ;;  %v6911_v54 = vshll.u32 %v6688_v24, 16  ;;  %v6689_v7 = vld [vmem:[#allocation2 + $0xf0] sm:$0xf0] }
 0x3c9   : > { %9955 = vmatprep.mubr.bf16.mxu1 %v6847_v34  ;;  %v9579_v20 = vpop.f32.mrb[192].mxu0  ;;  %v11756_v47 = vadd.f32 %v9477_v55, %v9476_v23  ;;  %v6872_v33 = vor.u32 %v6871_v12, %v6868_v28  ;;  %v6880_v2 = vor.u32 %v6879_v41, %v6876_v61  ;;  %v6885_v46 = vrot.slane %v6883_v35, 4  ;;  %v6691_v57 = vld [vmem:[#allocation2 + $0x100] sm:$0xf0] }
 0x3ca   : > { %v9580_v39 = vpop.f32.mrb[193].mxu0  ;;  %v6888_v45 = vrot.slane %v6886_v43, 5  ;;  %v6893_v49 = vrot.slane %v6891_v26, 4  ;;  %v6896_v11 = vrot.slane %v6894_v21, 5  ;;  %v6902_v10 = vrot.slane %v6900_v48, 4 }
 0x3cb   : > { %v9581_v1 = vadd.f32 %v9580_v39, %v9579_v20  ;;  %v9582_v15 = vpop.f32.mrb[194].mxu0  ;;  %v6905_v30 = vrot.slane %v6903_v9, 5  ;;  %v6864_v53 = vsel %vm953_vm2, %v6855_v5, %v6863_v16  ;;  %v6910_v13 = vrot.slane %v6908_v63, 4 }
 0x3cc   : > { %v9583_v37 = vpop.f32.mrb[195].mxu0  ;;  %v6913_v44 = vrot.slane %v6911_v54, 5  ;;  %v6889_v23 = vor.u32 %v6888_v45, %v6885_v46  ;;  %v6897_v28 = vor.u32 %v6896_v11, %v6893_v49  ;;  %v6917_v12 = vshrl.u32 %v6689_v7, 16  ;;  %v6693_v54 = vld [vmem:[#allocation2 + $0x110] sm:$0xf0] }
 0x3cd   : > { %v11759_v31 = vadd.f32 %v9581_v1, %v11741_v19  ;;  %v9584_v38 = vadd.f32 %v9583_v37, %v9582_v15  ;;  %v6881_v19 = vsel %vm953_vm2, %v6872_v33, %v6880_v2  ;;  %v6906_v61 = vor.u32 %v6905_v30, %v6902_v10  ;;  %v6694_v45 = vld [vmem:[#allocation2 + $0x118] sm:$0x1f] }
 0x3ce   : > { %v9479_v18 = vpop.f32.mrb[168].mxu1  ;;  %v6920_v41 = vshll.u32 %v6689_v7, 16  ;;  %v6925_v35 = vshrl.u32 %v6690_v3, 16  ;;  %v6914_v20 = vor.u32 %v6913_v44, %v6910_v13  ;;  %v6928_v26 = vshll.u32 %v6690_v3, 16 }
 0x3cf   : > { %v11762_v0 = vadd.f32 %v9584_v38, %v11744_v62  ;;  %v9480_v17 = vpop.f32.mrb[169].mxu1  ;;  %v6692_v62 = vld [vmem:[#allocation2 + $0x108] sm:$0x1f]  ;;  %v6934_v21 = vshrl.u32 %v6691_v57, 16  ;;  %v6937_v39 = vshll.u32 %v6691_v57, 16  ;;  %v6898_v16 = vsel %vm953_vm2, %v6889_v23, %v6897_v28 }
 0x3d0   : > { %9956 = vmatmul.mubr.bf16.gmra.mrb[16].mxu1 %v6864_v53  ;;  %v11766_v27 = vadd.f32 %v9480_v17, %v9479_v18  ;;  %v9482_v32 = vpop.f32.mrb[170].mxu1  ;;  %v6942_v9 = vshrl.u32 %v6692_v62, 16  ;;  %v6945_v1 = vshll.u32 %v6692_v62, 16  ;;  %v6919_v63 = vrot.slane %v6917_v12, 4 }
 0x3d1   : > { %9959 = vmatprep.mubr.bf16.mxu1 %v6881_v19  ;;  %v9483_v34 = vpop.f32.mrb[171].mxu1  ;;  %v6922_v2 = vrot.slane %v6920_v41, 5  ;;  %v6927_v46 = vrot.slane %v6925_v35, 4  ;;  %v6915_v38 = vsel %vm953_vm2, %v6906_v61, %v6914_v20  ;;  %v6930_v11 = vrot.slane %v6928_v26, 5 }
 0x3d2   : > { %v9585_v24 = vpop.f32.mrb[196].mxu0  ;;  %v9484_v55 = vadd.f32 %v9483_v34, %v9482_v32  ;;  %v6936_v18 = vrot.slane %v6934_v21, 4  ;;  %v6939_v10 = vrot.slane %v6937_v39, 5  ;;  %v6944_v53 = vrot.slane %v6942_v9, 4 }
 0x3d3   : > { %v9586_v43 = vpop.f32.mrb[197].mxu0  ;;  %v6947_v17 = vrot.slane %v6945_v1, 5  ;;  %v6951_v13 = vshrl.u32 %v6693_v54, 16  ;;  %v6954_v3 = vshll.u32 %v6693_v54, 16  ;;  %v6959_v19 = vshrl.u32 %v6694_v45, 16 }
 0x3d4   : > { %v9587_v5 = vadd.f32 %v9586_v43, %v9585_v24  ;;  %v9588_v48 = vpop.f32.mrb[198].mxu0  ;;  %v6962_v32 = vshll.u32 %v6694_v45, 16  ;;  %v6923_v28 = vor.u32 %v6922_v2, %v6919_v63  ;;  %v6931_v12 = vor.u32 %v6930_v11, %v6927_v46 }
 0x3d5   : > { %v9589_v15 = vpop.f32.mrb[199].mxu0  ;;  %v6940_v24 = vor.u32 %v6939_v10, %v6936_v18  ;;  %v6953_v61 = vrot.slane %v6951_v13, 4  ;;  %v6956_v43 = vrot.slane %v6954_v3, 5  ;;  %v6961_v20 = vrot.slane %v6959_v19, 4 }
 0x3d6   : > { %v11770_v37 = vadd.f32 %v9587_v5, %v11754_v36  ;;  %v9590_v33 = vadd.f32 %v9589_v15, %v9588_v48  ;;  %v6964_v26 = vrot.slane %v6962_v32, 5  ;;  %v6932_v48 = vsel %vm953_vm2, %v6923_v28, %v6931_v12 }
 0x3d7   : > { %v9485_v49 = vpop.f32.mrb[172].mxu1  ;;  %v6957_v63 = vor.u32 %v6956_v43, %v6953_v61 }
 0x3d8   : > { %v11774_v30 = vadd.f32 %v9590_v33, %v11756_v47  ;;  %9960 = vmatmul.mubr.bf16.gmra.mrb[20].mxu1 %v6898_v16  ;;  %v9486_v7 = vpop.f32.mrb[173].mxu1  ;;  %v6948_v47 = vor.u32 %v6947_v17, %v6944_v53  ;;  %v6965_v54 = vor.u32 %v6964_v26, %v6961_v20 }
 0x3d9   : > { %9963 = vmatprep.mubr.bf16.mxu1 %v6915_v38  ;;  %v9487_v36 = vadd.f32 %v9486_v7, %v9485_v49  ;;  %v9488_v44 = vpop.f32.mrb[174].mxu1 }
 0x3da   : > { %v9489_v57 = vpop.f32.mrb[175].mxu1  ;;  %v6949_v9 = vsel %vm953_vm2, %v6940_v24, %v6948_v47  ;;  %v6966_v49 = vsel %vm953_vm2, %v6957_v63, %v6965_v54 }
 0x3db   : > { %v9591_v34 = vpop.f32.mrb[200].mxu0  ;;  %v9490_v23 = vadd.f32 %v9489_v57, %v9488_v44 }
 0x3dc   : > { %v9592_v62 = vpop.f32.mrb[201].mxu0 }
 0x3dd   : > { %v9593_v41 = vadd.f32 %v9592_v62, %v9591_v34  ;;  %v9594_v35 = vpop.f32.mrb[202].mxu0 }
 0x3de   : > { %v9595_v21 = vpop.f32.mrb[203].mxu0 }
 0x3df   : > { %v11777_v39 = vadd.f32 %v9593_v41, %v11766_v27  ;;  %v9596_v5 = vadd.f32 %v9595_v21, %v9594_v35 }
 0x3e0   : > { %9964 = vmatmul.mubr.bf16.gmra.mrb[24].mxu1 %v6932_v48  ;;  %v9491_v1 = vpop.f32.mrb[176].mxu1 }
 0x3e1   : > { %v11781_v15 = vadd.f32 %v9596_v5, %v9484_v55  ;;  %9967 = vmatprep.mubr.bf16.mxu1 %v6949_v9  ;;  %v9492_v16 = vpop.f32.mrb[177].mxu1 }
 0x3e2   : > { %v9493_v33 = vadd.f32 %v9492_v16, %v9491_v1  ;;  %v9494_v2 = vpop.f32.mrb[178].mxu1 }
 0x3e3   : > { %v9495_v46 = vpop.f32.mrb[179].mxu1 }
 0x3e4   : > { %v9597_v45 = vpop.f32.mrb[204].mxu0  ;;  %v9496_v38 = vadd.f32 %v9495_v46, %v9494_v2 }
 0x3e5   : > { %v9598_v27 = vpop.f32.mrb[205].mxu0 }
 0x3e6   : > { %v9599_v11 = vadd.f32 %v9598_v27, %v9597_v45  ;;  %v9600_v18 = vpop.f32.mrb[206].mxu0 }
 0x3e7   : > { %v9601_v10 = vpop.f32.mrb[207].mxu0 }
 0x3e8   : > { %v11784_v7 = vadd.f32 %v9599_v11, %v9487_v36  ;;  %v9602_v53 = vadd.f32 %v9601_v10, %v9600_v18  ;;  %9968 = vmatmul.mubr.bf16.gmra.mrb[28].mxu1 %v6966_v49 }
 0x3e9   : > { %v9497_v55 = vpop.f32.mrb[180].mxu1 }
 0x3ea   : > { %v11786_v17 = vadd.f32 %v9602_v53, %v9490_v23  ;;  %v9498_v13 = vpop.f32.mrb[181].mxu1 }
 0x3eb   : > { %v9499_v44 = vadd.f32 %v9498_v13, %v9497_v55  ;;  %v9500_v3 = vpop.f32.mrb[182].mxu1 }
 0x3ec   : > { %v9501_v19 = vpop.f32.mrb[183].mxu1 }
 0x3ed   : > { %v9603_v32 = vpop.f32.mrb[208].mxu0  ;;  %v9502_v57 = vadd.f32 %v9501_v19, %v9500_v3 }
 0x3ee   : > { %v9604_v34 = vpop.f32.mrb[209].mxu0 }
 0x3ef   : > { %v9605_v28 = vadd.f32 %v9604_v34, %v9603_v32  ;;  %v9606_v12 = vpop.f32.mrb[210].mxu0 }
 0x3f0   : > { %v9607_v62 = vpop.f32.mrb[211].mxu0 }
 0x3f1   : > { %v11788_v24 = vadd.f32 %v9605_v28, %v9493_v33  ;;  %v9608_v47 = vadd.f32 %v9607_v62, %v9606_v12 }
 0x3f2   : > { %v9503_v36 = vpop.f32.mrb[184].mxu1 }
 0x3f3   : > { %v11790_v61 = vadd.f32 %v9608_v47, %v9496_v38  ;;  %v9504_v41 = vpop.f32.mrb[185].mxu1 }
 0x3f4   : > { %v9505_v35 = vadd.f32 %v9504_v41, %v9503_v36  ;;  %v9506_v23 = vpop.f32.mrb[186].mxu1 }
 0x3f5   : > { %v9507_v43 = vpop.f32.mrb[187].mxu1 }
 0x3f6   : > { %v9609_v20 = vpop.f32.mrb[212].mxu0  ;;  %v9508_v26 = vadd.f32 %v9507_v43, %v9506_v23 }
 0x3f7   : > { %v9610_v21 = vpop.f32.mrb[213].mxu0 }
 0x3f8   : > { %v9611_v5 = vadd.f32 %v9610_v21, %v9609_v20  ;;  %v9612_v48 = vpop.f32.mrb[214].mxu0 }
 0x3f9   : > { %v9613_v9 = vpop.f32.mrb[215].mxu0 }
 0x3fa   : > { %v11792_v1 = vadd.f32 %v9611_v5, %v9499_v44  ;;  %v9614_v16 = vadd.f32 %v9613_v9, %v9612_v48 }
 0x3fb   : > { %v9509_v63 = vpop.f32.mrb[188].mxu1 }
 0x3fc   : > { %v11794_v54 = vadd.f32 %v9614_v16, %v9502_v57  ;;  %v9510_v33 = vpop.f32.mrb[189].mxu1 }
 0x3fd   : > { %v9511_v2 = vadd.f32 %v9510_v33, %v9509_v63  ;;  %v9512_v46 = vpop.f32.mrb[190].mxu1 }
 0x3fe   : > { %v9615_v45 = vpop.f32.mrb[216].mxu0  ;;  %v9513_v38 = vpop.f32.mrb[191].mxu1 }
 0x3ff   : > { %v9616_v27 = vpop.f32.mrb[217].mxu0  ;;  %v9514_v49 = vadd.f32 %v9513_v38, %v9512_v46 }
 0x400   : > { %v9617_v11 = vadd.f32 %v9616_v27, %v9615_v45  ;;  %v9618_v18 = vpop.f32.mrb[218].mxu0 }
 0x401   : > { %v9619_v10 = vpop.f32.mrb[219].mxu0 }
 0x402   : > { %v11796_v53 = vadd.f32 %v9617_v11, %v9505_v35  ;;  %v9620_v55 = vadd.f32 %v9619_v10, %v9618_v18 }
 0x403   : > { %v9643_v13 = vpop.f32.mrb[192].mxu1 }
 0x404   : > { %v11798_v44 = vadd.f32 %v9620_v55, %v9508_v26  ;;  %v9644_v3 = vpop.f32.mrb[193].mxu1 }
 0x405   : > { %v9645_v19 = vadd.f32 %v9644_v3, %v9643_v13  ;;  %v9646_v32 = vpop.f32.mrb[194].mxu1 }
 0x406   : > { %v9647_v57 = vpop.f32.mrb[195].mxu1 }
 0x407   : > { %v9621_v34 = vpop.f32.mrb[220].mxu0  ;;  %v8076_v28 = vadd.f32 %v9645_v19, %v11627_v29  ;;  %v9648_v12 = vadd.f32 %v9647_v57, %v9646_v32 }
 0x408   : > { %v9622_v62 = vpop.f32.mrb[221].mxu0 }
 0x409   : > { %v9623_v47 = vadd.f32 %v9622_v62, %v9621_v34  ;;  %v9624_v36 = vpop.f32.mrb[222].mxu0  ;;  %v8079_v41 = vadd.f32 %v9648_v12, %v11629_v4 }
 0x40a   : > { %v9625_v23 = vpop.f32.mrb[223].mxu0 }
 0x40b   : > { %v11802_v35 = vadd.f32 %v9623_v47, %v9511_v2  ;;  %v9626_v43 = vadd.f32 %v9625_v23, %v9624_v36  ;;  %v9649_v20 = vpop.f32.mrb[196].mxu1 }
 0x40c   : > { %v9650_v26 = vpop.f32.mrb[197].mxu1 }
 0x40d   : > { %v11804_v21 = vadd.f32 %v9626_v43, %v9514_v49  ;;  %v9651_v5 = vadd.f32 %v9650_v26, %v9649_v20  ;;  %v9652_v48 = vpop.f32.mrb[198].mxu1 }
 0x40e   : > { %v9653_v9 = vpop.f32.mrb[199].mxu1 }
 0x40f   : > { %v8084_v16 = vadd.f32 %v9651_v5, %v11644_v56  ;;  %v9654_v29 = vadd.f32 %v9653_v9, %v9652_v48 }
 0x411   : > { %v9755_v63 = vpop.f32.mrb[224].mxu0  ;;  %v8087_v33 = vadd.f32 %v9654_v29, %v11647_v6 }
 0x412   : > { %v9756_v46 = vpop.f32.mrb[225].mxu0 }
 0x413   : > { %v9757_v45 = vadd.f32 %v9756_v46, %v9755_v63  ;;  %v9758_v4 = vpop.f32.mrb[226].mxu0  ;;  %v9655_v38 = vpop.f32.mrb[200].mxu1 }
 0x414   : > { %v9759_v2 = vpop.f32.mrb[227].mxu0  ;;  %v9656_v27 = vpop.f32.mrb[201].mxu1 }
 0x415   : > { %v9760_v11 = vadd.f32 %v9759_v2, %v9758_v4  ;;  %v9657_v18 = vadd.f32 %v9656_v27, %v9655_v38  ;;  %v9658_v10 = vpop.f32.mrb[202].mxu1  ;;  %v11808_v49 = vadd.f32 %v9757_v45, %v8076_v28 }
 0x416   : > { %v9659_v55 = vpop.f32.mrb[203].mxu1 }
 0x417   : > { %v8092_v13 = vadd.f32 %v9657_v18, %v11667_v42  ;;  %v9660_v3 = vadd.f32 %v9659_v55, %v9658_v10  ;;  %v11811_v56 = vadd.f32 %v9760_v11, %v8079_v41 }
 0x419   : > { %v9761_v19 = vpop.f32.mrb[228].mxu0  ;;  %v8095_v6 = vadd.f32 %v9660_v3, %v11670_v51 }
 0x41a   : > { %v9762_v32 = vpop.f32.mrb[229].mxu0 }
 0x41b   : > { %v9763_v57 = vadd.f32 %v9762_v32, %v9761_v19  ;;  %v9764_v34 = vpop.f32.mrb[230].mxu0  ;;  %v9661_v12 = vpop.f32.mrb[204].mxu1 }
 0x41c   : > { %v9765_v62 = vpop.f32.mrb[231].mxu0  ;;  %v9662_v47 = vpop.f32.mrb[205].mxu1 }
 0x41d   : > { %v9766_v36 = vadd.f32 %v9765_v62, %v9764_v34  ;;  %v9663_v23 = vadd.f32 %v9662_v47, %v9661_v12  ;;  %v9664_v43 = vpop.f32.mrb[206].mxu1  ;;  %v11814_v28 = vadd.f32 %v9763_v57, %v8084_v16 }
 0x41e   : > { %v9665_v20 = vpop.f32.mrb[207].mxu1 }
 0x41f   : > { %v8100_v42 = vadd.f32 %v9663_v23, %v11685_v60  ;;  %v9666_v26 = vadd.f32 %v9665_v20, %v9664_v43  ;;  %v11817_v41 = vadd.f32 %v9766_v36, %v8087_v33 }
 0x421   : > { %v9767_v5 = vpop.f32.mrb[232].mxu0  ;;  %v8103_v51 = vadd.f32 %v9666_v26, %v11692_v50 }
 0x422   : > { %v9768_v48 = vpop.f32.mrb[233].mxu0 }
 0x423   : > { %v9769_v9 = vadd.f32 %v9768_v48, %v9767_v5  ;;  %v9770_v29 = vpop.f32.mrb[234].mxu0  ;;  %v9667_v63 = vpop.f32.mrb[208].mxu1 }
 0x424   : > { %v9771_v46 = vpop.f32.mrb[235].mxu0  ;;  %v9668_v45 = vpop.f32.mrb[209].mxu1 }
 0x425   : > { %v9772_v4 = vadd.f32 %v9771_v46, %v9770_v29  ;;  %v9669_v38 = vadd.f32 %v9668_v45, %v9667_v63  ;;  %v9670_v2 = vpop.f32.mrb[210].mxu1  ;;  %v11820_v16 = vadd.f32 %v9769_v9, %v8092_v13 }
 0x426   : > { %v9671_v27 = vpop.f32.mrb[211].mxu1 }
 0x427   : > { %v8108_v60 = vadd.f32 %v9669_v38, %v11707_v59  ;;  %v9672_v11 = vadd.f32 %v9671_v27, %v9670_v2  ;;  %v11823_v33 = vadd.f32 %v9772_v4, %v8095_v6 }
 0x429   : > { %v9773_v18 = vpop.f32.mrb[236].mxu0  ;;  %v8111_v50 = vadd.f32 %v9672_v11, %v11713_v52 }
 0x42a   : > { %v9774_v10 = vpop.f32.mrb[237].mxu0 }
 0x42b   : > { %v9775_v55 = vadd.f32 %v9774_v10, %v9773_v18  ;;  %v9776_v3 = vpop.f32.mrb[238].mxu0  ;;  %v9673_v19 = vpop.f32.mrb[212].mxu1 }
 0x42c   : > { %v9777_v32 = vpop.f32.mrb[239].mxu0  ;;  %v9674_v57 = vpop.f32.mrb[213].mxu1 }
 0x42d   : > { %v9778_v34 = vadd.f32 %v9777_v32, %v9776_v3  ;;  %v9675_v12 = vadd.f32 %v9674_v57, %v9673_v19  ;;  %v9676_v62 = vpop.f32.mrb[214].mxu1  ;;  %v11826_v13 = vadd.f32 %v9775_v55, %v8100_v42 }
 0x42e   : > { %v9677_v47 = vpop.f32.mrb[215].mxu1 }
 0x42f   : > { %v8116_v59 = vadd.f32 %v9675_v12, %v11723_v58  ;;  %v9678_v36 = vadd.f32 %v9677_v47, %v9676_v62  ;;  %v11829_v6 = vadd.f32 %v9778_v34, %v8103_v51 }
 0x431   : > { %v9779_v23 = vpop.f32.mrb[240].mxu0  ;;  %v8119_v52 = vadd.f32 %v9678_v36, %v11726_v14 }
 0x432   : > { %v9780_v43 = vpop.f32.mrb[241].mxu0 }
 0x433   : > { %v9781_v20 = vadd.f32 %v9780_v43, %v9779_v23  ;;  %v9782_v26 = vpop.f32.mrb[242].mxu0  ;;  %v9679_v5 = vpop.f32.mrb[216].mxu1 }
 0x434   : > { %v9783_v48 = vpop.f32.mrb[243].mxu0  ;;  %v9680_v9 = vpop.f32.mrb[217].mxu1 }
 0x435   : > { %v9784_v29 = vadd.f32 %v9783_v48, %v9782_v26  ;;  %v9681_v63 = vadd.f32 %v9680_v9, %v9679_v5  ;;  %v9682_v46 = vpop.f32.mrb[218].mxu1  ;;  %v11832_v42 = vadd.f32 %v9781_v20, %v8108_v60 }
 0x436   : > { %v9683_v45 = vpop.f32.mrb[219].mxu1 }
 0x437   : > { %v8124_v58 = vadd.f32 %v9681_v63, %v11735_v40  ;;  %v9684_v4 = vadd.f32 %v9683_v45, %v9682_v46  ;;  %v11835_v51 = vadd.f32 %v9784_v29, %v8111_v50 }
 0x439   : > { %v9785_v38 = vpop.f32.mrb[244].mxu0  ;;  %v8127_v14 = vadd.f32 %v9684_v4, %v11738_v25 }
 0x43a   : > { %v9786_v2 = vpop.f32.mrb[245].mxu0 }
 0x43b   : > { %v9787_v27 = vadd.f32 %v9786_v2, %v9785_v38  ;;  %v9788_v11 = vpop.f32.mrb[246].mxu0  ;;  %v9685_v18 = vpop.f32.mrb[220].mxu1 }
 0x43c   : > { %v9789_v10 = vpop.f32.mrb[247].mxu0  ;;  %v9686_v55 = vpop.f32.mrb[221].mxu1 }
 0x43d   : > { %v9790_v3 = vadd.f32 %v9789_v10, %v9788_v11  ;;  %v9687_v19 = vadd.f32 %v9686_v55, %v9685_v18  ;;  %v9688_v32 = vpop.f32.mrb[222].mxu1  ;;  %v11838_v60 = vadd.f32 %v9787_v27, %v8116_v59 }
 0x43e   : > { %v9689_v57 = vpop.f32.mrb[223].mxu1 }
 0x43f   : > { %v8132_v40 = vadd.f32 %v9687_v19, %v11747_v8  ;;  %v9690_v34 = vadd.f32 %v9689_v57, %v9688_v32  ;;  %v11841_v50 = vadd.f32 %v9790_v3, %v8119_v52 }
 0x441   : > { %v9791_v12 = vpop.f32.mrb[248].mxu0  ;;  %v8135_v25 = vadd.f32 %v9690_v34, %v11751_v22 }
 0x442   : > { %v9792_v62 = vpop.f32.mrb[249].mxu0 }
 0x443   : > { %v9793_v47 = vadd.f32 %v9792_v62, %v9791_v12  ;;  %v9794_v36 = vpop.f32.mrb[250].mxu0  ;;  %v9691_v23 = vpop.f32.mrb[224].mxu1 }
 0x444   : > { %v9795_v43 = vpop.f32.mrb[251].mxu0  ;;  %v9692_v20 = vpop.f32.mrb[225].mxu1 }
 0x445   : > { %v9796_v26 = vadd.f32 %v9795_v43, %v9794_v36  ;;  %v9693_v5 = vadd.f32 %v9692_v20, %v9691_v23  ;;  %v9694_v48 = vpop.f32.mrb[226].mxu1  ;;  %v11844_v59 = vadd.f32 %v9793_v47, %v8124_v58 }
 0x446   : > { %v9695_v9 = vpop.f32.mrb[227].mxu1 }
 0x447   : > { %v8140_v8 = vadd.f32 %v9693_v5, %v11759_v31  ;;  %v9696_v29 = vadd.f32 %v9695_v9, %v9694_v48  ;;  %v11847_v52 = vadd.f32 %v9796_v26, %v8127_v14 }
 0x449   : > { %v9797_v63 = vpop.f32.mrb[252].mxu0  ;;  %v8143_v22 = vadd.f32 %v9696_v29, %v11762_v0 }
 0x44a   : > { %v9798_v46 = vpop.f32.mrb[253].mxu0 }
 0x44b   : > { %v9799_v45 = vadd.f32 %v9798_v46, %v9797_v63  ;;  %v9800_v4 = vpop.f32.mrb[254].mxu0  ;;  %v9697_v38 = vpop.f32.mrb[228].mxu1 }
 0x44c   : > { %v9801_v2 = vpop.f32.mrb[255].mxu0  ;;  %v9698_v27 = vpop.f32.mrb[229].mxu1 }
 0x44d   : > { %v9802_v11 = vadd.f32 %v9801_v2, %v9800_v4  ;;  %v9699_v18 = vadd.f32 %v9698_v27, %v9697_v38  ;;  %v9700_v10 = vpop.f32.mrb[230].mxu1  ;;  %v11850_v58 = vadd.f32 %v9799_v45, %v8132_v40 }
 0x44e   : > { %v9701_v55 = vpop.f32.mrb[231].mxu1 }
 0x44f   : > { %v8148_v31 = vadd.f32 %v9699_v18, %v11770_v37  ;;  %v9702_v3 = vadd.f32 %v9701_v55, %v9700_v10  ;;  %v11853_v14 = vadd.f32 %v9802_v11, %v8135_v25 }
 0x451   : > { %v9803_v19 = vpop.f32.mrb[0].mxu0  ;;  %v8151_v0 = vadd.f32 %v9702_v3, %v11774_v30 }
 0x452   : > { %v9804_v32 = vpop.f32.mrb[1].mxu0 }
 0x453   : > { %v9805_v57 = vadd.f32 %v9804_v32, %v9803_v19  ;;  %v9806_v34 = vpop.f32.mrb[2].mxu0  ;;  %v9703_v12 = vpop.f32.mrb[232].mxu1 }
 0x454   : > { %v9807_v62 = vpop.f32.mrb[3].mxu0  ;;  %v9704_v47 = vpop.f32.mrb[233].mxu1 }
 0x455   : > { %v9808_v36 = vadd.f32 %v9807_v62, %v9806_v34  ;;  %v9705_v23 = vadd.f32 %v9704_v47, %v9703_v12  ;;  %v9706_v43 = vpop.f32.mrb[234].mxu1  ;;  %v11856_v40 = vadd.f32 %v9805_v57, %v8140_v8 }
 0x456   : > { %v9707_v20 = vpop.f32.mrb[235].mxu1 }
 0x457   : > { %v8156_v37 = vadd.f32 %v9705_v23, %v11777_v39  ;;  %v9708_v26 = vadd.f32 %v9707_v20, %v9706_v43  ;;  %v11859_v25 = vadd.f32 %v9808_v36, %v8143_v22 }
 0x459   : > { %v9809_v5 = vpop.f32.mrb[4].mxu0  ;;  %v8159_v30 = vadd.f32 %v9708_v26, %v11781_v15 }
 0x45a   : > { %v9810_v48 = vpop.f32.mrb[5].mxu0 }
 0x45b   : > { %v9811_v9 = vadd.f32 %v9810_v48, %v9809_v5  ;;  %v9812_v29 = vpop.f32.mrb[6].mxu0  ;;  %v9709_v63 = vpop.f32.mrb[236].mxu1 }
 0x45c   : > { %v9813_v46 = vpop.f32.mrb[7].mxu0  ;;  %v9710_v45 = vpop.f32.mrb[237].mxu1 }
 0x45d   : > { %v9814_v4 = vadd.f32 %v9813_v46, %v9812_v29  ;;  %v9711_v38 = vadd.f32 %v9710_v45, %v9709_v63  ;;  %v9712_v2 = vpop.f32.mrb[238].mxu1  ;;  %v11862_v8 = vadd.f32 %v9811_v9, %v8148_v31 }
 0x45e   : > { %v9713_v27 = vpop.f32.mrb[239].mxu1 }
 0x45f   : > { %v8164_v39 = vadd.f32 %v9711_v38, %v11784_v7  ;;  %v9714_v11 = vadd.f32 %v9713_v27, %v9712_v2  ;;  %v11865_v22 = vadd.f32 %v9814_v4, %v8151_v0 }
 0x461   : > { %v9815_v18 = vpop.f32.mrb[8].mxu0  ;;  %v8167_v15 = vadd.f32 %v9714_v11, %v11786_v17 }
 0x462   : > { %v9816_v10 = vpop.f32.mrb[9].mxu0 }
 0x463   : > { %v9817_v55 = vadd.f32 %v9816_v10, %v9815_v18  ;;  %v9818_v3 = vpop.f32.mrb[10].mxu0  ;;  %v9715_v19 = vpop.f32.mrb[240].mxu1 }
 0x464   : > { %v9819_v32 = vpop.f32.mrb[11].mxu0  ;;  %v9716_v57 = vpop.f32.mrb[241].mxu1 }
 0x465   : > { %v9820_v34 = vadd.f32 %v9819_v32, %v9818_v3  ;;  %v9717_v12 = vadd.f32 %v9716_v57, %v9715_v19  ;;  %v9718_v62 = vpop.f32.mrb[242].mxu1  ;;  %v11868_v31 = vadd.f32 %v9817_v55, %v8156_v37 }
 0x466   : > { %v9719_v47 = vpop.f32.mrb[243].mxu1 }
 0x467   : > { %v8172_v7 = vadd.f32 %v9717_v12, %v11788_v24  ;;  %v9720_v36 = vadd.f32 %v9719_v47, %v9718_v62  ;;  %v11871_v0 = vadd.f32 %v9820_v34, %v8159_v30 }
 0x469   : > { %v9821_v23 = vpop.f32.mrb[12].mxu0  ;;  %v8175_v17 = vadd.f32 %v9720_v36, %v11790_v61 }
 0x46a   : > { %v9822_v43 = vpop.f32.mrb[13].mxu0 }
 0x46b   : > { %v9823_v20 = vadd.f32 %v9822_v43, %v9821_v23  ;;  %v9824_v26 = vpop.f32.mrb[14].mxu0  ;;  %v9721_v5 = vpop.f32.mrb[244].mxu1 }
 0x46c   : > { %v9825_v48 = vpop.f32.mrb[15].mxu0  ;;  %v9722_v9 = vpop.f32.mrb[245].mxu1 }
 0x46d   : > { %v9826_v29 = vadd.f32 %v9825_v48, %v9824_v26  ;;  %v9723_v63 = vadd.f32 %v9722_v9, %v9721_v5  ;;  %v9724_v46 = vpop.f32.mrb[246].mxu1  ;;  %v11874_v37 = vadd.f32 %v9823_v20, %v8164_v39 }
 0x46e   : > { %v9725_v45 = vpop.f32.mrb[247].mxu1 }
 0x46f   : > { %v8180_v24 = vadd.f32 %v9723_v63, %v11792_v1  ;;  %v9726_v4 = vadd.f32 %v9725_v45, %v9724_v46  ;;  %v11877_v30 = vadd.f32 %v9826_v29, %v8167_v15 }
 0x471   : > { %v9827_v38 = vpop.f32.mrb[16].mxu0  ;;  %v8183_v61 = vadd.f32 %v9726_v4, %v11794_v54 }
 0x472   : > { %v9828_v2 = vpop.f32.mrb[17].mxu0 }
 0x473   : > { %v9829_v27 = vadd.f32 %v9828_v2, %v9827_v38  ;;  %v9830_v11 = vpop.f32.mrb[18].mxu0  ;;  %v9727_v18 = vpop.f32.mrb[248].mxu1  ;;  %v11895_v2 = vld [vmem:[%s12092_s4] ss:$0 sm:$0xff] }
 0x474   : > { %v9831_v10 = vpop.f32.mrb[19].mxu0  ;;  %v9728_v55 = vpop.f32.mrb[249].mxu1 }
 0x475   : > { %v9832_v3 = vadd.f32 %v9831_v10, %v9830_v11  ;;  %v9729_v19 = vadd.f32 %v9728_v55, %v9727_v18  ;;  %v9730_v32 = vpop.f32.mrb[250].mxu1  ;;  %v11880_v39 = vadd.f32 %v9829_v27, %v8172_v7 }
 0x476   : > { %v9731_v57 = vpop.f32.mrb[251].mxu1 }
 0x477   : > { %v8188_v1 = vadd.f32 %v9729_v19, %v11796_v53  ;;  %v9732_v34 = vadd.f32 %v9731_v57, %v9730_v32  ;;  %v11883_v15 = vadd.f32 %v9832_v3, %v8175_v17  ;;  %v10191_v57 = vld [vmem:[%s10600_s6 + $0x10] sm:$0xff] }
 0x479   : > { %v9833_v12 = vpop.f32.mrb[20].mxu0  ;;  %v8191_v54 = vadd.f32 %v9732_v34, %v11798_v44 }
 0x47a   : > { %v9834_v62 = vpop.f32.mrb[21].mxu0 }
 0x47b   : > { %v9835_v47 = vadd.f32 %v9834_v62, %v9833_v12  ;;  %v9836_v36 = vpop.f32.mrb[22].mxu0  ;;  %v9733_v23 = vpop.f32.mrb[252].mxu1  ;;  %v10192_v12 = vld [vmem:[%s10600_s6] sm:$0xff] }
 0x47c   : > { %v9837_v43 = vpop.f32.mrb[23].mxu0  ;;  %v9734_v20 = vpop.f32.mrb[253].mxu1 }
 0x47d   : > { %v9838_v26 = vadd.f32 %v9837_v43, %v9836_v36  ;;  %v9735_v5 = vadd.f32 %v9734_v20, %v9733_v23  ;;  %v9736_v48 = vpop.f32.mrb[254].mxu1  ;;  %v11886_v7 = vadd.f32 %v9835_v47, %v8180_v24  ;;  %v10193_v23 = vld [vmem:[%s10600_s6 + $0x18] sm:$0xff] }
 0x47e   : > { %v9737_v9 = vpop.f32.mrb[255].mxu1 }
 0x47f   : > { %v8196_v53 = vadd.f32 %v9735_v5, %v11802_v35  ;;  %v9738_v29 = vadd.f32 %v9737_v9, %v9736_v48  ;;  %v11889_v17 = vadd.f32 %v9838_v26, %v8183_v61  ;;  %v10194_v5 = vld [vmem:[%s10600_s6 + $0x8] sm:$0xff] }
 0x481   : > { %v9839_v63 = vpop.f32.mrb[24].mxu0  ;;  %v8199_v44 = vadd.f32 %v9738_v29, %v11804_v21 }
 0x482   : > { %v9840_v46 = vpop.f32.mrb[25].mxu0 }
 0x483   : > { %v9841_v45 = vadd.f32 %v9840_v46, %v9839_v63  ;;  %v9842_v4 = vpop.f32.mrb[26].mxu0  ;;  %v9941_v38 = vpop.f32.mrb[0].mxu1 }
 0x484   : > { %v9843_v24 = vpop.f32.mrb[27].mxu0  ;;  %v8406_v27 = vadd.f32 %v9941_v38, %v11814_v28  ;;  %v8397_v35 = vpop.f32.mrb[1].mxu1 }
 0x485   : > { %v9844_v61 = vadd.f32 %v9843_v24, %v9842_v4  ;;  %v8398_v11 = vadd.f32 %v8397_v35, %v11808_v49  ;;  %v9942_v18 = vpop.f32.mrb[2].mxu1  ;;  %v11899_v21 = vadd.f32 %v9841_v45, %v8188_v1 }
 0x486   : > { %v8533_v10 = vadd.f32 %v11895_v2, %v8406_v27  ;;  %v8409_v55 = vadd.f32 %v9942_v18, %v11817_v41  ;;  %v8400_v3 = vpop.f32.mrb[3].mxu1 }
 0x487   : > { %v8531_v19 = vadd.f32 %v11895_v2, %v8398_v11  ;;  %v8401_v32 = vadd.f32 %v8400_v3, %v11811_v56  ;;  %v11905_v28 = vadd.f32 %v9844_v61, %v8191_v54  ;;  %v10196_v3 = vld [vmem:[%s10600_s6 + $0x20] sm:$0xff] }
 0x488   : > { %v8565_v34 = vadd.f32 %v10191_v57, %v8533_v10  ;;  %v8534_v49 = vadd.f32 %v11895_v2, %v8409_v55  ;;  %v10197_v57 = vld [vmem:[%s10600_s6 + $0x38] sm:$0xff] }
 0x489   : > { %v9845_v1 = vpop.f32.mrb[28].mxu0  ;;  %v8563_v62 = vadd.f32 %v10192_v12, %v8531_v19  ;;  %v8532_v47 = vadd.f32 %v11895_v2, %v8401_v32 }
 0x48a   : > { %v8597_v36 = vmax.f32 %v8565_v34, 0.0  ;;  %v9846_v41 = vpop.f32.mrb[29].mxu0  ;;  %v8566_v43 = vadd.f32 %v10193_v23, %v8534_v49 }
 0x48b   : > { %v8595_v20 = vmax.f32 %v8563_v62, 0.0  ;;  %v9847_v26 = vadd.f32 %v9846_v41, %v9845_v1  ;;  %v9848_v56 = vpop.f32.mrb[30].mxu0  ;;  %v8564_v54 = vadd.f32 %v10194_v5, %v8532_v47  ;;  %v9945_v48 = vpop.f32.mrb[4].mxu1  ;;  %v10198_v1 = vld [vmem:[%s10600_s6 + $0x28] sm:$0xff]  ;;  %v10199_v5 = vld [vmem:[%s10600_s6 + $0x50] sm:$0xff] }
 0x48c   : > { %8629 = vst [vmem:[%s11915_s30 + $0x10] sm:$0xff] %v8597_v36  ;;  %v8598_v9 = vmax.f32 %v8566_v43, 0.0  ;;  %v9849_v29 = vpop.f32.mrb[31].mxu0  ;;  %v8422_v63 = vadd.f32 %v9945_v48, %v11826_v13  ;;  %v8413_v46 = vpop.f32.mrb[5].mxu1  ;;  %v10200_v48 = vld [vmem:[%s10600_s6 + $0x40] sm:$0xff] }
 0x48d   : > { %8627 = vst [vmem:[%s11915_s30] sm:$0xff] %v8595_v20  ;;  %v8596_v45 = vmax.f32 %v8564_v54, 0.0  ;;  %v9850_v4 = vadd.f32 %v9849_v29, %v9848_v56  ;;  %v8414_v38 = vadd.f32 %v8413_v46, %v11820_v16  ;;  %v9946_v24 = vpop.f32.mrb[6].mxu1  ;;  %v11921_v27 = vadd.f32 %v9847_v26, %v8196_v53  ;;  %v10195_v16 = vld [vmem:[%s10600_s6 + $0x30] sm:$0xff]  ;;  %v10201_v46 = vld [vmem:[%s10600_s6 + $0x58] sm:$0xff] }
 0x48e   : > { %8630 = vst [vmem:[%s11915_s30 + $0x18] sm:$0xff] %v8598_v9  ;;  %v8537_v35 = vadd.f32 %v11895_v2, %v8422_v63  ;;  %v8425_v61 = vadd.f32 %v9946_v24, %v11829_v6  ;;  %v8416_v11 = vpop.f32.mrb[7].mxu1 }
 0x48f   : > { %8628 = vst [vmem:[%s11915_s30 + $0x8] sm:$0xff] %v8596_v45  ;;  %v8535_v13 = vadd.f32 %v11895_v2, %v8414_v38  ;;  %v8417_v18 = vadd.f32 %v8416_v11, %v11823_v33  ;;  %v11929_v10 = vadd.f32 %v9850_v4, %v8199_v44  ;;  %v10202_v4 = vld [vmem:[%s10600_s6 + $0x48] sm:$0xff] }
 0x490   : > { %v8569_v55 = vadd.f32 %v10195_v16, %v8537_v35  ;;  %v8538_v53 = vadd.f32 %v11895_v2, %v8425_v61 }
 0x491   : > { %v8567_v19 = vadd.f32 %v10196_v3, %v8535_v13  ;;  %v8536_v32 = vadd.f32 %v11895_v2, %v8417_v18 }
 0x492   : > { %v8601_v6 = vmax.f32 %v8569_v55, 0.0  ;;  %v8570_v34 = vadd.f32 %v10197_v57, %v8538_v53 }
 0x493   : > { %v8599_v49 = vmax.f32 %v8567_v19, 0.0  ;;  %v8568_v12 = vadd.f32 %v10198_v1, %v8536_v32  ;;  %v9949_v33 = vpop.f32.mrb[8].mxu1  ;;  %v10203_v19 = vld [vmem:[%s10600_s6 + $0x70] sm:$0xff]  ;;  %v10205_v1 = vld [vmem:[%s10600_s6 + $0x78] sm:$0xff] }
 0x494   : > { %8633 = vst [vmem:[%s11915_s30 + $0x30] sm:$0xff] %v8601_v6  ;;  %v8602_v44 = vmax.f32 %v8570_v34, 0.0  ;;  %v8438_v62 = vadd.f32 %v9949_v33, %v11838_v60  ;;  %v8429_v47 = vpop.f32.mrb[9].mxu1  ;;  %v10204_v6 = vld [vmem:[%s10600_s6 + $0x60] sm:$0xff]  ;;  %v10206_v33 = vld [vmem:[%s10600_s6 + $0x68] sm:$0xff] }
 0x495   : > { %8631 = vst [vmem:[%s11915_s30 + $0x20] sm:$0xff] %v8599_v49  ;;  %v8600_v36 = vmax.f32 %v8568_v12, 0.0  ;;  %v8430_v41 = vadd.f32 %v8429_v47, %v11832_v42  ;;  %v9950_v23 = vpop.f32.mrb[10].mxu1 }
 0x496   : > { %8634 = vst [vmem:[%s11915_s30 + $0x38] sm:$0xff] %v8602_v44  ;;  %v8541_v43 = vadd.f32 %v11895_v2, %v8438_v62  ;;  %v8441_v20 = vadd.f32 %v9950_v23, %v11841_v50  ;;  %v8432_v26 = vpop.f32.mrb[11].mxu1 }
 0x497   : > { %8632 = vst [vmem:[%s11915_s30 + $0x28] sm:$0xff] %v8600_v36  ;;  %v8539_v56 = vadd.f32 %v11895_v2, %v8430_v41  ;;  %v8433_v60 = vadd.f32 %v8432_v26, %v11835_v51 }
 0x498   : > { %v8573_v54 = vadd.f32 %v10199_v5, %v8541_v43  ;;  %v8542_v42 = vadd.f32 %v11895_v2, %v8441_v20  ;;  %v10207_v5 = vld [vmem:[%s10600_s6 + $0x90] sm:$0xff] }
 0x499   : > { %v8571_v9 = vadd.f32 %v10200_v48, %v8539_v56  ;;  %v8540_v29 = vadd.f32 %v11895_v2, %v8433_v60 }
 0x49a   : > { %v8605_v63 = vmax.f32 %v8573_v54, 0.0  ;;  %v8574_v50 = vadd.f32 %v10201_v46, %v8542_v42  ;;  %v10208_v42 = vld [vmem:[%s10600_s6 + $0x80] sm:$0xff] }
 0x49b   : > { %v8603_v45 = vmax.f32 %v8571_v9, 0.0  ;;  %v8572_v38 = vadd.f32 %v10202_v4, %v8540_v29  ;;  %v9953_v24 = vpop.f32.mrb[12].mxu1 }
 0x49c   : > { %8637 = vst [vmem:[%s11915_s30 + $0x50] sm:$0xff] %v8605_v63  ;;  %v8606_v51 = vmax.f32 %v8574_v50, 0.0  ;;  %v8454_v35 = vadd.f32 %v9953_v24, %v11850_v58  ;;  %v8445_v61 = vpop.f32.mrb[13].mxu1  ;;  %v10209_v63 = vld [vmem:[%s10600_s6 + $0x98] sm:$0xff]  ;;  %v10210_v50 = vld [vmem:[%s10600_s6 + $0x88] sm:$0xff] }
 0x49d   : > { %8635 = vst [vmem:[%s11915_s30 + $0x40] sm:$0xff] %v8603_v45  ;;  %v8604_v11 = vmax.f32 %v8572_v38, 0.0  ;;  %v8446_v13 = vadd.f32 %v8445_v61, %v11844_v59  ;;  %v9954_v18 = vpop.f32.mrb[14].mxu1 }
 0x49e   : > { %8638 = vst [vmem:[%s11915_s30 + $0x58] sm:$0xff] %v8606_v51  ;;  %v8545_v16 = vadd.f32 %v11895_v2, %v8454_v35  ;;  %v8457_v55 = vadd.f32 %v9954_v18, %v11853_v14  ;;  %v8448_v53 = vpop.f32.mrb[15].mxu1 }
 0x49f   : > { %8636 = vst [vmem:[%s11915_s30 + $0x48] sm:$0xff] %v8604_v11  ;;  %v8543_v3 = vadd.f32 %v11895_v2, %v8446_v13  ;;  %v8449_v58 = vadd.f32 %v8448_v53, %v11847_v52 }
 0x4a0   : > { %v8577_v32 = vadd.f32 %v10203_v19, %v8545_v16  ;;  %v8546_v59 = vadd.f32 %v11895_v2, %v8457_v55  ;;  %v10211_v55 = vld [vmem:[%s10600_s6 + $0xb0] sm:$0xff] }
 0x4a1   : > { %v8575_v57 = vadd.f32 %v10204_v6, %v8543_v3  ;;  %v8544_v34 = vadd.f32 %v11895_v2, %v8449_v58  ;;  %v10212_v3 = vld [vmem:[%s10600_s6 + $0xa0] sm:$0xff] }
 0x4a2   : > { %v8609_v49 = vmax.f32 %v8577_v32, 0.0  ;;  %v8578_v14 = vadd.f32 %v10205_v1, %v8546_v59  ;;  %v10213_v59 = vld [vmem:[%s10600_s6 + $0xb8] sm:$0xff] }
 0x4a3   : > { %v8607_v12 = vmax.f32 %v8575_v57, 0.0  ;;  %v8576_v44 = vadd.f32 %v10206_v33, %v8544_v34  ;;  %v9957_v62 = vpop.f32.mrb[16].mxu1  ;;  %v10214_v57 = vld [vmem:[%s10600_s6 + $0xa8] sm:$0xff] }
 0x4a4   : > { %8641 = vst [vmem:[%s11915_s30 + $0x70] sm:$0xff] %v8609_v49  ;;  %v8610_v52 = vmax.f32 %v8578_v14, 0.0  ;;  %v8470_v47 = vadd.f32 %v9957_v62, %v11862_v8  ;;  %v8461_v36 = vpop.f32.mrb[17].mxu1 }
 0x4a5   : > { %8639 = vst [vmem:[%s11915_s30 + $0x60] sm:$0xff] %v8607_v12  ;;  %v8608_v41 = vmax.f32 %v8576_v44, 0.0  ;;  %v8462_v23 = vadd.f32 %v8461_v36, %v11856_v40  ;;  %v9958_v43 = vpop.f32.mrb[18].mxu1 }
 0x4a6   : > { %8642 = vst [vmem:[%s11915_s30 + $0x78] sm:$0xff] %v8610_v52  ;;  %v8549_v20 = vadd.f32 %v11895_v2, %v8470_v47  ;;  %v8473_v26 = vadd.f32 %v9958_v43, %v11865_v22  ;;  %v8464_v56 = vpop.f32.mrb[19].mxu1  ;;  %v10216_v43 = vld [vmem:[%s10600_s6 + $0xc0] sm:$0xff] }
 0x4a7   : > { %8640 = vst [vmem:[%s11915_s30 + $0x68] sm:$0xff] %v8608_v41  ;;  %v8547_v60 = vadd.f32 %v11895_v2, %v8462_v23  ;;  %v8465_v8 = vadd.f32 %v8464_v56, %v11859_v25  ;;  %v10215_v41 = vld [vmem:[%s10600_s6 + $0xd0] sm:$0xff] }
 0x4a8   : > { %v8581_v54 = vadd.f32 %v10207_v5, %v8549_v20  ;;  %v8550_v40 = vadd.f32 %v11895_v2, %v8473_v26  ;;  %v10218_v5 = vld [vmem:[%s10600_s6 + $0xc8] sm:$0xff] }
 0x4a9   : > { %v8579_v48 = vadd.f32 %v10208_v42, %v8547_v60  ;;  %v8548_v9 = vadd.f32 %v11895_v2, %v8465_v8  ;;  %v10217_v60 = vld [vmem:[%s10600_s6 + $0xd8] sm:$0xff] }
 0x4aa   : > { %v8613_v29 = vmax.f32 %v8581_v54, 0.0  ;;  %v8582_v22 = vadd.f32 %v10209_v63, %v8550_v40 }
 0x4ab   : > { %v8611_v46 = vmax.f32 %v8579_v48, 0.0  ;;  %v8580_v45 = vadd.f32 %v10210_v50, %v8548_v9  ;;  %v9961_v4 = vpop.f32.mrb[20].mxu1 }
 0x4ac   : > { %8645 = vst [vmem:[%s11915_s30 + $0x90] sm:$0xff] %v8613_v29  ;;  %v8614_v25 = vmax.f32 %v8582_v22, 0.0  ;;  %v8486_v38 = vadd.f32 %v9961_v4, %v11874_v37  ;;  %v8477_v24 = vpop.f32.mrb[21].mxu1  ;;  %v10219_v4 = vld [vmem:[%s10600_s6 + $0xf0] sm:$0xff] }
 0x4ad   : > { %8643 = vst [vmem:[%s11915_s30 + $0x80] sm:$0xff] %v8611_v46  ;;  %v8612_v51 = vmax.f32 %v8580_v45, 0.0  ;;  %v8478_v35 = vadd.f32 %v8477_v24, %v11868_v31  ;;  %v9962_v61 = vpop.f32.mrb[22].mxu1 }
 0x4ae   : > { %8646 = vst [vmem:[%s11915_s30 + $0x98] sm:$0xff] %v8614_v25  ;;  %v8553_v11 = vadd.f32 %v11895_v2, %v8486_v38  ;;  %v8489_v13 = vadd.f32 %v9962_v61, %v11877_v30  ;;  %v8480_v18 = vpop.f32.mrb[23].mxu1  ;;  %v10220_v38 = vld [vmem:[%s10600_s6 + $0xe0] sm:$0xff] }
 0x4af   : > { %8644 = vst [vmem:[%s11915_s30 + $0x88] sm:$0xff] %v8612_v51  ;;  %v8551_v16 = vadd.f32 %v11895_v2, %v8478_v35  ;;  %v8481_v37 = vadd.f32 %v8480_v18, %v11871_v0  ;;  %v10221_v35 = vld [vmem:[%s10600_s6 + $0xf8] sm:$0xff] }
 0x4b0   : > { %v8585_v53 = vadd.f32 %v10211_v55, %v8553_v11  ;;  %v8554_v31 = vadd.f32 %v11895_v2, %v8489_v13 }
 0x4b1   : > { %v8583_v58 = vadd.f32 %v10212_v3, %v8551_v16  ;;  %v8552_v19 = vadd.f32 %v11895_v2, %v8481_v37 }
 0x4b2   : > { %v8617_v32 = vmax.f32 %v8585_v53, 0.0  ;;  %v8586_v30 = vadd.f32 %v10213_v59, %v8554_v31 }
 0x4b3   : > { %v8615_v6 = vmax.f32 %v8583_v58, 0.0  ;;  %v8584_v34 = vadd.f32 %v10214_v57, %v8552_v19  ;;  %v9965_v49 = vpop.f32.mrb[24].mxu1 }
 0x4b4   : > { %8649 = vst [vmem:[%s11915_s30 + $0xb0] sm:$0xff] %v8617_v32  ;;  %v8618_v0 = vmax.f32 %v8586_v30, 0.0  ;;  %v8502_v1 = vadd.f32 %v9965_v49, %v11886_v7  ;;  %v8493_v14 = vpop.f32.mrb[25].mxu1 }
 0x4b5   : > { %8647 = vst [vmem:[%s11915_s30 + $0xa0] sm:$0xff] %v8615_v6  ;;  %v8616_v12 = vmax.f32 %v8584_v34, 0.0  ;;  %v8494_v33 = vadd.f32 %v8493_v14, %v11880_v39  ;;  %v9966_v44 = vpop.f32.mrb[26].mxu1 }
 0x4b6   : > { %8650 = vst [vmem:[%s11915_s30 + $0xb8] sm:$0xff] %v8618_v0  ;;  %v8557_v62 = vadd.f32 %v11895_v2, %v8502_v1  ;;  %v8505_v52 = vadd.f32 %v9966_v44, %v11889_v17  ;;  %v8496_v47 = vpop.f32.mrb[27].mxu1 }
 0x4b7   : > { %8648 = vst [vmem:[%s11915_s30 + $0xa8] sm:$0xff] %v8616_v12  ;;  %v8555_v36 = vadd.f32 %v11895_v2, %v8494_v33  ;;  %v8497_v7 = vadd.f32 %v8496_v47, %v11883_v15 }
 0x4b8   : > { %v8589_v23 = vadd.f32 %v10215_v41, %v8557_v62  ;;  %v8558_v39 = vadd.f32 %v11895_v2, %v8505_v52 }
 0x4b9   : > { %v8587_v20 = vadd.f32 %v10216_v43, %v8555_v36  ;;  %v8556_v26 = vadd.f32 %v11895_v2, %v8497_v7 }
 0x4ba   : > { %v8621_v56 = vmax.f32 %v8589_v23, 0.0  ;;  %v8590_v17 = vadd.f32 %v10217_v60, %v8558_v39 }
 0x4bb   : > { %v8619_v8 = vmax.f32 %v8587_v20, 0.0  ;;  %v8588_v54 = vadd.f32 %v10218_v5, %v8556_v26  ;;  %v9969_v40 = vpop.f32.mrb[28].mxu1 }
 0x4bc   : > { %8653 = vst [vmem:[%s11915_s30 + $0xd0] sm:$0xff] %v8621_v56  ;;  %v8622_v15 = vmax.f32 %v8590_v17, 0.0  ;;  %v8518_v42 = vadd.f32 %v9969_v40, %v11921_v27  ;;  %v8509_v48 = vpop.f32.mrb[29].mxu1 }
 0x4bd   : > { %8651 = vst [vmem:[%s11915_s30 + $0xc0] sm:$0xff] %v8619_v8  ;;  %v8620_v9 = vmax.f32 %v8588_v54, 0.0  ;;  %v8510_v29 = vadd.f32 %v8509_v48, %v11899_v21  ;;  %v9970_v63 = vpop.f32.mrb[30].mxu1 }
 0x4be   : > { %8654 = vst [vmem:[%s11915_s30 + $0xd8] sm:$0xff] %v8622_v15  ;;  %v8561_v22 = vadd.f32 %v11895_v2, %v8518_v42  ;;  %v8521_v46 = vadd.f32 %v9970_v63, %v11929_v10  ;;  %v8512_v50 = vpop.f32.mrb[31].mxu1 }
 0x4bf   : > { %8652 = vst [vmem:[%s11915_s30 + $0xc8] sm:$0xff] %v8620_v9  ;;  %v8559_v27 = vadd.f32 %v11895_v2, %v8510_v29  ;;  %v8513_v45 = vadd.f32 %v8512_v50, %v11905_v28  ;;  %v10222_v28 = vld [vmem:[%s10600_s6 + $0xe8] sm:$0xff]  ;;  %s10313_s6 = sshll.u32 %s10389_s7, 4  ;;  %s10314_s6 = int_to_ptr.vmem [resolvable:$false] %s10313_s6 }
 0x4c0   : > { %v8593_v25 = vadd.f32 %v10219_v4, %v8561_v22  ;;  %v8562_v21 = vadd.f32 %v11895_v2, %v8521_v46  ;;  %s10315_s24 = scalar_lea.vmem %s10314_s6, 8192  ;;  %p10316_p7 = scmp.lt.s32.totalorder %s12041_s16, %s10314_s6 }
 0x4c1   : > { %v8591_v24 = vadd.f32 %v10220_v38, %v8559_v27  ;;  %v8560_v51 = vadd.f32 %v11895_v2, %v8513_v45  ;;  %p10317_p9 = scmp.lt.s32.totalorder %s10315_s24, %s10309_s17 }
 0x4c2   : > { %v8625_v10 = vmax.f32 %v8593_v25, 0.0  ;;  %v8594_v61 = vadd.f32 %v10221_v35, %v8562_v21 }
 0x4c3   : > { %v8623_v11 = vmax.f32 %v8591_v24, 0.0  ;;  %v8592_v13 = vadd.f32 %v10222_v28, %v8560_v51  ;;  %p10318_p12 = por %p10317_p9, %p10316_p7 }
 0x4c4   : > { %8657 = vst [vmem:[%s11915_s30 + $0xf0] sm:$0xff] %v8625_v10  ;;  %v8626_v18 = vmax.f32 %v8594_v61, 0.0 }
 0x4c5   : > { %8655 = vst [vmem:[%s11915_s30 + $0xe0] sm:$0xff] %v8623_v11  ;;  %v8624_v2 = vmax.f32 %v8592_v13, 0.0  ;;  %p10319_p2 = pnand %p10318_p12, %p10312_p3 }
 0x4c6   : > { %8658 = vst [vmem:[%s11915_s30 + $0xf8] sm:$0xff] %v8626_v18 }
 0x4c7   : > { %8656 = vst [vmem:[%s11915_s30 + $0xe8] sm:$0xff] %v8624_v2 }
 0x4c8   : > { %10322 = shalt.err (!%p10319_p2)
}
 0x4c9   : > { %s10323_s26 = scalar_lea.hbm %s12039_s13, 4096  ;;  %s10327_s11 = scalar_lea.hbm %s12093_s5, 8192 }
 0x4ca   : > { %p10324_p13 = scmp.ne.s32.totalorder %s12039_s13, %s10323_s26  ;;  %p10328_p4 = scmp.lt.u32.totalorder %s12039_s13, %s12093_s5 }
 0x4cb   : > { %p10329_p5 = scmp.lt.u32.totalorder %s10327_s11, %s10323_s26  ;;  %p10331_p11 = scmp.lt.u32.totalorder %s10323_s26, %s12039_s13 }
 0x4cc   : > { %p10325_p6 = pnand %p10324_p13, %p12125_p0 }
 0x4cd   : > { %p10330_p8 = por %p10329_p5, %p10328_p4 }
 0x4ce   : > { %p10326_p10 = pneg %p10325_p6 }
 0x4cf   : > { %p10332_p1 = por %p10331_p11, %p10330_p8 }
 0x4d1   : > { %p10333_p3 = pnand %p10332_p1, %p10326_p10 }
 0x4d3   : > { %10336 = shalt.err (!%p10333_p3)
}
 0x4d4   : > { %s10390_s15 = smov 128   ;;  %s10391_s9 = smov 8  }
 0x4d5   : > { %9981 = dma.vmem_to_hbm [thread:$0]  (%p12125_p0), %s12041_s16, 4096, %s12039_s13, %s8660_s22, %s10390_s15, %s10390_s15, %s10391_s9  }
 0x4d6 PF: > { %s8688_s12 = sand.u32 1, %s10367_s18   ;;  %p12126_p7 = scmp.ne.s32.totalorder %s12098_s25, 0 }
 0x4d7   : > { %p12127_p9 = scmp.ge.s32.totalorder %s10379_s21, 2  ;;  %s8689_s17 = scalar_lea.sflag [#allocation6], %s8688_s12 }
 0x4d9   : > { %p9995_p12 = pnand %p12127_p9, %p12126_p7 }
 0x4db   : > { %10362 = dma.done.wait (!%p9995_p12), %s8689_s17, 4096  }
 0x4dc   : > { %10364 = vsyncadd (!%p9995_p12), %s8689_s17, 4294963200  ;;  %p19_p2 = scmp.ge.s32.totalorder %s10532_s14, 4   ;;  %s12128_s18 = smov %s10371_s19 }
 0x4dd   : > { %s12129_s19 = smov %s10375_s20  ;;  %s12130_s20 = smov %s10548_s27 }
 0x4de   : > { %s12131_s21 = smov %s10532_s14  ;;  %21 = sbr.rel (!%p19_p2) target bundleno = 6 (0x6), region = 96 }
 0x4e5   :  { %8694 = vsyncpa [#allocation5], 1 }
 0x4e6   :  { %8696 = vsyncpa [#allocation5 + $0x1], 1 }
 0x4e7   :  { %8697 = vsyncpa [#allocation8], 1 }
 0x4e8   :  { %8698 = vsyncpa [#allocation6], 1 }
 0x4e9   :  { %8700 = vsyncpa [#allocation6 + $0x1], 1 }

</bundles_post_ra>
